<compile_context>
chip_gen: v6e
topology: v6e:2x2x1
jax: 0.10.0
libtpu: 0.0.40
codegen_flags: <defaults>
</compile_context>

<pallas_src>
import functools
from math import ceil

import numpy as np
import jax
import jax.numpy as jnp
from jax.experimental import pallas as pl
from jax.experimental.pallas import tpu as pltpu

_MXU_DTYPE = jnp.bfloat16          # matmul operand dtype (accumulation stays f32)
_LN_EPS = 1e-5
_SQRT_HALF = 0.7071067811865476


# ----------------------------------------------------------------------------
# In-kernel elementwise helpers
# ----------------------------------------------------------------------------
def _erf_approx(x):
    # Abramowitz & Stegun 7.1.26 polynomial erf, |err| < 1.5e-7 (~f32 eps).
    # TODO(synk): lax.erf has no guaranteed Mosaic lowering; matches torch GELU(erf) to f32 precision.
    a1, a2, a3, a4, a5 = 0.254829592, -0.284496736, 1.421413741, -1.453152027, 1.061405429
    p = 0.3275911
    sign = jnp.where(x >= 0.0, 1.0, -1.0)
    ax = jnp.abs(x)
    t = 1.0 / (1.0 + p * ax)
    poly = ((((a5 * t + a4) * t + a3) * t + a2) * t + a1) * t
    return sign * (1.0 - poly * jnp.exp(-ax * ax))


def _gelu(x):
    # torch.nn.GELU() default (erf form)
    return 0.5 * x * (1.0 + _erf_approx(x * _SQRT_HALF))


def _layernorm(y, g, b, eps):
    mu = jnp.mean(y, axis=-1, keepdims=True)
    yc = y - mu
    var = jnp.mean(yc * yc, axis=-1, keepdims=True)
    return yc * jax.lax.rsqrt(var + eps) * g + b


# ----------------------------------------------------------------------------
# Tiling helpers
# ----------------------------------------------------------------------------
def _row_block(M, target=512):
    """Largest divisor of M that is a multiple of 8 and <= target, preferring >=2 grid steps."""
    if M <= 8 or M % 8 != 0:
        return M
    cap = min(target, max(8, (M // 2) // 8 * 8))
    best = 8
    for d in range(8, cap + 1, 8):
        if M % d == 0:
            best = d
    return best


# ----------------------------------------------------------------------------
# Pallas kernels
# ----------------------------------------------------------------------------
def _mha_kernel(q_ref, kv_ref, wq_ref, wkv_ref, wfc_ref, *rest,
                n_heads, d_k, inv_temp, fuse_ln, eps):
    """Fused MultiHeadAttention(q, kv, kv) (+ optional residual + LayerNorm epilogue)."""
    if fuse_ln:
        g_ref, b_ref, o_ref = rest
    else:
        (o_ref,) = rest
    BB, Lq, dm = q_ref.shape
    Lk = kv_ref.shape[1]

    q = q_ref[...]                                       # (BB, Lq, dm) f32
    kv = kv_ref[...]                                     # (BB, Lk, dm) f32

    # Q / stacked-KV projections (no bias), bf16 operands -> f32 accumulation.
    qp = jnp.dot(q.reshape(BB * Lq, dm).astype(_MXU_DTYPE), wq_ref[...],
                 preferred_element_type=jnp.float32).reshape(BB, Lq, n_heads * d_k)
    kvp = jnp.dot(kv.reshape(BB * Lk, dm).astype(_MXU_DTYPE), wkv_ref[...],
                  preferred_element_type=jnp.float32).reshape(BB, Lk, 2 * n_heads * d_k)

    # Per-head scaled-dot-product attention; the fc output projection is accumulated
    # head-by-head (avoids an in-kernel concatenate along the lane dim).
    y = jnp.zeros((BB * Lq, dm), jnp.float32)
    for h in range(n_heads):
        qh = (qp[:, :, h * d_k:(h + 1) * d_k] * inv_temp).astype(_MXU_DTYPE)
        kh = kvp[:, :, h * d_k:(h + 1) * d_k].astype(_MXU_DTYPE)
        vh = kvp[:, :, n_heads * d_k + h * d_k:
                       n_heads * d_k + (h + 1) * d_k].astype(_MXU_DTYPE)
        s = jnp.einsum('bqd,bkd->bqk', qh, kh, preferred_element_type=jnp.float32)
        m = jnp.max(s, axis=-1, keepdims=True)
        p = jnp.exp(s - m)
        p = p * pl.reciprocal(jnp.sum(p, axis=-1, keepdims=True), approx=True)
        oh = jnp.einsum('bqk,bkd->bqd', p.astype(_MXU_DTYPE), vh,
                        preferred_element_type=jnp.float32)
        y = y + jnp.dot(oh.reshape(BB * Lq, d_k).astype(_MXU_DTYPE),
                        wfc_ref[h * d_k:(h + 1) * d_k, :],
                        preferred_element_type=jnp.float32)
    y = y.reshape(BB, Lq, dm)

    if fuse_ln:
        y = _layernorm(y + q, g_ref[...], b_ref[...], eps)   # residual is the q input
    o_ref[...] = y


def _mlp_ln_kernel(x_ref, w1_ref, b1_ref, w2_ref, b2_ref, g_ref, b_ref, o_ref, *, eps):
    """LayerNorm(x + Linear(GELU(Linear(x)))) — the TSA feed-forward sub-block."""
    x = x_ref[...]                                              # (TM, dm) f32
    h = jnp.dot(x.astype(_MXU_DTYPE), w1_ref[...],
                preferred_element_type=jnp.float32) + b1_ref[...]
    h = _gelu(h)
    y = jnp.dot(h.astype(_MXU_DTYPE), w2_ref[...],
                preferred_element_type=jnp.float32) + b2_ref[...]
    o_ref[...] = _layernorm(x + y, g_ref[...], b_ref[...], eps)


def _embed_kernel(x_ref, w_ref, pos_ref, g_ref, b_ref, o_ref, *, eps):
    """value_embedding matmul + positional offsets + pre_norm LayerNorm."""
    x = x_ref[0]                                                # (R, seg_len)
    y = jnp.dot(x.astype(_MXU_DTYPE), w_ref[...],
                preferred_element_type=jnp.float32) + pos_ref[...]
    o_ref[0] = _layernorm(y, g_ref[...], b_ref[...], eps)


def _merge_kernel(x_ref, g_ref, gb_ref, w_ref, b_ref, o_ref, *, eps):
    """SegMerging: LayerNorm(win*dm) followed by Linear(win*dm -> dm)."""
    xn = _layernorm(x_ref[...], g_ref[...], gb_ref[...], eps)
    o_ref[...] = jnp.dot(xn.astype(_MXU_DTYPE), w_ref[...],
                         preferred_element_type=jnp.float32) + b_ref[...]


def _linear_kernel(x_ref, w_ref, b_ref, o_ref):
    o_ref[...] = jnp.dot(x_ref[...].astype(_MXU_DTYPE), w_ref[...],
                         preferred_element_type=jnp.float32) + b_ref[...]


# ----------------------------------------------------------------------------
# Pallas wrappers
# ----------------------------------------------------------------------------
def fused_mha(p, q, kv, n_heads, ln=None):
    """Fused MultiHeadAttention(q, kv, kv) with optional residual+LayerNorm epilogue.

    q : (R, Lq, dm) with R | Bstar; the q rows used for kv batch row j are q[j % R]
        (R == Bstar for ordinary attention, R == seg_num for the broadcast router).
    kv: (Bstar, Lk, dm)
    ln: None, or (gamma, beta) -> output = LayerNorm(q + attention(q, kv, kv)).
    """
    Bstar, Lk, dm = kv.shape
    R, Lq, _ = q.shape
    assert Bstar % R == 0
    assert ln is None or R == Bstar
    d_k = p["wq"].shape[1] // n_heads

    # batch-block size: a divisor of R, capped to keep the per-step VMEM footprint
    # small (v7x has only 64 MiB VMEM) and to leave >= 2 grid steps for megacore.
    per_item = (Lq + 2 * Lk) * dm * 4 * 4
    cap = max(1, min(16, (4 << 20) // max(1, per_item), R // 2 if R >= 2 else 1))
    BB = 1
    for d in range(cap, 0, -1):
        if R % d == 0:
            BB = d
            break
    nqb = R // BB

    in_specs = [
        pl.BlockSpec((BB, Lq, dm), lambda i: (i % nqb, 0, 0)),   # router broadcast friendly
        pl.BlockSpec((BB, Lk, dm), lambda i: (i, 0, 0)),
        pl.BlockSpec(p["wq"].shape, lambda i: (0, 0)),
        pl.BlockSpec(p["wkv"].shape, lambda i: (0, 0)),
        pl.BlockSpec(p["wfc"].shape, lambda i: (0, 0)),
    ]
    args = [q, kv, p["wq"], p["wkv"], p["wfc"]]
    if ln is not None:
        in_specs += [pl.BlockSpec((1, dm), lambda i: (0, 0)),
                     pl.BlockSpec((1, dm), lambda i: (0, 0))]
        args += [ln[0], ln[1]]

    return pl.pallas_call(
        functools.partial(_mha_kernel, n_heads=n_heads, d_k=d_k,
                          inv_temp=1.0 / (float(d_k) ** 0.5),
                          fuse_ln=ln is not None, eps=_LN_EPS),
        out_shape=jax.ShapeDtypeStruct((Bstar, Lq, dm), jnp.float32),
        grid=(Bstar // BB,),
        in_specs=in_specs,
        out_specs=pl.BlockSpec((BB, Lq, dm), lambda i: (i, 0, 0)),
        compiler_params=pltpu.CompilerParams(dimension_semantics=("parallel",)),
    )(*args)


def fused_mlp_ln(x2d, w1, b1, w2, b2, g, b):
    M, dm = x2d.shape
    dff = w1.shape[1]
    TM = _row_block(M)
    return pl.pallas_call(
        functools.partial(_mlp_ln_kernel, eps=_LN_EPS),
        out_shape=jax.ShapeDtypeStruct((M, dm), jnp.float32),
        grid=(M // TM,),
        in_specs=[pl.BlockSpec((TM, dm), lambda i: (i, 0)),
                  pl.BlockSpec((dm, dff), lambda i: (0, 0)),
                  pl.BlockSpec((1, dff), lambda i: (0, 0)),
                  pl.BlockSpec((dff, dm), lambda i: (0, 0)),
                  pl.BlockSpec((1, dm), lambda i: (0, 0)),
                  pl.BlockSpec((1, dm), lambda i: (0, 0)),
                  pl.BlockSpec((1, dm), lambda i: (0, 0))],
        out_specs=pl.BlockSpec((TM, dm), lambda i: (i, 0)),
        compiler_params=pltpu.CompilerParams(dimension_semantics=("parallel",)),
    )(x2d, w1, b1, w2, b2, g, b)


def pallas_embed(x3d, w, pos, g, b):
    B, R, K = x3d.shape
    dm = w.shape[1]
    return pl.pallas_call(
        functools.partial(_embed_kernel, eps=_LN_EPS),
        out_shape=jax.ShapeDtypeStruct((B, R, dm), jnp.float32),
        grid=(B,),
        in_specs=[pl.BlockSpec((1, R, K), lambda i: (i, 0, 0)),
                  pl.BlockSpec((K, dm), lambda i: (0, 0)),
                  pl.BlockSpec((R, dm), lambda i: (0, 0)),
                  pl.BlockSpec((1, dm), lambda i: (0, 0)),
                  pl.BlockSpec((1, dm), lambda i: (0, 0))],
        out_specs=pl.BlockSpec((1, R, dm), lambda i: (i, 0, 0)),
        compiler_params=pltpu.CompilerParams(dimension_semantics=("parallel",)),
    )(x3d, w, pos, g, b)


def pallas_merge(x2d, norm_g, norm_b, w, b):
    M, K = x2d.shape
    N = w.shape[1]
    TM = _row_block(M)
    return pl.pallas_call(
        functools.partial(_merge_kernel, eps=_LN_EPS),
        out_shape=jax.ShapeDtypeStruct((M, N), jnp.float32),
        grid=(M // TM,),
        in_specs=[pl.BlockSpec((TM, K), lambda i: (i, 0)),
                  pl.BlockSpec((1, K), lambda i: (0, 0)),
                  pl.BlockSpec((1, K), lambda i: (0, 0)),
                  pl.BlockSpec((K, N), lambda i: (0, 0)),
                  pl.BlockSpec((1, N), lambda i: (0, 0))],
        out_specs=pl.BlockSpec((TM, N), lambda i: (i, 0)),
        compiler_params=pltpu.CompilerParams(dimension_semantics=("parallel",)),
    )(x2d, norm_g, norm_b, w, b)


def pallas_linear(x2d, w, b):
    M, K = x2d.shape
    N = w.shape[1]
    TM = _row_block(M)
    return pl.pallas_call(
        _linear_kernel,
        out_shape=jax.ShapeDtypeStruct((M, N), jnp.float32),
        grid=(M // TM,),
        in_specs=[pl.BlockSpec((TM, K), lambda i: (i, 0)),
                  pl.BlockSpec((K, N), lambda i: (0, 0)),
                  pl.BlockSpec((1, N), lambda i: (0, 0))],
        out_specs=pl.BlockSpec((TM, N), lambda i: (i, 0)),
        compiler_params=pltpu.CompilerParams(dimension_semantics=("parallel",)),
    )(x2d, w, b)


# ----------------------------------------------------------------------------
# Model glue (reshapes / parameter plumbing in plain JAX)
# ----------------------------------------------------------------------------
def seg_merging(p, x, win_size):
    # SegMerging: interleave win_size consecutive segments along feature dim, LN, Linear.
    B, D, L, dm = x.shape
    pad_num = L % win_size
    if pad_num != 0:
        pad_num = win_size - pad_num
        x = jnp.concatenate([x, x[:, :, -pad_num:, :]], axis=2)
        L = L + pad_num
    xm = x.reshape(B, D, L // win_size, win_size * dm).reshape(-1, win_size * dm)
    out = pallas_merge(xm, p["norm_g"], p["norm_b"], p["lin_w"], p["lin_b"])
    return out.reshape(B, D, L // win_size, dm)


def tsa_layer(p, x, n_heads):
    # TwoStageAttentionLayer.  x: (B, D, L, d_model).  dropout(p=0) == identity.
    B, D, L, dm = x.shape
    # --- cross-time stage ---
    time_in = x.reshape(B * D, L, dm)
    dim_in = fused_mha(p["time_attention"], time_in, time_in, n_heads,
                       ln=(p["norm1_g"], p["norm1_b"]))               # LN1(x + attn(x))
    dim_in = fused_mlp_ln(dim_in.reshape(-1, dm),
                          p["mlp1_w1"], p["mlp1_b1"], p["mlp1_w2"], p["mlp1_b2"],
                          p["norm2_g"], p["norm2_b"]).reshape(B, D, L, dm)
    # --- cross-dimension stage (router attention) ---
    # TODO(synk): the time<->dim stage relayout stays in XLA; expressing it via BlockSpecs
    # would need sub-8 sublane blocks, which violates the (8,128) block rule.
    dim_send = dim_in.transpose(0, 2, 1, 3).reshape(B * L, D, dm)
    dim_buffer = fused_mha(p["dim_sender"], p["router"], dim_send, n_heads)  # router bcast via index_map
    dim_enc = fused_mha(p["dim_receiver"], dim_send, dim_buffer, n_heads,
                        ln=(p["norm3_g"], p["norm3_b"]))              # LN3(dim_send + attn)
    dim_enc = fused_mlp_ln(dim_enc.reshape(-1, dm),
                           p["mlp2_w1"], p["mlp2_b1"], p["mlp2_w2"], p["mlp2_b2"],
                           p["norm4_g"], p["norm4_b"]).reshape(B, L, D, dm)
    return dim_enc.transpose(0, 2, 1, 3)


def crossformer_forward(params, cfg, X, missing_mask, X_ori, indicating_mask):
    B, T, D = X.shape
    dm = cfg["d_model"]
    seg_len = cfg["seg_len"]
    win_size = cfg["win_size"]
    n_heads = cfg["n_heads"]
    pad_in_len = ceil(1.0 * T / seg_len) * seg_len
    S = pad_in_len // seg_len

    # --- PatchEmbedding(X.permute(0,2,1)) + pos embeddings + pre_norm (one fused kernel) ---
    x = jnp.transpose(X, (0, 2, 1))                            # (B, D, T)
    pad = pad_in_len - T
    if pad > 0:                                                # ReplicationPad1d((0, pad))
        x = jnp.concatenate([x, jnp.repeat(x[:, :, -1:], pad, axis=-1)], axis=-1)
    x = x.reshape(B, D * S, seg_len)
    x_enc = pallas_embed(x, params["w_ve"], params["pos_total"],
                         params["pre_norm_g"], params["pre_norm_b"])
    x_enc = x_enc.reshape(B, D, S, dm)

    # --- encoder (list of ScaleBlocks) ---
    xcur = x_enc
    for lp in params["layers"]:
        if lp["merge"] is not None:
            xcur = seg_merging(lp["merge"], xcur, win_size)
        xcur = tsa_layer(lp["tsa"], xcur, n_heads)
    enc_last = xcur                                            # (B, D, L_out, d_model)

    # --- FlattenHead on enc_out[-1].permute(0, 1, 3, 2) ---
    L_out = enc_last.shape[2]
    flat = jnp.transpose(enc_last, (0, 1, 3, 2)).reshape(B * D, dm * L_out)
    dec = pallas_linear(flat, params["head_w"], params["head_b"]).reshape(B, D, T)
    dec_out = jnp.transpose(dec, (0, 2, 1))                    # (B, T, D)

    # Imputation + masked-MSE loss: trivially-fused elementwise XLA ops (last dim D << 128,
    # so a Pallas kernel would only add masked-store / launch overhead).
    imputed = missing_mask * X + (1.0 - missing_mask) * dec_out
    loss = jnp.sum(jnp.square(dec_out - X_ori) * indicating_mask) / (jnp.sum(indicating_mask) + 1e-12)
    return imputed, loss


# ----------------------------------------------------------------------------
# Deterministic parameter init (weights pre-transposed to (in, out), stored in bf16)
# ----------------------------------------------------------------------------
def _normal(key, shape, scale=0.02, dtype=jnp.float32):
    return (scale * jax.random.normal(key, shape, dtype=jnp.float32)).astype(dtype)


def sinusoid_table(n_pos, d_hid):
    pos = np.arange(n_pos)[:, None].astype(np.float64)
    i = np.arange(d_hid)[None, :]
    angle = pos / np.power(10000.0, 2.0 * (i // 2) / d_hid)
    table = np.zeros((n_pos, d_hid))
    table[:, 0::2] = np.sin(angle[:, 0::2])
    table[:, 1::2] = np.cos(angle[:, 1::2])
    return jnp.asarray(table, jnp.float32)


def init_mha_params(key, d_model, n_heads):
    d_k = d_model // n_heads
    k1, k2, k3, k4 = jax.random.split(key, 4)
    wk = _normal(k2, (d_model, n_heads * d_k))
    wv = _normal(k3, (d_model, n_heads * d_k))
    return dict(wq=_normal(k1, (d_model, n_heads * d_k), dtype=_MXU_DTYPE),
                wkv=jnp.concatenate([wk, wv], axis=1).astype(_MXU_DTYPE),
                wfc=_normal(k4, (n_heads * d_k, d_model), dtype=_MXU_DTYPE))


def init_tsa_params(key, seg_num, factor, d_model, n_heads, d_ff):
    ks = jax.random.split(key, 8)
    ones = lambda n: jnp.ones((1, n), jnp.float32)
    zeros = lambda n: jnp.zeros((1, n), jnp.float32)
    return dict(
        time_attention=init_mha_params(ks[0], d_model, n_heads),
        dim_sender=init_mha_params(ks[1], d_model, n_heads),
        dim_receiver=init_mha_params(ks[2], d_model, n_heads),
        router=jax.random.normal(ks[3], (seg_num, factor, d_model), dtype=jnp.float32),
        norm1_g=ones(d_model), norm1_b=zeros(d_model),
        norm2_g=ones(d_model), norm2_b=zeros(d_model),
        norm3_g=ones(d_model), norm3_b=zeros(d_model),
        norm4_g=ones(d_model), norm4_b=zeros(d_model),
        mlp1_w1=_normal(ks[4], (d_model, d_ff), dtype=_MXU_DTYPE), mlp1_b1=zeros(d_ff),
        mlp1_w2=_normal(ks[5], (d_ff, d_model), dtype=_MXU_DTYPE), mlp1_b2=zeros(d_model),
        mlp2_w1=_normal(ks[6], (d_model, d_ff), dtype=_MXU_DTYPE), mlp2_b1=zeros(d_ff),
        mlp2_w2=_normal(ks[7], (d_ff, d_model), dtype=_MXU_DTYPE), mlp2_b2=zeros(d_model),
    )


def init_params(key, cfg):
    n_steps, n_features = cfg["n_steps"], cfg["n_features"]
    d_model, d_ffn = cfg["d_model"], cfg["d_ffn"]
    n_layers, n_heads = cfg["n_layers"], cfg["n_heads"]
    seg_len, win_size, factor = cfg["seg_len"], cfg["win_size"], cfg["factor"]

    pad_in_len = ceil(1.0 * n_steps / seg_len) * seg_len
    in_seg_num = pad_in_len // seg_len
    out_seg_num = ceil(in_seg_num / win_size ** (n_layers - 1))
    head_nf = d_model * out_seg_num

    keys = jax.random.split(key, 3 + n_layers)
    pos_table = sinusoid_table(in_seg_num, d_model)                      # (S, dm)
    enc_pos = jax.random.normal(keys[1], (1, n_features, in_seg_num, d_model),
                                dtype=jnp.float32)
    # combined (sinusoid + learned) positional offsets, flattened to (D*S, dm)
    pos_total = (pos_table[None, :, :] + enc_pos[0]).reshape(n_features * in_seg_num, d_model)

    params = dict(
        w_ve=_normal(keys[0], (seg_len, d_model), dtype=_MXU_DTYPE),     # value_embedding (no bias)
        pos_total=pos_total,
        pre_norm_g=jnp.ones((1, d_model), jnp.float32),
        pre_norm_b=jnp.zeros((1, d_model), jnp.float32),
        head_w=_normal(keys[2], (head_nf, n_steps), dtype=_MXU_DTYPE),
        head_b=jnp.zeros((1, n_steps), jnp.float32),
        layers=[],
    )
    for layer in range(n_layers):
        k_merge, k_tsa, k_lw = jax.random.split(keys[3 + layer], 3)
        win = 1 if layer == 0 else win_size
        seg_num = in_seg_num if layer == 0 else ceil(in_seg_num / win_size ** layer)
        merge = None
        if win > 1:
            merge = dict(norm_g=jnp.ones((1, win * d_model), jnp.float32),
                         norm_b=jnp.zeros((1, win * d_model), jnp.float32),
                         lin_w=_normal(k_lw, (win * d_model, d_model), dtype=_MXU_DTYPE),
                         lin_b=jnp.zeros((1, d_model), jnp.float32))
        params["layers"].append(dict(
            merge=merge,
            tsa=init_tsa_params(k_tsa, seg_num, factor, d_model, n_heads, d_ffn),
        ))
    return params


# ----------------------------------------------------------------------------
if __name__ == "__main__":
    cfg = dict(n_steps=16, n_features=4, n_layers=2, n_heads=2, d_model=32,
               d_ffn=64, factor=2, seg_len=4, win_size=2, dropout=0.0)

    key = jax.random.PRNGKey(0)
    kp, kx, km, ko, ki = jax.random.split(key, 5)
    params = init_params(kp, cfg)

    B = 2
    shape = (B, cfg["n_steps"], cfg["n_features"])
    X = jax.random.normal(kx, shape, dtype=jnp.float32)
    missing_mask = (jax.random.uniform(km, shape) > 0.2).astype(jnp.float32)
    X_ori = X + 0.1 * jax.random.normal(ko, shape, dtype=jnp.float32)
    indicating_mask = (jax.random.uniform(ki, shape) > 0.5).astype(jnp.float32)

    fwd = jax.jit(lambda x, m, xo, im: crossformer_forward(params, cfg, x, m, xo, im))
    imputed_data, loss = fwd(X, missing_mask, X_ori, indicating_mask)
    jax.block_until_ready((imputed_data, loss))

    assert imputed_data.shape == shape
    assert imputed_data.dtype == jnp.float32
    assert loss.shape == ()
    assert bool(jnp.all(jnp.isfinite(imputed_data))) and bool(jnp.isfinite(loss))
    print("KERNEL_OK")
</pallas_src>

<mosaic_0001>
module attributes {stable_mosaic.version = 11 : i64} {
  func.func @_embed_kernel(%arg0: i32, %arg1: memref<1x16x4xf32, #tpu.memory_space<vmem>>, %arg2: memref<4x32xbf16, #tpu.memory_space<vmem>>, %arg3: memref<16x32xf32, #tpu.memory_space<vmem>>, %arg4: memref<1x32xf32, #tpu.memory_space<vmem>>, %arg5: memref<1x32xf32, #tpu.memory_space<vmem>>, %arg6: memref<1x16x32xf32, #tpu.memory_space<vmem>>) attributes {dimension_semantics = [#tpu.dimension_semantics<parallel>], iteration_bounds = array<i64: 2>, scalar_prefetch = 0 : i64, scratch_operands = 0 : i64, tpu.core_type = #tpu.core_type<tc>, window_params = [{transform_indices = @transform_0, window_bounds = array<i64: 1, 16, 4>}, {pipeline_mode = #tpu.pipeline_mode<synchronous>, transform_indices = @transform_1, window_bounds = array<i64: 4, 32>}, {pipeline_mode = #tpu.pipeline_mode<synchronous>, transform_indices = @transform_2, window_bounds = array<i64: 16, 32>}, {pipeline_mode = #tpu.pipeline_mode<synchronous>, transform_indices = @transform_3, window_bounds = array<i64: 1, 32>}, {pipeline_mode = #tpu.pipeline_mode<synchronous>, transform_indices = @transform_4, window_bounds = array<i64: 1, 32>}, {transform_indices = @transform_5, window_bounds = array<i64: 1, 16, 32>}]} {
    %c0 = arith.constant 0 : index
    %c0_0 = arith.constant 0 : index
    %c0_1 = arith.constant 0 : index
    %0 = vector.load %arg1[%c0, %c0_0, %c0_1] : memref<1x16x4xf32, #tpu.memory_space<vmem>>, vector<1x16x4xf32>
    %1 = vector.shape_cast %0 : vector<1x16x4xf32> to vector<16x4xf32>
    %2 = arith.truncf %1 : vector<16x4xf32> to vector<16x4xbf16>
    %c0_2 = arith.constant 0 : index
    %c0_3 = arith.constant 0 : index
    %3 = vector.load %arg2[%c0_2, %c0_3] : memref<4x32xbf16, #tpu.memory_space<vmem>>, vector<4x32xbf16>
    %cst = arith.constant dense<0.000000e+00> : vector<16x32xf32>
    %4 = tpu.matmul %2, %3, %cst {dimension_numbers = #tpu.dot_dimension_numbers<[1], [0], [0], [1], [0, 0, 1, 1], [], []>} : vector<16x4xbf16>, vector<4x32xbf16>, vector<16x32xf32> -> vector<16x32xf32>
    %c0_4 = arith.constant 0 : index
    %c0_5 = arith.constant 0 : index
    %5 = vector.load %arg3[%c0_4, %c0_5] : memref<16x32xf32, #tpu.memory_space<vmem>>, vector<16x32xf32>
    %6 = arith.addf %4, %5 : vector<16x32xf32>
    %c0_6 = arith.constant 0 : index
    %c0_7 = arith.constant 0 : index
    %7 = vector.load %arg4[%c0_6, %c0_7] : memref<1x32xf32, #tpu.memory_space<vmem>>, vector<1x32xf32>
    %c0_8 = arith.constant 0 : index
    %c0_9 = arith.constant 0 : index
    %8 = vector.load %arg5[%c0_8, %c0_9] : memref<1x32xf32, #tpu.memory_space<vmem>>, vector<1x32xf32>
    %cst_10 = arith.constant dense<0.000000e+00> : vector<16xf32>
    %9 = vector.multi_reduction <add>, %6, %cst_10 [1] : vector<16x32xf32> to vector<16xf32>
    %10 = vector.shape_cast %9 : vector<16xf32> to vector<16x1xf32>
    %cst_11 = arith.constant 3.200000e+01 : f32
    %11 = vector.broadcast %cst_11 : f32 to vector<16x1xf32>
    %12 = arith.divf %10, %11 : vector<16x1xf32>
    %13 = vector.broadcast %12 : vector<16x1xf32> to vector<16x32xf32>
    %14 = arith.subf %6, %13 : vector<16x32xf32>
    %15 = arith.mulf %14, %14 : vector<16x32xf32>
    %cst_12 = arith.constant dense<0.000000e+00> : vector<16xf32>
    %16 = vector.multi_reduction <add>, %15, %cst_12 [1] : vector<16x32xf32> to vector<16xf32>
    %17 = vector.shape_cast %16 : vector<16xf32> to vector<16x1xf32>
    %cst_13 = arith.constant 3.200000e+01 : f32
    %18 = vector.broadcast %cst_13 : f32 to vector<16x1xf32>
    %19 = arith.divf %17, %18 : vector<16x1xf32>
    %cst_14 = arith.constant 9.99999974E-6 : f32
    %20 = vector.broadcast %cst_14 : f32 to vector<16x1xf32>
    %21 = arith.addf %19, %20 : vector<16x1xf32>
    %22 = math.rsqrt %21 : vector<16x1xf32>
    %23 = vector.broadcast %22 : vector<16x1xf32> to vector<16x32xf32>
    %24 = arith.mulf %14, %23 : vector<16x32xf32>
    %25 = vector.broadcast %7 : vector<1x32xf32> to vector<16x32xf32>
    %26 = arith.mulf %24, %25 : vector<16x32xf32>
    %27 = vector.broadcast %8 : vector<1x32xf32> to vector<16x32xf32>
    %28 = arith.addf %26, %27 : vector<16x32xf32>
    %c0_15 = arith.constant 0 : index
    %c0_16 = arith.constant 0 : index
    %c0_17 = arith.constant 0 : index
    %29 = vector.load %arg6[%c0_15, %c0_16, %c0_17] : memref<1x16x32xf32, #tpu.memory_space<vmem>>, vector<1x16x32xf32>
    %30 = vector.shape_cast %29 : vector<1x16x32xf32> to vector<16x32xf32>
    %31 = vector.shape_cast %28 : vector<16x32xf32> to vector<1x16x32xf32>
    tpu.vector_store %arg6[%c0_15, %c0_16, %c0_17], %31 {strides = array<i32>} : memref<1x16x32xf32, #tpu.memory_space<vmem>>, vector<1x16x32xf32>,
    return
  }
  func.func @transform_0(%arg0: i32) -> (i32, i32, i32) {
    %c0_i32 = arith.constant 0 : i32
    %c0_i32_0 = arith.constant 0 : i32
    %c0_i32_1 = arith.constant 0 : i32
    return %arg0, %c0_i32, %c0_i32_0 : i32, i32, i32
  }
  func.func @transform_1(%arg0: i32) -> (i32, i32) {
    %c0_i32 = arith.constant 0 : i32
    %c0_i32_0 = arith.constant 0 : i32
    %c0_i32_1 = arith.constant 0 : i32
    return %c0_i32, %c0_i32_0 : i32, i32
  }
  func.func @transform_2(%arg0: i32) -> (i32, i32) {
    %c0_i32 = arith.constant 0 : i32
    %c0_i32_0 = arith.constant 0 : i32
    %c0_i32_1 = arith.constant 0 : i32
    return %c0_i32, %c0_i32_0 : i32, i32
  }
  func.func @transform_3(%arg0: i32) -> (i32, i32) {
    %c0_i32 = arith.constant 0 : i32
    %c0_i32_0 = arith.constant 0 : i32
    %c0_i32_1 = arith.constant 0 : i32
    return %c0_i32, %c0_i32_0 : i32, i32
  }
  func.func @transform_4(%arg0: i32) -> (i32, i32) {
    %c0_i32 = arith.constant 0 : i32
    %c0_i32_0 = arith.constant 0 : i32
    %c0_i32_1 = arith.constant 0 : i32
    return %c0_i32, %c0_i32_0 : i32, i32
  }
  func.func @transform_5(%arg0: i32) -> (i32, i32, i32) {
    %c0_i32 = arith.constant 0 : i32
    %c0_i32_0 = arith.constant 0 : i32
    %c0_i32_1 = arith.constant 0 : i32
    return %arg0, %c0_i32, %c0_i32_0 : i32, i32, i32
  }
}

module attributes {stable_mosaic.version = 11 : i64} {
  func.func @_mha_kernel(%arg0: i32, %arg1: memref<4x4x32xf32, #tpu.memory_space<vmem>>, %arg2: memref<4x4x32xf32, #tpu.memory_space<vmem>>, %arg3: memref<32x32xbf16, #tpu.memory_space<vmem>>, %arg4: memref<32x64xbf16, #tpu.memory_space<vmem>>, %arg5: memref<32x32xbf16, #tpu.memory_space<vmem>>, %arg6: memref<1x32xf32, #tpu.memory_space<vmem>>, %arg7: memref<1x32xf32, #tpu.memory_space<vmem>>, %arg8: memref<4x4x32xf32, #tpu.memory_space<vmem>>) attributes {dimension_semantics = [#tpu.dimension_semantics<parallel>], iteration_bounds = array<i64: 2>, scalar_prefetch = 0 : i64, scratch_operands = 0 : i64, tpu.core_type = #tpu.core_type<tc>, window_params = [{transform_indices = @transform_0, window_bounds = array<i64: 4, 4, 32>}, {transform_indices = @transform_1, window_bounds = array<i64: 4, 4, 32>}, {pipeline_mode = #tpu.pipeline_mode<synchronous>, transform_indices = @transform_2, window_bounds = array<i64: 32, 32>}, {pipeline_mode = #tpu.pipeline_mode<synchronous>, transform_indices = @transform_3, window_bounds = array<i64: 32, 64>}, {pipeline_mode = #tpu.pipeline_mode<synchronous>, transform_indices = @transform_4, window_bounds = array<i64: 32, 32>}, {pipeline_mode = #tpu.pipeline_mode<synchronous>, transform_indices = @transform_5, window_bounds = array<i64: 1, 32>}, {pipeline_mode = #tpu.pipeline_mode<synchronous>, transform_indices = @transform_6, window_bounds = array<i64: 1, 32>}, {transform_indices = @transform_7, window_bounds = array<i64: 4, 4, 32>}]} {
    %c0 = arith.constant 0 : index
    %c0_0 = arith.constant 0 : index
    %c0_1 = arith.constant 0 : index
    %0 = vector.load %arg1[%c0, %c0_0, %c0_1] : memref<4x4x32xf32, #tpu.memory_space<vmem>>, vector<4x4x32xf32>
    %c0_2 = arith.constant 0 : index
    %c0_3 = arith.constant 0 : index
    %c0_4 = arith.constant 0 : index
    %1 = vector.load %arg2[%c0_2, %c0_3, %c0_4] : memref<4x4x32xf32, #tpu.memory_space<vmem>>, vector<4x4x32xf32>
    %2 = vector.shape_cast %0 : vector<4x4x32xf32> to vector<16x32xf32>
    %3 = arith.truncf %2 : vector<16x32xf32> to vector<16x32xbf16>
    %c0_5 = arith.constant 0 : index
    %c0_6 = arith.constant 0 : index
    %4 = vector.load %arg3[%c0_5, %c0_6] : memref<32x32xbf16, #tpu.memory_space<vmem>>, vector<32x32xbf16>
    %cst = arith.constant dense<0.000000e+00> : vector<16x32xf32>
    %5 = tpu.matmul %3, %4, %cst {dimension_numbers = #tpu.dot_dimension_numbers<[1], [0], [0], [1], [0, 0, 1, 1], [], []>} : vector<16x32xbf16>, vector<32x32xbf16>, vector<16x32xf32> -> vector<16x32xf32>
    %6 = vector.shape_cast %5 : vector<16x32xf32> to vector<4x4x32xf32>
    %7 = vector.shape_cast %1 : vector<4x4x32xf32> to vector<16x32xf32>
    %8 = arith.truncf %7 : vector<16x32xf32> to vector<16x32xbf16>
    %c0_7 = arith.constant 0 : index
    %c0_8 = arith.constant 0 : index
    %9 = vector.load %arg4[%c0_7, %c0_8] : memref<32x64xbf16, #tpu.memory_space<vmem>>, vector<32x64xbf16>
    %cst_9 = arith.constant dense<0.000000e+00> : vector<16x64xf32>
    %10 = tpu.matmul %8, %9, %cst_9 {dimension_numbers = #tpu.dot_dimension_numbers<[1], [0], [0], [1], [0, 0, 1, 1], [], []>} : vector<16x32xbf16>, vector<32x64xbf16>, vector<16x64xf32> -> vector<16x64xf32>
    %11 = vector.shape_cast %10 : vector<16x64xf32> to vector<4x4x64xf32>
    %cst_10 = arith.constant 0.000000e+00 : f32
    %12 = vector.broadcast %cst_10 : f32 to vector<16x32xf32>
    %13 = vector.extract_strided_slice %6 {offsets = [0, 0, 0], sizes = [4, 4, 16], strides = [1, 1, 1]} : vector<4x4x32xf32> to vector<4x4x16xf32>
    %cst_11 = arith.constant 2.500000e-01 : f32
    %14 = vector.broadcast %cst_11 : f32 to vector<4x4x16xf32>
    %15 = arith.mulf %13, %14 : vector<4x4x16xf32>
    %16 = arith.truncf %15 : vector<4x4x16xf32> to vector<4x4x16xbf16>
    %17 = vector.extract_strided_slice %11 {offsets = [0, 0, 0], sizes = [4, 4, 16], strides = [1, 1, 1]} : vector<4x4x64xf32> to vector<4x4x16xf32>
    %18 = arith.truncf %17 : vector<4x4x16xf32> to vector<4x4x16xbf16>
    %19 = vector.extract_strided_slice %11 {offsets = [0, 0, 32], sizes = [4, 4, 16], strides = [1, 1, 1]} : vector<4x4x64xf32> to vector<4x4x16xf32>
    %20 = arith.truncf %19 : vector<4x4x16xf32> to vector<4x4x16xbf16>
    "tpu.trace_start"() <{level = 10 : i32, message = "bqd,bkd->bqk"}> : () -> ()
    %cst_12 = arith.constant dense<0.000000e+00> : vector<4x4x4xf32>
    %21 = tpu.matmul %16, %18, %cst_12 {dimension_numbers = #tpu.dot_dimension_numbers<[2], [2], [1], [1], [0, 0, 0, 1, 1, 1], [0], [0]>} : vector<4x4x16xbf16>, vector<4x4x16xbf16>, vector<4x4x4xf32> -> vector<4x4x4xf32>
    "tpu.trace_stop"() : () -> ()
    %cst_13 = arith.constant dense<0xFF800000> : vector<4x4xf32>
    %22 = vector.multi_reduction <maximumf>, %21, %cst_13 [2] : vector<4x4x4xf32> to vector<4x4xf32>
    %23 = vector.shape_cast %22 : vector<4x4xf32> to vector<4x4x1xf32>
    %24 = vector.broadcast %23 : vector<4x4x1xf32> to vector<4x4x4xf32>
    %25 = arith.subf %21, %24 : vector<4x4x4xf32>
    %26 = math.exp %25 : vector<4x4x4xf32>
    %cst_14 = arith.constant dense<0.000000e+00> : vector<4x4xf32>
    %27 = vector.multi_reduction <add>, %26, %cst_14 [2] : vector<4x4x4xf32> to vector<4x4xf32>
    %28 = vector.shape_cast %27 : vector<4x4xf32> to vector<4x4x1xf32>
    %29 = tpu.reciprocal %28 {approx = true} : vector<4x4x1xf32> -> vector<4x4x1xf32>
    %30 = vector.broadcast %29 : vector<4x4x1xf32> to vector<4x4x4xf32>
    %31 = arith.mulf %26, %30 : vector<4x4x4xf32>
    %32 = arith.truncf %31 : vector<4x4x4xf32> to vector<4x4x4xbf16>
    "tpu.trace_start"() <{level = 10 : i32, message = "bqk,bkd->bqd"}> : () -> ()
    %cst_15 = arith.constant dense<0.000000e+00> : vector<4x4x16xf32>
    %33 = tpu.matmul %32, %20, %cst_15 {dimension_numbers = #tpu.dot_dimension_numbers<[2], [1], [1], [2], [0, 0, 0, 1, 1, 2], [0], [0]>} : vector<4x4x4xbf16>, vector<4x4x16xbf16>, vector<4x4x16xf32> -> vector<4x4x16xf32>
    "tpu.trace_stop"() : () -> ()
    %34 = vector.shape_cast %33 : vector<4x4x16xf32> to vector<16x16xf32>
    %35 = arith.truncf %34 : vector<16x16xf32> to vector<16x16xbf16>
    %c0_16 = arith.constant 0 : index
    %c0_17 = arith.constant 0 : index
    %36 = vector.load %arg5[%c0_16, %c0_17] : memref<32x32xbf16, #tpu.memory_space<vmem>>, vector<16x32xbf16>
    %cst_18 = arith.constant dense<0.000000e+00> : vector<16x32xf32>
    %37 = tpu.matmul %35, %36, %cst_18 {dimension_numbers = #tpu.dot_dimension_numbers<[1], [0], [0], [1], [0, 0, 1, 1], [], []>} : vector<16x16xbf16>, vector<16x32xbf16>, vector<16x32xf32> -> vector<16x32xf32>
    %38 = arith.addf %12, %37 : vector<16x32xf32>
    %39 = vector.extract_strided_slice %6 {offsets = [0, 0, 16], sizes = [4, 4, 16], strides = [1, 1, 1]} : vector<4x4x32xf32> to vector<4x4x16xf32>
    %cst_19 = arith.constant 2.500000e-01 : f32
    %40 = vector.broadcast %cst_19 : f32 to vector<4x4x16xf32>
    %41 = arith.mulf %39, %40 : vector<4x4x16xf32>
    %42 = arith.truncf %41 : vector<4x4x16xf32> to vector<4x4x16xbf16>
    %43 = vector.extract_strided_slice %11 {offsets = [0, 0, 16], sizes = [4, 4, 16], strides = [1, 1, 1]} : vector<4x4x64xf32> to vector<4x4x16xf32>
    %44 = arith.truncf %43 : vector<4x4x16xf32> to vector<4x4x16xbf16>
    %45 = vector.extract_strided_slice %11 {offsets = [0, 0, 48], sizes = [4, 4, 16], strides = [1, 1, 1]} : vector<4x4x64xf32> to vector<4x4x16xf32>
    %46 = arith.truncf %45 : vector<4x4x16xf32> to vector<4x4x16xbf16>
    "tpu.trace_start"() <{level = 10 : i32, message = "bqd,bkd->bqk"}> : () -> ()
    %cst_20 = arith.constant dense<0.000000e+00> : vector<4x4x4xf32>
    %47 = tpu.matmul %42, %44, %cst_20 {dimension_numbers = #tpu.dot_dimension_numbers<[2], [2], [1], [1], [0, 0, 0, 1, 1, 1], [0], [0]>} : vector<4x4x16xbf16>, vector<4x4x16xbf16>, vector<4x4x4xf32> -> vector<4x4x4xf32>
    "tpu.trace_stop"() : () -> ()
    %cst_21 = arith.constant dense<0xFF800000> : vector<4x4xf32>
    %48 = vector.multi_reduction <maximumf>, %47, %cst_21 [2] : vector<4x4x4xf32> to vector<4x4xf32>
    %49 = vector.shape_cast %48 : vector<4x4xf32> to vector<4x4x1xf32>
    %50 = vector.broadcast %49 : vector<4x4x1xf32> to vector<4x4x4xf32>
    %51 = arith.subf %47, %50 : vector<4x4x4xf32>
    %52 = math.exp %51 : vector<4x4x4xf32>
    %cst_22 = arith.constant dense<0.000000e+00> : vector<4x4xf32>
    %53 = vector.multi_reduction <add>, %52, %cst_22 [2] : vector<4x4x4xf32> to vector<4x4xf32>
    %54 = vector.shape_cast %53 : vector<4x4xf32> to vector<4x4x1xf32>
    %55 = tpu.reciprocal %54 {approx = true} : vector<4x4x1xf32> -> vector<4x4x1xf32>
    %56 = vector.broadcast %55 : vector<4x4x1xf32> to vector<4x4x4xf32>
    %57 = arith.mulf %52, %56 : vector<4x4x4xf32>
    %58 = arith.truncf %57 : vector<4x4x4xf32> to vector<4x4x4xbf16>
    "tpu.trace_start"() <{level = 10 : i32, message = "bqk,bkd->bqd"}> : () -> ()
    %cst_23 = arith.constant dense<0.000000e+00> : vector<4x4x16xf32>
    %59 = tpu.matmul %58, %46, %cst_23 {dimension_numbers = #tpu.dot_dimension_numbers<[2], [1], [1], [2], [0, 0, 0, 1, 1, 2], [0], [0]>} : vector<4x4x4xbf16>, vector<4x4x16xbf16>, vector<4x4x16xf32> -> vector<4x4x16xf32>
    "tpu.trace_stop"() : () -> ()
    %60 = vector.shape_cast %59 : vector<4x4x16xf32> to vector<16x16xf32>
    %61 = arith.truncf %60 : vector<16x16xf32> to vector<16x16xbf16>
    %c16 = arith.constant 16 : index
    %c0_24 = arith.constant 0 : index
    %62 = vector.load %arg5[%c16, %c0_24] : memref<32x32xbf16, #tpu.memory_space<vmem>>, vector<16x32xbf16>
    %cst_25 = arith.constant dense<0.000000e+00> : vector<16x32xf32>
    %63 = tpu.matmul %61, %62, %cst_25 {dimension_numbers = #tpu.dot_dimension_numbers<[1], [0], [0], [1], [0, 0, 1, 1], [], []>} : vector<16x16xbf16>, vector<16x32xbf16>, vector<16x32xf32> -> vector<16x32xf32>
    %64 = arith.addf %38, %63 : vector<16x32xf32>
    %65 = vector.shape_cast %64 : vector<16x32xf32> to vector<4x4x32xf32>
    %66 = arith.addf %65, %0 : vector<4x4x32xf32>
    %c0_26 = arith.constant 0 : index
    %c0_27 = arith.constant 0 : index
    %67 = vector.load %arg6[%c0_26, %c0_27] : memref<1x32xf32, #tpu.memory_space<vmem>>, vector<1x32xf32>
    %c0_28 = arith.constant 0 : index
    %c0_29 = arith.constant 0 : index
    %68 = vector.load %arg7[%c0_28, %c0_29] : memref<1x32xf32, #tpu.memory_space<vmem>>, vector<1x32xf32>
    %cst_30 = arith.constant dense<0.000000e+00> : vector<4x4xf32>
    %69 = vector.multi_reduction <add>, %66, %cst_30 [2] : vector<4x4x32xf32> to vector<4x4xf32>
    %70 = vector.shape_cast %69 : vector<4x4xf32> to vector<4x4x1xf32>
    %cst_31 = arith.constant 3.200000e+01 : f32
    %71 = vector.broadcast %cst_31 : f32 to vector<4x4x1xf32>
    %72 = arith.divf %70, %71 : vector<4x4x1xf32>
    %73 = vector.broadcast %72 : vector<4x4x1xf32> to vector<4x4x32xf32>
    %74 = arith.subf %66, %73 : vector<4x4x32xf32>
    %75 = arith.mulf %74, %74 : vector<4x4x32xf32>
    %cst_32 = arith.constant dense<0.000000e+00> : vector<4x4xf32>
    %76 = vector.multi_reduction <add>, %75, %cst_32 [2] : vector<4x4x32xf32> to vector<4x4xf32>
    %77 = vector.shape_cast %76 : vector<4x4xf32> to vector<4x4x1xf32>
    %cst_33 = arith.constant 3.200000e+01 : f32
    %78 = vector.broadcast %cst_33 : f32 to vector<4x4x1xf32>
    %79 = arith.divf %77, %78 : vector<4x4x1xf32>
    %cst_34 = arith.constant 9.99999974E-6 : f32
    %80 = vector.broadcast %cst_34 : f32 to vector<4x4x1xf32>
    %81 = arith.addf %79, %80 : vector<4x4x1xf32>
    %82 = math.rsqrt %81 : vector<4x4x1xf32>
    %83 = vector.broadcast %82 : vector<4x4x1xf32> to vector<4x4x32xf32>
    %84 = arith.mulf %74, %83 : vector<4x4x32xf32>
    %85 = vector.shape_cast %67 : vector<1x32xf32> to vector<1x1x32xf32>
    %86 = vector.broadcast %85 : vector<1x1x32xf32> to vector<4x4x32xf32>
    %87 = arith.mulf %84, %86 : vector<4x4x32xf32>
    %88 = vector.shape_cast %68 : vector<1x32xf32> to vector<1x1x32xf32>
    %89 = vector.broadcast %88 : vector<1x1x32xf32> to vector<4x4x32xf32>
    %90 = arith.addf %87, %89 : vector<4x4x32xf32>
    %c0_35 = arith.constant 0 : index
    %c0_36 = arith.constant 0 : index
    %c0_37 = arith.constant 0 : index
    %91 = vector.load %arg8[%c0_35, %c0_36, %c0_37] : memref<4x4x32xf32, #tpu.memory_space<vmem>>, vector<4x4x32xf32>
    tpu.vector_store %arg8[%c0_35, %c0_36, %c0_37], %90 {strides = array<i32>} : memref<4x4x32xf32, #tpu.memory_space<vmem>>, vector<4x4x32xf32>,
    return
  }
  func.func @transform_0(%arg0: i32) -> (i32, i32, i32) {
    %c2_i32 = arith.constant 2 : i32
    %c0_i32 = arith.constant 0 : i32
    %0 = arith.cmpi eq, %c2_i32, %c0_i32 : i32
    %c1_i32 = arith.constant 1 : i32
    %1 = arith.select %0, %c1_i32, %c2_i32 : i32
    %2 = arith.remsi %arg0, %1 : i32
    %c0_i32_0 = arith.constant 0 : i32
    %3 = arith.cmpi ne, %2, %c0_i32_0 : i32
    %c0_i32_1 = arith.constant 0 : i32
    %4 = arith.cmpi slt, %2, %c0_i32_1 : i32
    %c0_i32_2 = arith.constant 0 : i32
    %5 = arith.cmpi slt, %1, %c0_i32_2 : i32
    %6 = arith.xori %4, %5 : i1
    %7 = arith.andi %6, %3 : i1
    %8 = arith.addi %2, %1 : i32
    %9 = arith.select %7, %8, %2 : i32
    %c0_i32_3 = arith.constant 0 : i32
    %c0_i32_4 = arith.constant 0 : i32
    %c0_i32_5 = arith.constant 0 : i32
    return %9, %c0_i32_3, %c0_i32_4 : i32, i32, i32
  }
  func.func @transform_1(%arg0: i32) -> (i32, i32, i32) {
    %c0_i32 = arith.constant 0 : i32
    %c0_i32_0 = arith.constant 0 : i32
    %c0_i32_1 = arith.constant 0 : i32
    return %arg0, %c0_i32, %c0_i32_0 : i32, i32, i32
  }
  func.func @transform_2(%arg0: i32) -> (i32, i32) {
    %c0_i32 = arith.constant 0 : i32
    %c0_i32_0 = arith.constant 0 : i32
    %c0_i32_1 = arith.constant 0 : i32
    return %c0_i32, %c0_i32_0 : i32, i32
  }
  func.func @transform_3(%arg0: i32) -> (i32, i32) {
    %c0_i32 = arith.constant 0 : i32
    %c0_i32_0 = arith.constant 0 : i32
    %c0_i32_1 = arith.constant 0 : i32
    return %c0_i32, %c0_i32_0 : i32, i32
  }
  func.func @transform_4(%arg0: i32) -> (i32, i32) {
    %c0_i32 = arith.constant 0 : i32
    %c0_i32_0 = arith.constant 0 : i32
    %c0_i32_1 = arith.constant 0 : i32
    return %c0_i32, %c0_i32_0 : i32, i32
  }
  func.func @transform_5(%arg0: i32) -> (i32, i32) {
    %c0_i32 = arith.constant 0 : i32
    %c0_i32_0 = arith.constant 0 : i32
    %c0_i32_1 = arith.constant 0 : i32
    return %c0_i32, %c0_i32_0 : i32, i32
  }
  func.func @transform_6(%arg0: i32) -> (i32, i32) {
    %c0_i32 = arith.constant 0 : i32
    %c0_i32_0 = arith.constant 0 : i32
    %c0_i32_1 = arith.constant 0 : i32
    return %c0_i32, %c0_i32_0 : i32, i32
  }
  func.func @transform_7(%arg0: i32) -> (i32, i32, i32) {
    %c0_i32 = arith.constant 0 : i32
    %c0_i32_0 = arith.constant 0 : i32
    %c0_i32_1 = arith.constant 0 : i32
    return %arg0, %c0_i32, %c0_i32_0 : i32, i32, i32
  }
}

module attributes {stable_mosaic.version = 11 : i64} {
  func.func @_mlp_ln_kernel(%arg0: i32, %arg1: memref<16x32xf32, #tpu.memory_space<vmem>>, %arg2: memref<32x64xbf16, #tpu.memory_space<vmem>>, %arg3: memref<1x64xf32, #tpu.memory_space<vmem>>, %arg4: memref<64x32xbf16, #tpu.memory_space<vmem>>, %arg5: memref<1x32xf32, #tpu.memory_space<vmem>>, %arg6: memref<1x32xf32, #tpu.memory_space<vmem>>, %arg7: memref<1x32xf32, #tpu.memory_space<vmem>>, %arg8: memref<16x32xf32, #tpu.memory_space<vmem>>) attributes {dimension_semantics = [#tpu.dimension_semantics<parallel>], iteration_bounds = array<i64: 2>, scalar_prefetch = 0 : i64, scratch_operands = 0 : i64, tpu.core_type = #tpu.core_type<tc>, window_params = [{transform_indices = @transform_0, window_bounds = array<i64: 16, 32>}, {pipeline_mode = #tpu.pipeline_mode<synchronous>, transform_indices = @transform_1, window_bounds = array<i64: 32, 64>}, {pipeline_mode = #tpu.pipeline_mode<synchronous>, transform_indices = @transform_2, window_bounds = array<i64: 1, 64>}, {pipeline_mode = #tpu.pipeline_mode<synchronous>, transform_indices = @transform_3, window_bounds = array<i64: 64, 32>}, {pipeline_mode = #tpu.pipeline_mode<synchronous>, transform_indices = @transform_4, window_bounds = array<i64: 1, 32>}, {pipeline_mode = #tpu.pipeline_mode<synchronous>, transform_indices = @transform_5, window_bounds = array<i64: 1, 32>}, {pipeline_mode = #tpu.pipeline_mode<synchronous>, transform_indices = @transform_6, window_bounds = array<i64: 1, 32>}, {transform_indices = @transform_7, window_bounds = array<i64: 16, 32>}]} {
    %c0 = arith.constant 0 : index
    %c0_0 = arith.constant 0 : index
    %0 = vector.load %arg1[%c0, %c0_0] : memref<16x32xf32, #tpu.memory_space<vmem>>, vector<16x32xf32>
    %1 = arith.truncf %0 : vector<16x32xf32> to vector<16x32xbf16>
    %c0_1 = arith.constant 0 : index
    %c0_2 = arith.constant 0 : index
    %2 = vector.load %arg2[%c0_1, %c0_2] : memref<32x64xbf16, #tpu.memory_space<vmem>>, vector<32x64xbf16>
    %cst = arith.constant dense<0.000000e+00> : vector<16x64xf32>
    %3 = tpu.matmul %1, %2, %cst {dimension_numbers = #tpu.dot_dimension_numbers<[1], [0], [0], [1], [0, 0, 1, 1], [], []>} : vector<16x32xbf16>, vector<32x64xbf16>, vector<16x64xf32> -> vector<16x64xf32>
    %c0_3 = arith.constant 0 : index
    %c0_4 = arith.constant 0 : index
    %4 = vector.load %arg3[%c0_3, %c0_4] : memref<1x64xf32, #tpu.memory_space<vmem>>, vector<1x64xf32>
    %5 = vector.broadcast %4 : vector<1x64xf32> to vector<16x64xf32>
    %6 = arith.addf %3, %5 : vector<16x64xf32>
    %cst_5 = arith.constant 5.000000e-01 : f32
    %7 = vector.broadcast %cst_5 : f32 to vector<16x64xf32>
    %8 = arith.mulf %7, %6 : vector<16x64xf32>
    %cst_6 = arith.constant 0.707106769 : f32
    %9 = vector.broadcast %cst_6 : f32 to vector<16x64xf32>
    %10 = arith.mulf %6, %9 : vector<16x64xf32>
    %cst_7 = arith.constant 0.000000e+00 : f32
    %11 = vector.broadcast %cst_7 : f32 to vector<16x64xf32>
    %12 = arith.cmpf oge, %10, %11 : vector<16x64xf32>
    %cst_8 = arith.constant 1.000000e+00 : f32
    %cst_9 = arith.constant -1.000000e+00 : f32
    %13 = vector.broadcast %cst_8 : f32 to vector<16x64xf32>
    %14 = vector.broadcast %cst_9 : f32 to vector<16x64xf32>
    %15 = arith.select %12, %13, %14 : vector<16x64xi1>, vector<16x64xf32>
    %16 = math.absf %10 : vector<16x64xf32>
    %cst_10 = arith.constant 0.327591091 : f32
    %17 = vector.broadcast %cst_10 : f32 to vector<16x64xf32>
    %18 = arith.mulf %17, %16 : vector<16x64xf32>
    %cst_11 = arith.constant 1.000000e+00 : f32
    %19 = vector.broadcast %cst_11 : f32 to vector<16x64xf32>
    %20 = arith.addf %19, %18 : vector<16x64xf32>
    %cst_12 = arith.constant 1.000000e+00 : f32
    %21 = vector.broadcast %cst_12 : f32 to vector<16x64xf32>
    %22 = arith.divf %21, %20 : vector<16x64xf32>
    %cst_13 = arith.constant 1.06140542 : f32
    %23 = vector.broadcast %cst_13 : f32 to vector<16x64xf32>
    %24 = arith.mulf %23, %22 : vector<16x64xf32>
    %cst_14 = arith.constant -1.45315206 : f32
    %25 = vector.broadcast %cst_14 : f32 to vector<16x64xf32>
    %26 = arith.addf %24, %25 : vector<16x64xf32>
    %27 = arith.mulf %26, %22 : vector<16x64xf32>
    %cst_15 = arith.constant 1.42141378 : f32
    %28 = vector.broadcast %cst_15 : f32 to vector<16x64xf32>
    %29 = arith.addf %27, %28 : vector<16x64xf32>
    %30 = arith.mulf %29, %22 : vector<16x64xf32>
    %cst_16 = arith.constant -0.284496725 : f32
    %31 = vector.broadcast %cst_16 : f32 to vector<16x64xf32>
    %32 = arith.addf %30, %31 : vector<16x64xf32>
    %33 = arith.mulf %32, %22 : vector<16x64xf32>
    %cst_17 = arith.constant 0.254829586 : f32
    %34 = vector.broadcast %cst_17 : f32 to vector<16x64xf32>
    %35 = arith.addf %33, %34 : vector<16x64xf32>
    %36 = arith.mulf %35, %22 : vector<16x64xf32>
    %cst_18 = arith.constant 0.000000e+00 : f32
    %37 = vector.broadcast %cst_18 : f32 to vector<16x64xf32>
    %38 = arith.subf %37, %16 : vector<16x64xf32>
    %39 = arith.mulf %38, %16 : vector<16x64xf32>
    %40 = math.exp %39 : vector<16x64xf32>
    %41 = arith.mulf %36, %40 : vector<16x64xf32>
    %cst_19 = arith.constant 1.000000e+00 : f32
    %42 = vector.broadcast %cst_19 : f32 to vector<16x64xf32>
    %43 = arith.subf %42, %41 : vector<16x64xf32>
    %44 = arith.mulf %15, %43 : vector<16x64xf32>
    %cst_20 = arith.constant 1.000000e+00 : f32
    %45 = vector.broadcast %cst_20 : f32 to vector<16x64xf32>
    %46 = arith.addf %45, %44 : vector<16x64xf32>
    %47 = arith.mulf %8, %46 : vector<16x64xf32>
    %48 = arith.truncf %47 : vector<16x64xf32> to vector<16x64xbf16>
    %c0_21 = arith.constant 0 : index
    %c0_22 = arith.constant 0 : index
    %49 = vector.load %arg4[%c0_21, %c0_22] : memref<64x32xbf16, #tpu.memory_space<vmem>>, vector<64x32xbf16>
    %cst_23 = arith.constant dense<0.000000e+00> : vector<16x32xf32>
    %50 = tpu.matmul %48, %49, %cst_23 {dimension_numbers = #tpu.dot_dimension_numbers<[1], [0], [0], [1], [0, 0, 1, 1], [], []>} : vector<16x64xbf16>, vector<64x32xbf16>, vector<16x32xf32> -> vector<16x32xf32>
    %c0_24 = arith.constant 0 : index
    %c0_25 = arith.constant 0 : index
    %51 = vector.load %arg5[%c0_24, %c0_25] : memref<1x32xf32, #tpu.memory_space<vmem>>, vector<1x32xf32>
    %52 = vector.broadcast %51 : vector<1x32xf32> to vector<16x32xf32>
    %53 = arith.addf %50, %52 : vector<16x32xf32>
    %54 = arith.addf %0, %53 : vector<16x32xf32>
    %c0_26 = arith.constant 0 : index
    %c0_27 = arith.constant 0 : index
    %55 = vector.load %arg6[%c0_26, %c0_27] : memref<1x32xf32, #tpu.memory_space<vmem>>, vector<1x32xf32>
    %c0_28 = arith.constant 0 : index
    %c0_29 = arith.constant 0 : index
    %56 = vector.load %arg7[%c0_28, %c0_29] : memref<1x32xf32, #tpu.memory_space<vmem>>, vector<1x32xf32>
    %cst_30 = arith.constant dense<0.000000e+00> : vector<16xf32>
    %57 = vector.multi_reduction <add>, %54, %cst_30 [1] : vector<16x32xf32> to vector<16xf32>
    %58 = vector.shape_cast %57 : vector<16xf32> to vector<16x1xf32>
    %cst_31 = arith.constant 3.200000e+01 : f32
    %59 = vector.broadcast %cst_31 : f32 to vector<16x1xf32>
    %60 = arith.divf %58, %59 : vector<16x1xf32>
    %61 = vector.broadcast %60 : vector<16x1xf32> to vector<16x32xf32>
    %62 = arith.subf %54, %61 : vector<16x32xf32>
    %63 = arith.mulf %62, %62 : vector<16x32xf32>
    %cst_32 = arith.constant dense<0.000000e+00> : vector<16xf32>
    %64 = vector.multi_reduction <add>, %63, %cst_32 [1] : vector<16x32xf32> to vector<16xf32>
    %65 = vector.shape_cast %64 : vector<16xf32> to vector<16x1xf32>
    %cst_33 = arith.constant 3.200000e+01 : f32
    %66 = vector.broadcast %cst_33 : f32 to vector<16x1xf32>
    %67 = arith.divf %65, %66 : vector<16x1xf32>
    %cst_34 = arith.constant 9.99999974E-6 : f32
    %68 = vector.broadcast %cst_34 : f32 to vector<16x1xf32>
    %69 = arith.addf %67, %68 : vector<16x1xf32>
    %70 = math.rsqrt %69 : vector<16x1xf32>
    %71 = vector.broadcast %70 : vector<16x1xf32> to vector<16x32xf32>
    %72 = arith.mulf %62, %71 : vector<16x32xf32>
    %73 = vector.broadcast %55 : vector<1x32xf32> to vector<16x32xf32>
    %74 = arith.mulf %72, %73 : vector<16x32xf32>
    %75 = vector.broadcast %56 : vector<1x32xf32> to vector<16x32xf32>
    %76 = arith.addf %74, %75 : vector<16x32xf32>
    %c0_35 = arith.constant 0 : index
    %c0_36 = arith.constant 0 : index
    %77 = vector.load %arg8[%c0_35, %c0_36] : memref<16x32xf32, #tpu.memory_space<vmem>>, vector<16x32xf32>
    tpu.vector_store %arg8[%c0_35, %c0_36], %76 {strides = array<i32>} : memref<16x32xf32, #tpu.memory_space<vmem>>, vector<16x32xf32>,
    return
  }
  func.func @transform_0(%arg0: i32) -> (i32, i32) {
    %c0_i32 = arith.constant 0 : i32
    %c0_i32_0 = arith.constant 0 : i32
    return %arg0, %c0_i32 : i32, i32
  }
  func.func @transform_1(%arg0: i32) -> (i32, i32) {
    %c0_i32 = arith.constant 0 : i32
    %c0_i32_0 = arith.constant 0 : i32
    %c0_i32_1 = arith.constant 0 : i32
    return %c0_i32, %c0_i32_0 : i32, i32
  }
  func.func @transform_2(%arg0: i32) -> (i32, i32) {
    %c0_i32 = arith.constant 0 : i32
    %c0_i32_0 = arith.constant 0 : i32
    %c0_i32_1 = arith.constant 0 : i32
    return %c0_i32, %c0_i32_0 : i32, i32
  }
  func.func @transform_3(%arg0: i32) -> (i32, i32) {
    %c0_i32 = arith.constant 0 : i32
    %c0_i32_0 = arith.constant 0 : i32
    %c0_i32_1 = arith.constant 0 : i32
    return %c0_i32, %c0_i32_0 : i32, i32
  }
  func.func @transform_4(%arg0: i32) -> (i32, i32) {
    %c0_i32 = arith.constant 0 : i32
    %c0_i32_0 = arith.constant 0 : i32
    %c0_i32_1 = arith.constant 0 : i32
    return %c0_i32, %c0_i32_0 : i32, i32
  }
  func.func @transform_5(%arg0: i32) -> (i32, i32) {
    %c0_i32 = arith.constant 0 : i32
    %c0_i32_0 = arith.constant 0 : i32
    %c0_i32_1 = arith.constant 0 : i32
    return %c0_i32, %c0_i32_0 : i32, i32
  }
  func.func @transform_6(%arg0: i32) -> (i32, i32) {
    %c0_i32 = arith.constant 0 : i32
    %c0_i32_0 = arith.constant 0 : i32
    %c0_i32_1 = arith.constant 0 : i32
    return %c0_i32, %c0_i32_0 : i32, i32
  }
  func.func @transform_7(%arg0: i32) -> (i32, i32) {
    %c0_i32 = arith.constant 0 : i32
    %c0_i32_0 = arith.constant 0 : i32
    return %arg0, %c0_i32 : i32, i32
  }
}

module attributes {stable_mosaic.version = 11 : i64} {
  func.func @_mha_kernel(%arg0: i32, %arg1: memref<2x2x32xf32, #tpu.memory_space<vmem>>, %arg2: memref<2x4x32xf32, #tpu.memory_space<vmem>>, %arg3: memref<32x32xbf16, #tpu.memory_space<vmem>>, %arg4: memref<32x64xbf16, #tpu.memory_space<vmem>>, %arg5: memref<32x32xbf16, #tpu.memory_space<vmem>>, %arg6: memref<2x2x32xf32, #tpu.memory_space<vmem>>) attributes {dimension_semantics = [#tpu.dimension_semantics<parallel>], iteration_bounds = array<i64: 4>, scalar_prefetch = 0 : i64, scratch_operands = 0 : i64, tpu.core_type = #tpu.core_type<tc>, window_params = [{transform_indices = @transform_0, window_bounds = array<i64: 2, 2, 32>}, {transform_indices = @transform_1, window_bounds = array<i64: 2, 4, 32>}, {pipeline_mode = #tpu.pipeline_mode<synchronous>, transform_indices = @transform_2, window_bounds = array<i64: 32, 32>}, {pipeline_mode = #tpu.pipeline_mode<synchronous>, transform_indices = @transform_3, window_bounds = array<i64: 32, 64>}, {pipeline_mode = #tpu.pipeline_mode<synchronous>, transform_indices = @transform_4, window_bounds = array<i64: 32, 32>}, {transform_indices = @transform_5, window_bounds = array<i64: 2, 2, 32>}]} {
    %c0 = arith.constant 0 : index
    %c0_0 = arith.constant 0 : index
    %c0_1 = arith.constant 0 : index
    %0 = vector.load %arg1[%c0, %c0_0, %c0_1] : memref<2x2x32xf32, #tpu.memory_space<vmem>>, vector<2x2x32xf32>
    %c0_2 = arith.constant 0 : index
    %c0_3 = arith.constant 0 : index
    %c0_4 = arith.constant 0 : index
    %1 = vector.load %arg2[%c0_2, %c0_3, %c0_4] : memref<2x4x32xf32, #tpu.memory_space<vmem>>, vector<2x4x32xf32>
    %2 = vector.shape_cast %0 : vector<2x2x32xf32> to vector<4x32xf32>
    %3 = arith.truncf %2 : vector<4x32xf32> to vector<4x32xbf16>
    %c0_5 = arith.constant 0 : index
    %c0_6 = arith.constant 0 : index
    %4 = vector.load %arg3[%c0_5, %c0_6] : memref<32x32xbf16, #tpu.memory_space<vmem>>, vector<32x32xbf16>
    %cst = arith.constant dense<0.000000e+00> : vector<4x32xf32>
    %5 = tpu.matmul %3, %4, %cst {dimension_numbers = #tpu.dot_dimension_numbers<[1], [0], [0], [1], [0, 0, 1, 1], [], []>} : vector<4x32xbf16>, vector<32x32xbf16>, vector<4x32xf32> -> vector<4x32xf32>
    %6 = vector.shape_cast %5 : vector<4x32xf32> to vector<2x2x32xf32>
    %7 = vector.shape_cast %1 : vector<2x4x32xf32> to vector<8x32xf32>
    %8 = arith.truncf %7 : vector<8x32xf32> to vector<8x32xbf16>
    %c0_7 = arith.constant 0 : index
    %c0_8 = arith.constant 0 : index
    %9 = vector.load %arg4[%c0_7, %c0_8] : memref<32x64xbf16, #tpu.memory_space<vmem>>, vector<32x64xbf16>
    %cst_9 = arith.constant dense<0.000000e+00> : vector<8x64xf32>
    %10 = tpu.matmul %8, %9, %cst_9 {dimension_numbers = #tpu.dot_dimension_numbers<[1], [0], [0], [1], [0, 0, 1, 1], [], []>} : vector<8x32xbf16>, vector<32x64xbf16>, vector<8x64xf32> -> vector<8x64xf32>
    %11 = vector.shape_cast %10 : vector<8x64xf32> to vector<2x4x64xf32>
    %cst_10 = arith.constant 0.000000e+00 : f32
    %12 = vector.broadcast %cst_10 : f32 to vector<4x32xf32>
    %13 = vector.extract_strided_slice %6 {offsets = [0, 0, 0], sizes = [2, 2, 16], strides = [1, 1, 1]} : vector<2x2x32xf32> to vector<2x2x16xf32>
    %cst_11 = arith.constant 2.500000e-01 : f32
    %14 = vector.broadcast %cst_11 : f32 to vector<2x2x16xf32>
    %15 = arith.mulf %13, %14 : vector<2x2x16xf32>
    %16 = arith.truncf %15 : vector<2x2x16xf32> to vector<2x2x16xbf16>
    %17 = vector.extract_strided_slice %11 {offsets = [0, 0, 0], sizes = [2, 4, 16], strides = [1, 1, 1]} : vector<2x4x64xf32> to vector<2x4x16xf32>
    %18 = arith.truncf %17 : vector<2x4x16xf32> to vector<2x4x16xbf16>
    %19 = vector.extract_strided_slice %11 {offsets = [0, 0, 32], sizes = [2, 4, 16], strides = [1, 1, 1]} : vector<2x4x64xf32> to vector<2x4x16xf32>
    %20 = arith.truncf %19 : vector<2x4x16xf32> to vector<2x4x16xbf16>
    "tpu.trace_start"() <{level = 10 : i32, message = "bqd,bkd->bqk"}> : () -> ()
    %cst_12 = arith.constant dense<0.000000e+00> : vector<2x2x4xf32>
    %21 = tpu.matmul %16, %18, %cst_12 {dimension_numbers = #tpu.dot_dimension_numbers<[2], [2], [1], [1], [0, 0, 0, 1, 1, 1], [0], [0]>} : vector<2x2x16xbf16>, vector<2x4x16xbf16>, vector<2x2x4xf32> -> vector<2x2x4xf32>
    "tpu.trace_stop"() : () -> ()
    %cst_13 = arith.constant dense<0xFF800000> : vector<2x2xf32>
    %22 = vector.multi_reduction <maximumf>, %21, %cst_13 [2] : vector<2x2x4xf32> to vector<2x2xf32>
    %23 = vector.shape_cast %22 : vector<2x2xf32> to vector<2x2x1xf32>
    %24 = vector.broadcast %23 : vector<2x2x1xf32> to vector<2x2x4xf32>
    %25 = arith.subf %21, %24 : vector<2x2x4xf32>
    %26 = math.exp %25 : vector<2x2x4xf32>
    %cst_14 = arith.constant dense<0.000000e+00> : vector<2x2xf32>
    %27 = vector.multi_reduction <add>, %26, %cst_14 [2] : vector<2x2x4xf32> to vector<2x2xf32>
    %28 = vector.shape_cast %27 : vector<2x2xf32> to vector<2x2x1xf32>
    %29 = tpu.reciprocal %28 {approx = true} : vector<2x2x1xf32> -> vector<2x2x1xf32>
    %30 = vector.broadcast %29 : vector<2x2x1xf32> to vector<2x2x4xf32>
    %31 = arith.mulf %26, %30 : vector<2x2x4xf32>
    %32 = arith.truncf %31 : vector<2x2x4xf32> to vector<2x2x4xbf16>
    "tpu.trace_start"() <{level = 10 : i32, message = "bqk,bkd->bqd"}> : () -> ()
    %cst_15 = arith.constant dense<0.000000e+00> : vector<2x2x16xf32>
    %33 = tpu.matmul %32, %20, %cst_15 {dimension_numbers = #tpu.dot_dimension_numbers<[2], [1], [1], [2], [0, 0, 0, 1, 1, 2], [0], [0]>} : vector<2x2x4xbf16>, vector<2x4x16xbf16>, vector<2x2x16xf32> -> vector<2x2x16xf32>
    "tpu.trace_stop"() : () -> ()
    %34 = vector.shape_cast %33 : vector<2x2x16xf32> to vector<4x16xf32>
    %35 = arith.truncf %34 : vector<4x16xf32> to vector<4x16xbf16>
    %c0_16 = arith.constant 0 : index
    %c0_17 = arith.constant 0 : index
    %36 = vector.load %arg5[%c0_16, %c0_17] : memref<32x32xbf16, #tpu.memory_space<vmem>>, vector<16x32xbf16>
    %cst_18 = arith.constant dense<0.000000e+00> : vector<4x32xf32>
    %37 = tpu.matmul %35, %36, %cst_18 {dimension_numbers = #tpu.dot_dimension_numbers<[1], [0], [0], [1], [0, 0, 1, 1], [], []>} : vector<4x16xbf16>, vector<16x32xbf16>, vector<4x32xf32> -> vector<4x32xf32>
    %38 = arith.addf %12, %37 : vector<4x32xf32>
    %39 = vector.extract_strided_slice %6 {offsets = [0, 0, 16], sizes = [2, 2, 16], strides = [1, 1, 1]} : vector<2x2x32xf32> to vector<2x2x16xf32>
    %cst_19 = arith.constant 2.500000e-01 : f32
    %40 = vector.broadcast %cst_19 : f32 to vector<2x2x16xf32>
    %41 = arith.mulf %39, %40 : vector<2x2x16xf32>
    %42 = arith.truncf %41 : vector<2x2x16xf32> to vector<2x2x16xbf16>
    %43 = vector.extract_strided_slice %11 {offsets = [0, 0, 16], sizes = [2, 4, 16], strides = [1, 1, 1]} : vector<2x4x64xf32> to vector<2x4x16xf32>
    %44 = arith.truncf %43 : vector<2x4x16xf32> to vector<2x4x16xbf16>
    %45 = vector.extract_strided_slice %11 {offsets = [0, 0, 48], sizes = [2, 4, 16], strides = [1, 1, 1]} : vector<2x4x64xf32> to vector<2x4x16xf32>
    %46 = arith.truncf %45 : vector<2x4x16xf32> to vector<2x4x16xbf16>
    "tpu.trace_start"() <{level = 10 : i32, message = "bqd,bkd->bqk"}> : () -> ()
    %cst_20 = arith.constant dense<0.000000e+00> : vector<2x2x4xf32>
    %47 = tpu.matmul %42, %44, %cst_20 {dimension_numbers = #tpu.dot_dimension_numbers<[2], [2], [1], [1], [0, 0, 0, 1, 1, 1], [0], [0]>} : vector<2x2x16xbf16>, vector<2x4x16xbf16>, vector<2x2x4xf32> -> vector<2x2x4xf32>
    "tpu.trace_stop"() : () -> ()
    %cst_21 = arith.constant dense<0xFF800000> : vector<2x2xf32>
    %48 = vector.multi_reduction <maximumf>, %47, %cst_21 [2] : vector<2x2x4xf32> to vector<2x2xf32>
    %49 = vector.shape_cast %48 : vector<2x2xf32> to vector<2x2x1xf32>
    %50 = vector.broadcast %49 : vector<2x2x1xf32> to vector<2x2x4xf32>
    %51 = arith.subf %47, %50 : vector<2x2x4xf32>
    %52 = math.exp %51 : vector<2x2x4xf32>
    %cst_22 = arith.constant dense<0.000000e+00> : vector<2x2xf32>
    %53 = vector.multi_reduction <add>, %52, %cst_22 [2] : vector<2x2x4xf32> to vector<2x2xf32>
    %54 = vector.shape_cast %53 : vector<2x2xf32> to vector<2x2x1xf32>
    %55 = tpu.reciprocal %54 {approx = true} : vector<2x2x1xf32> -> vector<2x2x1xf32>
    %56 = vector.broadcast %55 : vector<2x2x1xf32> to vector<2x2x4xf32>
    %57 = arith.mulf %52, %56 : vector<2x2x4xf32>
    %58 = arith.truncf %57 : vector<2x2x4xf32> to vector<2x2x4xbf16>
    "tpu.trace_start"() <{level = 10 : i32, message = "bqk,bkd->bqd"}> : () -> ()
    %cst_23 = arith.constant dense<0.000000e+00> : vector<2x2x16xf32>
    %59 = tpu.matmul %58, %46, %cst_23 {dimension_numbers = #tpu.dot_dimension_numbers<[2], [1], [1], [2], [0, 0, 0, 1, 1, 2], [0], [0]>} : vector<2x2x4xbf16>, vector<2x4x16xbf16>, vector<2x2x16xf32> -> vector<2x2x16xf32>
    "tpu.trace_stop"() : () -> ()
    %60 = vector.shape_cast %59 : vector<2x2x16xf32> to vector<4x16xf32>
    %61 = arith.truncf %60 : vector<4x16xf32> to vector<4x16xbf16>
    %c16 = arith.constant 16 : index
    %c0_24 = arith.constant 0 : index
    %62 = vector.load %arg5[%c16, %c0_24] : memref<32x32xbf16, #tpu.memory_space<vmem>>, vector<16x32xbf16>
    %cst_25 = arith.constant dense<0.000000e+00> : vector<4x32xf32>
    %63 = tpu.matmul %61, %62, %cst_25 {dimension_numbers = #tpu.dot_dimension_numbers<[1], [0], [0], [1], [0, 0, 1, 1], [], []>} : vector<4x16xbf16>, vector<16x32xbf16>, vector<4x32xf32> -> vector<4x32xf32>
    %64 = arith.addf %38, %63 : vector<4x32xf32>
    %65 = vector.shape_cast %64 : vector<4x32xf32> to vector<2x2x32xf32>
    %c0_26 = arith.constant 0 : index
    %c0_27 = arith.constant 0 : index
    %c0_28 = arith.constant 0 : index
    %66 = vector.load %arg6[%c0_26, %c0_27, %c0_28] : memref<2x2x32xf32, #tpu.memory_space<vmem>>, vector<2x2x32xf32>
    tpu.vector_store %arg6[%c0_26, %c0_27, %c0_28], %65 {strides = array<i32>} : memref<2x2x32xf32, #tpu.memory_space<vmem>>, vector<2x2x32xf32>,
    return
  }
  func.func @transform_0(%arg0: i32) -> (i32, i32, i32) {
    %c2_i32 = arith.constant 2 : i32
    %c0_i32 = arith.constant 0 : i32
    %0 = arith.cmpi eq, %c2_i32, %c0_i32 : i32
    %c1_i32 = arith.constant 1 : i32
    %1 = arith.select %0, %c1_i32, %c2_i32 : i32
    %2 = arith.remsi %arg0, %1 : i32
    %c0_i32_0 = arith.constant 0 : i32
    %3 = arith.cmpi ne, %2, %c0_i32_0 : i32
    %c0_i32_1 = arith.constant 0 : i32
    %4 = arith.cmpi slt, %2, %c0_i32_1 : i32
    %c0_i32_2 = arith.constant 0 : i32
    %5 = arith.cmpi slt, %1, %c0_i32_2 : i32
    %6 = arith.xori %4, %5 : i1
    %7 = arith.andi %6, %3 : i1
    %8 = arith.addi %2, %1 : i32
    %9 = arith.select %7, %8, %2 : i32
    %c0_i32_3 = arith.constant 0 : i32
    %c0_i32_4 = arith.constant 0 : i32
    %c0_i32_5 = arith.constant 0 : i32
    return %9, %c0_i32_3, %c0_i32_4 : i32, i32, i32
  }
  func.func @transform_1(%arg0: i32) -> (i32, i32, i32) {
    %c0_i32 = arith.constant 0 : i32
    %c0_i32_0 = arith.constant 0 : i32
    %c0_i32_1 = arith.constant 0 : i32
    return %arg0, %c0_i32, %c0_i32_0 : i32, i32, i32
  }
  func.func @transform_2(%arg0: i32) -> (i32, i32) {
    %c0_i32 = arith.constant 0 : i32
    %c0_i32_0 = arith.constant 0 : i32
    %c0_i32_1 = arith.constant 0 : i32
    return %c0_i32, %c0_i32_0 : i32, i32
  }
  func.func @transform_3(%arg0: i32) -> (i32, i32) {
    %c0_i32 = arith.constant 0 : i32
    %c0_i32_0 = arith.constant 0 : i32
    %c0_i32_1 = arith.constant 0 : i32
    return %c0_i32, %c0_i32_0 : i32, i32
  }
  func.func @transform_4(%arg0: i32) -> (i32, i32) {
    %c0_i32 = arith.constant 0 : i32
    %c0_i32_0 = arith.constant 0 : i32
    %c0_i32_1 = arith.constant 0 : i32
    return %c0_i32, %c0_i32_0 : i32, i32
  }
  func.func @transform_5(%arg0: i32) -> (i32, i32, i32) {
    %c0_i32 = arith.constant 0 : i32
    %c0_i32_0 = arith.constant 0 : i32
    %c0_i32_1 = arith.constant 0 : i32
    return %arg0, %c0_i32, %c0_i32_0 : i32, i32, i32
  }
}

module attributes {stable_mosaic.version = 11 : i64} {
  func.func @_merge_kernel(%arg0: i32, %arg1: memref<8x64xf32, #tpu.memory_space<vmem>>, %arg2: memref<1x64xf32, #tpu.memory_space<vmem>>, %arg3: memref<1x64xf32, #tpu.memory_space<vmem>>, %arg4: memref<64x32xbf16, #tpu.memory_space<vmem>>, %arg5: memref<1x32xf32, #tpu.memory_space<vmem>>, %arg6: memref<8x32xf32, #tpu.memory_space<vmem>>) attributes {dimension_semantics = [#tpu.dimension_semantics<parallel>], iteration_bounds = array<i64: 2>, scalar_prefetch = 0 : i64, scratch_operands = 0 : i64, tpu.core_type = #tpu.core_type<tc>, window_params = [{transform_indices = @transform_0, window_bounds = array<i64: 8, 64>}, {pipeline_mode = #tpu.pipeline_mode<synchronous>, transform_indices = @transform_1, window_bounds = array<i64: 1, 64>}, {pipeline_mode = #tpu.pipeline_mode<synchronous>, transform_indices = @transform_2, window_bounds = array<i64: 1, 64>}, {pipeline_mode = #tpu.pipeline_mode<synchronous>, transform_indices = @transform_3, window_bounds = array<i64: 64, 32>}, {pipeline_mode = #tpu.pipeline_mode<synchronous>, transform_indices = @transform_4, window_bounds = array<i64: 1, 32>}, {transform_indices = @transform_5, window_bounds = array<i64: 8, 32>}]} {
    %c0 = arith.constant 0 : index
    %c0_0 = arith.constant 0 : index
    %0 = vector.load %arg1[%c0, %c0_0] : memref<8x64xf32, #tpu.memory_space<vmem>>, vector<8x64xf32>
    %c0_1 = arith.constant 0 : index
    %c0_2 = arith.constant 0 : index
    %1 = vector.load %arg2[%c0_1, %c0_2] : memref<1x64xf32, #tpu.memory_space<vmem>>, vector<1x64xf32>
    %c0_3 = arith.constant 0 : index
    %c0_4 = arith.constant 0 : index
    %2 = vector.load %arg3[%c0_3, %c0_4] : memref<1x64xf32, #tpu.memory_space<vmem>>, vector<1x64xf32>
    %cst = arith.constant dense<0.000000e+00> : vector<8xf32>
    %3 = vector.multi_reduction <add>, %0, %cst [1] : vector<8x64xf32> to vector<8xf32>
    %4 = vector.shape_cast %3 : vector<8xf32> to vector<8x1xf32>
    %cst_5 = arith.constant 6.400000e+01 : f32
    %5 = vector.broadcast %cst_5 : f32 to vector<8x1xf32>
    %6 = arith.divf %4, %5 : vector<8x1xf32>
    %7 = vector.broadcast %6 : vector<8x1xf32> to vector<8x64xf32>
    %8 = arith.subf %0, %7 : vector<8x64xf32>
    %9 = arith.mulf %8, %8 : vector<8x64xf32>
    %cst_6 = arith.constant dense<0.000000e+00> : vector<8xf32>
    %10 = vector.multi_reduction <add>, %9, %cst_6 [1] : vector<8x64xf32> to vector<8xf32>
    %11 = vector.shape_cast %10 : vector<8xf32> to vector<8x1xf32>
    %cst_7 = arith.constant 6.400000e+01 : f32
    %12 = vector.broadcast %cst_7 : f32 to vector<8x1xf32>
    %13 = arith.divf %11, %12 : vector<8x1xf32>
    %cst_8 = arith.constant 9.99999974E-6 : f32
    %14 = vector.broadcast %cst_8 : f32 to vector<8x1xf32>
    %15 = arith.addf %13, %14 : vector<8x1xf32>
    %16 = math.rsqrt %15 : vector<8x1xf32>
    %17 = vector.broadcast %16 : vector<8x1xf32> to vector<8x64xf32>
    %18 = arith.mulf %8, %17 : vector<8x64xf32>
    %19 = vector.broadcast %1 : vector<1x64xf32> to vector<8x64xf32>
    %20 = arith.mulf %18, %19 : vector<8x64xf32>
    %21 = vector.broadcast %2 : vector<1x64xf32> to vector<8x64xf32>
    %22 = arith.addf %20, %21 : vector<8x64xf32>
    %23 = arith.truncf %22 : vector<8x64xf32> to vector<8x64xbf16>
    %c0_9 = arith.constant 0 : index
    %c0_10 = arith.constant 0 : index
    %24 = vector.load %arg4[%c0_9, %c0_10] : memref<64x32xbf16, #tpu.memory_space<vmem>>, vector<64x32xbf16>
    %cst_11 = arith.constant dense<0.000000e+00> : vector<8x32xf32>
    %25 = tpu.matmul %23, %24, %cst_11 {dimension_numbers = #tpu.dot_dimension_numbers<[1], [0], [0], [1], [0, 0, 1, 1], [], []>} : vector<8x64xbf16>, vector<64x32xbf16>, vector<8x32xf32> -> vector<8x32xf32>
    %c0_12 = arith.constant 0 : index
    %c0_13 = arith.constant 0 : index
    %26 = vector.load %arg5[%c0_12, %c0_13] : memref<1x32xf32, #tpu.memory_space<vmem>>, vector<1x32xf32>
    %27 = vector.broadcast %26 : vector<1x32xf32> to vector<8x32xf32>
    %28 = arith.addf %25, %27 : vector<8x32xf32>
    %c0_14 = arith.constant 0 : index
    %c0_15 = arith.constant 0 : index
    %29 = vector.load %arg6[%c0_14, %c0_15] : memref<8x32xf32, #tpu.memory_space<vmem>>, vector<8x32xf32>
    tpu.vector_store %arg6[%c0_14, %c0_15], %28 {strides = array<i32>} : memref<8x32xf32, #tpu.memory_space<vmem>>, vector<8x32xf32>,
    return
  }
  func.func @transform_0(%arg0: i32) -> (i32, i32) {
    %c0_i32 = arith.constant 0 : i32
    %c0_i32_0 = arith.constant 0 : i32
    return %arg0, %c0_i32 : i32, i32
  }
  func.func @transform_1(%arg0: i32) -> (i32, i32) {
    %c0_i32 = arith.constant 0 : i32
    %c0_i32_0 = arith.constant 0 : i32
    %c0_i32_1 = arith.constant 0 : i32
    return %c0_i32, %c0_i32_0 : i32, i32
  }
  func.func @transform_2(%arg0: i32) -> (i32, i32) {
    %c0_i32 = arith.constant 0 : i32
    %c0_i32_0 = arith.constant 0 : i32
    %c0_i32_1 = arith.constant 0 : i32
    return %c0_i32, %c0_i32_0 : i32, i32
  }
  func.func @transform_3(%arg0: i32) -> (i32, i32) {
    %c0_i32 = arith.constant 0 : i32
    %c0_i32_0 = arith.constant 0 : i32
    %c0_i32_1 = arith.constant 0 : i32
    return %c0_i32, %c0_i32_0 : i32, i32
  }
  func.func @transform_4(%arg0: i32) -> (i32, i32) {
    %c0_i32 = arith.constant 0 : i32
    %c0_i32_0 = arith.constant 0 : i32
    %c0_i32_1 = arith.constant 0 : i32
    return %c0_i32, %c0_i32_0 : i32, i32
  }
  func.func @transform_5(%arg0: i32) -> (i32, i32) {
    %c0_i32 = arith.constant 0 : i32
    %c0_i32_0 = arith.constant 0 : i32
    return %arg0, %c0_i32 : i32, i32
  }
}

module attributes {stable_mosaic.version = 11 : i64} {
  func.func @_mlp_ln_kernel(%arg0: i32, %arg1: memref<8x32xf32, #tpu.memory_space<vmem>>, %arg2: memref<32x64xbf16, #tpu.memory_space<vmem>>, %arg3: memref<1x64xf32, #tpu.memory_space<vmem>>, %arg4: memref<64x32xbf16, #tpu.memory_space<vmem>>, %arg5: memref<1x32xf32, #tpu.memory_space<vmem>>, %arg6: memref<1x32xf32, #tpu.memory_space<vmem>>, %arg7: memref<1x32xf32, #tpu.memory_space<vmem>>, %arg8: memref<8x32xf32, #tpu.memory_space<vmem>>) attributes {dimension_semantics = [#tpu.dimension_semantics<parallel>], iteration_bounds = array<i64: 2>, scalar_prefetch = 0 : i64, scratch_operands = 0 : i64, tpu.core_type = #tpu.core_type<tc>, window_params = [{transform_indices = @transform_0, window_bounds = array<i64: 8, 32>}, {pipeline_mode = #tpu.pipeline_mode<synchronous>, transform_indices = @transform_1, window_bounds = array<i64: 32, 64>}, {pipeline_mode = #tpu.pipeline_mode<synchronous>, transform_indices = @transform_2, window_bounds = array<i64: 1, 64>}, {pipeline_mode = #tpu.pipeline_mode<synchronous>, transform_indices = @transform_3, window_bounds = array<i64: 64, 32>}, {pipeline_mode = #tpu.pipeline_mode<synchronous>, transform_indices = @transform_4, window_bounds = array<i64: 1, 32>}, {pipeline_mode = #tpu.pipeline_mode<synchronous>, transform_indices = @transform_5, window_bounds = array<i64: 1, 32>}, {pipeline_mode = #tpu.pipeline_mode<synchronous>, transform_indices = @transform_6, window_bounds = array<i64: 1, 32>}, {transform_indices = @transform_7, window_bounds = array<i64: 8, 32>}]} {
    %c0 = arith.constant 0 : index
    %c0_0 = arith.constant 0 : index
    %0 = vector.load %arg1[%c0, %c0_0] : memref<8x32xf32, #tpu.memory_space<vmem>>, vector<8x32xf32>
    %1 = arith.truncf %0 : vector<8x32xf32> to vector<8x32xbf16>
    %c0_1 = arith.constant 0 : index
    %c0_2 = arith.constant 0 : index
    %2 = vector.load %arg2[%c0_1, %c0_2] : memref<32x64xbf16, #tpu.memory_space<vmem>>, vector<32x64xbf16>
    %cst = arith.constant dense<0.000000e+00> : vector<8x64xf32>
    %3 = tpu.matmul %1, %2, %cst {dimension_numbers = #tpu.dot_dimension_numbers<[1], [0], [0], [1], [0, 0, 1, 1], [], []>} : vector<8x32xbf16>, vector<32x64xbf16>, vector<8x64xf32> -> vector<8x64xf32>
    %c0_3 = arith.constant 0 : index
    %c0_4 = arith.constant 0 : index
    %4 = vector.load %arg3[%c0_3, %c0_4] : memref<1x64xf32, #tpu.memory_space<vmem>>, vector<1x64xf32>
    %5 = vector.broadcast %4 : vector<1x64xf32> to vector<8x64xf32>
    %6 = arith.addf %3, %5 : vector<8x64xf32>
    %cst_5 = arith.constant 5.000000e-01 : f32
    %7 = vector.broadcast %cst_5 : f32 to vector<8x64xf32>
    %8 = arith.mulf %7, %6 : vector<8x64xf32>
    %cst_6 = arith.constant 0.707106769 : f32
    %9 = vector.broadcast %cst_6 : f32 to vector<8x64xf32>
    %10 = arith.mulf %6, %9 : vector<8x64xf32>
    %cst_7 = arith.constant 0.000000e+00 : f32
    %11 = vector.broadcast %cst_7 : f32 to vector<8x64xf32>
    %12 = arith.cmpf oge, %10, %11 : vector<8x64xf32>
    %cst_8 = arith.constant 1.000000e+00 : f32
    %cst_9 = arith.constant -1.000000e+00 : f32
    %13 = vector.broadcast %cst_8 : f32 to vector<8x64xf32>
    %14 = vector.broadcast %cst_9 : f32 to vector<8x64xf32>
    %15 = arith.select %12, %13, %14 : vector<8x64xi1>, vector<8x64xf32>
    %16 = math.absf %10 : vector<8x64xf32>
    %cst_10 = arith.constant 0.327591091 : f32
    %17 = vector.broadcast %cst_10 : f32 to vector<8x64xf32>
    %18 = arith.mulf %17, %16 : vector<8x64xf32>
    %cst_11 = arith.constant 1.000000e+00 : f32
    %19 = vector.broadcast %cst_11 : f32 to vector<8x64xf32>
    %20 = arith.addf %19, %18 : vector<8x64xf32>
    %cst_12 = arith.constant 1.000000e+00 : f32
    %21 = vector.broadcast %cst_12 : f32 to vector<8x64xf32>
    %22 = arith.divf %21, %20 : vector<8x64xf32>
    %cst_13 = arith.constant 1.06140542 : f32
    %23 = vector.broadcast %cst_13 : f32 to vector<8x64xf32>
    %24 = arith.mulf %23, %22 : vector<8x64xf32>
    %cst_14 = arith.constant -1.45315206 : f32
    %25 = vector.broadcast %cst_14 : f32 to vector<8x64xf32>
    %26 = arith.addf %24, %25 : vector<8x64xf32>
    %27 = arith.mulf %26, %22 : vector<8x64xf32>
    %cst_15 = arith.constant 1.42141378 : f32
    %28 = vector.broadcast %cst_15 : f32 to vector<8x64xf32>
    %29 = arith.addf %27, %28 : vector<8x64xf32>
    %30 = arith.mulf %29, %22 : vector<8x64xf32>
    %cst_16 = arith.constant -0.284496725 : f32
    %31 = vector.broadcast %cst_16 : f32 to vector<8x64xf32>
    %32 = arith.addf %30, %31 : vector<8x64xf32>
    %33 = arith.mulf %32, %22 : vector<8x64xf32>
    %cst_17 = arith.constant 0.254829586 : f32
    %34 = vector.broadcast %cst_17 : f32 to vector<8x64xf32>
    %35 = arith.addf %33, %34 : vector<8x64xf32>
    %36 = arith.mulf %35, %22 : vector<8x64xf32>
    %cst_18 = arith.constant 0.000000e+00 : f32
    %37 = vector.broadcast %cst_18 : f32 to vector<8x64xf32>
    %38 = arith.subf %37, %16 : vector<8x64xf32>
    %39 = arith.mulf %38, %16 : vector<8x64xf32>
    %40 = math.exp %39 : vector<8x64xf32>
    %41 = arith.mulf %36, %40 : vector<8x64xf32>
    %cst_19 = arith.constant 1.000000e+00 : f32
    %42 = vector.broadcast %cst_19 : f32 to vector<8x64xf32>
    %43 = arith.subf %42, %41 : vector<8x64xf32>
    %44 = arith.mulf %15, %43 : vector<8x64xf32>
    %cst_20 = arith.constant 1.000000e+00 : f32
    %45 = vector.broadcast %cst_20 : f32 to vector<8x64xf32>
    %46 = arith.addf %45, %44 : vector<8x64xf32>
    %47 = arith.mulf %8, %46 : vector<8x64xf32>
    %48 = arith.truncf %47 : vector<8x64xf32> to vector<8x64xbf16>
    %c0_21 = arith.constant 0 : index
    %c0_22 = arith.constant 0 : index
    %49 = vector.load %arg4[%c0_21, %c0_22] : memref<64x32xbf16, #tpu.memory_space<vmem>>, vector<64x32xbf16>
    %cst_23 = arith.constant dense<0.000000e+00> : vector<8x32xf32>
    %50 = tpu.matmul %48, %49, %cst_23 {dimension_numbers = #tpu.dot_dimension_numbers<[1], [0], [0], [1], [0, 0, 1, 1], [], []>} : vector<8x64xbf16>, vector<64x32xbf16>, vector<8x32xf32> -> vector<8x32xf32>
    %c0_24 = arith.constant 0 : index
    %c0_25 = arith.constant 0 : index
    %51 = vector.load %arg5[%c0_24, %c0_25] : memref<1x32xf32, #tpu.memory_space<vmem>>, vector<1x32xf32>
    %52 = vector.broadcast %51 : vector<1x32xf32> to vector<8x32xf32>
    %53 = arith.addf %50, %52 : vector<8x32xf32>
    %54 = arith.addf %0, %53 : vector<8x32xf32>
    %c0_26 = arith.constant 0 : index
    %c0_27 = arith.constant 0 : index
    %55 = vector.load %arg6[%c0_26, %c0_27] : memref<1x32xf32, #tpu.memory_space<vmem>>, vector<1x32xf32>
    %c0_28 = arith.constant 0 : index
    %c0_29 = arith.constant 0 : index
    %56 = vector.load %arg7[%c0_28, %c0_29] : memref<1x32xf32, #tpu.memory_space<vmem>>, vector<1x32xf32>
    %cst_30 = arith.constant dense<0.000000e+00> : vector<8xf32>
    %57 = vector.multi_reduction <add>, %54, %cst_30 [1] : vector<8x32xf32> to vector<8xf32>
    %58 = vector.shape_cast %57 : vector<8xf32> to vector<8x1xf32>
    %cst_31 = arith.constant 3.200000e+01 : f32
    %59 = vector.broadcast %cst_31 : f32 to vector<8x1xf32>
    %60 = arith.divf %58, %59 : vector<8x1xf32>
    %61 = vector.broadcast %60 : vector<8x1xf32> to vector<8x32xf32>
    %62 = arith.subf %54, %61 : vector<8x32xf32>
    %63 = arith.mulf %62, %62 : vector<8x32xf32>
    %cst_32 = arith.constant dense<0.000000e+00> : vector<8xf32>
    %64 = vector.multi_reduction <add>, %63, %cst_32 [1] : vector<8x32xf32> to vector<8xf32>
    %65 = vector.shape_cast %64 : vector<8xf32> to vector<8x1xf32>
    %cst_33 = arith.constant 3.200000e+01 : f32
    %66 = vector.broadcast %cst_33 : f32 to vector<8x1xf32>
    %67 = arith.divf %65, %66 : vector<8x1xf32>
    %cst_34 = arith.constant 9.99999974E-6 : f32
    %68 = vector.broadcast %cst_34 : f32 to vector<8x1xf32>
    %69 = arith.addf %67, %68 : vector<8x1xf32>
    %70 = math.rsqrt %69 : vector<8x1xf32>
    %71 = vector.broadcast %70 : vector<8x1xf32> to vector<8x32xf32>
    %72 = arith.mulf %62, %71 : vector<8x32xf32>
    %73 = vector.broadcast %55 : vector<1x32xf32> to vector<8x32xf32>
    %74 = arith.mulf %72, %73 : vector<8x32xf32>
    %75 = vector.broadcast %56 : vector<1x32xf32> to vector<8x32xf32>
    %76 = arith.addf %74, %75 : vector<8x32xf32>
    %c0_35 = arith.constant 0 : index
    %c0_36 = arith.constant 0 : index
    %77 = vector.load %arg8[%c0_35, %c0_36] : memref<8x32xf32, #tpu.memory_space<vmem>>, vector<8x32xf32>
    tpu.vector_store %arg8[%c0_35, %c0_36], %76 {strides = array<i32>} : memref<8x32xf32, #tpu.memory_space<vmem>>, vector<8x32xf32>,
    return
  }
  func.func @transform_0(%arg0: i32) -> (i32, i32) {
    %c0_i32 = arith.constant 0 : i32
    %c0_i32_0 = arith.constant 0 : i32
    return %arg0, %c0_i32 : i32, i32
  }
  func.func @transform_1(%arg0: i32) -> (i32, i32) {
    %c0_i32 = arith.constant 0 : i32
    %c0_i32_0 = arith.constant 0 : i32
    %c0_i32_1 = arith.constant 0 : i32
    return %c0_i32, %c0_i32_0 : i32, i32
  }
  func.func @transform_2(%arg0: i32) -> (i32, i32) {
    %c0_i32 = arith.constant 0 : i32
    %c0_i32_0 = arith.constant 0 : i32
    %c0_i32_1 = arith.constant 0 : i32
    return %c0_i32, %c0_i32_0 : i32, i32
  }
  func.func @transform_3(%arg0: i32) -> (i32, i32) {
    %c0_i32 = arith.constant 0 : i32
    %c0_i32_0 = arith.constant 0 : i32
    %c0_i32_1 = arith.constant 0 : i32
    return %c0_i32, %c0_i32_0 : i32, i32
  }
  func.func @transform_4(%arg0: i32) -> (i32, i32) {
    %c0_i32 = arith.constant 0 : i32
    %c0_i32_0 = arith.constant 0 : i32
    %c0_i32_1 = arith.constant 0 : i32
    return %c0_i32, %c0_i32_0 : i32, i32
  }
  func.func @transform_5(%arg0: i32) -> (i32, i32) {
    %c0_i32 = arith.constant 0 : i32
    %c0_i32_0 = arith.constant 0 : i32
    %c0_i32_1 = arith.constant 0 : i32
    return %c0_i32, %c0_i32_0 : i32, i32
  }
  func.func @transform_6(%arg0: i32) -> (i32, i32) {
    %c0_i32 = arith.constant 0 : i32
    %c0_i32_0 = arith.constant 0 : i32
    %c0_i32_1 = arith.constant 0 : i32
    return %c0_i32, %c0_i32_0 : i32, i32
  }
  func.func @transform_7(%arg0: i32) -> (i32, i32) {
    %c0_i32 = arith.constant 0 : i32
    %c0_i32_0 = arith.constant 0 : i32
    return %arg0, %c0_i32 : i32, i32
  }
}

module attributes {stable_mosaic.version = 11 : i64} {
  func.func @_mha_kernel(%arg0: i32, %arg1: memref<4x2x32xf32, #tpu.memory_space<vmem>>, %arg2: memref<4x2x32xf32, #tpu.memory_space<vmem>>, %arg3: memref<32x32xbf16, #tpu.memory_space<vmem>>, %arg4: memref<32x64xbf16, #tpu.memory_space<vmem>>, %arg5: memref<32x32xbf16, #tpu.memory_space<vmem>>, %arg6: memref<1x32xf32, #tpu.memory_space<vmem>>, %arg7: memref<1x32xf32, #tpu.memory_space<vmem>>, %arg8: memref<4x2x32xf32, #tpu.memory_space<vmem>>) attributes {dimension_semantics = [#tpu.dimension_semantics<parallel>], iteration_bounds = array<i64: 2>, scalar_prefetch = 0 : i64, scratch_operands = 0 : i64, tpu.core_type = #tpu.core_type<tc>, window_params = [{transform_indices = @transform_0, window_bounds = array<i64: 4, 2, 32>}, {transform_indices = @transform_1, window_bounds = array<i64: 4, 2, 32>}, {pipeline_mode = #tpu.pipeline_mode<synchronous>, transform_indices = @transform_2, window_bounds = array<i64: 32, 32>}, {pipeline_mode = #tpu.pipeline_mode<synchronous>, transform_indices = @transform_3, window_bounds = array<i64: 32, 64>}, {pipeline_mode = #tpu.pipeline_mode<synchronous>, transform_indices = @transform_4, window_bounds = array<i64: 32, 32>}, {pipeline_mode = #tpu.pipeline_mode<synchronous>, transform_indices = @transform_5, window_bounds = array<i64: 1, 32>}, {pipeline_mode = #tpu.pipeline_mode<synchronous>, transform_indices = @transform_6, window_bounds = array<i64: 1, 32>}, {transform_indices = @transform_7, window_bounds = array<i64: 4, 2, 32>}]} {
    %c0 = arith.constant 0 : index
    %c0_0 = arith.constant 0 : index
    %c0_1 = arith.constant 0 : index
    %0 = vector.load %arg1[%c0, %c0_0, %c0_1] : memref<4x2x32xf32, #tpu.memory_space<vmem>>, vector<4x2x32xf32>
    %c0_2 = arith.constant 0 : index
    %c0_3 = arith.constant 0 : index
    %c0_4 = arith.constant 0 : index
    %1 = vector.load %arg2[%c0_2, %c0_3, %c0_4] : memref<4x2x32xf32, #tpu.memory_space<vmem>>, vector<4x2x32xf32>
    %2 = vector.shape_cast %0 : vector<4x2x32xf32> to vector<8x32xf32>
    %3 = arith.truncf %2 : vector<8x32xf32> to vector<8x32xbf16>
    %c0_5 = arith.constant 0 : index
    %c0_6 = arith.constant 0 : index
    %4 = vector.load %arg3[%c0_5, %c0_6] : memref<32x32xbf16, #tpu.memory_space<vmem>>, vector<32x32xbf16>
    %cst = arith.constant dense<0.000000e+00> : vector<8x32xf32>
    %5 = tpu.matmul %3, %4, %cst {dimension_numbers = #tpu.dot_dimension_numbers<[1], [0], [0], [1], [0, 0, 1, 1], [], []>} : vector<8x32xbf16>, vector<32x32xbf16>, vector<8x32xf32> -> vector<8x32xf32>
    %6 = vector.shape_cast %5 : vector<8x32xf32> to vector<4x2x32xf32>
    %7 = vector.shape_cast %1 : vector<4x2x32xf32> to vector<8x32xf32>
    %8 = arith.truncf %7 : vector<8x32xf32> to vector<8x32xbf16>
    %c0_7 = arith.constant 0 : index
    %c0_8 = arith.constant 0 : index
    %9 = vector.load %arg4[%c0_7, %c0_8] : memref<32x64xbf16, #tpu.memory_space<vmem>>, vector<32x64xbf16>
    %cst_9 = arith.constant dense<0.000000e+00> : vector<8x64xf32>
    %10 = tpu.matmul %8, %9, %cst_9 {dimension_numbers = #tpu.dot_dimension_numbers<[1], [0], [0], [1], [0, 0, 1, 1], [], []>} : vector<8x32xbf16>, vector<32x64xbf16>, vector<8x64xf32> -> vector<8x64xf32>
    %11 = vector.shape_cast %10 : vector<8x64xf32> to vector<4x2x64xf32>
    %cst_10 = arith.constant 0.000000e+00 : f32
    %12 = vector.broadcast %cst_10 : f32 to vector<8x32xf32>
    %13 = vector.extract_strided_slice %6 {offsets = [0, 0, 0], sizes = [4, 2, 16], strides = [1, 1, 1]} : vector<4x2x32xf32> to vector<4x2x16xf32>
    %cst_11 = arith.constant 2.500000e-01 : f32
    %14 = vector.broadcast %cst_11 : f32 to vector<4x2x16xf32>
    %15 = arith.mulf %13, %14 : vector<4x2x16xf32>
    %16 = arith.truncf %15 : vector<4x2x16xf32> to vector<4x2x16xbf16>
    %17 = vector.extract_strided_slice %11 {offsets = [0, 0, 0], sizes = [4, 2, 16], strides = [1, 1, 1]} : vector<4x2x64xf32> to vector<4x2x16xf32>
    %18 = arith.truncf %17 : vector<4x2x16xf32> to vector<4x2x16xbf16>
    %19 = vector.extract_strided_slice %11 {offsets = [0, 0, 32], sizes = [4, 2, 16], strides = [1, 1, 1]} : vector<4x2x64xf32> to vector<4x2x16xf32>
    %20 = arith.truncf %19 : vector<4x2x16xf32> to vector<4x2x16xbf16>
    "tpu.trace_start"() <{level = 10 : i32, message = "bqd,bkd->bqk"}> : () -> ()
    %cst_12 = arith.constant dense<0.000000e+00> : vector<4x2x2xf32>
    %21 = tpu.matmul %16, %18, %cst_12 {dimension_numbers = #tpu.dot_dimension_numbers<[2], [2], [1], [1], [0, 0, 0, 1, 1, 1], [0], [0]>} : vector<4x2x16xbf16>, vector<4x2x16xbf16>, vector<4x2x2xf32> -> vector<4x2x2xf32>
    "tpu.trace_stop"() : () -> ()
    %cst_13 = arith.constant dense<0xFF800000> : vector<4x2xf32>
    %22 = vector.multi_reduction <maximumf>, %21, %cst_13 [2] : vector<4x2x2xf32> to vector<4x2xf32>
    %23 = vector.shape_cast %22 : vector<4x2xf32> to vector<4x2x1xf32>
    %24 = vector.broadcast %23 : vector<4x2x1xf32> to vector<4x2x2xf32>
    %25 = arith.subf %21, %24 : vector<4x2x2xf32>
    %26 = math.exp %25 : vector<4x2x2xf32>
    %cst_14 = arith.constant dense<0.000000e+00> : vector<4x2xf32>
    %27 = vector.multi_reduction <add>, %26, %cst_14 [2] : vector<4x2x2xf32> to vector<4x2xf32>
    %28 = vector.shape_cast %27 : vector<4x2xf32> to vector<4x2x1xf32>
    %29 = tpu.reciprocal %28 {approx = true} : vector<4x2x1xf32> -> vector<4x2x1xf32>
    %30 = vector.broadcast %29 : vector<4x2x1xf32> to vector<4x2x2xf32>
    %31 = arith.mulf %26, %30 : vector<4x2x2xf32>
    %32 = arith.truncf %31 : vector<4x2x2xf32> to vector<4x2x2xbf16>
    "tpu.trace_start"() <{level = 10 : i32, message = "bqk,bkd->bqd"}> : () -> ()
    %cst_15 = arith.constant dense<0.000000e+00> : vector<4x2x16xf32>
    %33 = tpu.matmul %32, %20, %cst_15 {dimension_numbers = #tpu.dot_dimension_numbers<[2], [1], [1], [2], [0, 0, 0, 1, 1, 2], [0], [0]>} : vector<4x2x2xbf16>, vector<4x2x16xbf16>, vector<4x2x16xf32> -> vector<4x2x16xf32>
    "tpu.trace_stop"() : () -> ()
    %34 = vector.shape_cast %33 : vector<4x2x16xf32> to vector<8x16xf32>
    %35 = arith.truncf %34 : vector<8x16xf32> to vector<8x16xbf16>
    %c0_16 = arith.constant 0 : index
    %c0_17 = arith.constant 0 : index
    %36 = vector.load %arg5[%c0_16, %c0_17] : memref<32x32xbf16, #tpu.memory_space<vmem>>, vector<16x32xbf16>
    %cst_18 = arith.constant dense<0.000000e+00> : vector<8x32xf32>
    %37 = tpu.matmul %35, %36, %cst_18 {dimension_numbers = #tpu.dot_dimension_numbers<[1], [0], [0], [1], [0, 0, 1, 1], [], []>} : vector<8x16xbf16>, vector<16x32xbf16>, vector<8x32xf32> -> vector<8x32xf32>
    %38 = arith.addf %12, %37 : vector<8x32xf32>
    %39 = vector.extract_strided_slice %6 {offsets = [0, 0, 16], sizes = [4, 2, 16], strides = [1, 1, 1]} : vector<4x2x32xf32> to vector<4x2x16xf32>
    %cst_19 = arith.constant 2.500000e-01 : f32
    %40 = vector.broadcast %cst_19 : f32 to vector<4x2x16xf32>
    %41 = arith.mulf %39, %40 : vector<4x2x16xf32>
    %42 = arith.truncf %41 : vector<4x2x16xf32> to vector<4x2x16xbf16>
    %43 = vector.extract_strided_slice %11 {offsets = [0, 0, 16], sizes = [4, 2, 16], strides = [1, 1, 1]} : vector<4x2x64xf32> to vector<4x2x16xf32>
    %44 = arith.truncf %43 : vector<4x2x16xf32> to vector<4x2x16xbf16>
    %45 = vector.extract_strided_slice %11 {offsets = [0, 0, 48], sizes = [4, 2, 16], strides = [1, 1, 1]} : vector<4x2x64xf32> to vector<4x2x16xf32>
    %46 = arith.truncf %45 : vector<4x2x16xf32> to vector<4x2x16xbf16>
    "tpu.trace_start"() <{level = 10 : i32, message = "bqd,bkd->bqk"}> : () -> ()
    %cst_20 = arith.constant dense<0.000000e+00> : vector<4x2x2xf32>
    %47 = tpu.matmul %42, %44, %cst_20 {dimension_numbers = #tpu.dot_dimension_numbers<[2], [2], [1], [1], [0, 0, 0, 1, 1, 1], [0], [0]>} : vector<4x2x16xbf16>, vector<4x2x16xbf16>, vector<4x2x2xf32> -> vector<4x2x2xf32>
    "tpu.trace_stop"() : () -> ()
    %cst_21 = arith.constant dense<0xFF800000> : vector<4x2xf32>
    %48 = vector.multi_reduction <maximumf>, %47, %cst_21 [2] : vector<4x2x2xf32> to vector<4x2xf32>
    %49 = vector.shape_cast %48 : vector<4x2xf32> to vector<4x2x1xf32>
    %50 = vector.broadcast %49 : vector<4x2x1xf32> to vector<4x2x2xf32>
    %51 = arith.subf %47, %50 : vector<4x2x2xf32>
    %52 = math.exp %51 : vector<4x2x2xf32>
    %cst_22 = arith.constant dense<0.000000e+00> : vector<4x2xf32>
    %53 = vector.multi_reduction <add>, %52, %cst_22 [2] : vector<4x2x2xf32> to vector<4x2xf32>
    %54 = vector.shape_cast %53 : vector<4x2xf32> to vector<4x2x1xf32>
    %55 = tpu.reciprocal %54 {approx = true} : vector<4x2x1xf32> -> vector<4x2x1xf32>
    %56 = vector.broadcast %55 : vector<4x2x1xf32> to vector<4x2x2xf32>
    %57 = arith.mulf %52, %56 : vector<4x2x2xf32>
    %58 = arith.truncf %57 : vector<4x2x2xf32> to vector<4x2x2xbf16>
    "tpu.trace_start"() <{level = 10 : i32, message = "bqk,bkd->bqd"}> : () -> ()
    %cst_23 = arith.constant dense<0.000000e+00> : vector<4x2x16xf32>
    %59 = tpu.matmul %58, %46, %cst_23 {dimension_numbers = #tpu.dot_dimension_numbers<[2], [1], [1], [2], [0, 0, 0, 1, 1, 2], [0], [0]>} : vector<4x2x2xbf16>, vector<4x2x16xbf16>, vector<4x2x16xf32> -> vector<4x2x16xf32>
    "tpu.trace_stop"() : () -> ()
    %60 = vector.shape_cast %59 : vector<4x2x16xf32> to vector<8x16xf32>
    %61 = arith.truncf %60 : vector<8x16xf32> to vector<8x16xbf16>
    %c16 = arith.constant 16 : index
    %c0_24 = arith.constant 0 : index
    %62 = vector.load %arg5[%c16, %c0_24] : memref<32x32xbf16, #tpu.memory_space<vmem>>, vector<16x32xbf16>
    %cst_25 = arith.constant dense<0.000000e+00> : vector<8x32xf32>
    %63 = tpu.matmul %61, %62, %cst_25 {dimension_numbers = #tpu.dot_dimension_numbers<[1], [0], [0], [1], [0, 0, 1, 1], [], []>} : vector<8x16xbf16>, vector<16x32xbf16>, vector<8x32xf32> -> vector<8x32xf32>
    %64 = arith.addf %38, %63 : vector<8x32xf32>
    %65 = vector.shape_cast %64 : vector<8x32xf32> to vector<4x2x32xf32>
    %66 = arith.addf %65, %0 : vector<4x2x32xf32>
    %c0_26 = arith.constant 0 : index
    %c0_27 = arith.constant 0 : index
    %67 = vector.load %arg6[%c0_26, %c0_27] : memref<1x32xf32, #tpu.memory_space<vmem>>, vector<1x32xf32>
    %c0_28 = arith.constant 0 : index
    %c0_29 = arith.constant 0 : index
    %68 = vector.load %arg7[%c0_28, %c0_29] : memref<1x32xf32, #tpu.memory_space<vmem>>, vector<1x32xf32>
    %cst_30 = arith.constant dense<0.000000e+00> : vector<4x2xf32>
    %69 = vector.multi_reduction <add>, %66, %cst_30 [2] : vector<4x2x32xf32> to vector<4x2xf32>
    %70 = vector.shape_cast %69 : vector<4x2xf32> to vector<4x2x1xf32>
    %cst_31 = arith.constant 3.200000e+01 : f32
    %71 = vector.broadcast %cst_31 : f32 to vector<4x2x1xf32>
    %72 = arith.divf %70, %71 : vector<4x2x1xf32>
    %73 = vector.broadcast %72 : vector<4x2x1xf32> to vector<4x2x32xf32>
    %74 = arith.subf %66, %73 : vector<4x2x32xf32>
    %75 = arith.mulf %74, %74 : vector<4x2x32xf32>
    %cst_32 = arith.constant dense<0.000000e+00> : vector<4x2xf32>
    %76 = vector.multi_reduction <add>, %75, %cst_32 [2] : vector<4x2x32xf32> to vector<4x2xf32>
    %77 = vector.shape_cast %76 : vector<4x2xf32> to vector<4x2x1xf32>
    %cst_33 = arith.constant 3.200000e+01 : f32
    %78 = vector.broadcast %cst_33 : f32 to vector<4x2x1xf32>
    %79 = arith.divf %77, %78 : vector<4x2x1xf32>
    %cst_34 = arith.constant 9.99999974E-6 : f32
    %80 = vector.broadcast %cst_34 : f32 to vector<4x2x1xf32>
    %81 = arith.addf %79, %80 : vector<4x2x1xf32>
    %82 = math.rsqrt %81 : vector<4x2x1xf32>
    %83 = vector.broadcast %82 : vector<4x2x1xf32> to vector<4x2x32xf32>
    %84 = arith.mulf %74, %83 : vector<4x2x32xf32>
    %85 = vector.shape_cast %67 : vector<1x32xf32> to vector<1x1x32xf32>
    %86 = vector.broadcast %85 : vector<1x1x32xf32> to vector<4x2x32xf32>
    %87 = arith.mulf %84, %86 : vector<4x2x32xf32>
    %88 = vector.shape_cast %68 : vector<1x32xf32> to vector<1x1x32xf32>
    %89 = vector.broadcast %88 : vector<1x1x32xf32> to vector<4x2x32xf32>
    %90 = arith.addf %87, %89 : vector<4x2x32xf32>
    %c0_35 = arith.constant 0 : index
    %c0_36 = arith.constant 0 : index
    %c0_37 = arith.constant 0 : index
    %91 = vector.load %arg8[%c0_35, %c0_36, %c0_37] : memref<4x2x32xf32, #tpu.memory_space<vmem>>, vector<4x2x32xf32>
    tpu.vector_store %arg8[%c0_35, %c0_36, %c0_37], %90 {strides = array<i32>} : memref<4x2x32xf32, #tpu.memory_space<vmem>>, vector<4x2x32xf32>,
    return
  }
  func.func @transform_0(%arg0: i32) -> (i32, i32, i32) {
    %c2_i32 = arith.constant 2 : i32
    %c0_i32 = arith.constant 0 : i32
    %0 = arith.cmpi eq, %c2_i32, %c0_i32 : i32
    %c1_i32 = arith.constant 1 : i32
    %1 = arith.select %0, %c1_i32, %c2_i32 : i32
    %2 = arith.remsi %arg0, %1 : i32
    %c0_i32_0 = arith.constant 0 : i32
    %3 = arith.cmpi ne, %2, %c0_i32_0 : i32
    %c0_i32_1 = arith.constant 0 : i32
    %4 = arith.cmpi slt, %2, %c0_i32_1 : i32
    %c0_i32_2 = arith.constant 0 : i32
    %5 = arith.cmpi slt, %1, %c0_i32_2 : i32
    %6 = arith.xori %4, %5 : i1
    %7 = arith.andi %6, %3 : i1
    %8 = arith.addi %2, %1 : i32
    %9 = arith.select %7, %8, %2 : i32
    %c0_i32_3 = arith.constant 0 : i32
    %c0_i32_4 = arith.constant 0 : i32
    %c0_i32_5 = arith.constant 0 : i32
    return %9, %c0_i32_3, %c0_i32_4 : i32, i32, i32
  }
  func.func @transform_1(%arg0: i32) -> (i32, i32, i32) {
    %c0_i32 = arith.constant 0 : i32
    %c0_i32_0 = arith.constant 0 : i32
    %c0_i32_1 = arith.constant 0 : i32
    return %arg0, %c0_i32, %c0_i32_0 : i32, i32, i32
  }
  func.func @transform_2(%arg0: i32) -> (i32, i32) {
    %c0_i32 = arith.constant 0 : i32
    %c0_i32_0 = arith.constant 0 : i32
    %c0_i32_1 = arith.constant 0 : i32
    return %c0_i32, %c0_i32_0 : i32, i32
  }
  func.func @transform_3(%arg0: i32) -> (i32, i32) {
    %c0_i32 = arith.constant 0 : i32
    %c0_i32_0 = arith.constant 0 : i32
    %c0_i32_1 = arith.constant 0 : i32
    return %c0_i32, %c0_i32_0 : i32, i32
  }
  func.func @transform_4(%arg0: i32) -> (i32, i32) {
    %c0_i32 = arith.constant 0 : i32
    %c0_i32_0 = arith.constant 0 : i32
    %c0_i32_1 = arith.constant 0 : i32
    return %c0_i32, %c0_i32_0 : i32, i32
  }
  func.func @transform_5(%arg0: i32) -> (i32, i32) {
    %c0_i32 = arith.constant 0 : i32
    %c0_i32_0 = arith.constant 0 : i32
    %c0_i32_1 = arith.constant 0 : i32
    return %c0_i32, %c0_i32_0 : i32, i32
  }
  func.func @transform_6(%arg0: i32) -> (i32, i32) {
    %c0_i32 = arith.constant 0 : i32
    %c0_i32_0 = arith.constant 0 : i32
    %c0_i32_1 = arith.constant 0 : i32
    return %c0_i32, %c0_i32_0 : i32, i32
  }
  func.func @transform_7(%arg0: i32) -> (i32, i32, i32) {
    %c0_i32 = arith.constant 0 : i32
    %c0_i32_0 = arith.constant 0 : i32
    %c0_i32_1 = arith.constant 0 : i32
    return %arg0, %c0_i32, %c0_i32_0 : i32, i32, i32
  }
}

module attributes {stable_mosaic.version = 11 : i64} {
  func.func @_mha_kernel(%arg0: i32, %arg1: memref<4x4x32xf32, #tpu.memory_space<vmem>>, %arg2: memref<4x2x32xf32, #tpu.memory_space<vmem>>, %arg3: memref<32x32xbf16, #tpu.memory_space<vmem>>, %arg4: memref<32x64xbf16, #tpu.memory_space<vmem>>, %arg5: memref<32x32xbf16, #tpu.memory_space<vmem>>, %arg6: memref<1x32xf32, #tpu.memory_space<vmem>>, %arg7: memref<1x32xf32, #tpu.memory_space<vmem>>, %arg8: memref<4x4x32xf32, #tpu.memory_space<vmem>>) attributes {dimension_semantics = [#tpu.dimension_semantics<parallel>], iteration_bounds = array<i64: 2>, scalar_prefetch = 0 : i64, scratch_operands = 0 : i64, tpu.core_type = #tpu.core_type<tc>, window_params = [{transform_indices = @transform_0, window_bounds = array<i64: 4, 4, 32>}, {transform_indices = @transform_1, window_bounds = array<i64: 4, 2, 32>}, {pipeline_mode = #tpu.pipeline_mode<synchronous>, transform_indices = @transform_2, window_bounds = array<i64: 32, 32>}, {pipeline_mode = #tpu.pipeline_mode<synchronous>, transform_indices = @transform_3, window_bounds = array<i64: 32, 64>}, {pipeline_mode = #tpu.pipeline_mode<synchronous>, transform_indices = @transform_4, window_bounds = array<i64: 32, 32>}, {pipeline_mode = #tpu.pipeline_mode<synchronous>, transform_indices = @transform_5, window_bounds = array<i64: 1, 32>}, {pipeline_mode = #tpu.pipeline_mode<synchronous>, transform_indices = @transform_6, window_bounds = array<i64: 1, 32>}, {transform_indices = @transform_7, window_bounds = array<i64: 4, 4, 32>}]} {
    %c0 = arith.constant 0 : index
    %c0_0 = arith.constant 0 : index
    %c0_1 = arith.constant 0 : index
    %0 = vector.load %arg1[%c0, %c0_0, %c0_1] : memref<4x4x32xf32, #tpu.memory_space<vmem>>, vector<4x4x32xf32>
    %c0_2 = arith.constant 0 : index
    %c0_3 = arith.constant 0 : index
    %c0_4 = arith.constant 0 : index
    %1 = vector.load %arg2[%c0_2, %c0_3, %c0_4] : memref<4x2x32xf32, #tpu.memory_space<vmem>>, vector<4x2x32xf32>
    %2 = vector.shape_cast %0 : vector<4x4x32xf32> to vector<16x32xf32>
    %3 = arith.truncf %2 : vector<16x32xf32> to vector<16x32xbf16>
    %c0_5 = arith.constant 0 : index
    %c0_6 = arith.constant 0 : index
    %4 = vector.load %arg3[%c0_5, %c0_6] : memref<32x32xbf16, #tpu.memory_space<vmem>>, vector<32x32xbf16>
    %cst = arith.constant dense<0.000000e+00> : vector<16x32xf32>
    %5 = tpu.matmul %3, %4, %cst {dimension_numbers = #tpu.dot_dimension_numbers<[1], [0], [0], [1], [0, 0, 1, 1], [], []>} : vector<16x32xbf16>, vector<32x32xbf16>, vector<16x32xf32> -> vector<16x32xf32>
    %6 = vector.shape_cast %5 : vector<16x32xf32> to vector<4x4x32xf32>
    %7 = vector.shape_cast %1 : vector<4x2x32xf32> to vector<8x32xf32>
    %8 = arith.truncf %7 : vector<8x32xf32> to vector<8x32xbf16>
    %c0_7 = arith.constant 0 : index
    %c0_8 = arith.constant 0 : index
    %9 = vector.load %arg4[%c0_7, %c0_8] : memref<32x64xbf16, #tpu.memory_space<vmem>>, vector<32x64xbf16>
    %cst_9 = arith.constant dense<0.000000e+00> : vector<8x64xf32>
    %10 = tpu.matmul %8, %9, %cst_9 {dimension_numbers = #tpu.dot_dimension_numbers<[1], [0], [0], [1], [0, 0, 1, 1], [], []>} : vector<8x32xbf16>, vector<32x64xbf16>, vector<8x64xf32> -> vector<8x64xf32>
    %11 = vector.shape_cast %10 : vector<8x64xf32> to vector<4x2x64xf32>
    %cst_10 = arith.constant 0.000000e+00 : f32
    %12 = vector.broadcast %cst_10 : f32 to vector<16x32xf32>
    %13 = vector.extract_strided_slice %6 {offsets = [0, 0, 0], sizes = [4, 4, 16], strides = [1, 1, 1]} : vector<4x4x32xf32> to vector<4x4x16xf32>
    %cst_11 = arith.constant 2.500000e-01 : f32
    %14 = vector.broadcast %cst_11 : f32 to vector<4x4x16xf32>
    %15 = arith.mulf %13, %14 : vector<4x4x16xf32>
    %16 = arith.truncf %15 : vector<4x4x16xf32> to vector<4x4x16xbf16>
    %17 = vector.extract_strided_slice %11 {offsets = [0, 0, 0], sizes = [4, 2, 16], strides = [1, 1, 1]} : vector<4x2x64xf32> to vector<4x2x16xf32>
    %18 = arith.truncf %17 : vector<4x2x16xf32> to vector<4x2x16xbf16>
    %19 = vector.extract_strided_slice %11 {offsets = [0, 0, 32], sizes = [4, 2, 16], strides = [1, 1, 1]} : vector<4x2x64xf32> to vector<4x2x16xf32>
    %20 = arith.truncf %19 : vector<4x2x16xf32> to vector<4x2x16xbf16>
    "tpu.trace_start"() <{level = 10 : i32, message = "bqd,bkd->bqk"}> : () -> ()
    %cst_12 = arith.constant dense<0.000000e+00> : vector<4x4x2xf32>
    %21 = tpu.matmul %16, %18, %cst_12 {dimension_numbers = #tpu.dot_dimension_numbers<[2], [2], [1], [1], [0, 0, 0, 1, 1, 1], [0], [0]>} : vector<4x4x16xbf16>, vector<4x2x16xbf16>, vector<4x4x2xf32> -> vector<4x4x2xf32>
    "tpu.trace_stop"() : () -> ()
    %cst_13 = arith.constant dense<0xFF800000> : vector<4x4xf32>
    %22 = vector.multi_reduction <maximumf>, %21, %cst_13 [2] : vector<4x4x2xf32> to vector<4x4xf32>
    %23 = vector.shape_cast %22 : vector<4x4xf32> to vector<4x4x1xf32>
    %24 = vector.broadcast %23 : vector<4x4x1xf32> to vector<4x4x2xf32>
    %25 = arith.subf %21, %24 : vector<4x4x2xf32>
    %26 = math.exp %25 : vector<4x4x2xf32>
    %cst_14 = arith.constant dense<0.000000e+00> : vector<4x4xf32>
    %27 = vector.multi_reduction <add>, %26, %cst_14 [2] : vector<4x4x2xf32> to vector<4x4xf32>
    %28 = vector.shape_cast %27 : vector<4x4xf32> to vector<4x4x1xf32>
    %29 = tpu.reciprocal %28 {approx = true} : vector<4x4x1xf32> -> vector<4x4x1xf32>
    %30 = vector.broadcast %29 : vector<4x4x1xf32> to vector<4x4x2xf32>
    %31 = arith.mulf %26, %30 : vector<4x4x2xf32>
    %32 = arith.truncf %31 : vector<4x4x2xf32> to vector<4x4x2xbf16>
    "tpu.trace_start"() <{level = 10 : i32, message = "bqk,bkd->bqd"}> : () -> ()
    %cst_15 = arith.constant dense<0.000000e+00> : vector<4x4x16xf32>
    %33 = tpu.matmul %32, %20, %cst_15 {dimension_numbers = #tpu.dot_dimension_numbers<[2], [1], [1], [2], [0, 0, 0, 1, 1, 2], [0], [0]>} : vector<4x4x2xbf16>, vector<4x2x16xbf16>, vector<4x4x16xf32> -> vector<4x4x16xf32>
    "tpu.trace_stop"() : () -> ()
    %34 = vector.shape_cast %33 : vector<4x4x16xf32> to vector<16x16xf32>
    %35 = arith.truncf %34 : vector<16x16xf32> to vector<16x16xbf16>
    %c0_16 = arith.constant 0 : index
    %c0_17 = arith.constant 0 : index
    %36 = vector.load %arg5[%c0_16, %c0_17] : memref<32x32xbf16, #tpu.memory_space<vmem>>, vector<16x32xbf16>
    %cst_18 = arith.constant dense<0.000000e+00> : vector<16x32xf32>
    %37 = tpu.matmul %35, %36, %cst_18 {dimension_numbers = #tpu.dot_dimension_numbers<[1], [0], [0], [1], [0, 0, 1, 1], [], []>} : vector<16x16xbf16>, vector<16x32xbf16>, vector<16x32xf32> -> vector<16x32xf32>
    %38 = arith.addf %12, %37 : vector<16x32xf32>
    %39 = vector.extract_strided_slice %6 {offsets = [0, 0, 16], sizes = [4, 4, 16], strides = [1, 1, 1]} : vector<4x4x32xf32> to vector<4x4x16xf32>
    %cst_19 = arith.constant 2.500000e-01 : f32
    %40 = vector.broadcast %cst_19 : f32 to vector<4x4x16xf32>
    %41 = arith.mulf %39, %40 : vector<4x4x16xf32>
    %42 = arith.truncf %41 : vector<4x4x16xf32> to vector<4x4x16xbf16>
    %43 = vector.extract_strided_slice %11 {offsets = [0, 0, 16], sizes = [4, 2, 16], strides = [1, 1, 1]} : vector<4x2x64xf32> to vector<4x2x16xf32>
    %44 = arith.truncf %43 : vector<4x2x16xf32> to vector<4x2x16xbf16>
    %45 = vector.extract_strided_slice %11 {offsets = [0, 0, 48], sizes = [4, 2, 16], strides = [1, 1, 1]} : vector<4x2x64xf32> to vector<4x2x16xf32>
    %46 = arith.truncf %45 : vector<4x2x16xf32> to vector<4x2x16xbf16>
    "tpu.trace_start"() <{level = 10 : i32, message = "bqd,bkd->bqk"}> : () -> ()
    %cst_20 = arith.constant dense<0.000000e+00> : vector<4x4x2xf32>
    %47 = tpu.matmul %42, %44, %cst_20 {dimension_numbers = #tpu.dot_dimension_numbers<[2], [2], [1], [1], [0, 0, 0, 1, 1, 1], [0], [0]>} : vector<4x4x16xbf16>, vector<4x2x16xbf16>, vector<4x4x2xf32> -> vector<4x4x2xf32>
    "tpu.trace_stop"() : () -> ()
    %cst_21 = arith.constant dense<0xFF800000> : vector<4x4xf32>
    %48 = vector.multi_reduction <maximumf>, %47, %cst_21 [2] : vector<4x4x2xf32> to vector<4x4xf32>
    %49 = vector.shape_cast %48 : vector<4x4xf32> to vector<4x4x1xf32>
    %50 = vector.broadcast %49 : vector<4x4x1xf32> to vector<4x4x2xf32>
    %51 = arith.subf %47, %50 : vector<4x4x2xf32>
    %52 = math.exp %51 : vector<4x4x2xf32>
    %cst_22 = arith.constant dense<0.000000e+00> : vector<4x4xf32>
    %53 = vector.multi_reduction <add>, %52, %cst_22 [2] : vector<4x4x2xf32> to vector<4x4xf32>
    %54 = vector.shape_cast %53 : vector<4x4xf32> to vector<4x4x1xf32>
    %55 = tpu.reciprocal %54 {approx = true} : vector<4x4x1xf32> -> vector<4x4x1xf32>
    %56 = vector.broadcast %55 : vector<4x4x1xf32> to vector<4x4x2xf32>
    %57 = arith.mulf %52, %56 : vector<4x4x2xf32>
    %58 = arith.truncf %57 : vector<4x4x2xf32> to vector<4x4x2xbf16>
    "tpu.trace_start"() <{level = 10 : i32, message = "bqk,bkd->bqd"}> : () -> ()
    %cst_23 = arith.constant dense<0.000000e+00> : vector<4x4x16xf32>
    %59 = tpu.matmul %58, %46, %cst_23 {dimension_numbers = #tpu.dot_dimension_numbers<[2], [1], [1], [2], [0, 0, 0, 1, 1, 2], [0], [0]>} : vector<4x4x2xbf16>, vector<4x2x16xbf16>, vector<4x4x16xf32> -> vector<4x4x16xf32>
    "tpu.trace_stop"() : () -> ()
    %60 = vector.shape_cast %59 : vector<4x4x16xf32> to vector<16x16xf32>
    %61 = arith.truncf %60 : vector<16x16xf32> to vector<16x16xbf16>
    %c16 = arith.constant 16 : index
    %c0_24 = arith.constant 0 : index
    %62 = vector.load %arg5[%c16, %c0_24] : memref<32x32xbf16, #tpu.memory_space<vmem>>, vector<16x32xbf16>
    %cst_25 = arith.constant dense<0.000000e+00> : vector<16x32xf32>
    %63 = tpu.matmul %61, %62, %cst_25 {dimension_numbers = #tpu.dot_dimension_numbers<[1], [0], [0], [1], [0, 0, 1, 1], [], []>} : vector<16x16xbf16>, vector<16x32xbf16>, vector<16x32xf32> -> vector<16x32xf32>
    %64 = arith.addf %38, %63 : vector<16x32xf32>
    %65 = vector.shape_cast %64 : vector<16x32xf32> to vector<4x4x32xf32>
    %66 = arith.addf %65, %0 : vector<4x4x32xf32>
    %c0_26 = arith.constant 0 : index
    %c0_27 = arith.constant 0 : index
    %67 = vector.load %arg6[%c0_26, %c0_27] : memref<1x32xf32, #tpu.memory_space<vmem>>, vector<1x32xf32>
    %c0_28 = arith.constant 0 : index
    %c0_29 = arith.constant 0 : index
    %68 = vector.load %arg7[%c0_28, %c0_29] : memref<1x32xf32, #tpu.memory_space<vmem>>, vector<1x32xf32>
    %cst_30 = arith.constant dense<0.000000e+00> : vector<4x4xf32>
    %69 = vector.multi_reduction <add>, %66, %cst_30 [2] : vector<4x4x32xf32> to vector<4x4xf32>
    %70 = vector.shape_cast %69 : vector<4x4xf32> to vector<4x4x1xf32>
    %cst_31 = arith.constant 3.200000e+01 : f32
    %71 = vector.broadcast %cst_31 : f32 to vector<4x4x1xf32>
    %72 = arith.divf %70, %71 : vector<4x4x1xf32>
    %73 = vector.broadcast %72 : vector<4x4x1xf32> to vector<4x4x32xf32>
    %74 = arith.subf %66, %73 : vector<4x4x32xf32>
    %75 = arith.mulf %74, %74 : vector<4x4x32xf32>
    %cst_32 = arith.constant dense<0.000000e+00> : vector<4x4xf32>
    %76 = vector.multi_reduction <add>, %75, %cst_32 [2] : vector<4x4x32xf32> to vector<4x4xf32>
    %77 = vector.shape_cast %76 : vector<4x4xf32> to vector<4x4x1xf32>
    %cst_33 = arith.constant 3.200000e+01 : f32
    %78 = vector.broadcast %cst_33 : f32 to vector<4x4x1xf32>
    %79 = arith.divf %77, %78 : vector<4x4x1xf32>
    %cst_34 = arith.constant 9.99999974E-6 : f32
    %80 = vector.broadcast %cst_34 : f32 to vector<4x4x1xf32>
    %81 = arith.addf %79, %80 : vector<4x4x1xf32>
    %82 = math.rsqrt %81 : vector<4x4x1xf32>
    %83 = vector.broadcast %82 : vector<4x4x1xf32> to vector<4x4x32xf32>
    %84 = arith.mulf %74, %83 : vector<4x4x32xf32>
    %85 = vector.shape_cast %67 : vector<1x32xf32> to vector<1x1x32xf32>
    %86 = vector.broadcast %85 : vector<1x1x32xf32> to vector<4x4x32xf32>
    %87 = arith.mulf %84, %86 : vector<4x4x32xf32>
    %88 = vector.shape_cast %68 : vector<1x32xf32> to vector<1x1x32xf32>
    %89 = vector.broadcast %88 : vector<1x1x32xf32> to vector<4x4x32xf32>
    %90 = arith.addf %87, %89 : vector<4x4x32xf32>
    %c0_35 = arith.constant 0 : index
    %c0_36 = arith.constant 0 : index
    %c0_37 = arith.constant 0 : index
    %91 = vector.load %arg8[%c0_35, %c0_36, %c0_37] : memref<4x4x32xf32, #tpu.memory_space<vmem>>, vector<4x4x32xf32>
    tpu.vector_store %arg8[%c0_35, %c0_36, %c0_37], %90 {strides = array<i32>} : memref<4x4x32xf32, #tpu.memory_space<vmem>>, vector<4x4x32xf32>,
    return
  }
  func.func @transform_0(%arg0: i32) -> (i32, i32, i32) {
    %c2_i32 = arith.constant 2 : i32
    %c0_i32 = arith.constant 0 : i32
    %0 = arith.cmpi eq, %c2_i32, %c0_i32 : i32
    %c1_i32 = arith.constant 1 : i32
    %1 = arith.select %0, %c1_i32, %c2_i32 : i32
    %2 = arith.remsi %arg0, %1 : i32
    %c0_i32_0 = arith.constant 0 : i32
    %3 = arith.cmpi ne, %2, %c0_i32_0 : i32
    %c0_i32_1 = arith.constant 0 : i32
    %4 = arith.cmpi slt, %2, %c0_i32_1 : i32
    %c0_i32_2 = arith.constant 0 : i32
    %5 = arith.cmpi slt, %1, %c0_i32_2 : i32
    %6 = arith.xori %4, %5 : i1
    %7 = arith.andi %6, %3 : i1
    %8 = arith.addi %2, %1 : i32
    %9 = arith.select %7, %8, %2 : i32
    %c0_i32_3 = arith.constant 0 : i32
    %c0_i32_4 = arith.constant 0 : i32
    %c0_i32_5 = arith.constant 0 : i32
    return %9, %c0_i32_3, %c0_i32_4 : i32, i32, i32
  }
  func.func @transform_1(%arg0: i32) -> (i32, i32, i32) {
    %c0_i32 = arith.constant 0 : i32
    %c0_i32_0 = arith.constant 0 : i32
    %c0_i32_1 = arith.constant 0 : i32
    return %arg0, %c0_i32, %c0_i32_0 : i32, i32, i32
  }
  func.func @transform_2(%arg0: i32) -> (i32, i32) {
    %c0_i32 = arith.constant 0 : i32
    %c0_i32_0 = arith.constant 0 : i32
    %c0_i32_1 = arith.constant 0 : i32
    return %c0_i32, %c0_i32_0 : i32, i32
  }
  func.func @transform_3(%arg0: i32) -> (i32, i32) {
    %c0_i32 = arith.constant 0 : i32
    %c0_i32_0 = arith.constant 0 : i32
    %c0_i32_1 = arith.constant 0 : i32
    return %c0_i32, %c0_i32_0 : i32, i32
  }
  func.func @transform_4(%arg0: i32) -> (i32, i32) {
    %c0_i32 = arith.constant 0 : i32
    %c0_i32_0 = arith.constant 0 : i32
    %c0_i32_1 = arith.constant 0 : i32
    return %c0_i32, %c0_i32_0 : i32, i32
  }
  func.func @transform_5(%arg0: i32) -> (i32, i32) {
    %c0_i32 = arith.constant 0 : i32
    %c0_i32_0 = arith.constant 0 : i32
    %c0_i32_1 = arith.constant 0 : i32
    return %c0_i32, %c0_i32_0 : i32, i32
  }
  func.func @transform_6(%arg0: i32) -> (i32, i32) {
    %c0_i32 = arith.constant 0 : i32
    %c0_i32_0 = arith.constant 0 : i32
    %c0_i32_1 = arith.constant 0 : i32
    return %c0_i32, %c0_i32_0 : i32, i32
  }
  func.func @transform_7(%arg0: i32) -> (i32, i32, i32) {
    %c0_i32 = arith.constant 0 : i32
    %c0_i32_0 = arith.constant 0 : i32
    %c0_i32_1 = arith.constant 0 : i32
    return %arg0, %c0_i32, %c0_i32_0 : i32, i32, i32
  }
}

module attributes {stable_mosaic.version = 11 : i64} {
  func.func @_mha_kernel(%arg0: i32, %arg1: memref<1x2x32xf32, #tpu.memory_space<vmem>>, %arg2: memref<1x4x32xf32, #tpu.memory_space<vmem>>, %arg3: memref<32x32xbf16, #tpu.memory_space<vmem>>, %arg4: memref<32x64xbf16, #tpu.memory_space<vmem>>, %arg5: memref<32x32xbf16, #tpu.memory_space<vmem>>, %arg6: memref<1x2x32xf32, #tpu.memory_space<vmem>>) attributes {dimension_semantics = [#tpu.dimension_semantics<parallel>], iteration_bounds = array<i64: 4>, scalar_prefetch = 0 : i64, scratch_operands = 0 : i64, tpu.core_type = #tpu.core_type<tc>, window_params = [{transform_indices = @transform_0, window_bounds = array<i64: 1, 2, 32>}, {transform_indices = @transform_1, window_bounds = array<i64: 1, 4, 32>}, {pipeline_mode = #tpu.pipeline_mode<synchronous>, transform_indices = @transform_2, window_bounds = array<i64: 32, 32>}, {pipeline_mode = #tpu.pipeline_mode<synchronous>, transform_indices = @transform_3, window_bounds = array<i64: 32, 64>}, {pipeline_mode = #tpu.pipeline_mode<synchronous>, transform_indices = @transform_4, window_bounds = array<i64: 32, 32>}, {transform_indices = @transform_5, window_bounds = array<i64: 1, 2, 32>}]} {
    %c0 = arith.constant 0 : index
    %c0_0 = arith.constant 0 : index
    %c0_1 = arith.constant 0 : index
    %0 = vector.load %arg1[%c0, %c0_0, %c0_1] : memref<1x2x32xf32, #tpu.memory_space<vmem>>, vector<1x2x32xf32>
    %c0_2 = arith.constant 0 : index
    %c0_3 = arith.constant 0 : index
    %c0_4 = arith.constant 0 : index
    %1 = vector.load %arg2[%c0_2, %c0_3, %c0_4] : memref<1x4x32xf32, #tpu.memory_space<vmem>>, vector<1x4x32xf32>
    %2 = vector.shape_cast %0 : vector<1x2x32xf32> to vector<2x32xf32>
    %3 = arith.truncf %2 : vector<2x32xf32> to vector<2x32xbf16>
    %c0_5 = arith.constant 0 : index
    %c0_6 = arith.constant 0 : index
    %4 = vector.load %arg3[%c0_5, %c0_6] : memref<32x32xbf16, #tpu.memory_space<vmem>>, vector<32x32xbf16>
    %cst = arith.constant dense<0.000000e+00> : vector<2x32xf32>
    %5 = tpu.matmul %3, %4, %cst {dimension_numbers = #tpu.dot_dimension_numbers<[1], [0], [0], [1], [0, 0, 1, 1], [], []>} : vector<2x32xbf16>, vector<32x32xbf16>, vector<2x32xf32> -> vector<2x32xf32>
    %6 = vector.shape_cast %5 : vector<2x32xf32> to vector<1x2x32xf32>
    %7 = vector.shape_cast %1 : vector<1x4x32xf32> to vector<4x32xf32>
    %8 = arith.truncf %7 : vector<4x32xf32> to vector<4x32xbf16>
    %c0_7 = arith.constant 0 : index
    %c0_8 = arith.constant 0 : index
    %9 = vector.load %arg4[%c0_7, %c0_8] : memref<32x64xbf16, #tpu.memory_space<vmem>>, vector<32x64xbf16>
    %cst_9 = arith.constant dense<0.000000e+00> : vector<4x64xf32>
    %10 = tpu.matmul %8, %9, %cst_9 {dimension_numbers = #tpu.dot_dimension_numbers<[1], [0], [0], [1], [0, 0, 1, 1], [], []>} : vector<4x32xbf16>, vector<32x64xbf16>, vector<4x64xf32> -> vector<4x64xf32>
    %11 = vector.shape_cast %10 : vector<4x64xf32> to vector<1x4x64xf32>
    %cst_10 = arith.constant 0.000000e+00 : f32
    %12 = vector.broadcast %cst_10 : f32 to vector<2x32xf32>
    %13 = vector.extract_strided_slice %6 {offsets = [0, 0, 0], sizes = [1, 2, 16], strides = [1, 1, 1]} : vector<1x2x32xf32> to vector<1x2x16xf32>
    %cst_11 = arith.constant 2.500000e-01 : f32
    %14 = vector.broadcast %cst_11 : f32 to vector<1x2x16xf32>
    %15 = arith.mulf %13, %14 : vector<1x2x16xf32>
    %16 = arith.truncf %15 : vector<1x2x16xf32> to vector<1x2x16xbf16>
    %17 = vector.extract_strided_slice %11 {offsets = [0, 0, 0], sizes = [1, 4, 16], strides = [1, 1, 1]} : vector<1x4x64xf32> to vector<1x4x16xf32>
    %18 = arith.truncf %17 : vector<1x4x16xf32> to vector<1x4x16xbf16>
    %19 = vector.extract_strided_slice %11 {offsets = [0, 0, 32], sizes = [1, 4, 16], strides = [1, 1, 1]} : vector<1x4x64xf32> to vector<1x4x16xf32>
    %20 = arith.truncf %19 : vector<1x4x16xf32> to vector<1x4x16xbf16>
    "tpu.trace_start"() <{level = 10 : i32, message = "bqd,bkd->bqk"}> : () -> ()
    %cst_12 = arith.constant dense<0.000000e+00> : vector<1x2x4xf32>
    %21 = tpu.matmul %16, %18, %cst_12 {dimension_numbers = #tpu.dot_dimension_numbers<[2], [2], [1], [1], [0, 0, 0, 1, 1, 1], [0], [0]>} : vector<1x2x16xbf16>, vector<1x4x16xbf16>, vector<1x2x4xf32> -> vector<1x2x4xf32>
    "tpu.trace_stop"() : () -> ()
    %cst_13 = arith.constant dense<0xFF800000> : vector<1x2xf32>
    %22 = vector.multi_reduction <maximumf>, %21, %cst_13 [2] : vector<1x2x4xf32> to vector<1x2xf32>
    %23 = vector.shape_cast %22 : vector<1x2xf32> to vector<1x2x1xf32>
    %24 = vector.broadcast %23 : vector<1x2x1xf32> to vector<1x2x4xf32>
    %25 = arith.subf %21, %24 : vector<1x2x4xf32>
    %26 = math.exp %25 : vector<1x2x4xf32>
    %cst_14 = arith.constant dense<0.000000e+00> : vector<1x2xf32>
    %27 = vector.multi_reduction <add>, %26, %cst_14 [2] : vector<1x2x4xf32> to vector<1x2xf32>
    %28 = vector.shape_cast %27 : vector<1x2xf32> to vector<1x2x1xf32>
    %29 = tpu.reciprocal %28 {approx = true} : vector<1x2x1xf32> -> vector<1x2x1xf32>
    %30 = vector.broadcast %29 : vector<1x2x1xf32> to vector<1x2x4xf32>
    %31 = arith.mulf %26, %30 : vector<1x2x4xf32>
    %32 = arith.truncf %31 : vector<1x2x4xf32> to vector<1x2x4xbf16>
    "tpu.trace_start"() <{level = 10 : i32, message = "bqk,bkd->bqd"}> : () -> ()
    %cst_15 = arith.constant dense<0.000000e+00> : vector<1x2x16xf32>
    %33 = tpu.matmul %32, %20, %cst_15 {dimension_numbers = #tpu.dot_dimension_numbers<[2], [1], [1], [2], [0, 0, 0, 1, 1, 2], [0], [0]>} : vector<1x2x4xbf16>, vector<1x4x16xbf16>, vector<1x2x16xf32> -> vector<1x2x16xf32>
    "tpu.trace_stop"() : () -> ()
    %34 = vector.shape_cast %33 : vector<1x2x16xf32> to vector<2x16xf32>
    %35 = arith.truncf %34 : vector<2x16xf32> to vector<2x16xbf16>
    %c0_16 = arith.constant 0 : index
    %c0_17 = arith.constant 0 : index
    %36 = vector.load %arg5[%c0_16, %c0_17] : memref<32x32xbf16, #tpu.memory_space<vmem>>, vector<16x32xbf16>
    %cst_18 = arith.constant dense<0.000000e+00> : vector<2x32xf32>
    %37 = tpu.matmul %35, %36, %cst_18 {dimension_numbers = #tpu.dot_dimension_numbers<[1], [0], [0], [1], [0, 0, 1, 1], [], []>} : vector<2x16xbf16>, vector<16x32xbf16>, vector<2x32xf32> -> vector<2x32xf32>
    %38 = arith.addf %12, %37 : vector<2x32xf32>
    %39 = vector.extract_strided_slice %6 {offsets = [0, 0, 16], sizes = [1, 2, 16], strides = [1, 1, 1]} : vector<1x2x32xf32> to vector<1x2x16xf32>
    %cst_19 = arith.constant 2.500000e-01 : f32
    %40 = vector.broadcast %cst_19 : f32 to vector<1x2x16xf32>
    %41 = arith.mulf %39, %40 : vector<1x2x16xf32>
    %42 = arith.truncf %41 : vector<1x2x16xf32> to vector<1x2x16xbf16>
    %43 = vector.extract_strided_slice %11 {offsets = [0, 0, 16], sizes = [1, 4, 16], strides = [1, 1, 1]} : vector<1x4x64xf32> to vector<1x4x16xf32>
    %44 = arith.truncf %43 : vector<1x4x16xf32> to vector<1x4x16xbf16>
    %45 = vector.extract_strided_slice %11 {offsets = [0, 0, 48], sizes = [1, 4, 16], strides = [1, 1, 1]} : vector<1x4x64xf32> to vector<1x4x16xf32>
    %46 = arith.truncf %45 : vector<1x4x16xf32> to vector<1x4x16xbf16>
    "tpu.trace_start"() <{level = 10 : i32, message = "bqd,bkd->bqk"}> : () -> ()
    %cst_20 = arith.constant dense<0.000000e+00> : vector<1x2x4xf32>
    %47 = tpu.matmul %42, %44, %cst_20 {dimension_numbers = #tpu.dot_dimension_numbers<[2], [2], [1], [1], [0, 0, 0, 1, 1, 1], [0], [0]>} : vector<1x2x16xbf16>, vector<1x4x16xbf16>, vector<1x2x4xf32> -> vector<1x2x4xf32>
    "tpu.trace_stop"() : () -> ()
    %cst_21 = arith.constant dense<0xFF800000> : vector<1x2xf32>
    %48 = vector.multi_reduction <maximumf>, %47, %cst_21 [2] : vector<1x2x4xf32> to vector<1x2xf32>
    %49 = vector.shape_cast %48 : vector<1x2xf32> to vector<1x2x1xf32>
    %50 = vector.broadcast %49 : vector<1x2x1xf32> to vector<1x2x4xf32>
    %51 = arith.subf %47, %50 : vector<1x2x4xf32>
    %52 = math.exp %51 : vector<1x2x4xf32>
    %cst_22 = arith.constant dense<0.000000e+00> : vector<1x2xf32>
    %53 = vector.multi_reduction <add>, %52, %cst_22 [2] : vector<1x2x4xf32> to vector<1x2xf32>
    %54 = vector.shape_cast %53 : vector<1x2xf32> to vector<1x2x1xf32>
    %55 = tpu.reciprocal %54 {approx = true} : vector<1x2x1xf32> -> vector<1x2x1xf32>
    %56 = vector.broadcast %55 : vector<1x2x1xf32> to vector<1x2x4xf32>
    %57 = arith.mulf %52, %56 : vector<1x2x4xf32>
    %58 = arith.truncf %57 : vector<1x2x4xf32> to vector<1x2x4xbf16>
    "tpu.trace_start"() <{level = 10 : i32, message = "bqk,bkd->bqd"}> : () -> ()
    %cst_23 = arith.constant dense<0.000000e+00> : vector<1x2x16xf32>
    %59 = tpu.matmul %58, %46, %cst_23 {dimension_numbers = #tpu.dot_dimension_numbers<[2], [1], [1], [2], [0, 0, 0, 1, 1, 2], [0], [0]>} : vector<1x2x4xbf16>, vector<1x4x16xbf16>, vector<1x2x16xf32> -> vector<1x2x16xf32>
    "tpu.trace_stop"() : () -> ()
    %60 = vector.shape_cast %59 : vector<1x2x16xf32> to vector<2x16xf32>
    %61 = arith.truncf %60 : vector<2x16xf32> to vector<2x16xbf16>
    %c16 = arith.constant 16 : index
    %c0_24 = arith.constant 0 : index
    %62 = vector.load %arg5[%c16, %c0_24] : memref<32x32xbf16, #tpu.memory_space<vmem>>, vector<16x32xbf16>
    %cst_25 = arith.constant dense<0.000000e+00> : vector<2x32xf32>
    %63 = tpu.matmul %61, %62, %cst_25 {dimension_numbers = #tpu.dot_dimension_numbers<[1], [0], [0], [1], [0, 0, 1, 1], [], []>} : vector<2x16xbf16>, vector<16x32xbf16>, vector<2x32xf32> -> vector<2x32xf32>
    %64 = arith.addf %38, %63 : vector<2x32xf32>
    %65 = vector.shape_cast %64 : vector<2x32xf32> to vector<1x2x32xf32>
    %c0_26 = arith.constant 0 : index
    %c0_27 = arith.constant 0 : index
    %c0_28 = arith.constant 0 : index
    %66 = vector.load %arg6[%c0_26, %c0_27, %c0_28] : memref<1x2x32xf32, #tpu.memory_space<vmem>>, vector<1x2x32xf32>
    tpu.vector_store %arg6[%c0_26, %c0_27, %c0_28], %65 {strides = array<i32>} : memref<1x2x32xf32, #tpu.memory_space<vmem>>, vector<1x2x32xf32>,
    return
  }
  func.func @transform_0(%arg0: i32) -> (i32, i32, i32) {
    %c2_i32 = arith.constant 2 : i32
    %c0_i32 = arith.constant 0 : i32
    %0 = arith.cmpi eq, %c2_i32, %c0_i32 : i32
    %c1_i32 = arith.constant 1 : i32
    %1 = arith.select %0, %c1_i32, %c2_i32 : i32
    %2 = arith.remsi %arg0, %1 : i32
    %c0_i32_0 = arith.constant 0 : i32
    %3 = arith.cmpi ne, %2, %c0_i32_0 : i32
    %c0_i32_1 = arith.constant 0 : i32
    %4 = arith.cmpi slt, %2, %c0_i32_1 : i32
    %c0_i32_2 = arith.constant 0 : i32
    %5 = arith.cmpi slt, %1, %c0_i32_2 : i32
    %6 = arith.xori %4, %5 : i1
    %7 = arith.andi %6, %3 : i1
    %8 = arith.addi %2, %1 : i32
    %9 = arith.select %7, %8, %2 : i32
    %c0_i32_3 = arith.constant 0 : i32
    %c0_i32_4 = arith.constant 0 : i32
    %c0_i32_5 = arith.constant 0 : i32
    return %9, %c0_i32_3, %c0_i32_4 : i32, i32, i32
  }
  func.func @transform_1(%arg0: i32) -> (i32, i32, i32) {
    %c0_i32 = arith.constant 0 : i32
    %c0_i32_0 = arith.constant 0 : i32
    %c0_i32_1 = arith.constant 0 : i32
    return %arg0, %c0_i32, %c0_i32_0 : i32, i32, i32
  }
  func.func @transform_2(%arg0: i32) -> (i32, i32) {
    %c0_i32 = arith.constant 0 : i32
    %c0_i32_0 = arith.constant 0 : i32
    %c0_i32_1 = arith.constant 0 : i32
    return %c0_i32, %c0_i32_0 : i32, i32
  }
  func.func @transform_3(%arg0: i32) -> (i32, i32) {
    %c0_i32 = arith.constant 0 : i32
    %c0_i32_0 = arith.constant 0 : i32
    %c0_i32_1 = arith.constant 0 : i32
    return %c0_i32, %c0_i32_0 : i32, i32
  }
  func.func @transform_4(%arg0: i32) -> (i32, i32) {
    %c0_i32 = arith.constant 0 : i32
    %c0_i32_0 = arith.constant 0 : i32
    %c0_i32_1 = arith.constant 0 : i32
    return %c0_i32, %c0_i32_0 : i32, i32
  }
  func.func @transform_5(%arg0: i32) -> (i32, i32, i32) {
    %c0_i32 = arith.constant 0 : i32
    %c0_i32_0 = arith.constant 0 : i32
    %c0_i32_1 = arith.constant 0 : i32
    return %arg0, %c0_i32, %c0_i32_0 : i32, i32, i32
  }
}

module attributes {stable_mosaic.version = 11 : i64} {
  func.func @_mha_kernel(%arg0: i32, %arg1: memref<2x4x32xf32, #tpu.memory_space<vmem>>, %arg2: memref<2x2x32xf32, #tpu.memory_space<vmem>>, %arg3: memref<32x32xbf16, #tpu.memory_space<vmem>>, %arg4: memref<32x64xbf16, #tpu.memory_space<vmem>>, %arg5: memref<32x32xbf16, #tpu.memory_space<vmem>>, %arg6: memref<1x32xf32, #tpu.memory_space<vmem>>, %arg7: memref<1x32xf32, #tpu.memory_space<vmem>>, %arg8: memref<2x4x32xf32, #tpu.memory_space<vmem>>) attributes {dimension_semantics = [#tpu.dimension_semantics<parallel>], iteration_bounds = array<i64: 2>, scalar_prefetch = 0 : i64, scratch_operands = 0 : i64, tpu.core_type = #tpu.core_type<tc>, window_params = [{transform_indices = @transform_0, window_bounds = array<i64: 2, 4, 32>}, {transform_indices = @transform_1, window_bounds = array<i64: 2, 2, 32>}, {pipeline_mode = #tpu.pipeline_mode<synchronous>, transform_indices = @transform_2, window_bounds = array<i64: 32, 32>}, {pipeline_mode = #tpu.pipeline_mode<synchronous>, transform_indices = @transform_3, window_bounds = array<i64: 32, 64>}, {pipeline_mode = #tpu.pipeline_mode<synchronous>, transform_indices = @transform_4, window_bounds = array<i64: 32, 32>}, {pipeline_mode = #tpu.pipeline_mode<synchronous>, transform_indices = @transform_5, window_bounds = array<i64: 1, 32>}, {pipeline_mode = #tpu.pipeline_mode<synchronous>, transform_indices = @transform_6, window_bounds = array<i64: 1, 32>}, {transform_indices = @transform_7, window_bounds = array<i64: 2, 4, 32>}]} {
    %c0 = arith.constant 0 : index
    %c0_0 = arith.constant 0 : index
    %c0_1 = arith.constant 0 : index
    %0 = vector.load %arg1[%c0, %c0_0, %c0_1] : memref<2x4x32xf32, #tpu.memory_space<vmem>>, vector<2x4x32xf32>
    %c0_2 = arith.constant 0 : index
    %c0_3 = arith.constant 0 : index
    %c0_4 = arith.constant 0 : index
    %1 = vector.load %arg2[%c0_2, %c0_3, %c0_4] : memref<2x2x32xf32, #tpu.memory_space<vmem>>, vector<2x2x32xf32>
    %2 = vector.shape_cast %0 : vector<2x4x32xf32> to vector<8x32xf32>
    %3 = arith.truncf %2 : vector<8x32xf32> to vector<8x32xbf16>
    %c0_5 = arith.constant 0 : index
    %c0_6 = arith.constant 0 : index
    %4 = vector.load %arg3[%c0_5, %c0_6] : memref<32x32xbf16, #tpu.memory_space<vmem>>, vector<32x32xbf16>
    %cst = arith.constant dense<0.000000e+00> : vector<8x32xf32>
    %5 = tpu.matmul %3, %4, %cst {dimension_numbers = #tpu.dot_dimension_numbers<[1], [0], [0], [1], [0, 0, 1, 1], [], []>} : vector<8x32xbf16>, vector<32x32xbf16>, vector<8x32xf32> -> vector<8x32xf32>
    %6 = vector.shape_cast %5 : vector<8x32xf32> to vector<2x4x32xf32>
    %7 = vector.shape_cast %1 : vector<2x2x32xf32> to vector<4x32xf32>
    %8 = arith.truncf %7 : vector<4x32xf32> to vector<4x32xbf16>
    %c0_7 = arith.constant 0 : index
    %c0_8 = arith.constant 0 : index
    %9 = vector.load %arg4[%c0_7, %c0_8] : memref<32x64xbf16, #tpu.memory_space<vmem>>, vector<32x64xbf16>
    %cst_9 = arith.constant dense<0.000000e+00> : vector<4x64xf32>
    %10 = tpu.matmul %8, %9, %cst_9 {dimension_numbers = #tpu.dot_dimension_numbers<[1], [0], [0], [1], [0, 0, 1, 1], [], []>} : vector<4x32xbf16>, vector<32x64xbf16>, vector<4x64xf32> -> vector<4x64xf32>
    %11 = vector.shape_cast %10 : vector<4x64xf32> to vector<2x2x64xf32>
    %cst_10 = arith.constant 0.000000e+00 : f32
    %12 = vector.broadcast %cst_10 : f32 to vector<8x32xf32>
    %13 = vector.extract_strided_slice %6 {offsets = [0, 0, 0], sizes = [2, 4, 16], strides = [1, 1, 1]} : vector<2x4x32xf32> to vector<2x4x16xf32>
    %cst_11 = arith.constant 2.500000e-01 : f32
    %14 = vector.broadcast %cst_11 : f32 to vector<2x4x16xf32>
    %15 = arith.mulf %13, %14 : vector<2x4x16xf32>
    %16 = arith.truncf %15 : vector<2x4x16xf32> to vector<2x4x16xbf16>
    %17 = vector.extract_strided_slice %11 {offsets = [0, 0, 0], sizes = [2, 2, 16], strides = [1, 1, 1]} : vector<2x2x64xf32> to vector<2x2x16xf32>
    %18 = arith.truncf %17 : vector<2x2x16xf32> to vector<2x2x16xbf16>
    %19 = vector.extract_strided_slice %11 {offsets = [0, 0, 32], sizes = [2, 2, 16], strides = [1, 1, 1]} : vector<2x2x64xf32> to vector<2x2x16xf32>
    %20 = arith.truncf %19 : vector<2x2x16xf32> to vector<2x2x16xbf16>
    "tpu.trace_start"() <{level = 10 : i32, message = "bqd,bkd->bqk"}> : () -> ()
    %cst_12 = arith.constant dense<0.000000e+00> : vector<2x4x2xf32>
    %21 = tpu.matmul %16, %18, %cst_12 {dimension_numbers = #tpu.dot_dimension_numbers<[2], [2], [1], [1], [0, 0, 0, 1, 1, 1], [0], [0]>} : vector<2x4x16xbf16>, vector<2x2x16xbf16>, vector<2x4x2xf32> -> vector<2x4x2xf32>
    "tpu.trace_stop"() : () -> ()
    %cst_13 = arith.constant dense<0xFF800000> : vector<2x4xf32>
    %22 = vector.multi_reduction <maximumf>, %21, %cst_13 [2] : vector<2x4x2xf32> to vector<2x4xf32>
    %23 = vector.shape_cast %22 : vector<2x4xf32> to vector<2x4x1xf32>
    %24 = vector.broadcast %23 : vector<2x4x1xf32> to vector<2x4x2xf32>
    %25 = arith.subf %21, %24 : vector<2x4x2xf32>
    %26 = math.exp %25 : vector<2x4x2xf32>
    %cst_14 = arith.constant dense<0.000000e+00> : vector<2x4xf32>
    %27 = vector.multi_reduction <add>, %26, %cst_14 [2] : vector<2x4x2xf32> to vector<2x4xf32>
    %28 = vector.shape_cast %27 : vector<2x4xf32> to vector<2x4x1xf32>
    %29 = tpu.reciprocal %28 {approx = true} : vector<2x4x1xf32> -> vector<2x4x1xf32>
    %30 = vector.broadcast %29 : vector<2x4x1xf32> to vector<2x4x2xf32>
    %31 = arith.mulf %26, %30 : vector<2x4x2xf32>
    %32 = arith.truncf %31 : vector<2x4x2xf32> to vector<2x4x2xbf16>
    "tpu.trace_start"() <{level = 10 : i32, message = "bqk,bkd->bqd"}> : () -> ()
    %cst_15 = arith.constant dense<0.000000e+00> : vector<2x4x16xf32>
    %33 = tpu.matmul %32, %20, %cst_15 {dimension_numbers = #tpu.dot_dimension_numbers<[2], [1], [1], [2], [0, 0, 0, 1, 1, 2], [0], [0]>} : vector<2x4x2xbf16>, vector<2x2x16xbf16>, vector<2x4x16xf32> -> vector<2x4x16xf32>
    "tpu.trace_stop"() : () -> ()
    %34 = vector.shape_cast %33 : vector<2x4x16xf32> to vector<8x16xf32>
    %35 = arith.truncf %34 : vector<8x16xf32> to vector<8x16xbf16>
    %c0_16 = arith.constant 0 : index
    %c0_17 = arith.constant 0 : index
    %36 = vector.load %arg5[%c0_16, %c0_17] : memref<32x32xbf16, #tpu.memory_space<vmem>>, vector<16x32xbf16>
    %cst_18 = arith.constant dense<0.000000e+00> : vector<8x32xf32>
    %37 = tpu.matmul %35, %36, %cst_18 {dimension_numbers = #tpu.dot_dimension_numbers<[1], [0], [0], [1], [0, 0, 1, 1], [], []>} : vector<8x16xbf16>, vector<16x32xbf16>, vector<8x32xf32> -> vector<8x32xf32>
    %38 = arith.addf %12, %37 : vector<8x32xf32>
    %39 = vector.extract_strided_slice %6 {offsets = [0, 0, 16], sizes = [2, 4, 16], strides = [1, 1, 1]} : vector<2x4x32xf32> to vector<2x4x16xf32>
    %cst_19 = arith.constant 2.500000e-01 : f32
    %40 = vector.broadcast %cst_19 : f32 to vector<2x4x16xf32>
    %41 = arith.mulf %39, %40 : vector<2x4x16xf32>
    %42 = arith.truncf %41 : vector<2x4x16xf32> to vector<2x4x16xbf16>
    %43 = vector.extract_strided_slice %11 {offsets = [0, 0, 16], sizes = [2, 2, 16], strides = [1, 1, 1]} : vector<2x2x64xf32> to vector<2x2x16xf32>
    %44 = arith.truncf %43 : vector<2x2x16xf32> to vector<2x2x16xbf16>
    %45 = vector.extract_strided_slice %11 {offsets = [0, 0, 48], sizes = [2, 2, 16], strides = [1, 1, 1]} : vector<2x2x64xf32> to vector<2x2x16xf32>
    %46 = arith.truncf %45 : vector<2x2x16xf32> to vector<2x2x16xbf16>
    "tpu.trace_start"() <{level = 10 : i32, message = "bqd,bkd->bqk"}> : () -> ()
    %cst_20 = arith.constant dense<0.000000e+00> : vector<2x4x2xf32>
    %47 = tpu.matmul %42, %44, %cst_20 {dimension_numbers = #tpu.dot_dimension_numbers<[2], [2], [1], [1], [0, 0, 0, 1, 1, 1], [0], [0]>} : vector<2x4x16xbf16>, vector<2x2x16xbf16>, vector<2x4x2xf32> -> vector<2x4x2xf32>
    "tpu.trace_stop"() : () -> ()
    %cst_21 = arith.constant dense<0xFF800000> : vector<2x4xf32>
    %48 = vector.multi_reduction <maximumf>, %47, %cst_21 [2] : vector<2x4x2xf32> to vector<2x4xf32>
    %49 = vector.shape_cast %48 : vector<2x4xf32> to vector<2x4x1xf32>
    %50 = vector.broadcast %49 : vector<2x4x1xf32> to vector<2x4x2xf32>
    %51 = arith.subf %47, %50 : vector<2x4x2xf32>
    %52 = math.exp %51 : vector<2x4x2xf32>
    %cst_22 = arith.constant dense<0.000000e+00> : vector<2x4xf32>
    %53 = vector.multi_reduction <add>, %52, %cst_22 [2] : vector<2x4x2xf32> to vector<2x4xf32>
    %54 = vector.shape_cast %53 : vector<2x4xf32> to vector<2x4x1xf32>
    %55 = tpu.reciprocal %54 {approx = true} : vector<2x4x1xf32> -> vector<2x4x1xf32>
    %56 = vector.broadcast %55 : vector<2x4x1xf32> to vector<2x4x2xf32>
    %57 = arith.mulf %52, %56 : vector<2x4x2xf32>
    %58 = arith.truncf %57 : vector<2x4x2xf32> to vector<2x4x2xbf16>
    "tpu.trace_start"() <{level = 10 : i32, message = "bqk,bkd->bqd"}> : () -> ()
    %cst_23 = arith.constant dense<0.000000e+00> : vector<2x4x16xf32>
    %59 = tpu.matmul %58, %46, %cst_23 {dimension_numbers = #tpu.dot_dimension_numbers<[2], [1], [1], [2], [0, 0, 0, 1, 1, 2], [0], [0]>} : vector<2x4x2xbf16>, vector<2x2x16xbf16>, vector<2x4x16xf32> -> vector<2x4x16xf32>
    "tpu.trace_stop"() : () -> ()
    %60 = vector.shape_cast %59 : vector<2x4x16xf32> to vector<8x16xf32>
    %61 = arith.truncf %60 : vector<8x16xf32> to vector<8x16xbf16>
    %c16 = arith.constant 16 : index
    %c0_24 = arith.constant 0 : index
    %62 = vector.load %arg5[%c16, %c0_24] : memref<32x32xbf16, #tpu.memory_space<vmem>>, vector<16x32xbf16>
    %cst_25 = arith.constant dense<0.000000e+00> : vector<8x32xf32>
    %63 = tpu.matmul %61, %62, %cst_25 {dimension_numbers = #tpu.dot_dimension_numbers<[1], [0], [0], [1], [0, 0, 1, 1], [], []>} : vector<8x16xbf16>, vector<16x32xbf16>, vector<8x32xf32> -> vector<8x32xf32>
    %64 = arith.addf %38, %63 : vector<8x32xf32>
    %65 = vector.shape_cast %64 : vector<8x32xf32> to vector<2x4x32xf32>
    %66 = arith.addf %65, %0 : vector<2x4x32xf32>
    %c0_26 = arith.constant 0 : index
    %c0_27 = arith.constant 0 : index
    %67 = vector.load %arg6[%c0_26, %c0_27] : memref<1x32xf32, #tpu.memory_space<vmem>>, vector<1x32xf32>
    %c0_28 = arith.constant 0 : index
    %c0_29 = arith.constant 0 : index
    %68 = vector.load %arg7[%c0_28, %c0_29] : memref<1x32xf32, #tpu.memory_space<vmem>>, vector<1x32xf32>
    %cst_30 = arith.constant dense<0.000000e+00> : vector<2x4xf32>
    %69 = vector.multi_reduction <add>, %66, %cst_30 [2] : vector<2x4x32xf32> to vector<2x4xf32>
    %70 = vector.shape_cast %69 : vector<2x4xf32> to vector<2x4x1xf32>
    %cst_31 = arith.constant 3.200000e+01 : f32
    %71 = vector.broadcast %cst_31 : f32 to vector<2x4x1xf32>
    %72 = arith.divf %70, %71 : vector<2x4x1xf32>
    %73 = vector.broadcast %72 : vector<2x4x1xf32> to vector<2x4x32xf32>
    %74 = arith.subf %66, %73 : vector<2x4x32xf32>
    %75 = arith.mulf %74, %74 : vector<2x4x32xf32>
    %cst_32 = arith.constant dense<0.000000e+00> : vector<2x4xf32>
    %76 = vector.multi_reduction <add>, %75, %cst_32 [2] : vector<2x4x32xf32> to vector<2x4xf32>
    %77 = vector.shape_cast %76 : vector<2x4xf32> to vector<2x4x1xf32>
    %cst_33 = arith.constant 3.200000e+01 : f32
    %78 = vector.broadcast %cst_33 : f32 to vector<2x4x1xf32>
    %79 = arith.divf %77, %78 : vector<2x4x1xf32>
    %cst_34 = arith.constant 9.99999974E-6 : f32
    %80 = vector.broadcast %cst_34 : f32 to vector<2x4x1xf32>
    %81 = arith.addf %79, %80 : vector<2x4x1xf32>
    %82 = math.rsqrt %81 : vector<2x4x1xf32>
    %83 = vector.broadcast %82 : vector<2x4x1xf32> to vector<2x4x32xf32>
    %84 = arith.mulf %74, %83 : vector<2x4x32xf32>
    %85 = vector.shape_cast %67 : vector<1x32xf32> to vector<1x1x32xf32>
    %86 = vector.broadcast %85 : vector<1x1x32xf32> to vector<2x4x32xf32>
    %87 = arith.mulf %84, %86 : vector<2x4x32xf32>
    %88 = vector.shape_cast %68 : vector<1x32xf32> to vector<1x1x32xf32>
    %89 = vector.broadcast %88 : vector<1x1x32xf32> to vector<2x4x32xf32>
    %90 = arith.addf %87, %89 : vector<2x4x32xf32>
    %c0_35 = arith.constant 0 : index
    %c0_36 = arith.constant 0 : index
    %c0_37 = arith.constant 0 : index
    %91 = vector.load %arg8[%c0_35, %c0_36, %c0_37] : memref<2x4x32xf32, #tpu.memory_space<vmem>>, vector<2x4x32xf32>
    tpu.vector_store %arg8[%c0_35, %c0_36, %c0_37], %90 {strides = array<i32>} : memref<2x4x32xf32, #tpu.memory_space<vmem>>, vector<2x4x32xf32>,
    return
  }
  func.func @transform_0(%arg0: i32) -> (i32, i32, i32) {
    %c2_i32 = arith.constant 2 : i32
    %c0_i32 = arith.constant 0 : i32
    %0 = arith.cmpi eq, %c2_i32, %c0_i32 : i32
    %c1_i32 = arith.constant 1 : i32
    %1 = arith.select %0, %c1_i32, %c2_i32 : i32
    %2 = arith.remsi %arg0, %1 : i32
    %c0_i32_0 = arith.constant 0 : i32
    %3 = arith.cmpi ne, %2, %c0_i32_0 : i32
    %c0_i32_1 = arith.constant 0 : i32
    %4 = arith.cmpi slt, %2, %c0_i32_1 : i32
    %c0_i32_2 = arith.constant 0 : i32
    %5 = arith.cmpi slt, %1, %c0_i32_2 : i32
    %6 = arith.xori %4, %5 : i1
    %7 = arith.andi %6, %3 : i1
    %8 = arith.addi %2, %1 : i32
    %9 = arith.select %7, %8, %2 : i32
    %c0_i32_3 = arith.constant 0 : i32
    %c0_i32_4 = arith.constant 0 : i32
    %c0_i32_5 = arith.constant 0 : i32
    return %9, %c0_i32_3, %c0_i32_4 : i32, i32, i32
  }
  func.func @transform_1(%arg0: i32) -> (i32, i32, i32) {
    %c0_i32 = arith.constant 0 : i32
    %c0_i32_0 = arith.constant 0 : i32
    %c0_i32_1 = arith.constant 0 : i32
    return %arg0, %c0_i32, %c0_i32_0 : i32, i32, i32
  }
  func.func @transform_2(%arg0: i32) -> (i32, i32) {
    %c0_i32 = arith.constant 0 : i32
    %c0_i32_0 = arith.constant 0 : i32
    %c0_i32_1 = arith.constant 0 : i32
    return %c0_i32, %c0_i32_0 : i32, i32
  }
  func.func @transform_3(%arg0: i32) -> (i32, i32) {
    %c0_i32 = arith.constant 0 : i32
    %c0_i32_0 = arith.constant 0 : i32
    %c0_i32_1 = arith.constant 0 : i32
    return %c0_i32, %c0_i32_0 : i32, i32
  }
  func.func @transform_4(%arg0: i32) -> (i32, i32) {
    %c0_i32 = arith.constant 0 : i32
    %c0_i32_0 = arith.constant 0 : i32
    %c0_i32_1 = arith.constant 0 : i32
    return %c0_i32, %c0_i32_0 : i32, i32
  }
  func.func @transform_5(%arg0: i32) -> (i32, i32) {
    %c0_i32 = arith.constant 0 : i32
    %c0_i32_0 = arith.constant 0 : i32
    %c0_i32_1 = arith.constant 0 : i32
    return %c0_i32, %c0_i32_0 : i32, i32
  }
  func.func @transform_6(%arg0: i32) -> (i32, i32) {
    %c0_i32 = arith.constant 0 : i32
    %c0_i32_0 = arith.constant 0 : i32
    %c0_i32_1 = arith.constant 0 : i32
    return %c0_i32, %c0_i32_0 : i32, i32
  }
  func.func @transform_7(%arg0: i32) -> (i32, i32, i32) {
    %c0_i32 = arith.constant 0 : i32
    %c0_i32_0 = arith.constant 0 : i32
    %c0_i32_1 = arith.constant 0 : i32
    return %arg0, %c0_i32, %c0_i32_0 : i32, i32, i32
  }
}

module attributes {stable_mosaic.version = 11 : i64} {
  func.func @_linear_kernel(%arg0: i32, %arg1: memref<8x64xf32, #tpu.memory_space<vmem>>, %arg2: memref<64x16xbf16, #tpu.memory_space<vmem>>, %arg3: memref<1x16xf32, #tpu.memory_space<vmem>>, %arg4: memref<8x16xf32, #tpu.memory_space<vmem>>) attributes {dimension_semantics = [#tpu.dimension_semantics<parallel>], iteration_bounds = array<i64: 1>, scalar_prefetch = 0 : i64, scratch_operands = 0 : i64, tpu.core_type = #tpu.core_type<tc>, window_params = [{transform_indices = @transform_0, window_bounds = array<i64: 8, 64>}, {pipeline_mode = #tpu.pipeline_mode<synchronous>, transform_indices = @transform_1, window_bounds = array<i64: 64, 16>}, {pipeline_mode = #tpu.pipeline_mode<synchronous>, transform_indices = @transform_2, window_bounds = array<i64: 1, 16>}, {transform_indices = @transform_3, window_bounds = array<i64: 8, 16>}]} {
    %c0 = arith.constant 0 : index
    %c0_0 = arith.constant 0 : index
    %0 = vector.load %arg1[%c0, %c0_0] : memref<8x64xf32, #tpu.memory_space<vmem>>, vector<8x64xf32>
    %1 = arith.truncf %0 : vector<8x64xf32> to vector<8x64xbf16>
    %c0_1 = arith.constant 0 : index
    %c0_2 = arith.constant 0 : index
    %2 = vector.load %arg2[%c0_1, %c0_2] : memref<64x16xbf16, #tpu.memory_space<vmem>>, vector<64x16xbf16>
    %cst = arith.constant dense<0.000000e+00> : vector<8x16xf32>
    %3 = tpu.matmul %1, %2, %cst {dimension_numbers = #tpu.dot_dimension_numbers<[1], [0], [0], [1], [0, 0, 1, 1], [], []>} : vector<8x64xbf16>, vector<64x16xbf16>, vector<8x16xf32> -> vector<8x16xf32>
    %c0_3 = arith.constant 0 : index
    %c0_4 = arith.constant 0 : index
    %4 = vector.load %arg3[%c0_3, %c0_4] : memref<1x16xf32, #tpu.memory_space<vmem>>, vector<1x16xf32>
    %5 = vector.broadcast %4 : vector<1x16xf32> to vector<8x16xf32>
    %6 = arith.addf %3, %5 : vector<8x16xf32>
    %c0_5 = arith.constant 0 : index
    %c0_6 = arith.constant 0 : index
    %7 = vector.load %arg4[%c0_5, %c0_6] : memref<8x16xf32, #tpu.memory_space<vmem>>, vector<8x16xf32>
    tpu.vector_store %arg4[%c0_5, %c0_6], %6 {strides = array<i32>} : memref<8x16xf32, #tpu.memory_space<vmem>>, vector<8x16xf32>,
    return
  }
  func.func @transform_0(%arg0: i32) -> (i32, i32) {
    %c0_i32 = arith.constant 0 : i32
    %c0_i32_0 = arith.constant 0 : i32
    return %arg0, %c0_i32 : i32, i32
  }
  func.func @transform_1(%arg0: i32) -> (i32, i32) {
    %c0_i32 = arith.constant 0 : i32
    %c0_i32_0 = arith.constant 0 : i32
    %c0_i32_1 = arith.constant 0 : i32
    return %c0_i32, %c0_i32_0 : i32, i32
  }
  func.func @transform_2(%arg0: i32) -> (i32, i32) {
    %c0_i32 = arith.constant 0 : i32
    %c0_i32_0 = arith.constant 0 : i32
    %c0_i32_1 = arith.constant 0 : i32
    return %c0_i32, %c0_i32_0 : i32, i32
  }
  func.func @transform_3(%arg0: i32) -> (i32, i32) {
    %c0_i32 = arith.constant 0 : i32
    %c0_i32_0 = arith.constant 0 : i32
    return %arg0, %c0_i32 : i32, i32
  }
}

</mosaic_0001>

<bundles_post_ra>
// kernel: _lambda_.13
= control target key start
LH: loop header
LB: loop body
LE: loop exit
PB: predicated region body
PF: predicated region fallthrough
CT: control target
= control target key end

     0   :  { %s462_s18 = smov 0   ;;  %s507_s0 = inlined_call_operand.vmem [shape: f32[2,16,4], index: 0, kind: input, shape index: {}]   ;;  %s508_s1 = inlined_call_operand.vmem [shape: bf16[4,32], index: 1, kind: input, shape index: {}]   ;;  %s509_s2 = inlined_call_operand.vmem [shape: f32[16,32], index: 2, kind: input, shape index: {}]   ;;  %s510_s3 = inlined_call_operand.vmem [shape: f32[1,32], index: 3, kind: input, shape index: {}]   ;;  %s511_s4 = inlined_call_operand.vmem [shape: f32[1,32], index: 4, kind: input, shape index: {}]   ;;  %s512_s5 = inlined_call_operand.vmem [shape: f32[2,16,32], index: 5, kind: output, shape index: {}]  }
   0x1 LB: > { %s384_s19 = sadd.s32 4294967295, %s428_s18   ;;  %p388_p0 = scmp.ge.s32.totalorder %s428_s18, 1  ;;  %s428_s18 = sphi %s462_s18, %s15_s18  }
   0x2   : > { %p187_p1 = scmp.lt.s32.totalorder %s428_s18, 3 }
   0x4   : > { %p188_p2 = pnand %p388_p0, %p187_p1 }
   0x5   : > { %p215_p3 = scmp.lt.s32.totalorder (!%p188_p2), %s384_s19, 1 }
   0x6   : > { %191 = sbr.rel (%p188_p2) target bundleno = 525 (0x20d), region = 40 }
   0xb   : > { %v229_v0 = vld [vmem:[%s508_s1] sm:$0x3]  ;;  %vm236_vm0 = vcmask 1041408   ;;  %v430_v1 = vmov 0.0   ;;  %vm431_vm1 = vmmov 0   ;;  %s514_s19 = smov (!%p215_p3, %s384_s19), 1 }
   0xc   : > { %402 = vmatprep.subr.bf16.mxu0 %v430_v1  ;;  %v238_v2 = vsel %vm236_vm0, %v229_v0, 0  ;;  %404 = vmatprep.mubr.msk.bf16.mxu0 %vm431_vm1, %v430_v1  ;;  %s398_s22 = sshll.u32 %s514_s19, 4  ;;  %vm232_vm2 = vcmask 31744   ;;  %v230_v6 = vld [vmem:[%s509_s2] sm:$0xff]  ;;  %vm283_vm3 = vcmask 261120   ;;  %v231_v10 = vld [vmem:[%s509_s2 + $0x8] sm:$0xff] }
   0xd   : > { %403 = vmatpush3.bf16.msra.mxu0 %v238_v2  ;;  %s219_s25 = scalar_lea.vmem %s507_s0, %s398_s22  ;;  %v394_v33 = vld [vmem:[%s510_s3] ss:$0 sm:$0xff]  ;;  %s224_s11 = scalar_lea.vmem %s512_s5, %s398_s22 }
   0xe   : > { %v226_v3 = vld [vmem:[%s219_s25] sm:$0xff]  ;;  %v227_v4 = vld [vmem:[%s219_s25 + $0x8] sm:$0xff] }
   0xf   : > { %v228_v5 = vpack.c.bf16 %v227_v4, %v226_v3  ;;  %v395_v35 = vld [vmem:[%s511_s4] ss:$0 sm:$0xff] }
  0x11   : > { %405 = vmatmul.mubr.msk.bf16.vlgmr.msra.gmra.mxu0 %vm232_vm2, %v228_v5 }
  0xd1   : > { %v274_v7 = vpop.f32.mrf.mxu0 }
  0xd2   : > { %v275_v8 = vadd.f32 %v274_v7, %v230_v6 }
  0xd3   : > { %v406_v9 = vpop.f32.mrf.mxu0 }
  0xd4   : > { %v284_v11 = vsel %vm283_vm3, %v275_v8, 0.0 }
  0xd5   : > { %285 = vadd.xlane.f32.xlu0 %v284_v11  ;;  %v277_v12 = vpop.f32.mrf.mxu0 }
  0xd6   : > { %v278_v13 = vadd.f32 %v277_v12, %v231_v10 }
  0xd7   : > { %v407_v14 = vpop.f32.mrf.mxu0 }
  0xd8   : > { %v287_v15 = vsel %vm283_vm3, %v278_v13, 0.0 }
  0xd9   : > { %288 = vadd.xlane.f32.xlu0 %v287_v15 }
 0x15e   : > { %v286_v16 = vpop.xlane.xlu0 %285 }
 0x15f   : > { %v291_v17 = vmul.f32 0.03125, %v286_v16 }
 0x161   : > { %v293_v18 = vsub.f32 %v275_v8, %v291_v17 }
 0x162   : > { %v289_v19 = vpop.xlane.xlu0 %288 }
 0x163   : > { %v292_v20 = vmul.f32 0.03125, %v289_v19  ;;  %v295_v21 = vmul.f32 %v293_v18, %v293_v18 }
 0x165   : > { %v294_v22 = vsub.f32 %v278_v13, %v292_v20  ;;  %v297_v23 = vsel %vm283_vm3, %v295_v21, 0.0 }
 0x166   : > { %298 = vadd.xlane.f32.xlu1 %v297_v23 }
 0x167   : > { %v296_v24 = vmul.f32 %v294_v22, %v294_v22 }
 0x169   : > { %v300_v25 = vsel %vm283_vm3, %v296_v24, 0.0 }
 0x16a   : > { %301 = vadd.xlane.f32.xlu1 %v300_v25 }
 0x1ef   : > { %v299_v26 = vpop.xlane.xlu1 %298 }
 0x1f0   : > { %v303_v27 = vmul.f32 0.03125, %v299_v26 }
 0x1f2   : > { %v305_v28 = vadd.f32 1e-05, %v303_v27 }
 0x1f3   : > { %v302_v29 = vpop.xlane.xlu1 %301 }
 0x1f4   : > { %418 = vrsqrt.f32 %v305_v28  ;;  %v304_v30 = vmul.f32 0.03125, %v302_v29 }
 0x1f6   : > { %v306_v31 = vadd.f32 1e-05, %v304_v30 }
 0x1f8   : > { %420 = vrsqrt.f32 %v306_v31 }
 0x201   : > { %v419_v32 = vpop.eup %418 }
 0x202   : > { %v309_v34 = vmul.f32 %v419_v32, %v293_v18 }
 0x204   : > { %v317_v36 = vmul.f32 %v394_v33, %v309_v34 }
 0x205   : > { %v421_v37 = vpop.eup %420 }
 0x206   : > { %v325_v38 = vadd.f32 %v395_v35, %v317_v36  ;;  %v310_v39 = vmul.f32 %v421_v37, %v294_v22 }
 0x208   : > { %327 = vst.msk [vmem:[%s224_s11] sm:$0xff] %vm283_vm3, %v325_v38  ;;  %v318_v40 = vmul.f32 %v394_v33, %v310_v39 }
 0x20a   : > { %v326_v41 = vadd.f32 %v395_v35, %v318_v40 }
 0x20c   : > { %328 = vst.msk [vmem:[%s224_s11 + $0x8] sm:$0xff] %vm283_vm3, %v326_v41 }
 0x20d PF: > { %s15_s18 = sadd.s32 1, %s428_s18  }
 0x20e   : > { %p12_p4 = scmp.ge.s32.totalorder %s15_s18, 4  }
 0x210   :  { %14 = sbr.rel (!%p12_p4) target bundleno = 1 (0x1), region = 70 }

// kernel: _lambda_.15
= control target key start
LH: loop header
LB: loop body
LE: loop exit
PB: predicated region body
PF: predicated region fallthrough
CT: control target
= control target key end

     0   :  { %s729_s24 = smov 0   ;;  %s798_s0 = inlined_call_operand.vmem [shape: f32[32,32], index: 0, kind: input, shape index: {}]   ;;  %s799_s1 = inlined_call_operand.vmem [shape: bf16[32,64], index: 1, kind: input, shape index: {}]   ;;  %s800_s2 = inlined_call_operand.vmem [shape: f32[1,64], index: 2, kind: input, shape index: {}]   ;;  %s801_s3 = inlined_call_operand.vmem [shape: bf16[64,32], index: 3, kind: input, shape index: {}]   ;;  %s802_s4 = inlined_call_operand.vmem [shape: f32[1,32], index: 4, kind: input, shape index: {}, may-alias: {4,6}]   ;;  %s803_s5 = inlined_call_operand.vmem [shape: f32[1,32], index: 5, kind: input, shape index: {}]   ;;  %s804_s6 = inlined_call_operand.vmem [shape: f32[1,32], index: 6, kind: input, shape index: {}, may-alias: {4,6}]   ;;  %s805_s7 = inlined_call_operand.vmem [shape: f32[32,32], index: 7, kind: output, shape index: {}]  }
   0x1 LB: > { %s598_s25 = sadd.s32 4294967295, %s684_s24   ;;  %p602_p0 = scmp.ge.s32.totalorder %s684_s24, 1  ;;  %s684_s24 = sphi %s729_s24, %s17_s24  }
   0x2   : > { %p238_p1 = scmp.lt.s32.totalorder %s684_s24, 3 }
   0x4   : > { %p239_p2 = pnand %p602_p0, %p238_p1 }
   0x5   : > { %s603_s30 = sshll.u32 (!%p239_p2), %s598_s25, 1 }
   0x6   : > { %242 = sbr.rel (%p239_p2) target bundleno = 781 (0x30d), region = 48  ;;  %p271_p3 = scmp.lt.s32.totalorder (!%p239_p2), %s603_s30, 3 }
   0xb   : > { %v660_v0 = vld [vmem:[%s799_s1 + $0x8] sm:$0xff]   ;;  %v686_v1 = vmov 0.0   ;;  %v661_v2 = vld [vmem:[%s799_s1] sm:$0xff]   ;;  %vm687_vm0 = vmmov 0   ;;  %s807_s30 = smov (!%p271_p3, %s603_s30), 3  ;;  %vm309_vm1 = vcmask 261120  }
   0xc   : > { %629 = vmatprep.subr.bf16.mxu0 %v686_v1  ;;  %637 = vmatprep.subr.bf16.mxu1 %v686_v1  ;;  %s604_s8 = sshll.u32 %s807_s30, 3  ;;  %v662_v6 = vld [vmem:[%s801_s3 + $0x18] sm:$0xff]   ;;  %v663_v7 = vld [vmem:[%s801_s3 + $0x10] sm:$0xff]   ;;  %v664_v8 = vld [vmem:[%s801_s3 + $0x8] sm:$0xff]   ;;  %v688_v55 = vmov -1.0   ;;  %vm448_vm4 = vcmask 523264  }
   0xd   : > { %630 = vmatpush3.bf16.msra.mxu0 %v660_v0  ;;  %633 = vmatprep.mubr.msk.bf16.mxu0 %vm687_vm0, %v686_v1  ;;  %s274_s11 = scalar_lea.vmem %s798_s0, %s604_s8  ;;  %v665_v9 = vld [vmem:[%s801_s3] sm:$0xff]   ;;  %s280_s10 = scalar_lea.vmem %s805_s7, %s604_s8 }
   0xe   : > { %631 = vmatprep.subr.bf16.mxu0 %v686_v1  ;;  %645 = vmatprep.mubr.msk.bf16.mxu1 %vm687_vm0, %v686_v1  ;;  %v751_v3 = vld [vmem:[%s274_s11] sm:$0xff]  ;;  %v753_v4 = vld [vmem:[%s274_s11 + $0x8] sm:$0xff] }
   0xf   : > { %v285_v5 = vpack.c.bf16 %v753_v4, %v751_v3  ;;  %638 = vmatpush3.bf16.msra.mxu1 %v662_v6  ;;  %v607_v10 = vld [vmem:[%s800_s2] ss:$0 sm:$0xff] }
  0x10   : > { %639 = vmatprep.subr.bf16.mxu1 %v686_v1 }
  0x11   : > { %632 = vmatpush3.bf16.msra.mxu0 %v661_v2 }
  0x13   : > { %640 = vmatpush3.bf16.msra.mxu1 %v663_v7  ;;  %v611_v7 = vld [vmem:[%s802_s4] ss:$0 sm:$0xff] }
  0x14   : > { %634 = vmatmul.mubr.msk.bf16.vlgmr.msra.gmra.mxu0 %vm309_vm1, %v285_v5  ;;  %641 = vmatprep.subr.bf16.mxu1 %v686_v1 }
  0x17   : > { %642 = vmatpush3.bf16.msra.mxu1 %v664_v8 }
  0x18   : > { %643 = vmatprep.subr.bf16.mxu1 %v686_v1 }
  0x1b   : > { %644 = vmatpush3.bf16.msra.mxu1 %v665_v9 }
  0xd4   : > { %v347_v11 = vpop.f32.mrf.mxu0 }
  0xd5   : > { %v348_v12 = vadd.f32 %v607_v10, %v347_v11 }
  0xd6   : > { %v635_v13 = vpop.f32.mrf.mxu0 }
  0xd7   : > { %v356_v14 = vmul.f32 0.70710677, %v348_v12  ;;  %v354_v63 = vmul.f32 0.5, %v348_v12 }
  0xd8   : > { %v350_v15 = vpop.f32.mrf.mxu0 }
  0xd9   : > { %v362_v16 = vand.u32 2147483647, %v356_v14  ;;  %v351_v17 = vadd.f32 %v607_v10, %v350_v15  ;;  %vm358_vm2 = vcmp.ge.f32.partialorder %v356_v14, 0.0 }
  0xda   : > { %v636_v18 = vpop.f32.mrf.mxu0  ;;  %v360_v56 = vsel %vm358_vm2, 1.0, %v688_v55 }
  0xdb   : > { %v364_v19 = vmul.f32 0.3275911, %v362_v16  ;;  %v357_v20 = vmul.f32 0.70710677, %v351_v17  ;;  %v390_v25 = vsub.f32 0.0, %v362_v16  ;;  %v355_v0 = vmul.f32 0.5, %v351_v17 }
  0xdd   : > { %v366_v21 = vadd.f32 1.0, %v364_v19  ;;  %v363_v22 = vand.u32 2147483647, %v357_v20  ;;  %v392_v26 = vmul.f32 %v390_v25, %v362_v16  ;;  %vm359_vm3 = vcmp.ge.f32.partialorder %v357_v20, 0.0 }
  0xde   : > { %v361_v60 = vsel %vm359_vm3, 1.0, %v688_v55 }
  0xdf   : > { %666 = vrcp.f32 %v366_v21  ;;  %v365_v23 = vmul.f32 0.3275911, %v363_v22  ;;  %v391_v27 = vsub.f32 0.0, %v363_v22  ;;  %v394_v30 = vmul.f32 1.442695, %v392_v26 }
  0xe1   : > { %v367_v24 = vadd.f32 1.0, %v365_v23  ;;  %v393_v31 = vmul.f32 %v391_v27, %v363_v22 }
  0xe3   : > { %668 = vrcp.f32 %v367_v24  ;;  %v396_v36 = vmul.f32 1.442695, %v393_v31 }
  0xe4   : > { %670 = vpow2.f32 %v394_v30 }
  0xe5   : > { %672 = vpow2.f32 %v396_v36 }
  0xec   : > { %v667_v28 = vpop.eup %666 }
  0xed   : > { %v372_v29 = vmul.f32 1.0614054, %v667_v28 }
  0xef   : > { %v374_v32 = vadd.f32 -1.4531521, %v372_v29 }
  0xf0   : > { %v669_v33 = vpop.eup %668 }
  0xf1   : > { %v376_v34 = vmul.f32 %v667_v28, %v374_v32  ;;  %v373_v35 = vmul.f32 1.0614054, %v669_v33  ;;  %v671_v49 = vpop.eup %670 }
  0xf2   : > { %v673_v54 = vpop.eup %672 }
  0xf3   : > { %v378_v37 = vadd.f32 1.4214138, %v376_v34  ;;  %v375_v38 = vadd.f32 -1.4531521, %v373_v35  ;;  %v618_v35 = vld [vmem:[%s804_s6] ss:$0 sm:$0xff] }
  0xf5   : > { %v380_v39 = vmul.f32 %v667_v28, %v378_v37  ;;  %v377_v40 = vmul.f32 %v669_v33, %v375_v38 }
  0xf7   : > { %v382_v41 = vadd.f32 -0.28449672, %v380_v39  ;;  %v379_v42 = vadd.f32 1.4214138, %v377_v40 }
  0xf9   : > { %v384_v43 = vmul.f32 %v667_v28, %v382_v41  ;;  %v381_v44 = vmul.f32 %v669_v33, %v379_v42 }
  0xfb   : > { %v386_v45 = vadd.f32 0.2548296, %v384_v43  ;;  %v383_v46 = vadd.f32 -0.28449672, %v381_v44 }
  0xfd   : > { %v388_v47 = vmul.f32 %v667_v28, %v386_v45  ;;  %v385_v48 = vmul.f32 %v669_v33, %v383_v46 }
  0xff   : > { %v398_v50 = vmul.f32 %v671_v49, %v388_v47  ;;  %v387_v51 = vadd.f32 0.2548296, %v385_v48 }
 0x101   : > { %v400_v52 = vsub.f32 1.0, %v398_v50  ;;  %v389_v53 = vmul.f32 %v669_v33, %v387_v51  ;;  %v617_v33 = vld [vmem:[%s803_s5] ss:$0 sm:$0xff] }
 0x103   : > { %v402_v57 = vmul.f32 %v400_v52, %v360_v56  ;;  %v399_v58 = vmul.f32 %v673_v54, %v389_v53 }
 0x105   : > { %v401_v59 = vsub.f32 1.0, %v399_v58  ;;  %v404_v61 = vadd.f32 1.0, %v402_v57 }
 0x107   : > { %v403_v62 = vmul.f32 %v401_v59, %v361_v60  ;;  %v406_v2 = vmul.f32 %v404_v61, %v354_v63 }
 0x109   : > { %v405_v1 = vadd.f32 1.0, %v403_v62 }
 0x10b   : > { %v407_v5 = vmul.f32 %v405_v1, %v355_v0 }
 0x10d   : > { %v408_v6 = vpack.c.bf16 %v407_v5, %v406_v2 }
 0x10f   : > { %646 = vmatmul.mubr.msk.bf16.vlgmr.msra.gmra.mxu1 %vm448_vm4, %v408_v6 }
 0x1cf   : > { %v486_v8 = vpop.f32.mrf.mxu1 }
 0x1d0   : > { %v487_v9 = vadd.f32 %v611_v7, %v486_v8 }
 0x1d1   : > { %v647_v10 = vpop.f32.mrf.mxu1 }
 0x1d2   : > { %v493_v11 = vadd.f32 %v487_v9, %v751_v3 }
 0x1d3   : > { %v489_v13 = vpop.f32.mrf.mxu1 }
 0x1d4   : > { %v490_v14 = vadd.f32 %v611_v7, %v489_v13  ;;  %v497_v12 = vsel %vm309_vm1, %v493_v11, 0.0 }
 0x1d5   : > { %498 = vadd.xlane.f32.xlu0 %v497_v12  ;;  %v648_v15 = vpop.f32.mrf.mxu1 }
 0x1d6   : > { %v494_v16 = vadd.f32 %v490_v14, %v753_v4 }
 0x1d8   : > { %v500_v17 = vsel %vm309_vm1, %v494_v16, 0.0 }
 0x1d9   : > { %501 = vadd.xlane.f32.xlu0 %v500_v17 }
 0x25e   : > { %v499_v18 = vpop.xlane.xlu0 %498 }
 0x25f   : > { %v504_v19 = vmul.f32 0.03125, %v499_v18 }
 0x261   : > { %v506_v20 = vsub.f32 %v493_v11, %v504_v19 }
 0x262   : > { %v502_v21 = vpop.xlane.xlu0 %501 }
 0x263   : > { %v505_v22 = vmul.f32 0.03125, %v502_v21  ;;  %v508_v23 = vmul.f32 %v506_v20, %v506_v20 }
 0x265   : > { %v507_v24 = vsub.f32 %v494_v16, %v505_v22  ;;  %v510_v3 = vsel %vm309_vm1, %v508_v23, 0.0 }
 0x266   : > { %511 = vadd.xlane.f32.xlu1 %v510_v3 }
 0x267   : > { %v509_v25 = vmul.f32 %v507_v24, %v507_v24 }
 0x269   : > { %v513_v26 = vsel %vm309_vm1, %v509_v25, 0.0 }
 0x26a   : > { %514 = vadd.xlane.f32.xlu1 %v513_v26 }
 0x2ef   : > { %v512_v27 = vpop.xlane.xlu1 %511 }
 0x2f0   : > { %v516_v4 = vmul.f32 0.03125, %v512_v27 }
 0x2f2   : > { %v518_v28 = vadd.f32 1e-05, %v516_v4 }
 0x2f3   : > { %v515_v29 = vpop.xlane.xlu1 %514 }
 0x2f4   : > { %674 = vrsqrt.f32 %v518_v28  ;;  %v517_v30 = vmul.f32 0.03125, %v515_v29 }
 0x2f6   : > { %v519_v31 = vadd.f32 1e-05, %v517_v30 }
 0x2f8   : > { %676 = vrsqrt.f32 %v519_v31 }
 0x301   : > { %v675_v32 = vpop.eup %674 }
 0x302   : > { %v522_v34 = vmul.f32 %v675_v32, %v506_v20 }
 0x304   : > { %v530_v36 = vmul.f32 %v617_v33, %v522_v34 }
 0x305   : > { %v677_v37 = vpop.eup %676 }
 0x306   : > { %v538_v38 = vadd.f32 %v618_v35, %v530_v36  ;;  %v523_v39 = vmul.f32 %v677_v37, %v507_v24 }
 0x308   : > { %540 = vst.msk [vmem:[%s280_s10] sm:$0xff] %vm309_vm1, %v538_v38  ;;  %v531_v40 = vmul.f32 %v617_v33, %v523_v39 }
 0x30a   : > { %v539_v41 = vadd.f32 %v618_v35, %v531_v40 }
 0x30c   : > { %541 = vst.msk [vmem:[%s280_s10 + $0x8] sm:$0xff] %vm309_vm1, %v539_v41 }
 0x30d PF: > { %s17_s24 = sadd.s32 1, %s684_s24  }
 0x30e   : > { %p14_p4 = scmp.ge.s32.totalorder %s17_s24, 4  }
 0x310   :  { %16 = sbr.rel (!%p14_p4) target bundleno = 1 (0x1), region = 78 }

// kernel: _lambda_.14
= control target key start
LH: loop header
LB: loop body
LE: loop exit
PB: predicated region body
PF: predicated region fallthrough
CT: control target
= control target key end

     0   :  { %s2048_s24 = smov 0   ;;  %s2290_s0 = inlined_call_operand.vmem [shape: f32[8,4,32], index: 0, kind: input, shape index: {}, may-alias: {0,1}]   ;;  %s2291_s1 = inlined_call_operand.vmem [shape: f32[8,4,32], index: 1, kind: input, shape index: {}, may-alias: {0,1}]   ;;  %s2292_s2 = inlined_call_operand.vmem [shape: bf16[32,32], index: 2, kind: input, shape index: {}]   ;;  %s2293_s3 = inlined_call_operand.vmem [shape: bf16[32,64], index: 3, kind: input, shape index: {}]   ;;  %s2294_s4 = inlined_call_operand.vmem [shape: bf16[32,32], index: 4, kind: input, shape index: {}]   ;;  %s2295_s5 = inlined_call_operand.vmem [shape: f32[1,32], index: 5, kind: input, shape index: {}]   ;;  %s2296_s6 = inlined_call_operand.vmem [shape: f32[1,32], index: 6, kind: input, shape index: {}]   ;;  %s2297_s7 = inlined_call_operand.vmem [shape: f32[8,4,32], index: 7, kind: output, shape index: {}]  }
   0x1 LB: > { %s2054_s25 = sadd.s32 4294967295, %s2001_s24   ;;  %p1726_p0 = scmp.ge.s32.totalorder %s2001_s24, 1  ;;  %s2001_s24 = sphi %s2048_s24, %s17_s24  }
   0x2   : > { %p297_p1 = scmp.lt.s32.totalorder %s2001_s24, 3 }
   0x4   : > { %p298_p2 = pnand %p1726_p0, %p297_p1 }
   0x5   : > { %s1732_s30 = sshll.u32 (!%p298_p2), %s2054_s25, 2  ;;  %s347_s10 = ssub.s32 (!%p298_p2), 0, %s2054_s25 }
   0x6   : > { %301 = sbr.rel (%p298_p2) target bundleno = 2071 (0x817), region = 48  ;;  %p377_p3 = scmp.lt.s32.totalorder (!%p298_p2), %s1732_s30, 7 }
   0x7   : > { %p346_p4 = scmp.lt.s32.totalorder (!%p298_p2), %s2054_s25, 0  ;;  %s1727_s13 = smin.u32 (!%p298_p2), %s2054_s25, %s347_s10 }
   0x8   : > { %s349_s15 = sand.u32 (!%p298_p2), 1, %s1727_s13   ;;  %s2005_s27 = smov (!%p298_p2), 96  }
   0x9   : > { %s350_s19 = ssub.s32 (!%p298_p2), 0, %s349_s15  ;;  %s2006_s28 = smov (!%p298_p2), 112  }
   0xa   : > { %s2007_s29 = smov (!%p298_p2), 80  }
   0xb   : > { %v1945_v0 = vld [vmem:[%s2293_s3 + $0x8] sm:$0xff]   ;;  %v2003_v1 = vmov 0.0   ;;  %v1946_v2 = vld [vmem:[%s2293_s3] sm:$0xff]   ;;  %vm2004_vm0 = vmmov 0   ;;  %s2299_s30 = smov (!%p377_p3, %s1732_s30), 7  ;;  %vm422_vm1 = vcmask 261120   ;;  %s2301_s19 = smov (!%p346_p4, %s350_s19), %s349_s15 }
   0xc   : > { %1816 = vmatprep.subr.bf16.mxu1 %v2003_v1  ;;  %1808 = vmatprep.subr.bf16.mxu0 %v2003_v1  ;;  %v1949_v3 = vld [vmem:[%s2292_s2 + $0x8] sm:$0xff]   ;;  %v1950_v4 = vld [vmem:[%s2292_s2] sm:$0xff]   ;;  %s1733_s14 = sshll.u32 %s2299_s30, 2  ;;  %p1729_p5 = scmp.lt.s32.totalorder %s2301_s19, 0  ;;  %vm560_vm2 = vcmask 130048   ;;  %vm745_vm3 = vcmask 27648  }
   0xd   : > { %1817 = vmatpush3.bf16.msra.mxu1 %v1945_v0  ;;  %1820 = vmatprep.mubr.msk.bf16.mxu1 %vm2004_vm0, %v2003_v1  ;;  %s380_s18 = scalar_lea.vmem %s2291_s1, %s1733_s14  ;;  %s356_s20 = sadd.s32 2, %s2301_s19  ;;  %vm801_vm4 = vcmask 1041408   ;;  %vm797_vm5 = vcmask 31744   ;;  %vm1570_vm6 = vcmask 257024  }
   0xe   : > { %1818 = vmatprep.subr.bf16.mxu1 %v2003_v1  ;;  %1812 = vmatprep.mubr.msk.bf16.mxu0 %vm2004_vm0, %v2003_v1  ;;  %v1947_v5 = vld [vmem:[%s380_s18] sm:$0xff]   ;;  %v1948_v6 = vld [vmem:[%s380_s18 + $0x8] sm:$0xff]   ;;  %s2303_s20 = smov (!%p1729_p5, %s356_s20), %s2301_s19  ;;  %s386_s19 = scalar_lea.vmem %s2297_s7, %s1733_s14 }
   0xf   : > { %1809 = vmatpush3.bf16.msra.mxu0 %v1949_v3  ;;  %v481_v7 = vpack.c.bf16 %v1948_v6, %v1947_v5  ;;  %s1730_s21 = sshll.u32 %s2303_s20, 2 }
  0x10   : > { %1810 = vmatprep.subr.bf16.mxu0 %v2003_v1  ;;  %p359_p6 = scmp.lt.s32.totalorder %s1730_s21, 7 }
  0x11   : > { %1819 = vmatpush3.bf16.msra.mxu1 %v1946_v2 }
  0x12   : > { %1830 = vmatprep.subr.bf16.mxu1 %v2003_v1  ;;  %s2305_s21 = smov (!%p359_p6, %s1730_s21), 7 }
  0x13   : > { %1811 = vmatpush3.bf16.msra.mxu0 %v1950_v4  ;;  %s1731_s22 = sshll.u32 %s2305_s21, 2 }
  0x14   : > { %1824 = vmatprep.subr.bf16.mxu0 %v2003_v1  ;;  %1821 = vmatmul.mubr.msk.bf16.vlgmr.msra.gmra.mxu1 %vm422_vm1, %v481_v7  ;;  %s362_s26 = scalar_lea.vmem %s2290_s0, %s1731_s22 }
  0x15   : > { %1832 = vmatprep.mubr.msk.bf16.mxu1 %vm2004_vm0, %v2003_v1  ;;  %v2098_v8 = vld [vmem:[%s362_s26] sm:$0xf]  ;;  %v2100_v9 = vld [vmem:[%s362_s26 + $0x4] sm:$0xf]  ;;  %v2102_v10 = vld [vmem:[%s362_s26 + $0x8] sm:$0xf] }
  0x16   : > { %v2104_v11 = vld [vmem:[%s362_s26 + $0xc] sm:$0xf]  ;;  %v401_v12 = vcombine.low %v2098_v8, %v2100_v9 }
  0x17   : > { %v402_v13 = vcombine.low %v2102_v10, %v2104_v11 }
  0x19   : > { %v405_v14 = vpack.c.bf16 %v402_v13, %v401_v12 }
  0x1b   : > { %1813 = vmatmul.mubr.msk.bf16.vlgmr.msra.gmra.mxu0 %vm422_vm1, %v405_v14 }
  0x1c   : > { %1826 = vmatprep.mubr.msk.bf16.mxu0 %vm2004_vm0, %v2003_v1 }
  0xd4   : > { %v535_v15 = vpop.f32.mrf.mxu1 }
  0xd5   : > { %v544_v16 = vcombine.high %v535_v15, %v535_v15  ;;  %v2113_v17 = vpack.c.bf16 %v535_v15, %v535_v15 }
  0xd6   : > { %v1822_v18 = vpop.f32.mrf.mxu1 }
  0xd7   : > { %v2115_v19 = vpack.c.bf16 %v544_v16, %v544_v16  ;;  %v565_v20 = vsel %vm560_vm2, %v2113_v17, 0 }
  0xd8   : > { %v538_v21 = vpop.f32.mrf.mxu1  ;;  %1825 = vmatpush3.bf16.xpose.msra.mxu0 %v565_v20 }
  0xd9   : > { %v611_v22 = vsel %vm560_vm2, %v2115_v19, 0  ;;  %1836 = vmatprep.subr.bf16.mxu0 %v2003_v1  ;;  %v545_v24 = vcombine.high %v538_v21, %v538_v21  ;;  %v2123_v26 = vpack.c.bf16 %v538_v21, %v538_v21 }
  0xda   : > { %v1823_v23 = vpop.f32.mrf.mxu1  ;;  %1831 = vmatpush3.bf16.xpose.msra.mxu1 %v611_v22 }
  0xdb   : > { %1842 = vmatprep.subr.bf16.mxu1 %v2003_v1  ;;  %v460_v25 = vpop.f32.mrf.mxu0  ;;  %v2125_v30 = vpack.c.bf16 %v545_v24, %v545_v24  ;;  %v657_v36 = vsel %vm560_vm2, %v2123_v26, 0 }
  0xdc   : > { %v469_v27 = vcombine.high %v460_v25, %v460_v25  ;;  %v548_v28 = vmul.f32 0.25, %v460_v25 }
  0xdd   : > { %v1814_v29 = vpop.f32.mrf.mxu0  ;;  %v703_v39 = vsel %vm560_vm2, %v2125_v30, 0 }
  0xde   : > { %v549_v31 = vmul.f32 0.25, %v469_v27  ;;  %v2127_v32 = vpack.c.bf16 %v548_v28, %v548_v28 }
  0xdf   : > { %v463_v33 = vpop.f32.mrf.mxu0 }
  0xe0   : > { %v2129_v34 = vpack.c.bf16 %v549_v31, %v549_v31  ;;  %v470_v35 = vcombine.high %v463_v33, %v463_v33  ;;  %1827 = vmatmul.mubr.msk.bf16.vlgmr.msra.gmra.mxu0 %vm560_vm2, %v2127_v32  ;;  %v550_v38 = vmul.f32 0.25, %v463_v33 }
  0xe1   : > { %1837 = vmatpush3.bf16.xpose.msra.mxu0 %v657_v36  ;;  %v1815_v37 = vpop.f32.mrf.mxu0  ;;  %1838 = vmatprep.mubr.msk.bf16.mxu0 %vm2004_vm0, %v2003_v1 }
  0xe2   : > { %1833 = vmatmul.mubr.msk.bf16.vlgmr.msra.gmra.mxu1 %vm560_vm2, %v2129_v34  ;;  %1848 = vmatprep.subr.bf16.mxu0 %v2003_v1  ;;  %v551_v40 = vmul.f32 0.25, %v470_v35  ;;  %v2145_v41 = vpack.c.bf16 %v550_v38, %v550_v38 }
  0xe3   : > { %1843 = vmatpush3.bf16.xpose.msra.mxu1 %v703_v39  ;;  %1844 = vmatprep.mubr.msk.bf16.mxu1 %vm2004_vm0, %v2003_v1 }
  0xe4   : > { %1854 = vmatprep.subr.bf16.mxu1 %v2003_v1  ;;  %v2147_v42 = vpack.c.bf16 %v551_v40, %v551_v40 }
  0xe8   : > { %1839 = vmatmul.mubr.msk.bf16.vlgmr.msra.gmra.mxu0 %vm560_vm2, %v2145_v41 }
  0xe9   : > { %1850 = vmatprep.mubr.msk.bf16.mxu0 %vm2004_vm0, %v2003_v1 }
  0xea   : > { %1845 = vmatmul.mubr.msk.bf16.vlgmr.msra.gmra.mxu1 %vm560_vm2, %v2147_v42 }
  0xeb   : > { %1856 = vmatprep.mubr.msk.bf16.mxu1 %vm2004_vm0, %v2003_v1 }
 0x1a0   : > { %v601_v43 = vpop.f32.mrf.mxu0 }
 0x1a1   : > { %v746_v44 = vsel %vm745_vm3, %v601_v43, -inf }
 0x1a2   : > { %v647_v45 = vpop.f32.mrf.mxu1  ;;  %747 = vmax.xlane.f32.xlu0 %v746_v44  ;;  %v1828_v46 = vpop.f32.mrf.mxu0 }
 0x1a3   : > { %v749_v49 = vsel %vm745_vm3, %v647_v45, -inf }
 0x1a4   : > { %v604_v47 = vpop.f32.mrf.mxu0  ;;  %v1834_v48 = vpop.f32.mrf.mxu1 }
 0x1a6   : > { %v650_v50 = vpop.f32.mrf.mxu1  ;;  %750 = vmax.xlane.f32.xlu0 %v749_v49  ;;  %v1829_v51 = vpop.f32.mrf.mxu0 }
 0x1a8   : > { %v1835_v52 = vpop.f32.mrf.mxu1  ;;  %v693_v53 = vpop.f32.mrf.mxu0 }
 0x1a9   : > { %v752_v54 = vsel %vm745_vm3, %v693_v53, -inf }
 0x1aa   : > { %v739_v55 = vpop.f32.mrf.mxu1  ;;  %753 = vmax.xlane.f32.xlu1 %v752_v54  ;;  %v1840_v56 = vpop.f32.mrf.mxu0 }
 0x1ab   : > { %v755_v59 = vsel %vm745_vm3, %v739_v55, -inf }
 0x1ac   : > { %v696_v57 = vpop.f32.mrf.mxu0  ;;  %v1846_v58 = vpop.f32.mrf.mxu1 }
 0x1ae   : > { %v742_v60 = vpop.f32.mrf.mxu1  ;;  %756 = vmax.xlane.f32.xlu1 %v755_v59  ;;  %v1841_v61 = vpop.f32.mrf.mxu0 }
 0x1b0   : > { %v1847_v62 = vpop.f32.mrf.mxu1 }
 0x1bf   : > { %846 = vrot.lane.b32.xlu1 %v2115_v19, %s2005_s27 }
 0x1c3   : > { %895 = vrot.lane.b32.xlu1 %v2123_v26, %s2005_s27 }
 0x1c7   : > { %944 = vrot.lane.b32.xlu1 %v2125_v30, %s2005_s27 }
 0x22b   : > { %v748_v63 = vpop.xlane.xlu0 %747 }
 0x22c   : > { %v758_v0 = vsub.f32 %v601_v43, %v748_v63 }
 0x22e   : > { %v762_v2 = vmul.f32 1.442695, %v758_v0 }
 0x22f   : > { %v751_v3 = vpop.xlane.xlu0 %750 }
 0x230   : > { %1955 = vpow2.f32 %v762_v2  ;;  %v759_v4 = vsub.f32 %v647_v45, %v751_v3 }
 0x232   : > { %v764_v5 = vmul.f32 1.442695, %v759_v4 }
 0x233   : > { %v754_v6 = vpop.xlane.xlu1 %753 }
 0x234   : > { %1957 = vpow2.f32 %v764_v5  ;;  %v760_v20 = vsub.f32 %v693_v53, %v754_v6 }
 0x236   : > { %v766_v21 = vmul.f32 1.442695, %v760_v20 }
 0x237   : > { %v757_v7 = vpop.xlane.xlu1 %756 }
 0x238   : > { %v761_v22 = vsub.f32 %v739_v55, %v757_v7  ;;  %1959 = vpow2.f32 %v766_v21 }
 0x23a   : > { %v768_v23 = vmul.f32 1.442695, %v761_v22 }
 0x23b   : > { %v847_v12 = vpop.permute.xlu1 %846 }
 0x23c   : > { %v852_v13 = vsel %vm801_vm4, %v847_v12, 0  ;;  %1961 = vpow2.f32 %v768_v23 }
 0x23d   : > { %v1956_v14 = vpop.eup %1955  ;;  %1855 = vmatpush3.bf16.msra.mxu1 %v852_v13 }
 0x23e   : > { %v770_v15 = vsel %vm745_vm3, %v1956_v14, 0.0  ;;  %1866 = vmatprep.subr.bf16.mxu1 %v2003_v1 }
 0x23f   : > { %771 = vadd.xlane.f32.xlu0 %v770_v15  ;;  %v896_v29 = vpop.permute.xlu1 %895 }
 0x240   : > { %v901_v40 = vsel %vm801_vm4, %v896_v29, 0 }
 0x241   : > { %v1958_v16 = vpop.eup %1957 }
 0x242   : > { %v773_v18 = vsel %vm745_vm3, %v1958_v16, 0.0 }
 0x243   : > { %774 = vadd.xlane.f32.xlu1 %v773_v18  ;;  %v945_v31 = vpop.permute.xlu1 %944 }
 0x244   : > { %v950_v43 = vsel %vm801_vm4, %v945_v31, 0 }
 0x245   : > { %v1960_v24 = vpop.eup %1959 }
 0x246   : > { %v776_v25 = vsel %vm745_vm3, %v1960_v24, 0.0 }
 0x249   : > { %v1962_v27 = vpop.eup %1961 }
 0x24a   : > { %v779_v28 = vsel %vm745_vm3, %v1962_v27, 0.0 }
 0x254   : > { %1057 = vrot.lane.b32.xlu1 %v2115_v19, %s2006_s28 }
 0x255   : > { %795 = vrot.lane.b32.xlu0 %v2113_v17, %s2005_s27 }
 0x274   : > { %777 = vadd.xlane.f32.xlu0 %v776_v25 }
 0x278   : > { %780 = vadd.xlane.f32.xlu1 %v779_v28 }
 0x289   : > { %1055 = vrot.lane.b32.xlu1 %v2129_v34, %s2006_s28 }
 0x28a   : > { %1006 = vrot.lane.b32.xlu0 %v2113_v17, %s2006_s28 }
 0x28d   : > { %1159 = vrot.lane.b32.xlu1 %v2125_v30, %s2006_s28 }
 0x28e   : > { %1004 = vrot.lane.b32.xlu0 %v2127_v32, %s2006_s28 }
 0x291   : > { %1157 = vrot.lane.b32.xlu1 %v2147_v42, %s2006_s28 }
 0x292   : > { %1108 = vrot.lane.b32.xlu0 %v2123_v26, %s2006_s28 }
 0x296   : > { %1106 = vrot.lane.b32.xlu0 %v2145_v41, %s2006_s28 }
 0x2c8   : > { %v772_v33 = vpop.xlane.xlu0 %771 }
 0x2c9   : > { %1963 = vrcp.f32 %v772_v33 }
 0x2cc   : > { %v796_v35 = vpop.permute.xlu0 %795  ;;  %v775_v36 = vpop.xlane.xlu1 %774 }
 0x2cd   : > { %v803_v34 = vsel %vm801_vm4, %v796_v35, 0  ;;  %1965 = vrcp.f32 %v775_v36 }
 0x2ce   : > { %1849 = vmatpush3.bf16.msra.mxu0 %v803_v34 }
 0x2cf   : > { %1860 = vmatprep.subr.bf16.mxu0 %v2003_v1 }
 0x2d0   : > { %v1058_v44 = vpop.permute.xlu1 %1057 }
 0x2d1   : > { %v1063_v57 = vsel %vm560_vm2, %v1058_v44, 0 }
 0x2d6   : > { %v1964_v37 = vpop.eup %1963 }
 0x2d7   : > { %v786_v32 = vmul.f32 %v1964_v37, %v1956_v14 }
 0x2d9   : > { %v790_v38 = vpack.c.bf16 %v786_v32, %v786_v32 }
 0x2da   : > { %v1966_v39 = vpop.eup %1965 }
 0x2db   : > { %1851 = vmatmul.mubr.msk.bf16.vlgmr.msra.gmra.mxu0 %vm797_vm5, %v790_v38  ;;  %v787_v41 = vmul.f32 %v1966_v39, %v1958_v16 }
 0x2dc   : > { %1861 = vmatpush3.bf16.msra.mxu0 %v901_v40  ;;  %1862 = vmatprep.mubr.msk.bf16.mxu0 %vm2004_vm0, %v2003_v1 }
 0x2dd   : > { %v791_v42 = vpack.c.bf16 %v787_v41, %v787_v41  ;;  %1872 = vmatprep.subr.bf16.mxu0 %v2003_v1 }
 0x2df   : > { %1857 = vmatmul.mubr.msk.bf16.vlgmr.msra.gmra.mxu1 %vm797_vm5, %v791_v42 }
 0x2e0   : > { %1867 = vmatpush3.bf16.msra.mxu1 %v950_v43  ;;  %1868 = vmatprep.mubr.msk.bf16.mxu1 %vm2004_vm0, %v2003_v1 }
 0x2e1   : > { %1878 = vmatprep.subr.bf16.mxu1 %v2003_v1 }
 0x2fd   : > { %v778_v45 = vpop.xlane.xlu0 %777 }
 0x2fe   : > { %1967 = vrcp.f32 %v778_v45 }
 0x301   : > { %v781_v46 = vpop.xlane.xlu1 %780  ;;  %v1007_v47 = vpop.permute.xlu0 %1006 }
 0x302   : > { %1969 = vrcp.f32 %v781_v46  ;;  %v1012_v53 = vsel %vm560_vm2, %v1007_v47, 0 }
 0x305   : > { %v1005_v52 = vpop.permute.xlu0 %1004  ;;  %v1056_v56 = vpop.permute.xlu1 %1055 }
 0x309   : > { %v1109_v58 = vpop.permute.xlu0 %1108  ;;  %v1160_v60 = vpop.permute.xlu1 %1159 }
 0x30a   : > { %v1114_v59 = vsel %vm560_vm2, %v1109_v58, 0  ;;  %v1165_v61 = vsel %vm560_vm2, %v1160_v60, 0 }
 0x30b   : > { %v1968_v48 = vpop.eup %1967 }
 0x30c   : > { %v788_v49 = vmul.f32 %v1968_v48, %v1960_v24 }
 0x30d   : > { %v1107_v62 = vpop.permute.xlu0 %1106  ;;  %v1158_v63 = vpop.permute.xlu1 %1157 }
 0x30e   : > { %v792_v50 = vpack.c.bf16 %v788_v49, %v788_v49 }
 0x30f   : > { %v1970_v51 = vpop.eup %1969 }
 0x310   : > { %1863 = vmatmul.mubr.msk.bf16.vlgmr.msra.gmra.mxu0 %vm797_vm5, %v792_v50  ;;  %v789_v54 = vmul.f32 %v1970_v51, %v1962_v27 }
 0x311   : > { %1873 = vmatpush3.bf16.xpose.msra.mxu0 %v1012_v53  ;;  %1874 = vmatprep.mubr.msk.bf16.mxu0 %vm2004_vm0, %v2003_v1 }
 0x312   : > { %v793_v55 = vpack.c.bf16 %v789_v54, %v789_v54  ;;  %1884 = vmatprep.subr.bf16.mxu0 %v2003_v1 }
 0x314   : > { %1869 = vmatmul.mubr.msk.bf16.vlgmr.msra.gmra.mxu1 %vm797_vm5, %v793_v55 }
 0x315   : > { %1879 = vmatpush3.bf16.xpose.msra.mxu1 %v1063_v57  ;;  %1880 = vmatprep.mubr.msk.bf16.mxu1 %vm2004_vm0, %v2003_v1 }
 0x316   : > { %1890 = vmatprep.subr.bf16.mxu1 %v2003_v1 }
 0x318   : > { %1875 = vmatmul.mubr.msk.bf16.vlgmr.msra.gmra.mxu0 %vm560_vm2, %v1005_v52 }
 0x319   : > { %1885 = vmatpush3.bf16.xpose.msra.mxu0 %v1114_v59  ;;  %1886 = vmatprep.mubr.msk.bf16.mxu0 %vm2004_vm0, %v2003_v1 }
 0x31a   : > { %1896 = vmatprep.subr.bf16.mxu0 %v2003_v1 }
 0x31c   : > { %1881 = vmatmul.mubr.msk.bf16.vlgmr.msra.gmra.mxu1 %vm560_vm2, %v1056_v56 }
 0x31d   : > { %1891 = vmatpush3.bf16.xpose.msra.mxu1 %v1165_v61  ;;  %1892 = vmatprep.mubr.msk.bf16.mxu1 %vm2004_vm0, %v2003_v1 }
 0x31e   : > { %1902 = vmatprep.subr.bf16.mxu1 %v2003_v1 }
 0x320   : > { %1887 = vmatmul.mubr.msk.bf16.vlgmr.msra.gmra.mxu0 %vm560_vm2, %v1107_v62 }
 0x321   : > { %1898 = vmatprep.mubr.msk.bf16.mxu0 %vm2004_vm0, %v2003_v1 }
 0x324   : > { %1893 = vmatmul.mubr.msk.bf16.vlgmr.msra.gmra.mxu1 %vm560_vm2, %v1158_v63 }
 0x325   : > { %1904 = vmatprep.mubr.msk.bf16.mxu1 %vm2004_vm0, %v2003_v1 }
 0x39b   : > { %v839_v0 = vpop.f32.mrf.mxu0 }
 0x39d   : > { %v1852_v2 = vpop.f32.mrf.mxu0 }
 0x39f   : > { %v842_v3 = vpop.f32.mrf.mxu0  ;;  %v888_v4 = vpop.f32.mrf.mxu1 }
 0x3a0   : > { %v996_v5 = vcombine.low %v839_v0, %v888_v4 }
 0x3a1   : > { %v1853_v6 = vpop.f32.mrf.mxu0  ;;  %v1858_v7 = vpop.f32.mrf.mxu1 }
 0x3a3   : > { %v891_v12 = vpop.f32.mrf.mxu1 }
 0x3a5   : > { %v1859_v13 = vpop.f32.mrf.mxu1 }
 0x3d0   : > { %v937_v14 = vpop.f32.mrf.mxu0 }
 0x3d2   : > { %v1864_v15 = vpop.f32.mrf.mxu0 }
 0x3d4   : > { %v940_v16 = vpop.f32.mrf.mxu0  ;;  %v986_v18 = vpop.f32.mrf.mxu1 }
 0x3d5   : > { %v997_v20 = vcombine.low %v937_v14, %v986_v18 }
 0x3d6   : > { %v1865_v21 = vpop.f32.mrf.mxu0  ;;  %v1870_v22 = vpop.f32.mrf.mxu1 }
 0x3d7   : > { %v2217_v23 = vpack.c.bf16 %v997_v20, %v996_v5 }
 0x3d8   : > { %v989_v24 = vpop.f32.mrf.mxu1  ;;  %v1048_v25 = vpop.f32.mrf.mxu0 }
 0x3d9   : > { %v1207_v27 = vsel %vm745_vm3, %v1048_v25, -inf }
 0x3da   : > { %v1871_v28 = vpop.f32.mrf.mxu1  ;;  %1208 = vmax.xlane.f32.xlu0 %v1207_v27  ;;  %v1876_v29 = vpop.f32.mrf.mxu0 }
 0x3dc   : > { %v1051_v31 = vpop.f32.mrf.mxu0  ;;  %v1099_v33 = vpop.f32.mrf.mxu1 }
 0x3dd   : > { %v1210_v35 = vsel %vm745_vm3, %v1099_v33, -inf }
 0x3de   : > { %1211 = vmax.xlane.f32.xlu1 %v1210_v35  ;;  %v1877_v36 = vpop.f32.mrf.mxu0  ;;  %v1882_v34 = vpop.f32.mrf.mxu1  ;;  %v1953_v35 = vld [vmem:[%s2294_s4] sm:$0xff]  }
 0x3df   : > { %v1954_v34 = vld [vmem:[%s2294_s4 + $0x8] sm:$0xff]  }
 0x3e0   : > { %v1102_v37 = vpop.f32.mrf.mxu1  ;;  %v1150_v32 = vpop.f32.mrf.mxu0 }
 0x3e1   : > { %v1213_v38 = vsel %vm745_vm3, %v1150_v32, -inf }
 0x3e2   : > { %v1883_v39 = vpop.f32.mrf.mxu1  ;;  %1214 = vmax.xlane.f32.xlu0 %v1213_v38  ;;  %v1888_v40 = vpop.f32.mrf.mxu0 }
 0x3e4   : > { %v1153_v41 = vpop.f32.mrf.mxu0  ;;  %v1201_v42 = vpop.f32.mrf.mxu1 }
 0x3e5   : > { %v1216_v43 = vsel %vm745_vm3, %v1201_v42, -inf }
 0x3e6   : > { %v1894_v44 = vpop.f32.mrf.mxu1  ;;  %1217 = vmax.xlane.f32.xlu0 %v1216_v43  ;;  %v1889_v45 = vpop.f32.mrf.mxu0 }
 0x3e8   : > { %v1204_v46 = vpop.f32.mrf.mxu1 }
 0x3ea   : > { %v1895_v47 = vpop.f32.mrf.mxu1 }
 0x463   : > { %v1209_v48 = vpop.xlane.xlu0 %1208 }
 0x464   : > { %v1219_v49 = vsub.f32 %v1048_v25, %v1209_v48 }
 0x466   : > { %v1223_v50 = vmul.f32 1.442695, %v1219_v49 }
 0x467   : > { %v1212_v51 = vpop.xlane.xlu1 %1211 }
 0x468   : > { %1971 = vpow2.f32 %v1223_v50  ;;  %v1220_v52 = vsub.f32 %v1099_v33, %v1212_v51 }
 0x46a   : > { %v1225_v53 = vmul.f32 1.442695, %v1220_v52 }
 0x46b   : > { %v1215_v54 = vpop.xlane.xlu0 %1214 }
 0x46c   : > { %1973 = vpow2.f32 %v1225_v53  ;;  %v1221_v55 = vsub.f32 %v1150_v32, %v1215_v54 }
 0x46e   : > { %v1227_v56 = vmul.f32 1.442695, %v1221_v55 }
 0x46f   : > { %v1218_v63 = vpop.xlane.xlu0 %1217 }
 0x470   : > { %1975 = vpow2.f32 %v1227_v56  ;;  %v1222_v0 = vsub.f32 %v1201_v42, %v1218_v63 }
 0x472   : > { %v1229_v2 = vmul.f32 1.442695, %v1222_v0 }
 0x474   : > { %1977 = vpow2.f32 %v1229_v2 }
 0x475   : > { %v1972_v57 = vpop.eup %1971 }
 0x476   : > { %v1231_v58 = vsel %vm745_vm3, %v1972_v57, 0.0 }
 0x477   : > { %1232 = vadd.xlane.f32.xlu0 %v1231_v58 }
 0x479   : > { %v1974_v59 = vpop.eup %1973 }
 0x47a   : > { %v1234_v60 = vsel %vm745_vm3, %v1974_v59, 0.0 }
 0x47b   : > { %1235 = vadd.xlane.f32.xlu1 %v1234_v60 }
 0x47d   : > { %v1976_v61 = vpop.eup %1975 }
 0x47e   : > { %v1237_v62 = vsel %vm745_vm3, %v1976_v61, 0.0 }
 0x47f   : > { %1238 = vadd.xlane.f32.xlu0 %v1237_v62 }
 0x481   : > { %v1978_v3 = vpop.eup %1977 }
 0x482   : > { %v1240_v4 = vsel %vm745_vm3, %v1978_v3, 0.0 }
 0x48c   : > { %1303 = vrot.lane.b32.xlu1 %v2115_v19, %s2007_s29 }
 0x490   : > { %1351 = vrot.lane.b32.xlu1 %v2123_v26, %s2007_s29 }
 0x495   : > { %1255 = vrot.lane.b32.xlu0 %v2113_v17, %s2007_s29 }
 0x4b4   : > { %1241 = vadd.xlane.f32.xlu1 %v1240_v4 }
 0x4c5   : > { %1399 = vrot.lane.b32.xlu1 %v2125_v30, %s2007_s29 }
 0x500   : > { %v1233_v5 = vpop.xlane.xlu0 %1232 }
 0x501   : > { %1979 = vrcp.f32 %v1233_v5 }
 0x504   : > { %v1236_v6 = vpop.xlane.xlu1 %1235 }
 0x505   : > { %1981 = vrcp.f32 %v1236_v6 }
 0x508   : > { %v1304_v7 = vpop.permute.xlu1 %1303  ;;  %v1239_v19 = vpop.xlane.xlu0 %1238 }
 0x509   : > { %v1309_v26 = vsel %vm801_vm4, %v1304_v7, 0  ;;  %1983 = vrcp.f32 %v1239_v19 }
 0x50a   : > { %1903 = vmatpush3.bf16.msra.mxu1 %v1309_v26 }
 0x50b   : > { %1914 = vmatprep.subr.bf16.mxu1 %v2003_v1 }
 0x50c   : > { %v1256_v17 = vpop.permute.xlu0 %1255  ;;  %v1352_v14 = vpop.permute.xlu1 %1351 }
 0x50d   : > { %v1261_v12 = vsel %vm801_vm4, %v1256_v17, 0  ;;  %v1357_v18 = vsel %vm801_vm4, %v1352_v14, 0 }
 0x50e   : > { %v1980_v13 = vpop.eup %1979  ;;  %1897 = vmatpush3.bf16.msra.mxu0 %v1261_v12 }
 0x50f   : > { %1908 = vmatprep.subr.bf16.mxu0 %v2003_v1  ;;  %v1247_v30 = vmul.f32 %v1980_v13, %v1972_v57 }
 0x511   : > { %v1251_v15 = vpack.c.bf16 %v1247_v30, %v1247_v30 }
 0x512   : > { %v1982_v16 = vpop.eup %1981 }
 0x513   : > { %1899 = vmatmul.mubr.msk.bf16.vlgmr.msra.gmra.mxu0 %vm797_vm5, %v1251_v15  ;;  %v1248_v20 = vmul.f32 %v1982_v16, %v1974_v59 }
 0x514   : > { %1909 = vmatpush3.bf16.msra.mxu0 %v1357_v18  ;;  %1910 = vmatprep.mubr.msk.bf16.mxu0 %vm2004_vm0, %v2003_v1 }
 0x515   : > { %v1252_v21 = vpack.c.bf16 %v1248_v20, %v1248_v20  ;;  %1920 = vmatprep.subr.bf16.mxu0 %v2003_v1 }
 0x516   : > { %v1984_v22 = vpop.eup %1983 }
 0x517   : > { %1905 = vmatmul.mubr.msk.bf16.vlgmr.msra.gmra.mxu1 %vm797_vm5, %v1252_v21  ;;  %v1249_v24 = vmul.f32 %v1984_v22, %v1976_v61 }
 0x518   : > { %1916 = vmatprep.mubr.msk.bf16.mxu1 %vm2004_vm0, %v2003_v1 }
 0x519   : > { %v1253_v25 = vpack.c.bf16 %v1249_v24, %v1249_v24 }
 0x51b   : > { %1911 = vmatmul.mubr.msk.bf16.vlgmr.msra.gmra.mxu0 %vm797_vm5, %v1253_v25 }
 0x51c   : > { %1922 = vmatprep.mubr.msk.bf16.mxu0 %vm2004_vm0, %v2003_v1  ;;  %1921 = vmatpush3.bf16.msra.mxu0 %v1954_v34 }
 0x53d   : > { %v1242_v27 = vpop.xlane.xlu1 %1241 }
 0x53e   : > { %1985 = vrcp.f32 %v1242_v27 }
 0x541   : > { %v1400_v28 = vpop.permute.xlu1 %1399 }
 0x542   : > { %v1405_v29 = vsel %vm801_vm4, %v1400_v28, 0 }
 0x543   : > { %1915 = vmatpush3.bf16.msra.mxu1 %v1405_v29 }
 0x544   : > { %1926 = vmatprep.subr.bf16.mxu1 %v2003_v1 }
 0x54b   : > { %v1986_v31 = vpop.eup %1985 }
 0x54c   : > { %v1250_v33 = vmul.f32 %v1986_v31, %v1978_v3 }
 0x54e   : > { %v1254_v36 = vpack.c.bf16 %v1250_v33, %v1250_v33 }
 0x550   : > { %1917 = vmatmul.mubr.msk.bf16.vlgmr.msra.gmra.mxu1 %vm797_vm5, %v1254_v36 }
 0x551   : > { %1927 = vmatpush3.bf16.msra.mxu1 %v1953_v35  ;;  %1928 = vmatprep.mubr.msk.bf16.mxu1 %vm2004_vm0, %v2003_v1 }
 0x558   : > { %1929 = vmatmul.mubr.msk.bf16.vlgmr.msra.gmra.mxu1 %vm560_vm2, %v2217_v23 }
 0x5d3   : > { %v1297_v37 = vpop.f32.mrf.mxu0 }
 0x5d5   : > { %v1900_v32 = vpop.f32.mrf.mxu0 }
 0x5d7   : > { %v1300_v38 = vpop.f32.mrf.mxu0  ;;  %v1345_v39 = vpop.f32.mrf.mxu1 }
 0x5d8   : > { %v1451_v48 = vcombine.low %v1297_v37, %v1345_v39 }
 0x5d9   : > { %v1901_v40 = vpop.f32.mrf.mxu0  ;;  %v1906_v41 = vpop.f32.mrf.mxu1 }
 0x5db   : > { %v1348_v42 = vpop.f32.mrf.mxu1  ;;  %v1393_v43 = vpop.f32.mrf.mxu0 }
 0x5dd   : > { %v1907_v44 = vpop.f32.mrf.mxu1  ;;  %v1912_v45 = vpop.f32.mrf.mxu0 }
 0x5de   : > { %v1762_v44 = vld [vmem:[%s2295_s5] ss:$0 sm:$0xff] }
 0x5df   : > { %v1396_v46 = vpop.f32.mrf.mxu0 }
 0x5e1   : > { %v1913_v1 = vpop.f32.mrf.mxu0 }
 0x5e2   : > { %v1763_v1 = vld [vmem:[%s2296_s6] ss:$0 sm:$0xff] }
 0x610   : > { %v1441_v47 = vpop.f32.mrf.mxu1 }
 0x611   : > { %v1452_v23 = vcombine.low %v1393_v43, %v1441_v47 }
 0x612   : > { %v1918_v49 = vpop.f32.mrf.mxu1 }
 0x613   : > { %v1455_v50 = vpack.c.bf16 %v1452_v23, %v1451_v48 }
 0x614   : > { %v1444_v51 = vpop.f32.mrf.mxu1 }
 0x615   : > { %1923 = vmatmul.mubr.msk.bf16.vlgmr.msra.gmra.mxu0 %vm560_vm2, %v1455_v50 }
 0x616   : > { %v1919_v52 = vpop.f32.mrf.mxu1 }
 0x618   : > { %v1551_v53 = vpop.f32.mrf.mxu1 }
 0x61a   : > { %v1930_v54 = vpop.f32.mrf.mxu1 }
 0x61c   : > { %v1554_v55 = vpop.f32.mrf.mxu1 }
 0x61e   : > { %v1931_v56 = vpop.f32.mrf.mxu1 }
 0x6d5   : > { %v1501_v57 = vpop.f32.mrf.mxu0 }
 0x6d6   : > { %v1552_v58 = vadd.f32 %v1551_v53, %v1501_v57 }
 0x6d7   : > { %v1924_v59 = vpop.f32.mrf.mxu0 }
 0x6d8   : > { %v1560_v60 = vcombine.high %v1552_v58, %v1552_v58  ;;  %v1564_v61 = vadd.f32 %v1552_v58, %v2098_v8 }
 0x6d9   : > { %v1504_v62 = vpop.f32.mrf.mxu0 }
 0x6da   : > { %v1555_v63 = vadd.f32 %v1554_v55, %v1504_v62  ;;  %v1571_v0 = vsel %vm1570_vm6, %v1564_v61, 0.0  ;;  %v1565_v2 = vadd.f32 %v1560_v60, %v2100_v9 }
 0x6db   : > { %1572 = vadd.xlane.f32.xlu0 %v1571_v0  ;;  %v1925_v3 = vpop.f32.mrf.mxu0 }
 0x6dc   : > { %v1561_v4 = vcombine.high %v1555_v63, %v1555_v63  ;;  %v1574_v5 = vsel %vm1570_vm6, %v1565_v2, 0.0  ;;  %v1566_v6 = vadd.f32 %v1555_v63, %v2102_v10 }
 0x6dd   : > { %1575 = vadd.xlane.f32.xlu1 %v1574_v5 }
 0x6de   : > { %v1577_v7 = vsel %vm1570_vm6, %v1566_v6, 0.0  ;;  %v1567_v19 = vadd.f32 %v1561_v4, %v2104_v11 }
 0x6df   : > { %1578 = vadd.xlane.f32.xlu0 %v1577_v7 }
 0x6e0   : > { %v1580_v8 = vsel %vm1570_vm6, %v1567_v19, 0.0 }
 0x6e3   : > { %1581 = vadd.xlane.f32.xlu0 %v1580_v8 }
 0x764   : > { %v1573_v26 = vpop.xlane.xlu0 %1572 }
 0x765   : > { %v1584_v17 = vmul.f32 0.03125, %v1573_v26 }
 0x766   : > { %v1576_v12 = vpop.xlane.xlu1 %1575 }
 0x767   : > { %v1588_v9 = vsub.f32 %v1564_v61, %v1584_v17  ;;  %v1585_v13 = vmul.f32 0.03125, %v1576_v12 }
 0x768   : > { %v1579_v30 = vpop.xlane.xlu0 %1578 }
 0x769   : > { %v1589_v14 = vsub.f32 %v1565_v2, %v1585_v13  ;;  %v1586_v15 = vmul.f32 0.03125, %v1579_v30  ;;  %v1592_v16 = vmul.f32 %v1588_v9, %v1588_v9 }
 0x76b   : > { %v1590_v18 = vsub.f32 %v1566_v6, %v1586_v15  ;;  %v1596_v10 = vsel %vm1570_vm6, %v1592_v16, 0.0  ;;  %v1593_v20 = vmul.f32 %v1589_v14, %v1589_v14 }
 0x76c   : > { %1597 = vadd.xlane.f32.xlu0 %v1596_v10  ;;  %v1582_v21 = vpop.xlane.xlu0 %1581 }
 0x76d   : > { %v1587_v11 = vmul.f32 0.03125, %v1582_v21  ;;  %v1599_v22 = vsel %vm1570_vm6, %v1593_v20, 0.0  ;;  %v1594_v24 = vmul.f32 %v1590_v18, %v1590_v18 }
 0x76e   : > { %1600 = vadd.xlane.f32.xlu1 %v1599_v22 }
 0x76f   : > { %v1591_v25 = vsub.f32 %v1567_v19, %v1587_v11  ;;  %v1602_v27 = vsel %vm1570_vm6, %v1594_v24, 0.0 }
 0x770   : > { %1603 = vadd.xlane.f32.xlu0 %v1602_v27 }
 0x771   : > { %v1595_v28 = vmul.f32 %v1591_v25, %v1591_v25 }
 0x773   : > { %v1605_v29 = vsel %vm1570_vm6, %v1595_v28, 0.0 }
 0x774   : > { %1606 = vadd.xlane.f32.xlu1 %v1605_v29 }
 0x7f5   : > { %v1598_v31 = vpop.xlane.xlu0 %1597 }
 0x7f6   : > { %v1608_v33 = vmul.f32 0.03125, %v1598_v31 }
 0x7f7   : > { %v1601_v35 = vpop.xlane.xlu1 %1600 }
 0x7f8   : > { %v1612_v36 = vadd.f32 1e-05, %v1608_v33  ;;  %v1609_v34 = vmul.f32 0.03125, %v1601_v35 }
 0x7f9   : > { %v1604_v37 = vpop.xlane.xlu0 %1603 }
 0x7fa   : > { %1987 = vrsqrt.f32 %v1612_v36  ;;  %v1613_v32 = vadd.f32 1e-05, %v1609_v34  ;;  %v1610_v38 = vmul.f32 0.03125, %v1604_v37 }
 0x7fc   : > { %1989 = vrsqrt.f32 %v1613_v32  ;;  %v1614_v39 = vadd.f32 1e-05, %v1610_v38 }
 0x7fd   : > { %v1607_v40 = vpop.xlane.xlu1 %1606 }
 0x7fe   : > { %1991 = vrsqrt.f32 %v1614_v39  ;;  %v1611_v41 = vmul.f32 0.03125, %v1607_v40 }
 0x800   : > { %v1615_v42 = vadd.f32 1e-05, %v1611_v41 }
 0x802   : > { %1993 = vrsqrt.f32 %v1615_v42 }
 0x807   : > { %v1988_v43 = vpop.eup %1987 }
 0x808   : > { %v1620_v45 = vmul.f32 %v1988_v43, %v1588_v9 }
 0x809   : > { %v1990_v46 = vpop.eup %1989 }
 0x80a   : > { %v1630_v47 = vmul.f32 %v1762_v44, %v1620_v45  ;;  %v1621_v48 = vmul.f32 %v1990_v46, %v1589_v14 }
 0x80b   : > { %v1992_v23 = vpop.eup %1991 }
 0x80c   : > { %v1640_v49 = vadd.f32 %v1763_v1, %v1630_v47  ;;  %v1631_v50 = vmul.f32 %v1762_v44, %v1621_v48  ;;  %v1622_v51 = vmul.f32 %v1992_v23, %v1590_v18 }
 0x80e   : > { %1644 = vst.msk [vmem:[%s386_s19] sm:$0xf] %vm1570_vm6, %v1640_v49  ;;  %v1641_v52 = vadd.f32 %v1763_v1, %v1631_v50  ;;  %v1632_v53 = vmul.f32 %v1762_v44, %v1622_v51 }
 0x80f   : > { %v1994_v54 = vpop.eup %1993 }
 0x810   : > { %1645 = vst.msk [vmem:[%s386_s19 + $0x4] sm:$0xf] %vm1570_vm6, %v1641_v52  ;;  %v1642_v55 = vadd.f32 %v1763_v1, %v1632_v53  ;;  %v1623_v56 = vmul.f32 %v1994_v54, %v1591_v25 }
 0x812   : > { %1646 = vst.msk [vmem:[%s386_s19 + $0x8] sm:$0xf] %vm1570_vm6, %v1642_v55  ;;  %v1633_v57 = vmul.f32 %v1762_v44, %v1623_v56 }
 0x814   : > { %v1643_v58 = vadd.f32 %v1763_v1, %v1633_v57 }
 0x816   : > { %1647 = vst.msk [vmem:[%s386_s19 + $0xc] sm:$0xf] %vm1570_vm6, %v1643_v58 }
 0x817 PF: > { %s17_s24 = sadd.s32 1, %s2001_s24  }
 0x818   : > { %p14_p7 = scmp.ge.s32.totalorder %s17_s24, 4  }
 0x81a   :  { %16 = sbr.rel (!%p14_p7) target bundleno = 1 (0x1), region = 81 }

// kernel: _lambda_.16
= control target key start
LH: loop header
LB: loop body
LE: loop exit
PB: predicated region body
PF: predicated region fallthrough
CT: control target
= control target key end

     0   :  { %s1366_s18 = smov 0   ;;  %s1510_s0 = inlined_call_operand.vmem [shape: f32[4,2,32], index: 0, kind: input, shape index: {}]   ;;  %s1511_s1 = inlined_call_operand.vmem [shape: f32[8,4,32], index: 1, kind: input, shape index: {}]   ;;  %s1512_s2 = inlined_call_operand.vmem [shape: bf16[32,32], index: 2, kind: input, shape index: {}]   ;;  %s1513_s3 = inlined_call_operand.vmem [shape: bf16[32,64], index: 3, kind: input, shape index: {}]   ;;  %s1514_s4 = inlined_call_operand.vmem [shape: bf16[32,32], index: 4, kind: input, shape index: {}]   ;;  %s1515_s5 = inlined_call_operand.vmem [shape: f32[8,2,32], index: 5, kind: output, shape index: {}]  }
   0x1 LB: > { %s1372_s19 = sadd.s32 4294967295, %s1328_s18   ;;  %p1153_p0 = scmp.ge.s32.totalorder %s1328_s18, 1  ;;  %s1328_s18 = sphi %s1366_s18, %s15_s18  }
   0x2   : > { %p247_p1 = scmp.lt.s32.totalorder %s1328_s18, 5 }
   0x4   : > { %p248_p2 = pnand %p1153_p0, %p247_p1 }
   0x5   : > { %s1159_s24 = sshll.u32 (!%p248_p2), %s1372_s19, 1  ;;  %p292_p4 = scmp.lt.s32.totalorder (!%p248_p2), %s1372_s19, 0 }
   0x6   : > { %251 = sbr.rel (%p248_p2) target bundleno = 1652 (0x674), region = 40  ;;  %p323_p3 = scmp.lt.s32.totalorder (!%p248_p2), %s1159_s24, 7 }
   0x7   : > { %s293_s27 = ssub.s32 (!%p248_p2), 0, %s1372_s19  ;;  %s1334_s20 = smov (!%p248_p2), 112  }
   0x8   : > { %s1154_s30 = smin.u32 (!%p248_p2), %s1372_s19, %s293_s27  ;;  %s1333_s19 = smov (!%p248_p2), 96  }
   0x9   : > { %s295_s7 = sand.u32 (!%p248_p2), 1, %s1154_s30   ;;  %s1335_s21 = smov (!%p248_p2), 80  }
   0xa   : > { %s296_s11 = ssub.s32 (!%p248_p2), 0, %s295_s7 }
   0xb   : > { %v1299_v0 = vld [vmem:[%s1513_s3 + $0x8] sm:$0xff]   ;;  %v1330_v1 = vmov 0.0   ;;  %v1300_v2 = vld [vmem:[%s1513_s3] sm:$0xff]   ;;  %vm1331_vm0 = vmmov 0   ;;  %s1517_s24 = smov (!%p323_p3, %s1159_s24), 7  ;;  %s1519_s11 = smov (!%p292_p4, %s296_s11), %s295_s7  ;;  %vm367_vm1 = vcmask 261120   ;;  %v345_v9 = vlaneseq }
   0xc   : > { %1217 = vmatprep.subr.bf16.mxu1 %v1330_v1  ;;  %1209 = vmatprep.subr.bf16.mxu0 %v1330_v1  ;;  %v1302_v3 = vld [vmem:[%s1512_s2 + $0x8] sm:$0xff]   ;;  %v1303_v4 = vld [vmem:[%s1512_s2] sm:$0xff]   ;;  %s1160_s6 = sshll.u32 %s1517_s24, 2  ;;  %p1156_p5 = scmp.lt.s32.totalorder %s1519_s11, 0  ;;  %v1332_v7 = vmov 1983009808  }
   0xd   : > { %1218 = vmatpush3.bf16.msra.mxu1 %v1299_v0  ;;  %1221 = vmatprep.mubr.msk.bf16.mxu1 %vm1331_vm0, %v1330_v1  ;;  %s326_s10 = scalar_lea.vmem %s1511_s1, %s1160_s6  ;;  %s302_s12 = sadd.s32 2, %s1519_s11  ;;  %v343_v8 = vunpack.c.l.s4 %v1332_v7  ;;  %v346_v11 = vshrl.u32 %v345_v9, 7  ;;  %vm495_vm2 = vcmask 130048   ;;  %vm620_vm3 = vcmask 1041408  }
   0xe   : > { %1219 = vmatprep.subr.bf16.mxu1 %v1330_v1  ;;  %1213 = vmatprep.mubr.msk.bf16.mxu0 %vm1331_vm0, %v1330_v1  ;;  %v1301_v5 = vld [vmem:[%s326_s10] sm:$0xff]   ;;  %s1521_s12 = smov (!%p1156_p5, %s302_s12), %s1519_s11  ;;  %vm588_vm4 = vcmask 25600   ;;  %vm616_vm5 = vcmask 31744   ;;  %s1162_s27 = sshll.u32 %s1517_s24, 1  ;;  %vm1072_vm6 = vcmask 254976  }
   0xf   : > { %1210 = vmatpush3.bf16.msra.mxu0 %v1302_v3  ;;  %v426_v6 = vpack.c.bf16 %v1301_v5, %v1301_v5  ;;  %s1157_s13 = sshll.u32 %s1521_s12, 1  ;;  %v344_v10 = vunpack.c.0.s8 %v343_v8  ;;  %s332_s30 = scalar_lea.vmem %s1515_s5, %s1162_s27 }
  0x10   : > { %1211 = vmatprep.subr.bf16.mxu0 %v1330_v1  ;;  %p305_p6 = scmp.lt.s32.totalorder %s1157_s13, 3 }
  0x11   : > { %1220 = vmatpush3.bf16.msra.mxu1 %v1300_v2  ;;  %v1416_v12 = vsub.s32 %v344_v10, %v346_v11 }
  0x12   : > { %1231 = vmatprep.subr.bf16.mxu1 %v1330_v1  ;;  %s1523_s13 = smov (!%p305_p6, %s1157_s13), 3 }
  0x13   : > { %1212 = vmatpush3.bf16.msra.mxu0 %v1303_v4  ;;  %s1158_s14 = sshll.u32 %s1523_s13, 1 }
  0x14   : > { %1225 = vmatprep.subr.bf16.mxu0 %v1330_v1  ;;  %1222 = vmatmul.mubr.msk.bf16.vlgmr.msra.gmra.mxu1 %vm367_vm1, %v426_v6  ;;  %s308_s17 = scalar_lea.vmem %s1510_s0, %s1158_s14 }
  0x15   : > { %1233 = vmatprep.mubr.msk.bf16.mxu1 %vm1331_vm0, %v1330_v1  ;;  %v335_v13 = vld [vmem:[%s308_s17] sm:$0x3]  ;;  %v336_v14 = vld [vmem:[%s308_s17 + $0x2] sm:$0x3] }
  0x16   : > { %v341_v15 = vcombine.low %v335_v13, %v336_v14 }
  0x18   : > { %v348_v16 = vrot.slane %v341_v15, %v1416_v12 }
  0x1a   : > { %v350_v17 = vpack.c.bf16 %v348_v16, %v348_v16 }
  0x1c   : > { %1214 = vmatmul.mubr.msk.bf16.vlgmr.msra.gmra.mxu0 %vm367_vm1, %v350_v17 }
  0x1d   : > { %1227 = vmatprep.mubr.msk.bf16.mxu0 %vm1331_vm0, %v1330_v1 }
  0xd4   : > { %v480_v18 = vpop.f32.mrf.mxu1 }
  0xd5   : > { %v487_v19 = vcombine.high %v480_v18, %v480_v18  ;;  %v1422_v20 = vpack.c.bf16 %v480_v18, %v480_v18 }
  0xd6   : > { %v1223_v21 = vpop.f32.mrf.mxu1 }
  0xd7   : > { %v1424_v22 = vpack.c.bf16 %v487_v19, %v487_v19  ;;  %v500_v23 = vsel %vm495_vm2, %v1422_v20, 0 }
  0xd8   : > { %v483_v24 = vpop.f32.mrf.mxu1  ;;  %1226 = vmatpush3.bf16.xpose.msra.mxu0 %v500_v23 }
  0xd9   : > { %665 = vrot.lane.b32.xlu1 %v1424_v22, %s1333_s19  ;;  %v546_v25 = vsel %vm495_vm2, %v1424_v22, 0  ;;  %1237 = vmatprep.subr.bf16.mxu0 %v1330_v1 }
  0xda   : > { %v1224_v26 = vpop.f32.mrf.mxu1  ;;  %1232 = vmatpush3.bf16.xpose.msra.mxu1 %v546_v25 }
  0xdb   : > { %1243 = vmatprep.subr.bf16.mxu1 %v1330_v1 }
  0xdc   : > { %v405_v27 = vpop.f32.mrf.mxu0 }
  0xdd   : > { %730 = vrot.lane.b32.xlu1 %v1422_v20, %s1334_s20  ;;  %v418_v28 = vrot.slane %v405_v27, %v1416_v12 }
  0xde   : > { %v1215_v29 = vpop.f32.mrf.mxu0 }
  0xdf   : > { %v419_v30 = vcombine.high %v418_v28, %v418_v28  ;;  %v489_v31 = vmul.f32 0.25, %v418_v28 }
  0xe0   : > { %v408_v32 = vpop.f32.mrf.mxu0 }
  0xe1   : > { %v490_v33 = vmul.f32 0.25, %v419_v30  ;;  %v491_v34 = vpack.c.bf16 %v489_v31, %v489_v31 }
  0xe2   : > { %v1216_v35 = vpop.f32.mrf.mxu0 }
  0xe3   : > { %v492_v36 = vpack.c.bf16 %v490_v33, %v490_v33  ;;  %1228 = vmatmul.mubr.msk.bf16.vlgmr.msra.gmra.mxu0 %vm495_vm2, %v491_v34 }
  0xe4   : > { %1239 = vmatprep.mubr.msk.bf16.mxu0 %vm1331_vm0, %v1330_v1 }
  0xe5   : > { %1234 = vmatmul.mubr.msk.bf16.vlgmr.msra.gmra.mxu1 %vm495_vm2, %v492_v36 }
  0xe6   : > { %1245 = vmatprep.mubr.msk.bf16.mxu1 %vm1331_vm0, %v1330_v1 }
 0x14b   : > { %v666_v37 = vpop.permute.xlu1 %665 }
 0x14c   : > { %v671_v38 = vsel %vm620_vm3, %v666_v37, 0 }
 0x14d   : > { %1244 = vmatpush3.bf16.msra.mxu1 %v671_v38 }
 0x14e   : > { %1255 = vmatprep.subr.bf16.mxu1 %v1330_v1 }
 0x14f   : > { %v731_v61 = vpop.permute.xlu1 %730 }
 0x150   : > { %v736_v5 = vsel %vm495_vm2, %v731_v61, 0 }
 0x1a3   : > { %v536_v39 = vpop.f32.mrf.mxu0 }
 0x1a4   : > { %v589_v40 = vsel %vm588_vm4, %v536_v39, -inf }
 0x1a5   : > { %v582_v41 = vpop.f32.mrf.mxu1  ;;  %590 = vmax.xlane.f32.xlu0 %v589_v40  ;;  %v1229_v42 = vpop.f32.mrf.mxu0 }
 0x1a6   : > { %v592_v45 = vsel %vm588_vm4, %v582_v41, -inf }
 0x1a7   : > { %v539_v43 = vpop.f32.mrf.mxu0  ;;  %v1235_v44 = vpop.f32.mrf.mxu1 }
 0x1a9   : > { %v585_v46 = vpop.f32.mrf.mxu1  ;;  %593 = vmax.xlane.f32.xlu0 %v592_v45  ;;  %v1230_v47 = vpop.f32.mrf.mxu0 }
 0x1ab   : > { %v1236_v48 = vpop.f32.mrf.mxu1 }
 0x1bf   : > { %614 = vrot.lane.b32.xlu0 %v1422_v20, %s1333_s19 }
 0x1c3   : > { %728 = vrot.lane.b32.xlu0 %v491_v34, %s1334_s20 }
 0x22e   : > { %v591_v49 = vpop.xlane.xlu0 %590 }
 0x22f   : > { %v595_v50 = vsub.f32 %v536_v39, %v591_v49 }
 0x231   : > { %v597_v51 = vmul.f32 1.442695, %v595_v50 }
 0x232   : > { %v594_v52 = vpop.xlane.xlu0 %593 }
 0x233   : > { %1306 = vpow2.f32 %v597_v51  ;;  %v596_v53 = vsub.f32 %v582_v41, %v594_v52 }
 0x235   : > { %v599_v54 = vmul.f32 1.442695, %v596_v53 }
 0x236   : > { %v615_v55 = vpop.permute.xlu0 %614 }
 0x237   : > { %1308 = vpow2.f32 %v599_v54  ;;  %v622_v56 = vsel %vm620_vm3, %v615_v55, 0 }
 0x238   : > { %1238 = vmatpush3.bf16.msra.mxu0 %v622_v56 }
 0x239   : > { %1249 = vmatprep.subr.bf16.mxu0 %v1330_v1 }
 0x23a   : > { %v729_v10 = vpop.permute.xlu0 %728 }
 0x240   : > { %v1307_v57 = vpop.eup %1306 }
 0x241   : > { %v601_v58 = vsel %vm588_vm4, %v1307_v57, 0.0 }
 0x242   : > { %602 = vadd.xlane.f32.xlu1 %v601_v58 }
 0x244   : > { %v1309_v59 = vpop.eup %1308 }
 0x245   : > { %v604_v60 = vsel %vm588_vm4, %v1309_v59, 0.0 }
 0x246   : > { %605 = vadd.xlane.f32.xlu1 %v604_v60 }
 0x257   : > { %781 = vrot.lane.b32.xlu1 %v1424_v22, %s1334_s20 }
 0x25b   : > { %779 = vrot.lane.b32.xlu1 %v492_v36, %s1334_s20 }
 0x2cb   : > { %v603_v62 = vpop.xlane.xlu1 %602 }
 0x2cc   : > { %1310 = vrcp.f32 %v603_v62 }
 0x2cf   : > { %v606_v63 = vpop.xlane.xlu1 %605 }
 0x2d0   : > { %1312 = vrcp.f32 %v606_v63 }
 0x2d3   : > { %v782_v7 = vpop.permute.xlu1 %781 }
 0x2d4   : > { %v787_v9 = vsel %vm495_vm2, %v782_v7, 0 }
 0x2d7   : > { %v780_v11 = vpop.permute.xlu1 %779 }
 0x2d9   : > { %v1311_v0 = vpop.eup %1310 }
 0x2da   : > { %v609_v2 = vmul.f32 %v1311_v0, %v1307_v57  ;;  %v1305_v57 = vld [vmem:[%s1514_s4 + $0x8] sm:$0xff]  }
 0x2dc   : > { %v611_v3 = vpack.c.bf16 %v609_v2, %v609_v2 }
 0x2dd   : > { %v1313_v4 = vpop.eup %1312 }
 0x2de   : > { %1240 = vmatmul.mubr.msk.bf16.vlgmr.msra.gmra.mxu0 %vm616_vm5, %v611_v3  ;;  %v610_v6 = vmul.f32 %v1313_v4, %v1309_v59 }
 0x2df   : > { %1250 = vmatpush3.bf16.xpose.msra.mxu0 %v736_v5  ;;  %1251 = vmatprep.mubr.msk.bf16.mxu0 %vm1331_vm0, %v1330_v1 }
 0x2e0   : > { %v612_v8 = vpack.c.bf16 %v610_v6, %v610_v6  ;;  %1261 = vmatprep.subr.bf16.mxu0 %v1330_v1 }
 0x2e2   : > { %1246 = vmatmul.mubr.msk.bf16.vlgmr.msra.gmra.mxu1 %vm616_vm5, %v612_v8 }
 0x2e3   : > { %1256 = vmatpush3.bf16.xpose.msra.mxu1 %v787_v9  ;;  %1257 = vmatprep.mubr.msk.bf16.mxu1 %vm1331_vm0, %v1330_v1 }
 0x2e4   : > { %1267 = vmatprep.subr.bf16.mxu1 %v1330_v1 }
 0x2e6   : > { %1252 = vmatmul.mubr.msk.bf16.vlgmr.msra.gmra.mxu0 %vm495_vm2, %v729_v10 }
 0x2e7   : > { %1263 = vmatprep.mubr.msk.bf16.mxu0 %vm1331_vm0, %v1330_v1 }
 0x2ea   : > { %1258 = vmatmul.mubr.msk.bf16.vlgmr.msra.gmra.mxu1 %vm495_vm2, %v780_v11 }
 0x2eb   : > { %1269 = vmatprep.mubr.msk.bf16.mxu1 %vm1331_vm0, %v1330_v1 }
 0x39e   : > { %v1473_v13 = vpop.f32.mrf.mxu0 }
 0x3a0   : > { %v1241_v14 = vpop.f32.mrf.mxu0 }
 0x3a2   : > { %v661_v15 = vpop.f32.mrf.mxu0  ;;  %v707_v16 = vpop.f32.mrf.mxu1 }
 0x3a3   : > { %v715_v17 = vcombine.low %v1473_v13, %v707_v16 }
 0x3a4   : > { %v1242_v18 = vpop.f32.mrf.mxu0  ;;  %v1247_v19 = vpop.f32.mrf.mxu1 }
 0x3a5   : > { %v722_v55 = vrot.slane %v715_v17, %v1416_v12 }
 0x3a6   : > { %v710_v21 = vpop.f32.mrf.mxu1  ;;  %v772_v23 = vpop.f32.mrf.mxu0 }
 0x3a7   : > { %v829_v24 = vsel %vm588_vm4, %v772_v23, -inf  ;;  %v724_v56 = vpack.c.bf16 %v722_v55, %v722_v55 }
 0x3a8   : > { %v1248_v25 = vpop.f32.mrf.mxu1  ;;  %830 = vmax.xlane.f32.xlu0 %v829_v24  ;;  %v1253_v26 = vpop.f32.mrf.mxu0 }
 0x3aa   : > { %v775_v27 = vpop.f32.mrf.mxu0  ;;  %v823_v28 = vpop.f32.mrf.mxu1 }
 0x3ab   : > { %v832_v29 = vsel %vm588_vm4, %v823_v28, -inf }
 0x3ac   : > { %833 = vmax.xlane.f32.xlu1 %v832_v29  ;;  %v1254_v30 = vpop.f32.mrf.mxu0  ;;  %v1259_v31 = vpop.f32.mrf.mxu1 }
 0x3ae   : > { %v826_v32 = vpop.f32.mrf.mxu1 }
 0x3b0   : > { %v1260_v33 = vpop.f32.mrf.mxu1 }
 0x3bd   : > { %901 = vrot.lane.b32.xlu1 %v1424_v22, %s1335_s21 }
 0x431   : > { %v831_v34 = vpop.xlane.xlu0 %830 }
 0x432   : > { %v835_v35 = vsub.f32 %v772_v23, %v831_v34 }
 0x434   : > { %v837_v36 = vmul.f32 1.442695, %v835_v35 }
 0x435   : > { %v834_v37 = vpop.xlane.xlu1 %833 }
 0x436   : > { %1314 = vpow2.f32 %v837_v36  ;;  %v836_v38 = vsub.f32 %v823_v28, %v834_v37 }
 0x438   : > { %v839_v39 = vmul.f32 1.442695, %v836_v38 }
 0x439   : > { %v902_v40 = vpop.permute.xlu1 %901 }
 0x43a   : > { %1316 = vpow2.f32 %v839_v39  ;;  %v907_v41 = vsel %vm620_vm3, %v902_v40, 0 }
 0x43b   : > { %1268 = vmatpush3.bf16.msra.mxu1 %v907_v41 }
 0x43c   : > { %1279 = vmatprep.subr.bf16.mxu1 %v1330_v1 }
 0x443   : > { %v1315_v42 = vpop.eup %1314 }
 0x444   : > { %v841_v43 = vsel %vm588_vm4, %v1315_v42, 0.0 }
 0x445   : > { %842 = vadd.xlane.f32.xlu0 %v841_v43 }
 0x447   : > { %v1317_v44 = vpop.eup %1316 }
 0x448   : > { %v844_v22 = vsel %vm588_vm4, %v1317_v44, 0.0 }
 0x449   : > { %845 = vadd.xlane.f32.xlu0 %v844_v22 }
 0x45f   : > { %853 = vrot.lane.b32.xlu0 %v1422_v20, %s1335_s21  ;;  %v1304_v20 = vld [vmem:[%s1514_s4] sm:$0xff]  }
 0x4ce   : > { %v843_v45 = vpop.xlane.xlu0 %842 }
 0x4cf   : > { %1318 = vrcp.f32 %v843_v45 }
 0x4d2   : > { %v846_v46 = vpop.xlane.xlu0 %845 }
 0x4d3   : > { %1320 = vrcp.f32 %v846_v46 }
 0x4d6   : > { %v854_v47 = vpop.permute.xlu0 %853 }
 0x4d7   : > { %v859_v48 = vsel %vm620_vm3, %v854_v47, 0 }
 0x4d8   : > { %1262 = vmatpush3.bf16.msra.mxu0 %v859_v48 }
 0x4d9   : > { %1273 = vmatprep.subr.bf16.mxu0 %v1330_v1 }
 0x4dc   : > { %v1319_v49 = vpop.eup %1318 }
 0x4dd   : > { %v849_v50 = vmul.f32 %v1319_v49, %v1315_v42 }
 0x4df   : > { %v851_v51 = vpack.c.bf16 %v849_v50, %v849_v50 }
 0x4e0   : > { %v1321_v52 = vpop.eup %1320 }
 0x4e1   : > { %1264 = vmatmul.mubr.msk.bf16.vlgmr.msra.gmra.mxu0 %vm616_vm5, %v851_v51  ;;  %v850_v53 = vmul.f32 %v1321_v52, %v1317_v44 }
 0x4e2   : > { %1275 = vmatprep.mubr.msk.bf16.mxu0 %vm1331_vm0, %v1330_v1  ;;  %1274 = vmatpush3.bf16.msra.mxu0 %v1305_v57 }
 0x4e3   : > { %v852_v54 = vpack.c.bf16 %v850_v53, %v850_v53 }
 0x4e5   : > { %1270 = vmatmul.mubr.msk.bf16.vlgmr.msra.gmra.mxu1 %vm616_vm5, %v852_v54 }
 0x4e6   : > { %1280 = vmatpush3.bf16.msra.mxu1 %v1304_v20  ;;  %1281 = vmatprep.mubr.msk.bf16.mxu1 %vm1331_vm0, %v1330_v1 }
 0x4ed   : > { %1282 = vmatmul.mubr.msk.bf16.vlgmr.msra.gmra.mxu1 %vm495_vm2, %v724_v56 }
 0x5a1   : > { %v895_v58 = vpop.f32.mrf.mxu0 }
 0x5a3   : > { %v1265_v59 = vpop.f32.mrf.mxu0 }
 0x5a5   : > { %v898_v60 = vpop.f32.mrf.mxu0  ;;  %v943_v61 = vpop.f32.mrf.mxu1 }
 0x5a6   : > { %v951_v62 = vcombine.low %v895_v58, %v943_v61 }
 0x5a7   : > { %v1266_v63 = vpop.f32.mrf.mxu0  ;;  %v1271_v0 = vpop.f32.mrf.mxu1 }
 0x5a8   : > { %v958_v1 = vrot.slane %v951_v62, %v1416_v12 }
 0x5a9   : > { %v946_v2 = vpop.f32.mrf.mxu1 }
 0x5aa   : > { %v960_v3 = vpack.c.bf16 %v958_v1, %v958_v1 }
 0x5ab   : > { %v1272_v4 = vpop.f32.mrf.mxu1 }
 0x5ac   : > { %1276 = vmatmul.mubr.msk.bf16.vlgmr.msra.gmra.mxu0 %vm495_vm2, %v960_v3 }
 0x5ad   : > { %v1055_v5 = vpop.f32.mrf.mxu1 }
 0x5af   : > { %v1283_v6 = vpop.f32.mrf.mxu1 }
 0x5b1   : > { %v1058_v7 = vpop.f32.mrf.mxu1 }
 0x5b3   : > { %v1284_v8 = vpop.f32.mrf.mxu1 }
 0x66c   : > { %v1006_v9 = vpop.f32.mrf.mxu0 }
 0x66d   : > { %v1056_v10 = vadd.f32 %v1055_v5, %v1006_v9 }
 0x66e   : > { %v1277_v11 = vpop.f32.mrf.mxu0 }
 0x66f   : > { %v1068_v13 = vrot.slane %v1056_v10, %v1416_v12 }
 0x670   : > { %v1009_v14 = vpop.f32.mrf.mxu0 }
 0x671   : > { %v1069_v15 = vcombine.high %v1068_v13, %v1068_v13  ;;  %1073 = vst.msk [vmem:[%s332_s30] sm:$0x3] %vm1072_vm6, %v1068_v13 }
 0x672   : > { %v1278_v16 = vpop.f32.mrf.mxu0 }
 0x673   : > { %1074 = vst.msk [vmem:[%s332_s30 + $0x2] sm:$0x3] %vm1072_vm6, %v1069_v15 }
 0x674 PF: > { %s15_s18 = sadd.s32 1, %s1328_s18  }
 0x675   : > { %p12_p7 = scmp.ge.s32.totalorder %s15_s18, 6  }
 0x677   :  { %14 = sbr.rel (!%p12_p7) target bundleno = 1 (0x1), region = 73 }

// kernel: _lambda_.19
= control target key start
LH: loop header
LB: loop body
LE: loop exit
PB: predicated region body
PF: predicated region fallthrough
CT: control target
= control target key end

     0   :  { %s481_s18 = smov 0   ;;  %s529_s0 = inlined_call_operand.vmem [shape: f32[16,64], index: 0, kind: input, shape index: {}]   ;;  %s530_s1 = inlined_call_operand.vmem [shape: f32[1,64], index: 1, kind: input, shape index: {}]   ;;  %s531_s2 = inlined_call_operand.vmem [shape: f32[1,64], index: 2, kind: input, shape index: {}]   ;;  %s532_s3 = inlined_call_operand.vmem [shape: bf16[64,32], index: 3, kind: input, shape index: {}]   ;;  %s533_s4 = inlined_call_operand.vmem [shape: f32[1,32], index: 4, kind: input, shape index: {}]   ;;  %s534_s5 = inlined_call_operand.vmem [shape: f32[16,32], index: 5, kind: output, shape index: {}]  }
   0x1 LB: > { %s391_s19 = sadd.s32 4294967295, %s447_s18   ;;  %p395_p0 = scmp.ge.s32.totalorder %s447_s18, 1  ;;  %s447_s18 = sphi %s481_s18, %s15_s18  }
   0x2   : > { %p186_p1 = scmp.lt.s32.totalorder %s447_s18, 3 }
   0x4   : > { %p187_p2 = pnand %p395_p0, %p186_p1 }
   0x5   : > { %p212_p3 = scmp.lt.s32.totalorder (!%p187_p2), %s391_s19, 1 }
   0x6   : > { %190 = sbr.rel (%p187_p2) target bundleno = 524 (0x20c), region = 40 }
   0xb   : > { %s536_s19 = smov (!%p212_p3, %s391_s19), 1  ;;  %vm224_vm0 = vcmask 523264   ;;  %v435_v7 = vld [vmem:[%s532_s3 + $0x18] sm:$0xff]   ;;  %v449_v8 = vmov 0.0   ;;  %vm450_vm1 = vmmov 0   ;;  %v436_v9 = vld [vmem:[%s532_s3 + $0x10] sm:$0xff]  }
   0xc   : > { %s396_s20 = sshll.u32 %s536_s19, 3  ;;  %413 = vmatprep.subr.bf16.mxu0 %v449_v8  ;;  %421 = vmatprep.mubr.msk.bf16.mxu0 %vm450_vm1, %v449_v8  ;;  %v437_v10 = vld [vmem:[%s532_s3 + $0x8] sm:$0xff]   ;;  %v438_v11 = vld [vmem:[%s532_s3] sm:$0xff]   ;;  %vm336_vm2 = vcmask 261120  }
   0xd   : > { %s215_s23 = scalar_lea.vmem %s529_s0, %s396_s20  ;;  %414 = vmatpush3.bf16.msra.mxu0 %v435_v7  ;;  %v398_v16 = vld [vmem:[%s530_s1] ss:$0 sm:$0xff]  ;;  %s219_s15 = scalar_lea.vmem %s534_s5, %s396_s20 }
   0xe   : > { %v221_v0 = vld [vmem:[%s215_s23] sm:$0xff]  ;;  %415 = vmatprep.subr.bf16.mxu0 %v449_v8 }
   0xf   : > { %v225_v1 = vsel %vm224_vm0, %v221_v0, 0.0  ;;  %v399_v18 = vld [vmem:[%s531_s2] ss:$0 sm:$0xff] }
  0x10   : > { %226 = vadd.xlane.f32.xlu0 %v225_v1  ;;  %v400_v22 = vld [vmem:[%s533_s4] ss:$0 sm:$0xff] }
  0x11   : > { %416 = vmatpush3.bf16.msra.mxu0 %v436_v9 }
  0x12   : > { %417 = vmatprep.subr.bf16.mxu0 %v449_v8 }
  0x15   : > { %418 = vmatpush3.bf16.msra.mxu0 %v437_v10 }
  0x16   : > { %419 = vmatprep.subr.bf16.mxu0 %v449_v8 }
  0x19   : > { %420 = vmatpush3.bf16.msra.mxu0 %v438_v11 }
  0x99   : > { %v227_v2 = vpop.xlane.xlu0 %226 }
  0x9a   : > { %v229_v3 = vmul.f32 0.015625, %v227_v2 }
  0x9c   : > { %v230_v4 = vsub.f32 %v221_v0, %v229_v3 }
  0x9e   : > { %v231_v5 = vmul.f32 %v230_v4, %v230_v4 }
  0xa0   : > { %v232_v6 = vsel %vm224_vm0, %v231_v5, 0.0 }
  0xa1   : > { %233 = vadd.xlane.f32.xlu0 %v232_v6 }
 0x12a   : > { %v234_v12 = vpop.xlane.xlu0 %233 }
 0x12b   : > { %v235_v13 = vmul.f32 0.015625, %v234_v12 }
 0x12d   : > { %v236_v14 = vadd.f32 1e-05, %v235_v13 }
 0x12f   : > { %439 = vrsqrt.f32 %v236_v14 }
 0x13c   : > { %v440_v15 = vpop.eup %439 }
 0x13d   : > { %v238_v17 = vmul.f32 %v440_v15, %v230_v4 }
 0x13f   : > { %v245_v19 = vmul.f32 %v398_v16, %v238_v17 }
 0x141   : > { %v252_v20 = vadd.f32 %v399_v18, %v245_v19 }
 0x143   : > { %v253_v21 = vpack.c.bf16 %v252_v20, %v252_v20 }
 0x145   : > { %422 = vmatmul.mubr.msk.bf16.vlgmr.msra.gmra.mxu0 %vm224_vm0, %v253_v21 }
 0x205   : > { %v330_v23 = vpop.f32.mrf.mxu0 }
 0x206   : > { %v331_v24 = vadd.f32 %v400_v22, %v330_v23 }
 0x207   : > { %v423_v25 = vpop.f32.mrf.mxu0 }
 0x208   : > { %337 = vst.msk [vmem:[%s219_s15] sm:$0xff] %vm336_vm2, %v331_v24 }
 0x209   : > { %v333_v26 = vpop.f32.mrf.mxu0 }
 0x20b   : > { %v424_v27 = vpop.f32.mrf.mxu0 }
 0x20c PF: > { %s15_s18 = sadd.s32 1, %s447_s18  }
 0x20d   : > { %p12_p4 = scmp.ge.s32.totalorder %s15_s18, 4  }
 0x20f   :  { %14 = sbr.rel (!%p12_p4) target bundleno = 1 (0x1), region = 70 }

// kernel: _lambda_.21
= control target key start
LH: loop header
LB: loop body
LE: loop exit
PB: predicated region body
PF: predicated region fallthrough
CT: control target
= control target key end

     0   :  { %s663_s24 = smov 0   ;;  %s721_s0 = inlined_call_operand.vmem [shape: f32[16,32], index: 0, kind: input, shape index: {}]   ;;  %s722_s1 = inlined_call_operand.vmem [shape: bf16[32,64], index: 1, kind: input, shape index: {}]   ;;  %s723_s2 = inlined_call_operand.vmem [shape: f32[1,64], index: 2, kind: input, shape index: {}]   ;;  %s724_s3 = inlined_call_operand.vmem [shape: bf16[64,32], index: 3, kind: input, shape index: {}]   ;;  %s725_s4 = inlined_call_operand.vmem [shape: f32[1,32], index: 4, kind: input, shape index: {}, may-alias: {4,6}]   ;;  %s726_s5 = inlined_call_operand.vmem [shape: f32[1,32], index: 5, kind: input, shape index: {}]   ;;  %s727_s6 = inlined_call_operand.vmem [shape: f32[1,32], index: 6, kind: input, shape index: {}, may-alias: {4,6}]   ;;  %s728_s7 = inlined_call_operand.vmem [shape: f32[16,32], index: 7, kind: output, shape index: {}]  }
   0x1 LB: > { %s540_s25 = sadd.s32 4294967295, %s618_s24   ;;  %p544_p0 = scmp.ge.s32.totalorder %s618_s24, 1  ;;  %s618_s24 = sphi %s663_s24, %s17_s24  }
   0x2   : > { %p236_p1 = scmp.lt.s32.totalorder %s618_s24, 3 }
   0x4   : > { %p237_p2 = pnand %p544_p0, %p236_p1 }
   0x5   : > { %p266_p3 = scmp.lt.s32.totalorder (!%p237_p2), %s540_s25, 1 }
   0x6   : > { %240 = sbr.rel (%p237_p2) target bundleno = 773 (0x305), region = 48 }
   0xb   : > { %v600_v0 = vld [vmem:[%s722_s1 + $0x8] sm:$0xff]   ;;  %v620_v1 = vmov 0.0   ;;  %v601_v2 = vld [vmem:[%s722_s1] sm:$0xff]   ;;  %vm621_vm0 = vmmov 0   ;;  %s730_s25 = smov (!%p266_p3, %s540_s25), 1  ;;  %vm300_vm1 = vcmask 261120  }
   0xc   : > { %569 = vmatprep.subr.bf16.mxu0 %v620_v1  ;;  %577 = vmatprep.subr.bf16.mxu1 %v620_v1  ;;  %s545_s30 = sshll.u32 %s730_s25, 3  ;;  %v602_v5 = vld [vmem:[%s724_s3 + $0x18] sm:$0xff]   ;;  %v603_v6 = vld [vmem:[%s724_s3 + $0x10] sm:$0xff]   ;;  %v604_v7 = vld [vmem:[%s724_s3 + $0x8] sm:$0xff]   ;;  %v622_v35 = vmov -1.0   ;;  %vm411_vm3 = vcmask 523264  }
   0xd   : > { %570 = vmatpush3.bf16.msra.mxu0 %v600_v0  ;;  %573 = vmatprep.mubr.msk.bf16.mxu0 %vm621_vm0, %v620_v1  ;;  %s269_s10 = scalar_lea.vmem %s721_s0, %s545_s30  ;;  %v605_v8 = vld [vmem:[%s724_s3] sm:$0xff]   ;;  %s273_s9 = scalar_lea.vmem %s728_s7, %s545_s30 }
   0xe   : > { %571 = vmatprep.subr.bf16.mxu0 %v620_v1  ;;  %585 = vmatprep.mubr.msk.bf16.mxu1 %vm621_vm0, %v620_v1  ;;  %v275_v3 = vld [vmem:[%s269_s10] sm:$0xff] }
   0xf   : > { %v276_v4 = vpack.c.bf16 %v275_v3, %v275_v3  ;;  %578 = vmatpush3.bf16.msra.mxu1 %v602_v5  ;;  %v547_v9 = vld [vmem:[%s723_s2] ss:$0 sm:$0xff] }
  0x10   : > { %579 = vmatprep.subr.bf16.mxu1 %v620_v1  ;;  %v551_v42 = vld [vmem:[%s725_s4] ss:$0 sm:$0xff] }
  0x11   : > { %572 = vmatpush3.bf16.msra.mxu0 %v601_v2  ;;  %v557_v59 = vld [vmem:[%s726_s5] ss:$0 sm:$0xff] }
  0x12   : > { %v558_v61 = vld [vmem:[%s727_s6] ss:$0 sm:$0xff] }
  0x13   : > { %580 = vmatpush3.bf16.msra.mxu1 %v603_v6 }
  0x14   : > { %574 = vmatmul.mubr.msk.bf16.vlgmr.msra.gmra.mxu0 %vm300_vm1, %v276_v4  ;;  %581 = vmatprep.subr.bf16.mxu1 %v620_v1 }
  0x17   : > { %582 = vmatpush3.bf16.msra.mxu1 %v604_v7 }
  0x18   : > { %583 = vmatprep.subr.bf16.mxu1 %v620_v1 }
  0x1b   : > { %584 = vmatpush3.bf16.msra.mxu1 %v605_v8 }
  0xd4   : > { %v338_v10 = vpop.f32.mrf.mxu0 }
  0xd5   : > { %v339_v11 = vadd.f32 %v547_v9, %v338_v10 }
  0xd6   : > { %v575_v12 = vpop.f32.mrf.mxu0 }
  0xd7   : > { %v345_v13 = vmul.f32 0.70710677, %v339_v11  ;;  %v344_v38 = vmul.f32 0.5, %v339_v11 }
  0xd8   : > { %v341_v14 = vpop.f32.mrf.mxu0 }
  0xd9   : > { %v348_v15 = vand.u32 2147483647, %v345_v13  ;;  %vm346_vm2 = vcmp.ge.f32.partialorder %v345_v13, 0.0 }
  0xda   : > { %v576_v16 = vpop.f32.mrf.mxu0  ;;  %v347_v36 = vsel %vm346_vm2, 1.0, %v622_v35 }
  0xdb   : > { %v349_v17 = vmul.f32 0.3275911, %v348_v15  ;;  %v362_v19 = vsub.f32 0.0, %v348_v15 }
  0xdd   : > { %v350_v18 = vadd.f32 1.0, %v349_v17  ;;  %v363_v20 = vmul.f32 %v362_v19, %v348_v15 }
  0xdf   : > { %606 = vrcp.f32 %v350_v18  ;;  %v364_v23 = vmul.f32 1.442695, %v363_v20 }
  0xe1   : > { %608 = vpow2.f32 %v364_v23 }
  0xec   : > { %v607_v21 = vpop.eup %606 }
  0xed   : > { %v353_v22 = vmul.f32 1.0614054, %v607_v21 }
  0xee   : > { %v609_v32 = vpop.eup %608 }
  0xef   : > { %v354_v24 = vadd.f32 -1.4531521, %v353_v22 }
  0xf1   : > { %v355_v25 = vmul.f32 %v607_v21, %v354_v24 }
  0xf3   : > { %v356_v26 = vadd.f32 1.4214138, %v355_v25 }
  0xf5   : > { %v357_v27 = vmul.f32 %v607_v21, %v356_v26 }
  0xf7   : > { %v358_v28 = vadd.f32 -0.28449672, %v357_v27 }
  0xf9   : > { %v359_v29 = vmul.f32 %v607_v21, %v358_v28 }
  0xfb   : > { %v360_v30 = vadd.f32 0.2548296, %v359_v29 }
  0xfd   : > { %v361_v31 = vmul.f32 %v607_v21, %v360_v30 }
  0xff   : > { %v366_v33 = vmul.f32 %v609_v32, %v361_v31 }
 0x101   : > { %v367_v34 = vsub.f32 1.0, %v366_v33 }
 0x103   : > { %v368_v37 = vmul.f32 %v367_v34, %v347_v36 }
 0x105   : > { %v369_v39 = vadd.f32 1.0, %v368_v37 }
 0x107   : > { %v370_v40 = vmul.f32 %v369_v39, %v344_v38 }
 0x109   : > { %v371_v41 = vpack.c.bf16 %v370_v40, %v370_v40 }
 0x10b   : > { %586 = vmatmul.mubr.msk.bf16.vlgmr.msra.gmra.mxu1 %vm411_vm3, %v371_v41 }
 0x1cb   : > { %v449_v43 = vpop.f32.mrf.mxu1 }
 0x1cc   : > { %v450_v44 = vadd.f32 %v551_v42, %v449_v43 }
 0x1cd   : > { %v587_v45 = vpop.f32.mrf.mxu1 }
 0x1ce   : > { %v455_v46 = vadd.f32 %v450_v44, %v275_v3 }
 0x1cf   : > { %v452_v47 = vpop.f32.mrf.mxu1 }
 0x1d0   : > { %v458_v48 = vsel %vm300_vm1, %v455_v46, 0.0 }
 0x1d1   : > { %459 = vadd.xlane.f32.xlu0 %v458_v48  ;;  %v588_v49 = vpop.f32.mrf.mxu1 }
 0x25a   : > { %v460_v50 = vpop.xlane.xlu0 %459 }
 0x25b   : > { %v462_v51 = vmul.f32 0.03125, %v460_v50 }
 0x25d   : > { %v463_v52 = vsub.f32 %v455_v46, %v462_v51 }
 0x25f   : > { %v464_v53 = vmul.f32 %v463_v52, %v463_v52 }
 0x261   : > { %v465_v54 = vsel %vm300_vm1, %v464_v53, 0.0 }
 0x262   : > { %466 = vadd.xlane.f32.xlu0 %v465_v54 }
 0x2eb   : > { %v467_v55 = vpop.xlane.xlu0 %466 }
 0x2ec   : > { %v468_v56 = vmul.f32 0.03125, %v467_v55 }
 0x2ee   : > { %v469_v57 = vadd.f32 1e-05, %v468_v56 }
 0x2f0   : > { %610 = vrsqrt.f32 %v469_v57 }
 0x2fd   : > { %v611_v58 = vpop.eup %610 }
 0x2fe   : > { %v471_v60 = vmul.f32 %v611_v58, %v463_v52 }
 0x300   : > { %v478_v62 = vmul.f32 %v557_v59, %v471_v60 }
 0x302   : > { %v485_v63 = vadd.f32 %v558_v61, %v478_v62 }
 0x304   : > { %486 = vst.msk [vmem:[%s273_s9] sm:$0xff] %vm300_vm1, %v485_v63 }
 0x305 PF: > { %s17_s24 = sadd.s32 1, %s618_s24  }
 0x306   : > { %p14_p4 = scmp.ge.s32.totalorder %s17_s24, 4  }
 0x308   :  { %16 = sbr.rel (!%p14_p4) target bundleno = 1 (0x1), region = 78 }

// kernel: _lambda_.20
= control target key start
LH: loop header
LB: loop body
LE: loop exit
PB: predicated region body
PF: predicated region fallthrough
CT: control target
= control target key end

     0   :  { %s2146_s24 = smov 0   ;;  %s2407_s0 = inlined_call_operand.vmem [shape: f32[8,2,32], index: 0, kind: input, shape index: {}, may-alias: {0,1}]   ;;  %s2408_s1 = inlined_call_operand.vmem [shape: f32[8,2,32], index: 1, kind: input, shape index: {}, may-alias: {0,1}]   ;;  %s2409_s2 = inlined_call_operand.vmem [shape: bf16[32,32], index: 2, kind: input, shape index: {}]   ;;  %s2410_s3 = inlined_call_operand.vmem [shape: bf16[32,64], index: 3, kind: input, shape index: {}]   ;;  %s2411_s4 = inlined_call_operand.vmem [shape: bf16[32,32], index: 4, kind: input, shape index: {}]   ;;  %s2412_s5 = inlined_call_operand.vmem [shape: f32[1,32], index: 5, kind: input, shape index: {}]   ;;  %s2413_s6 = inlined_call_operand.vmem [shape: f32[1,32], index: 6, kind: input, shape index: {}]   ;;  %s2414_s7 = inlined_call_operand.vmem [shape: f32[8,2,32], index: 7, kind: output, shape index: {}]  }
   0x1 LB: > { %s2152_s25 = sadd.s32 4294967295, %s2098_s24   ;;  %p1826_p0 = scmp.ge.s32.totalorder %s2098_s24, 1  ;;  %s2098_s24 = sphi %s2146_s24, %s17_s24  }
   0x2   : > { %p297_p1 = scmp.lt.s32.totalorder %s2098_s24, 3 }
   0x4   : > { %p298_p2 = pnand %p1826_p0, %p297_p1 }
   0x5   : > { %s1832_s30 = sshll.u32 (!%p298_p2), %s2152_s25, 2  ;;  %s347_s12 = ssub.s32 (!%p298_p2), 0, %s2152_s25 }
   0x6   : > { %301 = sbr.rel (%p298_p2) target bundleno = 2084 (0x824), region = 48  ;;  %p377_p3 = scmp.lt.s32.totalorder (!%p298_p2), %s1832_s30, 7 }
   0x7   : > { %p346_p4 = scmp.lt.s32.totalorder (!%p298_p2), %s2152_s25, 0  ;;  %s1827_s13 = smin.u32 (!%p298_p2), %s2152_s25, %s347_s12 }
   0x8   : > { %s349_s15 = sand.u32 (!%p298_p2), 1, %s1827_s13   ;;  %s2103_s27 = smov (!%p298_p2), 96  }
   0x9   : > { %s350_s19 = ssub.s32 (!%p298_p2), 0, %s349_s15  ;;  %s2104_s28 = smov (!%p298_p2), 112  }
   0xa   : > { %s2105_s29 = smov (!%p298_p2), 80  }
   0xb   : > { %v2046_v0 = vld [vmem:[%s2410_s3 + $0x8] sm:$0xff]   ;;  %v406_v1 = vlaneseq  ;;  %v2100_v2 = vmov 0.0   ;;  %v2047_v3 = vld [vmem:[%s2410_s3] sm:$0xff]   ;;  %vm2101_vm0 = vmmov 0   ;;  %v2102_v5 = vmov 1983009808   ;;  %s2418_s19 = smov (!%p346_p4, %s350_s19), %s349_s15 }
   0xc   : > { %1916 = vmatprep.subr.bf16.mxu1 %v2100_v2  ;;  %1908 = vmatprep.subr.bf16.mxu0 %v2100_v2  ;;  %v2048_v4 = vld [vmem:[%s2409_s2 + $0x8] sm:$0xff]   ;;  %v404_v6 = vunpack.c.l.s4 %v2102_v5  ;;  %v2049_v8 = vld [vmem:[%s2409_s2] sm:$0xff]   ;;  %s2416_s30 = smov (!%p377_p3, %s1832_s30), 7  ;;  %p1829_p5 = scmp.lt.s32.totalorder %s2418_s19, 0  ;;  %vm436_vm1 = vcmask 261120   ;;  %vm618_vm2 = vcmask 130048  }
   0xd   : > { %1917 = vmatpush3.bf16.msra.mxu1 %v2046_v0  ;;  %1920 = vmatprep.mubr.msk.bf16.mxu1 %vm2101_vm0, %v2100_v2  ;;  %v407_v7 = vshrl.u32 %v406_v1, 7  ;;  %s1833_s14 = sshll.u32 %s2416_s30, 1  ;;  %s356_s20 = sadd.s32 2, %s2418_s19  ;;  %vm803_vm3 = vcmask 9216   ;;  %vm859_vm4 = vcmask 1040384   ;;  %vm855_vm5 = vcmask 15360  }
   0xe   : > { %1918 = vmatprep.subr.bf16.mxu1 %v2100_v2  ;;  %1912 = vmatprep.mubr.msk.bf16.mxu0 %vm2101_vm0, %v2100_v2  ;;  %v405_v9 = vunpack.c.0.s8 %v404_v6  ;;  %s380_s18 = scalar_lea.vmem %s2408_s1, %s1833_s14  ;;  %s2420_s20 = smov (!%p1829_p5, %s356_s20), %s2418_s19  ;;  %vm1670_vm6 = vcmask 254976  }
   0xf   : > { %1909 = vmatpush3.bf16.msra.mxu0 %v2048_v4  ;;  %v393_v11 = vld [vmem:[%s380_s18] sm:$0x3]  ;;  %v394_v12 = vld [vmem:[%s380_s18 + $0x2] sm:$0x3]  ;;  %v395_v13 = vld [vmem:[%s380_s18 + $0x4] sm:$0x3]  ;;  %s386_s19 = scalar_lea.vmem %s2414_s7, %s1833_s14 }
  0x10   : > { %1910 = vmatprep.subr.bf16.mxu0 %v2100_v2  ;;  %v2189_v10 = vsub.s32 %v405_v9, %v407_v7  ;;  %v396_v14 = vld [vmem:[%s380_s18 + $0x6] sm:$0x3]  ;;  %v506_v15 = vcombine.low %v393_v11, %v394_v12  ;;  %s1830_s21 = sshll.u32 %s2420_s20, 2 }
  0x11   : > { %1919 = vmatpush3.bf16.msra.mxu1 %v2047_v3  ;;  %v507_v16 = vcombine.low %v395_v13, %v396_v14  ;;  %p359_p6 = scmp.lt.s32.totalorder %s1830_s21, 7 }
  0x12   : > { %1930 = vmatprep.subr.bf16.mxu1 %v2100_v2  ;;  %v514_v17 = vrot.slane %v506_v15, %v2189_v10 }
  0x13   : > { %1911 = vmatpush3.bf16.msra.mxu0 %v2049_v8  ;;  %v521_v18 = vrot.slane %v507_v16, %v2189_v10  ;;  %s2422_s21 = smov (!%p359_p6, %s1830_s21), 7 }
  0x14   : > { %1924 = vmatprep.subr.bf16.mxu0 %v2100_v2  ;;  %s1831_s22 = sshll.u32 %s2422_s21, 1 }
  0x15   : > { %v522_v19 = vcombine.low %v514_v17, %v521_v18  ;;  %s362_s26 = scalar_lea.vmem %s2407_s0, %s1831_s22 }
  0x16   : > { %v2202_v21 = vld [vmem:[%s362_s26] sm:$0x3]  ;;  %v2204_v22 = vld [vmem:[%s362_s26 + $0x2] sm:$0x3]  ;;  %v2206_v23 = vld [vmem:[%s362_s26 + $0x4] sm:$0x3] }
  0x17   : > { %v524_v20 = vpack.c.bf16 %v522_v19, %v522_v19  ;;  %v2208_v24 = vld [vmem:[%s362_s26 + $0x6] sm:$0x3]  ;;  %v401_v25 = vcombine.low %v2202_v21, %v2204_v22 }
  0x18   : > { %v402_v26 = vcombine.low %v2206_v23, %v2208_v24 }
  0x19   : > { %1921 = vmatmul.mubr.msk.bf16.vlgmr.msra.gmra.mxu1 %vm436_vm1, %v524_v20  ;;  %v409_v27 = vrot.slane %v401_v25, %v2189_v10 }
  0x1a   : > { %1932 = vmatprep.mubr.msk.bf16.mxu1 %vm2101_vm0, %v2100_v2  ;;  %v416_v28 = vrot.slane %v402_v26, %v2189_v10 }
  0x1c   : > { %v417_v29 = vcombine.low %v409_v27, %v416_v28 }
  0x1e   : > { %v419_v30 = vpack.c.bf16 %v417_v29, %v417_v29 }
  0x20   : > { %1913 = vmatmul.mubr.msk.bf16.vlgmr.msra.gmra.mxu0 %vm436_vm1, %v419_v30 }
  0x21   : > { %1926 = vmatprep.mubr.msk.bf16.mxu0 %vm2101_vm0, %v2100_v2 }
  0xd9   : > { %v578_v31 = vpop.f32.mrf.mxu1 }
  0xda   : > { %v592_v32 = vrot.slane %v578_v31, %v2189_v10  ;;  %v585_v41 = vcombine.high %v578_v31, %v578_v31 }
  0xdb   : > { %v1922_v33 = vpop.f32.mrf.mxu1 }
  0xdc   : > { %v600_v34 = vcombine.high %v592_v32, %v592_v32  ;;  %v2220_v35 = vpack.c.bf16 %v592_v32, %v592_v32  ;;  %v599_v42 = vrot.slane %v585_v41, %v2189_v10 }
  0xdd   : > { %v581_v36 = vpop.f32.mrf.mxu1 }
  0xde   : > { %v2222_v37 = vpack.c.bf16 %v600_v34, %v600_v34  ;;  %v623_v38 = vsel %vm618_vm2, %v2220_v35, 0  ;;  %v601_v44 = vcombine.high %v599_v42, %v599_v42  ;;  %v2232_v48 = vpack.c.bf16 %v599_v42, %v599_v42 }
  0xdf   : > { %v1923_v39 = vpop.f32.mrf.mxu1  ;;  %1925 = vmatpush3.bf16.xpose.msra.mxu0 %v623_v38 }
  0xe0   : > { %v669_v40 = vsel %vm618_vm2, %v2222_v37, 0  ;;  %1936 = vmatprep.subr.bf16.mxu0 %v2100_v2  ;;  %v474_v43 = vpop.f32.mrf.mxu0  ;;  %v2235_v53 = vpack.c.bf16 %v601_v44, %v601_v44  ;;  %v715_v59 = vsel %vm618_vm2, %v2232_v48, 0 }
  0xe1   : > { %1931 = vmatpush3.bf16.xpose.msra.mxu1 %v669_v40  ;;  %v481_v45 = vcombine.high %v474_v43, %v474_v43  ;;  %v488_v46 = vrot.slane %v474_v43, %v2189_v10 }
  0xe2   : > { %1942 = vmatprep.subr.bf16.mxu1 %v2100_v2  ;;  %v1914_v47 = vpop.f32.mrf.mxu0  ;;  %v761_v61 = vsel %vm618_vm2, %v2235_v53, 0 }
  0xe3   : > { %v495_v49 = vrot.slane %v481_v45, %v2189_v10  ;;  %v496_v50 = vcombine.high %v488_v46, %v488_v46  ;;  %v606_v51 = vmul.f32 0.25, %v488_v46 }
  0xe4   : > { %v477_v52 = vpop.f32.mrf.mxu0 }
  0xe5   : > { %v607_v54 = vmul.f32 0.25, %v496_v50  ;;  %v2237_v55 = vpack.c.bf16 %v606_v51, %v606_v51  ;;  %v497_v57 = vcombine.high %v495_v49, %v495_v49  ;;  %v608_v60 = vmul.f32 0.25, %v495_v49 }
  0xe6   : > { %v1915_v56 = vpop.f32.mrf.mxu0 }
  0xe7   : > { %v2239_v58 = vpack.c.bf16 %v607_v54, %v607_v54  ;;  %1927 = vmatmul.mubr.msk.bf16.vlgmr.msra.gmra.mxu0 %vm618_vm2, %v2237_v55  ;;  %v609_v62 = vmul.f32 0.25, %v497_v57  ;;  %v2255_v63 = vpack.c.bf16 %v608_v60, %v608_v60 }
  0xe8   : > { %1937 = vmatpush3.bf16.xpose.msra.mxu0 %v715_v59  ;;  %1938 = vmatprep.mubr.msk.bf16.mxu0 %vm2101_vm0, %v2100_v2 }
  0xe9   : > { %1933 = vmatmul.mubr.msk.bf16.vlgmr.msra.gmra.mxu1 %vm618_vm2, %v2239_v58  ;;  %1948 = vmatprep.subr.bf16.mxu0 %v2100_v2  ;;  %v2257_v0 = vpack.c.bf16 %v609_v62, %v609_v62 }
  0xea   : > { %1943 = vmatpush3.bf16.xpose.msra.mxu1 %v761_v61  ;;  %1944 = vmatprep.mubr.msk.bf16.mxu1 %vm2101_vm0, %v2100_v2 }
  0xeb   : > { %1954 = vmatprep.subr.bf16.mxu1 %v2100_v2 }
  0xef   : > { %1939 = vmatmul.mubr.msk.bf16.vlgmr.msra.gmra.mxu0 %vm618_vm2, %v2255_v63 }
  0xf0   : > { %1950 = vmatprep.mubr.msk.bf16.mxu0 %vm2101_vm0, %v2100_v2 }
  0xf1   : > { %1945 = vmatmul.mubr.msk.bf16.vlgmr.msra.gmra.mxu1 %vm618_vm2, %v2257_v0 }
  0xf2   : > { %1956 = vmatprep.mubr.msk.bf16.mxu1 %vm2101_vm0, %v2100_v2 }
 0x1a7   : > { %v659_v1 = vpop.f32.mrf.mxu0 }
 0x1a8   : > { %v804_v3 = vsel %vm803_vm3, %v659_v1, -inf }
 0x1a9   : > { %v705_v4 = vpop.f32.mrf.mxu1  ;;  %805 = vmax.xlane.f32.xlu0 %v804_v3  ;;  %v1928_v5 = vpop.f32.mrf.mxu0 }
 0x1aa   : > { %v807_v8 = vsel %vm803_vm3, %v705_v4, -inf }
 0x1ab   : > { %v662_v6 = vpop.f32.mrf.mxu0  ;;  %v1934_v7 = vpop.f32.mrf.mxu1 }
 0x1ad   : > { %v708_v9 = vpop.f32.mrf.mxu1  ;;  %808 = vmax.xlane.f32.xlu0 %v807_v8  ;;  %v1929_v11 = vpop.f32.mrf.mxu0 }
 0x1af   : > { %v1935_v12 = vpop.f32.mrf.mxu1  ;;  %v751_v13 = vpop.f32.mrf.mxu0 }
 0x1b0   : > { %v810_v14 = vsel %vm803_vm3, %v751_v13, -inf }
 0x1b1   : > { %v797_v15 = vpop.f32.mrf.mxu1  ;;  %811 = vmax.xlane.f32.xlu1 %v810_v14  ;;  %v1940_v16 = vpop.f32.mrf.mxu0 }
 0x1b2   : > { %v813_v19 = vsel %vm803_vm3, %v797_v15, -inf }
 0x1b3   : > { %v754_v17 = vpop.f32.mrf.mxu0  ;;  %v1946_v18 = vpop.f32.mrf.mxu1 }
 0x1b5   : > { %v800_v20 = vpop.f32.mrf.mxu1  ;;  %814 = vmax.xlane.f32.xlu1 %v813_v19  ;;  %v1941_v25 = vpop.f32.mrf.mxu0 }
 0x1b7   : > { %v1947_v26 = vpop.f32.mrf.mxu1 }
 0x1c6   : > { %904 = vrot.lane.b32.xlu1 %v2222_v37, %s2103_s27 }
 0x1ca   : > { %953 = vrot.lane.b32.xlu1 %v2232_v48, %s2103_s27 }
 0x1ce   : > { %1002 = vrot.lane.b32.xlu1 %v2235_v53, %s2103_s27 }
 0x232   : > { %v806_v27 = vpop.xlane.xlu0 %805 }
 0x233   : > { %v816_v28 = vsub.f32 %v659_v1, %v806_v27 }
 0x235   : > { %v820_v29 = vmul.f32 1.442695, %v816_v28 }
 0x236   : > { %v809_v30 = vpop.xlane.xlu0 %808 }
 0x237   : > { %2052 = vpow2.f32 %v820_v29  ;;  %v817_v31 = vsub.f32 %v705_v4, %v809_v30 }
 0x239   : > { %v822_v32 = vmul.f32 1.442695, %v817_v31 }
 0x23a   : > { %v812_v33 = vpop.xlane.xlu1 %811 }
 0x23b   : > { %2054 = vpow2.f32 %v822_v32  ;;  %v818_v43 = vsub.f32 %v751_v13, %v812_v33 }
 0x23d   : > { %v824_v44 = vmul.f32 1.442695, %v818_v43 }
 0x23e   : > { %v815_v34 = vpop.xlane.xlu1 %814 }
 0x23f   : > { %v819_v45 = vsub.f32 %v797_v15, %v815_v34  ;;  %2056 = vpow2.f32 %v824_v44 }
 0x241   : > { %v826_v46 = vmul.f32 1.442695, %v819_v45 }
 0x242   : > { %v905_v36 = vpop.permute.xlu1 %904 }
 0x243   : > { %v910_v38 = vsel %vm859_vm4, %v905_v36, 0  ;;  %2058 = vpow2.f32 %v826_v46 }
 0x244   : > { %v2053_v39 = vpop.eup %2052  ;;  %1955 = vmatpush3.bf16.msra.mxu1 %v910_v38 }
 0x245   : > { %v828_v40 = vsel %vm803_vm3, %v2053_v39, 0.0  ;;  %1966 = vmatprep.subr.bf16.mxu1 %v2100_v2 }
 0x246   : > { %829 = vadd.xlane.f32.xlu0 %v828_v40  ;;  %v954_v52 = vpop.permute.xlu1 %953 }
 0x248   : > { %v2055_v41 = vpop.eup %2054 }
 0x249   : > { %v831_v42 = vsel %vm803_vm3, %v2055_v41, 0.0 }
 0x24a   : > { %832 = vadd.xlane.f32.xlu1 %v831_v42  ;;  %v1003_v54 = vpop.permute.xlu1 %1002 }
 0x24b   : > { %v1008_v3 = vsel %vm859_vm4, %v1003_v54, 0 }
 0x24c   : > { %v2057_v47 = vpop.eup %2056 }
 0x24d   : > { %v834_v49 = vsel %vm803_vm3, %v2057_v47, 0.0 }
 0x250   : > { %v2059_v50 = vpop.eup %2058 }
 0x251   : > { %v837_v51 = vsel %vm803_vm3, %v2059_v50, 0.0 }
 0x25b   : > { %1129 = vrot.lane.b32.xlu1 %v2222_v37, %s2104_s28 }
 0x25c   : > { %853 = vrot.lane.b32.xlu0 %v2220_v35, %s2103_s27 }
 0x27b   : > { %835 = vadd.xlane.f32.xlu0 %v834_v49 }
 0x27f   : > { %838 = vadd.xlane.f32.xlu1 %v837_v51 }
 0x290   : > { %1127 = vrot.lane.b32.xlu1 %v2239_v58, %s2104_s28 }
 0x291   : > { %1078 = vrot.lane.b32.xlu0 %v2220_v35, %s2104_s28 }
 0x294   : > { %1231 = vrot.lane.b32.xlu1 %v2235_v53, %s2104_s28 }
 0x295   : > { %1076 = vrot.lane.b32.xlu0 %v2237_v55, %s2104_s28 }
 0x298   : > { %1229 = vrot.lane.b32.xlu1 %v2257_v0, %s2104_s28  ;;  %v959_v0 = vsel %vm859_vm4, %v954_v52, 0 }
 0x299   : > { %1180 = vrot.lane.b32.xlu0 %v2232_v48, %s2104_s28 }
 0x29d   : > { %1178 = vrot.lane.b32.xlu0 %v2255_v63, %s2104_s28 }
 0x2cf   : > { %v830_v56 = vpop.xlane.xlu0 %829 }
 0x2d0   : > { %2060 = vrcp.f32 %v830_v56 }
 0x2d3   : > { %v854_v57 = vpop.permute.xlu0 %853  ;;  %v833_v59 = vpop.xlane.xlu1 %832 }
 0x2d4   : > { %v861_v58 = vsel %vm859_vm4, %v854_v57, 0  ;;  %2062 = vrcp.f32 %v833_v59 }
 0x2d5   : > { %1949 = vmatpush3.bf16.msra.mxu0 %v861_v58 }
 0x2d6   : > { %1960 = vmatprep.subr.bf16.mxu0 %v2100_v2 }
 0x2d7   : > { %v1130_v4 = vpop.permute.xlu1 %1129 }
 0x2d8   : > { %v1135_v18 = vsel %vm618_vm2, %v1130_v4, 0 }
 0x2dd   : > { %v2061_v60 = vpop.eup %2060 }
 0x2de   : > { %v844_v55 = vmul.f32 %v2061_v60, %v2053_v39 }
 0x2e0   : > { %v848_v61 = vpack.c.bf16 %v844_v55, %v844_v55 }
 0x2e1   : > { %v2063_v62 = vpop.eup %2062 }
 0x2e2   : > { %1951 = vmatmul.mubr.msk.bf16.vlgmr.msra.gmra.mxu0 %vm855_vm5, %v848_v61  ;;  %v845_v63 = vmul.f32 %v2063_v62, %v2055_v41 }
 0x2e3   : > { %1961 = vmatpush3.bf16.msra.mxu0 %v959_v0  ;;  %1962 = vmatprep.mubr.msk.bf16.mxu0 %vm2101_vm0, %v2100_v2 }
 0x2e4   : > { %v849_v1 = vpack.c.bf16 %v845_v63, %v845_v63  ;;  %1972 = vmatprep.subr.bf16.mxu0 %v2100_v2 }
 0x2e6   : > { %1957 = vmatmul.mubr.msk.bf16.vlgmr.msra.gmra.mxu1 %vm855_vm5, %v849_v1 }
 0x2e7   : > { %1967 = vmatpush3.bf16.msra.mxu1 %v1008_v3  ;;  %1968 = vmatprep.mubr.msk.bf16.mxu1 %vm2101_vm0, %v2100_v2 }
 0x2e8   : > { %1978 = vmatprep.subr.bf16.mxu1 %v2100_v2 }
 0x304   : > { %v836_v5 = vpop.xlane.xlu0 %835 }
 0x305   : > { %2064 = vrcp.f32 %v836_v5 }
 0x308   : > { %v839_v6 = vpop.xlane.xlu1 %838  ;;  %v1079_v7 = vpop.permute.xlu0 %1078 }
 0x309   : > { %2066 = vrcp.f32 %v839_v6  ;;  %v1084_v14 = vsel %vm618_vm2, %v1079_v7, 0 }
 0x30c   : > { %v1077_v13 = vpop.permute.xlu0 %1076  ;;  %v1128_v17 = vpop.permute.xlu1 %1127 }
 0x310   : > { %v1181_v19 = vpop.permute.xlu0 %1180  ;;  %v1232_v25 = vpop.permute.xlu1 %1231 }
 0x311   : > { %v1186_v20 = vsel %vm618_vm2, %v1181_v19, 0  ;;  %v1237_v26 = vsel %vm618_vm2, %v1232_v25, 0 }
 0x312   : > { %v2065_v8 = vpop.eup %2064 }
 0x313   : > { %v846_v9 = vmul.f32 %v2065_v8, %v2057_v47 }
 0x314   : > { %v1179_v27 = vpop.permute.xlu0 %1178  ;;  %v1230_v28 = vpop.permute.xlu1 %1229 }
 0x315   : > { %v850_v11 = vpack.c.bf16 %v846_v9, %v846_v9 }
 0x316   : > { %v2067_v12 = vpop.eup %2066 }
 0x317   : > { %1963 = vmatmul.mubr.msk.bf16.vlgmr.msra.gmra.mxu0 %vm855_vm5, %v850_v11  ;;  %v847_v15 = vmul.f32 %v2067_v12, %v2059_v50 }
 0x318   : > { %1973 = vmatpush3.bf16.xpose.msra.mxu0 %v1084_v14  ;;  %1974 = vmatprep.mubr.msk.bf16.mxu0 %vm2101_vm0, %v2100_v2 }
 0x319   : > { %v851_v16 = vpack.c.bf16 %v847_v15, %v847_v15  ;;  %1984 = vmatprep.subr.bf16.mxu0 %v2100_v2 }
 0x31b   : > { %1969 = vmatmul.mubr.msk.bf16.vlgmr.msra.gmra.mxu1 %vm855_vm5, %v851_v16 }
 0x31c   : > { %1979 = vmatpush3.bf16.xpose.msra.mxu1 %v1135_v18  ;;  %1980 = vmatprep.mubr.msk.bf16.mxu1 %vm2101_vm0, %v2100_v2 }
 0x31d   : > { %1990 = vmatprep.subr.bf16.mxu1 %v2100_v2 }
 0x31f   : > { %1975 = vmatmul.mubr.msk.bf16.vlgmr.msra.gmra.mxu0 %vm618_vm2, %v1077_v13 }
 0x320   : > { %1985 = vmatpush3.bf16.xpose.msra.mxu0 %v1186_v20  ;;  %1986 = vmatprep.mubr.msk.bf16.mxu0 %vm2101_vm0, %v2100_v2 }
 0x321   : > { %1996 = vmatprep.subr.bf16.mxu0 %v2100_v2 }
 0x323   : > { %1981 = vmatmul.mubr.msk.bf16.vlgmr.msra.gmra.mxu1 %vm618_vm2, %v1128_v17 }
 0x324   : > { %1991 = vmatpush3.bf16.xpose.msra.mxu1 %v1237_v26  ;;  %1992 = vmatprep.mubr.msk.bf16.mxu1 %vm2101_vm0, %v2100_v2 }
 0x325   : > { %2002 = vmatprep.subr.bf16.mxu1 %v2100_v2 }
 0x327   : > { %1987 = vmatmul.mubr.msk.bf16.vlgmr.msra.gmra.mxu0 %vm618_vm2, %v1179_v27 }
 0x328   : > { %1998 = vmatprep.mubr.msk.bf16.mxu0 %vm2101_vm0, %v2100_v2 }
 0x32b   : > { %1993 = vmatmul.mubr.msk.bf16.vlgmr.msra.gmra.mxu1 %vm618_vm2, %v1230_v28 }
 0x32c   : > { %2004 = vmatprep.mubr.msk.bf16.mxu1 %vm2101_vm0, %v2100_v2 }
 0x3a2   : > { %v897_v29 = vpop.f32.mrf.mxu0 }
 0x3a4   : > { %v1952_v30 = vpop.f32.mrf.mxu0 }
 0x3a6   : > { %v900_v31 = vpop.f32.mrf.mxu0  ;;  %v946_v32 = vpop.f32.mrf.mxu1 }
 0x3a7   : > { %v1054_v33 = vcombine.low %v897_v29, %v946_v32 }
 0x3a8   : > { %v1953_v34 = vpop.f32.mrf.mxu0  ;;  %v1958_v36 = vpop.f32.mrf.mxu1 }
 0x3a9   : > { %v1062_v47 = vrot.slane %v1054_v33, %v2189_v10 }
 0x3aa   : > { %v949_v38 = vpop.f32.mrf.mxu1 }
 0x3ac   : > { %v1959_v39 = vpop.f32.mrf.mxu1 }
 0x3d7   : > { %v995_v40 = vpop.f32.mrf.mxu0 }
 0x3d9   : > { %v1964_v41 = vpop.f32.mrf.mxu0 }
 0x3db   : > { %v998_v42 = vpop.f32.mrf.mxu0  ;;  %v1044_v43 = vpop.f32.mrf.mxu1 }
 0x3dc   : > { %v1055_v44 = vcombine.low %v995_v40, %v1044_v43 }
 0x3dd   : > { %v1965_v45 = vpop.f32.mrf.mxu0  ;;  %v1970_v46 = vpop.f32.mrf.mxu1 }
 0x3de   : > { %v1069_v49 = vrot.slane %v1055_v44, %v2189_v10 }
 0x3df   : > { %v1047_v50 = vpop.f32.mrf.mxu1  ;;  %v1120_v51 = vpop.f32.mrf.mxu0 }
 0x3e0   : > { %v2329_v52 = vcombine.low %v1062_v47, %v1069_v49  ;;  %v1279_v54 = vsel %vm803_vm3, %v1120_v51, -inf }
 0x3e1   : > { %v1971_v56 = vpop.f32.mrf.mxu1  ;;  %1280 = vmax.xlane.f32.xlu0 %v1279_v54  ;;  %v1976_v57 = vpop.f32.mrf.mxu0 }
 0x3e3   : > { %v1123_v59 = vpop.f32.mrf.mxu0  ;;  %v1171_v58 = vpop.f32.mrf.mxu1 }
 0x3e4   : > { %v1282_v60 = vsel %vm803_vm3, %v1171_v58, -inf }
 0x3e5   : > { %1283 = vmax.xlane.f32.xlu1 %v1282_v60  ;;  %v1977_v55 = vpop.f32.mrf.mxu0  ;;  %v1982_v61 = vpop.f32.mrf.mxu1 }
 0x3e6   : > { %v2050_v55 = vld [vmem:[%s2411_s4] sm:$0xff]  }
 0x3e7   : > { %v1174_v62 = vpop.f32.mrf.mxu1  ;;  %v1222_v0 = vpop.f32.mrf.mxu0 }
 0x3e8   : > { %v1285_v63 = vsel %vm803_vm3, %v1222_v0, -inf  ;;  %v1072_v62 = vpack.c.bf16 %v2329_v52, %v2329_v52 }
 0x3e9   : > { %v1983_v1 = vpop.f32.mrf.mxu1  ;;  %1286 = vmax.xlane.f32.xlu0 %v1285_v63  ;;  %v1988_v3 = vpop.f32.mrf.mxu0 }
 0x3eb   : > { %v1225_v4 = vpop.f32.mrf.mxu0  ;;  %v1273_v5 = vpop.f32.mrf.mxu1 }
 0x3ec   : > { %v1288_v6 = vsel %vm803_vm3, %v1273_v5, -inf }
 0x3ed   : > { %v1994_v7 = vpop.f32.mrf.mxu1  ;;  %1289 = vmax.xlane.f32.xlu0 %v1288_v6  ;;  %v1989_v8 = vpop.f32.mrf.mxu0 }
 0x3ef   : > { %v1276_v9 = vpop.f32.mrf.mxu1 }
 0x3f1   : > { %v1995_v11 = vpop.f32.mrf.mxu1 }
 0x46a   : > { %v1281_v12 = vpop.xlane.xlu0 %1280 }
 0x46b   : > { %v1291_v13 = vsub.f32 %v1120_v51, %v1281_v12 }
 0x46d   : > { %v1295_v14 = vmul.f32 1.442695, %v1291_v13 }
 0x46e   : > { %v1284_v15 = vpop.xlane.xlu1 %1283 }
 0x46f   : > { %2068 = vpow2.f32 %v1295_v14  ;;  %v1292_v16 = vsub.f32 %v1171_v58, %v1284_v15 }
 0x471   : > { %v1297_v17 = vmul.f32 1.442695, %v1292_v16 }
 0x472   : > { %v1287_v18 = vpop.xlane.xlu0 %1286 }
 0x473   : > { %2070 = vpow2.f32 %v1297_v17  ;;  %v1293_v19 = vsub.f32 %v1222_v0, %v1287_v18  ;;  %v2051_v0 = vld [vmem:[%s2411_s4 + $0x8] sm:$0xff]  }
 0x475   : > { %v1299_v20 = vmul.f32 1.442695, %v1293_v19 }
 0x476   : > { %v1290_v31 = vpop.xlane.xlu0 %1289 }
 0x477   : > { %2072 = vpow2.f32 %v1299_v20  ;;  %v1294_v32 = vsub.f32 %v1273_v5, %v1290_v31 }
 0x479   : > { %v1301_v33 = vmul.f32 1.442695, %v1294_v32 }
 0x47b   : > { %2074 = vpow2.f32 %v1301_v33 }
 0x47c   : > { %v2069_v25 = vpop.eup %2068 }
 0x47d   : > { %v1303_v26 = vsel %vm803_vm3, %v2069_v25, 0.0 }
 0x47e   : > { %1304 = vadd.xlane.f32.xlu0 %v1303_v26 }
 0x480   : > { %v2071_v27 = vpop.eup %2070 }
 0x481   : > { %v1306_v28 = vsel %vm803_vm3, %v2071_v27, 0.0 }
 0x482   : > { %1307 = vadd.xlane.f32.xlu1 %v1306_v28 }
 0x484   : > { %v2073_v29 = vpop.eup %2072 }
 0x485   : > { %v1309_v30 = vsel %vm803_vm3, %v2073_v29, 0.0 }
 0x486   : > { %1310 = vadd.xlane.f32.xlu0 %v1309_v30 }
 0x488   : > { %v2075_v34 = vpop.eup %2074 }
 0x489   : > { %v1312_v36 = vsel %vm803_vm3, %v2075_v34, 0.0 }
 0x493   : > { %1375 = vrot.lane.b32.xlu1 %v2222_v37, %s2105_s29 }
 0x497   : > { %1423 = vrot.lane.b32.xlu1 %v2232_v48, %s2105_s29 }
 0x49c   : > { %1327 = vrot.lane.b32.xlu0 %v2220_v35, %s2105_s29 }
 0x4bb   : > { %1313 = vadd.xlane.f32.xlu1 %v1312_v36 }
 0x4cc   : > { %1471 = vrot.lane.b32.xlu1 %v2235_v53, %s2105_s29 }
 0x507   : > { %v1305_v38 = vpop.xlane.xlu0 %1304 }
 0x508   : > { %2076 = vrcp.f32 %v1305_v38 }
 0x50b   : > { %v1308_v39 = vpop.xlane.xlu1 %1307 }
 0x50c   : > { %2078 = vrcp.f32 %v1308_v39 }
 0x50f   : > { %v1376_v40 = vpop.permute.xlu1 %1375  ;;  %v1311_v37 = vpop.xlane.xlu0 %1310 }
 0x510   : > { %v1381_v48 = vsel %vm859_vm4, %v1376_v40, 0  ;;  %2080 = vrcp.f32 %v1311_v37 }
 0x511   : > { %2003 = vmatpush3.bf16.msra.mxu1 %v1381_v48 }
 0x512   : > { %2014 = vmatprep.subr.bf16.mxu1 %v2100_v2 }
 0x513   : > { %v1328_v35 = vpop.permute.xlu0 %1327  ;;  %v1424_v43 = vpop.permute.xlu1 %1423 }
 0x514   : > { %v1333_v41 = vsel %vm859_vm4, %v1328_v35, 0  ;;  %v1429_v46 = vsel %vm859_vm4, %v1424_v43, 0 }
 0x515   : > { %v2077_v42 = vpop.eup %2076  ;;  %1997 = vmatpush3.bf16.msra.mxu0 %v1333_v41 }
 0x516   : > { %2008 = vmatprep.subr.bf16.mxu0 %v2100_v2  ;;  %v1319_v53 = vmul.f32 %v2077_v42, %v2069_v25 }
 0x518   : > { %v1323_v44 = vpack.c.bf16 %v1319_v53, %v1319_v53 }
 0x519   : > { %v2079_v45 = vpop.eup %2078 }
 0x51a   : > { %1999 = vmatmul.mubr.msk.bf16.vlgmr.msra.gmra.mxu0 %vm855_vm5, %v1323_v44  ;;  %v1320_v47 = vmul.f32 %v2079_v45, %v2071_v27 }
 0x51b   : > { %2009 = vmatpush3.bf16.msra.mxu0 %v1429_v46  ;;  %2010 = vmatprep.mubr.msk.bf16.mxu0 %vm2101_vm0, %v2100_v2 }
 0x51c   : > { %v1324_v49 = vpack.c.bf16 %v1320_v47, %v1320_v47  ;;  %2020 = vmatprep.subr.bf16.mxu0 %v2100_v2 }
 0x51d   : > { %v2081_v50 = vpop.eup %2080 }
 0x51e   : > { %2005 = vmatmul.mubr.msk.bf16.vlgmr.msra.gmra.mxu1 %vm855_vm5, %v1324_v49  ;;  %v1321_v51 = vmul.f32 %v2081_v50, %v2073_v29 }
 0x51f   : > { %2016 = vmatprep.mubr.msk.bf16.mxu1 %vm2101_vm0, %v2100_v2 }
 0x520   : > { %v1325_v54 = vpack.c.bf16 %v1321_v51, %v1321_v51 }
 0x522   : > { %2011 = vmatmul.mubr.msk.bf16.vlgmr.msra.gmra.mxu0 %vm855_vm5, %v1325_v54 }
 0x523   : > { %2022 = vmatprep.mubr.msk.bf16.mxu0 %vm2101_vm0, %v2100_v2  ;;  %2021 = vmatpush3.bf16.msra.mxu0 %v2051_v0 }
 0x544   : > { %v1314_v56 = vpop.xlane.xlu1 %1313 }
 0x545   : > { %2082 = vrcp.f32 %v1314_v56 }
 0x548   : > { %v1472_v57 = vpop.permute.xlu1 %1471 }
 0x549   : > { %v1477_v59 = vsel %vm859_vm4, %v1472_v57, 0 }
 0x54a   : > { %2015 = vmatpush3.bf16.msra.mxu1 %v1477_v59 }
 0x54b   : > { %2026 = vmatprep.subr.bf16.mxu1 %v2100_v2 }
 0x552   : > { %v2083_v58 = vpop.eup %2082 }
 0x553   : > { %v1322_v60 = vmul.f32 %v2083_v58, %v2075_v34 }
 0x555   : > { %v1326_v61 = vpack.c.bf16 %v1322_v60, %v1322_v60 }
 0x557   : > { %2017 = vmatmul.mubr.msk.bf16.vlgmr.msra.gmra.mxu1 %vm855_vm5, %v1326_v61 }
 0x558   : > { %2027 = vmatpush3.bf16.msra.mxu1 %v2050_v55  ;;  %2028 = vmatprep.mubr.msk.bf16.mxu1 %vm2101_vm0, %v2100_v2 }
 0x55f   : > { %2029 = vmatmul.mubr.msk.bf16.vlgmr.msra.gmra.mxu1 %vm618_vm2, %v1072_v62 }
 0x5da   : > { %v1369_v63 = vpop.f32.mrf.mxu0 }
 0x5dc   : > { %v2000_v1 = vpop.f32.mrf.mxu0 }
 0x5de   : > { %v1372_v3 = vpop.f32.mrf.mxu0  ;;  %v1417_v4 = vpop.f32.mrf.mxu1 }
 0x5df   : > { %v1523_v52 = vcombine.low %v1369_v63, %v1417_v4 }
 0x5e0   : > { %v2001_v5 = vpop.f32.mrf.mxu0  ;;  %v2006_v6 = vpop.f32.mrf.mxu1 }
 0x5e1   : > { %v1531_v16 = vrot.slane %v1523_v52, %v2189_v10 }
 0x5e2   : > { %v1420_v7 = vpop.f32.mrf.mxu1  ;;  %v1465_v8 = vpop.f32.mrf.mxu0 }
 0x5e4   : > { %v2007_v9 = vpop.f32.mrf.mxu1  ;;  %v2012_v2 = vpop.f32.mrf.mxu0 }
 0x5e6   : > { %v1468_v11 = vpop.f32.mrf.mxu0 }
 0x5e8   : > { %v2013_v12 = vpop.f32.mrf.mxu0 }
 0x617   : > { %v1513_v13 = vpop.f32.mrf.mxu1 }
 0x618   : > { %v1524_v14 = vcombine.low %v1465_v8, %v1513_v13  ;;  %v1862_v13 = vld [vmem:[%s2412_s5] ss:$0 sm:$0xff] }
 0x619   : > { %v2018_v15 = vpop.f32.mrf.mxu1 }
 0x61a   : > { %v1538_v17 = vrot.slane %v1524_v14, %v2189_v10 }
 0x61b   : > { %v1516_v18 = vpop.f32.mrf.mxu1 }
 0x61c   : > { %v1539_v19 = vcombine.low %v1531_v16, %v1538_v17  ;;  %v1863_v16 = vld [vmem:[%s2413_s6] ss:$0 sm:$0xff] }
 0x61d   : > { %v2019_v20 = vpop.f32.mrf.mxu1 }
 0x61e   : > { %v1541_v25 = vpack.c.bf16 %v1539_v19, %v1539_v19 }
 0x61f   : > { %v1636_v26 = vpop.f32.mrf.mxu1 }
 0x620   : > { %2023 = vmatmul.mubr.msk.bf16.vlgmr.msra.gmra.mxu0 %vm618_vm2, %v1541_v25 }
 0x621   : > { %v2030_v27 = vpop.f32.mrf.mxu1 }
 0x623   : > { %v1639_v28 = vpop.f32.mrf.mxu1 }
 0x625   : > { %v2031_v29 = vpop.f32.mrf.mxu1 }
 0x6e0   : > { %v1587_v30 = vpop.f32.mrf.mxu0 }
 0x6e1   : > { %v1637_v31 = vadd.f32 %v1636_v26, %v1587_v30 }
 0x6e2   : > { %v2024_v32 = vpop.f32.mrf.mxu0 }
 0x6e3   : > { %v1643_v33 = vcombine.high %v1637_v31, %v1637_v31  ;;  %v1650_v34 = vrot.slane %v1637_v31, %v2189_v10 }
 0x6e4   : > { %v1590_v36 = vpop.f32.mrf.mxu0 }
 0x6e5   : > { %v1664_v38 = vadd.f32 %v1650_v34, %v2202_v21  ;;  %v1658_v39 = vcombine.high %v1650_v34, %v1650_v34  ;;  %v1657_v40 = vrot.slane %v1643_v33, %v2189_v10 }
 0x6e6   : > { %v2025_v37 = vpop.f32.mrf.mxu0 }
 0x6e7   : > { %v1671_v48 = vsel %vm1670_vm6, %v1664_v38, 0.0  ;;  %v1665_v35 = vadd.f32 %v1658_v39, %v2204_v22  ;;  %v1666_v41 = vadd.f32 %v1657_v40, %v2206_v23  ;;  %v1659_v42 = vcombine.high %v1657_v40, %v1657_v40 }
 0x6e8   : > { %1672 = vadd.xlane.f32.xlu0 %v1671_v48 }
 0x6e9   : > { %v1674_v53 = vsel %vm1670_vm6, %v1665_v35, 0.0  ;;  %v1677_v43 = vsel %vm1670_vm6, %v1666_v41, 0.0  ;;  %v1667_v44 = vadd.f32 %v1659_v42, %v2208_v24 }
 0x6ea   : > { %1675 = vadd.xlane.f32.xlu1 %v1674_v53 }
 0x6eb   : > { %v1680_v21 = vsel %vm1670_vm6, %v1667_v44, 0.0 }
 0x6ec   : > { %1678 = vadd.xlane.f32.xlu0 %v1677_v43 }
 0x6f0   : > { %1681 = vadd.xlane.f32.xlu0 %v1680_v21 }
 0x771   : > { %v1673_v10 = vpop.xlane.xlu0 %1672 }
 0x772   : > { %v1684_v45 = vmul.f32 0.03125, %v1673_v10 }
 0x773   : > { %v1676_v46 = vpop.xlane.xlu1 %1675 }
 0x774   : > { %v1688_v47 = vsub.f32 %v1664_v38, %v1684_v45  ;;  %v1685_v22 = vmul.f32 0.03125, %v1676_v46 }
 0x775   : > { %v1679_v49 = vpop.xlane.xlu0 %1678 }
 0x776   : > { %v1689_v23 = vsub.f32 %v1665_v35, %v1685_v22  ;;  %v1686_v50 = vmul.f32 0.03125, %v1679_v49  ;;  %v1692_v51 = vmul.f32 %v1688_v47, %v1688_v47 }
 0x778   : > { %v1690_v54 = vsub.f32 %v1666_v41, %v1686_v50  ;;  %v1696_v56 = vsel %vm1670_vm6, %v1692_v51, 0.0  ;;  %v1693_v57 = vmul.f32 %v1689_v23, %v1689_v23 }
 0x779   : > { %1697 = vadd.xlane.f32.xlu0 %v1696_v56  ;;  %v1682_v59 = vpop.xlane.xlu0 %1681 }
 0x77a   : > { %v1687_v24 = vmul.f32 0.03125, %v1682_v59  ;;  %v1699_v58 = vsel %vm1670_vm6, %v1693_v57, 0.0  ;;  %v1694_v60 = vmul.f32 %v1690_v54, %v1690_v54 }
 0x77b   : > { %1700 = vadd.xlane.f32.xlu1 %v1699_v58 }
 0x77c   : > { %v1691_v55 = vsub.f32 %v1667_v44, %v1687_v24  ;;  %v1702_v61 = vsel %vm1670_vm6, %v1694_v60, 0.0 }
 0x77d   : > { %1703 = vadd.xlane.f32.xlu0 %v1702_v61 }
 0x77e   : > { %v1695_v62 = vmul.f32 %v1691_v55, %v1691_v55 }
 0x780   : > { %v1705_v0 = vsel %vm1670_vm6, %v1695_v62, 0.0 }
 0x781   : > { %1706 = vadd.xlane.f32.xlu1 %v1705_v0 }
 0x802   : > { %v1698_v63 = vpop.xlane.xlu0 %1697 }
 0x803   : > { %v1708_v1 = vmul.f32 0.03125, %v1698_v63 }
 0x804   : > { %v1701_v3 = vpop.xlane.xlu1 %1700 }
 0x805   : > { %v1712_v4 = vadd.f32 1e-05, %v1708_v1  ;;  %v1709_v5 = vmul.f32 0.03125, %v1701_v3 }
 0x806   : > { %v1704_v6 = vpop.xlane.xlu0 %1703 }
 0x807   : > { %2084 = vrsqrt.f32 %v1712_v4  ;;  %v1713_v7 = vadd.f32 1e-05, %v1709_v5  ;;  %v1710_v8 = vmul.f32 0.03125, %v1704_v6 }
 0x809   : > { %2086 = vrsqrt.f32 %v1713_v7  ;;  %v1714_v9 = vadd.f32 1e-05, %v1710_v8 }
 0x80a   : > { %v1707_v2 = vpop.xlane.xlu1 %1706 }
 0x80b   : > { %2088 = vrsqrt.f32 %v1714_v9  ;;  %v1711_v11 = vmul.f32 0.03125, %v1707_v2 }
 0x80d   : > { %v1715_v12 = vadd.f32 1e-05, %v1711_v11 }
 0x80f   : > { %2090 = vrsqrt.f32 %v1715_v12 }
 0x814   : > { %v2085_v52 = vpop.eup %2084 }
 0x815   : > { %v1720_v14 = vmul.f32 %v2085_v52, %v1688_v47 }
 0x816   : > { %v2087_v15 = vpop.eup %2086 }
 0x817   : > { %v1730_v17 = vmul.f32 %v1862_v13, %v1720_v14  ;;  %v1721_v18 = vmul.f32 %v2087_v15, %v1689_v23 }
 0x818   : > { %v2089_v19 = vpop.eup %2088 }
 0x819   : > { %v1740_v20 = vadd.f32 %v1863_v16, %v1730_v17  ;;  %v1731_v25 = vmul.f32 %v1862_v13, %v1721_v18  ;;  %v1722_v26 = vmul.f32 %v2089_v19, %v1690_v54 }
 0x81b   : > { %1744 = vst.msk [vmem:[%s386_s19] sm:$0x3] %vm1670_vm6, %v1740_v20  ;;  %v1741_v27 = vadd.f32 %v1863_v16, %v1731_v25  ;;  %v1732_v28 = vmul.f32 %v1862_v13, %v1722_v26 }
 0x81c   : > { %v2091_v29 = vpop.eup %2090 }
 0x81d   : > { %1745 = vst.msk [vmem:[%s386_s19 + $0x2] sm:$0x3] %vm1670_vm6, %v1741_v27  ;;  %v1742_v30 = vadd.f32 %v1863_v16, %v1732_v28  ;;  %v1723_v31 = vmul.f32 %v2091_v29, %v1691_v55 }
 0x81f   : > { %1746 = vst.msk [vmem:[%s386_s19 + $0x4] sm:$0x3] %vm1670_vm6, %v1742_v30  ;;  %v1733_v32 = vmul.f32 %v1862_v13, %v1723_v31 }
 0x821   : > { %v1743_v33 = vadd.f32 %v1863_v16, %v1733_v32 }
 0x823   : > { %1747 = vst.msk [vmem:[%s386_s19 + $0x6] sm:$0x3] %vm1670_vm6, %v1743_v33 }
 0x824 PF: > { %s17_s24 = sadd.s32 1, %s2098_s24  }
 0x825   : > { %p14_p7 = scmp.ge.s32.totalorder %s17_s24, 4  }
 0x827   :  { %16 = sbr.rel (!%p14_p7) target bundleno = 1 (0x1), region = 81 }

// kernel: _lambda_.17
= control target key start
LH: loop header
LB: loop body
LE: loop exit
PB: predicated region body
PF: predicated region fallthrough
CT: control target
= control target key end

     0   :  { %s2077_s24 = smov 0   ;;  %s2316_s0 = inlined_call_operand.vmem [shape: f32[8,4,32], index: 0, kind: input, shape index: {}]   ;;  %s2317_s1 = inlined_call_operand.vmem [shape: f32[8,2,32], index: 1, kind: input, shape index: {}]   ;;  %s2318_s2 = inlined_call_operand.vmem [shape: bf16[32,32], index: 2, kind: input, shape index: {}]   ;;  %s2319_s3 = inlined_call_operand.vmem [shape: bf16[32,64], index: 3, kind: input, shape index: {}]   ;;  %s2320_s4 = inlined_call_operand.vmem [shape: bf16[32,32], index: 4, kind: input, shape index: {}]   ;;  %s2321_s5 = inlined_call_operand.vmem [shape: f32[1,32], index: 5, kind: input, shape index: {}]   ;;  %s2322_s6 = inlined_call_operand.vmem [shape: f32[1,32], index: 6, kind: input, shape index: {}]   ;;  %s2323_s7 = inlined_call_operand.vmem [shape: f32[8,4,32], index: 7, kind: output, shape index: {}]  }
   0x1 LB: > { %s2083_s25 = sadd.s32 4294967295, %s2029_s24   ;;  %p1755_p0 = scmp.ge.s32.totalorder %s2029_s24, 1  ;;  %s2029_s24 = sphi %s2077_s24, %s17_s24  }
   0x2   : > { %p297_p1 = scmp.lt.s32.totalorder %s2029_s24, 3 }
   0x4   : > { %p298_p2 = pnand %p1755_p0, %p297_p1 }
   0x5   : > { %s1761_s9 = sshll.u32 (!%p298_p2), %s2083_s25, 2  ;;  %s347_s12 = ssub.s32 (!%p298_p2), 0, %s2083_s25 }
   0x6   : > { %301 = sbr.rel (%p298_p2) target bundleno = 2077 (0x81d), region = 48  ;;  %p377_p3 = scmp.lt.s32.totalorder (!%p298_p2), %s1761_s9, 7 }
   0x7   : > { %s1756_s14 = smin.u32 (!%p298_p2), %s2083_s25, %s347_s12  ;;  %p346_p4 = scmp.lt.s32.totalorder (!%p298_p2), %s2083_s25, 0 }
   0x8   : > { %s349_s18 = sand.u32 (!%p298_p2), 1, %s1756_s14   ;;  %s2034_s27 = smov (!%p298_p2), 96  }
   0x9   : > { %s350_s19 = ssub.s32 (!%p298_p2), 0, %s349_s18  ;;  %s2035_s28 = smov (!%p298_p2), 112  }
   0xa   : > { %s2036_s29 = smov (!%p298_p2), 80  }
   0xb   : > { %v1975_v0 = vld [vmem:[%s2319_s3 + $0x8] sm:$0xff]   ;;  %v482_v1 = vlaneseq  ;;  %v2031_v2 = vmov 0.0   ;;  %v1976_v3 = vld [vmem:[%s2319_s3] sm:$0xff]   ;;  %vm2032_vm0 = vmmov 0   ;;  %v2033_v6 = vmov 1983009808   ;;  %s2327_s19 = smov (!%p346_p4, %s350_s19), %s349_s18 }
   0xc   : > { %1845 = vmatprep.subr.bf16.mxu1 %v2031_v2  ;;  %1837 = vmatprep.subr.bf16.mxu0 %v2031_v2  ;;  %v1977_v4 = vld [vmem:[%s2318_s2 + $0x8] sm:$0xff]   ;;  %v480_v7 = vunpack.c.l.s4 %v2033_v6  ;;  %v1978_v8 = vld [vmem:[%s2318_s2] sm:$0xff]   ;;  %s2325_s9 = smov (!%p377_p3, %s1761_s9), 7  ;;  %p1758_p5 = scmp.lt.s32.totalorder %s2327_s19, 0  ;;  %vm422_vm1 = vcmask 261120   ;;  %vm589_vm2 = vcmask 130048  }
   0xd   : > { %1846 = vmatpush3.bf16.msra.mxu1 %v1975_v0  ;;  %1849 = vmatprep.mubr.msk.bf16.mxu1 %vm2032_vm0, %v2031_v2  ;;  %v483_v5 = vshrl.u32 %v482_v1, 7  ;;  %s1762_s13 = sshll.u32 %s2325_s9, 1  ;;  %s356_s20 = sadd.s32 2, %s2327_s19  ;;  %vm774_vm3 = vcmask 11264   ;;  %vm830_vm4 = vcmask 1040384   ;;  %vm826_vm5 = vcmask 15360  }
   0xe   : > { %1847 = vmatprep.subr.bf16.mxu1 %v2031_v2  ;;  %1841 = vmatprep.mubr.msk.bf16.mxu0 %vm2032_vm0, %v2031_v2  ;;  %v481_v9 = vunpack.c.0.s8 %v480_v7  ;;  %s380_s17 = scalar_lea.vmem %s2317_s1, %s1762_s13  ;;  %s2329_s20 = smov (!%p1758_p5, %s356_s20), %s2327_s19  ;;  %vm1599_vm6 = vcmask 257024  }
   0xf   : > { %1838 = vmatpush3.bf16.msra.mxu0 %v1977_v4  ;;  %v393_v11 = vld [vmem:[%s380_s17] sm:$0x3]  ;;  %v394_v12 = vld [vmem:[%s380_s17 + $0x2] sm:$0x3]  ;;  %v395_v13 = vld [vmem:[%s380_s17 + $0x4] sm:$0x3] }
  0x10   : > { %1839 = vmatprep.subr.bf16.mxu0 %v2031_v2  ;;  %v484_v10 = vsub.s32 %v481_v9, %v483_v5  ;;  %v396_v14 = vld [vmem:[%s380_s17 + $0x6] sm:$0x3]  ;;  %v477_v15 = vcombine.low %v393_v11, %v394_v12  ;;  %s1759_s21 = sshll.u32 %s2329_s20, 2  ;;  %s1764_s14 = sshll.u32 %s2325_s9, 2 }
  0x11   : > { %1848 = vmatpush3.bf16.msra.mxu1 %v1976_v3  ;;  %v478_v16 = vcombine.low %v395_v13, %v396_v14  ;;  %p359_p6 = scmp.lt.s32.totalorder %s1759_s21, 7  ;;  %s386_s19 = scalar_lea.vmem %s2323_s7, %s1764_s14 }
  0x12   : > { %1859 = vmatprep.subr.bf16.mxu1 %v2031_v2  ;;  %v485_v17 = vrot.slane %v477_v15, %v484_v10 }
  0x13   : > { %1840 = vmatpush3.bf16.msra.mxu0 %v1978_v8  ;;  %v492_v18 = vrot.slane %v478_v16, %v484_v10  ;;  %s2331_s21 = smov (!%p359_p6, %s1759_s21), 7 }
  0x14   : > { %1853 = vmatprep.subr.bf16.mxu0 %v2031_v2  ;;  %s1760_s22 = sshll.u32 %s2331_s21, 2 }
  0x15   : > { %v493_v19 = vcombine.low %v485_v17, %v492_v18  ;;  %s362_s26 = scalar_lea.vmem %s2316_s0, %s1760_s22 }
  0x16   : > { %v2125_v21 = vld [vmem:[%s362_s26] sm:$0xf]  ;;  %v2127_v22 = vld [vmem:[%s362_s26 + $0x4] sm:$0xf]  ;;  %v2129_v23 = vld [vmem:[%s362_s26 + $0x8] sm:$0xf] }
  0x17   : > { %v495_v20 = vpack.c.bf16 %v493_v19, %v493_v19  ;;  %v2131_v24 = vld [vmem:[%s362_s26 + $0xc] sm:$0xf]  ;;  %v401_v25 = vcombine.low %v2125_v21, %v2127_v22 }
  0x18   : > { %v402_v26 = vcombine.low %v2129_v23, %v2131_v24 }
  0x19   : > { %1850 = vmatmul.mubr.msk.bf16.vlgmr.msra.gmra.mxu1 %vm422_vm1, %v495_v20 }
  0x1a   : > { %1861 = vmatprep.mubr.msk.bf16.mxu1 %vm2032_vm0, %v2031_v2  ;;  %v405_v27 = vpack.c.bf16 %v402_v26, %v401_v25 }
  0x1c   : > { %1842 = vmatmul.mubr.msk.bf16.vlgmr.msra.gmra.mxu0 %vm422_vm1, %v405_v27 }
  0x1d   : > { %1855 = vmatprep.mubr.msk.bf16.mxu0 %vm2032_vm0, %v2031_v2 }
  0xd9   : > { %v549_v28 = vpop.f32.mrf.mxu1 }
  0xda   : > { %v563_v29 = vrot.slane %v549_v28, %v484_v10  ;;  %v556_v31 = vcombine.high %v549_v28, %v549_v28 }
  0xdb   : > { %v1851_v30 = vpop.f32.mrf.mxu1 }
  0xdc   : > { %v571_v32 = vcombine.high %v563_v29, %v563_v29  ;;  %v2140_v33 = vpack.c.bf16 %v563_v29, %v563_v29  ;;  %v570_v38 = vrot.slane %v556_v31, %v484_v10  ;;  %v460_v41 = vpop.f32.mrf.mxu0 }
  0xdd   : > { %v552_v34 = vpop.f32.mrf.mxu1  ;;  %v469_v43 = vcombine.high %v460_v41, %v460_v41  ;;  %v577_v44 = vmul.f32 0.25, %v460_v41 }
  0xde   : > { %v2142_v35 = vpack.c.bf16 %v571_v32, %v571_v32  ;;  %v594_v36 = vsel %vm589_vm2, %v2140_v33, 0  ;;  %v572_v40 = vcombine.high %v570_v38, %v570_v38  ;;  %v2150_v42 = vpack.c.bf16 %v570_v38, %v570_v38  ;;  %v1843_v45 = vpop.f32.mrf.mxu0 }
  0xdf   : > { %v1852_v37 = vpop.f32.mrf.mxu1  ;;  %1854 = vmatpush3.bf16.xpose.msra.mxu0 %v594_v36  ;;  %v578_v47 = vmul.f32 0.25, %v469_v43  ;;  %v2154_v48 = vpack.c.bf16 %v577_v44, %v577_v44 }
  0xe0   : > { %v640_v39 = vsel %vm589_vm2, %v2142_v35, 0  ;;  %1865 = vmatprep.subr.bf16.mxu0 %v2031_v2  ;;  %v2152_v46 = vpack.c.bf16 %v572_v40, %v572_v40  ;;  %v463_v49 = vpop.f32.mrf.mxu0  ;;  %v686_v52 = vsel %vm589_vm2, %v2150_v42, 0 }
  0xe1   : > { %1860 = vmatpush3.bf16.xpose.msra.mxu1 %v640_v39  ;;  %v2156_v50 = vpack.c.bf16 %v578_v47, %v578_v47  ;;  %v470_v51 = vcombine.high %v463_v49, %v463_v49  ;;  %v579_v54 = vmul.f32 0.25, %v463_v49 }
  0xe2   : > { %1871 = vmatprep.subr.bf16.mxu1 %v2031_v2  ;;  %v1844_v53 = vpop.f32.mrf.mxu0  ;;  %v732_v55 = vsel %vm589_vm2, %v2152_v46, 0 }
  0xe3   : > { %v580_v56 = vmul.f32 0.25, %v470_v51  ;;  %v2172_v57 = vpack.c.bf16 %v579_v54, %v579_v54 }
  0xe5   : > { %v2174_v58 = vpack.c.bf16 %v580_v56, %v580_v56 }
  0xe6   : > { %1856 = vmatmul.mubr.msk.bf16.vlgmr.msra.gmra.mxu0 %vm589_vm2, %v2154_v48 }
  0xe7   : > { %1866 = vmatpush3.bf16.xpose.msra.mxu0 %v686_v52  ;;  %1867 = vmatprep.mubr.msk.bf16.mxu0 %vm2032_vm0, %v2031_v2 }
  0xe8   : > { %1862 = vmatmul.mubr.msk.bf16.vlgmr.msra.gmra.mxu1 %vm589_vm2, %v2156_v50  ;;  %1877 = vmatprep.subr.bf16.mxu0 %v2031_v2 }
  0xe9   : > { %1872 = vmatpush3.bf16.xpose.msra.mxu1 %v732_v55  ;;  %1873 = vmatprep.mubr.msk.bf16.mxu1 %vm2032_vm0, %v2031_v2 }
  0xea   : > { %1883 = vmatprep.subr.bf16.mxu1 %v2031_v2 }
  0xee   : > { %1868 = vmatmul.mubr.msk.bf16.vlgmr.msra.gmra.mxu0 %vm589_vm2, %v2172_v57 }
  0xef   : > { %1879 = vmatprep.mubr.msk.bf16.mxu0 %vm2032_vm0, %v2031_v2 }
  0xf0   : > { %1874 = vmatmul.mubr.msk.bf16.vlgmr.msra.gmra.mxu1 %vm589_vm2, %v2174_v58 }
  0xf1   : > { %1885 = vmatprep.mubr.msk.bf16.mxu1 %vm2032_vm0, %v2031_v2 }
 0x1a6   : > { %v630_v59 = vpop.f32.mrf.mxu0 }
 0x1a7   : > { %v775_v60 = vsel %vm774_vm3, %v630_v59, -inf }
 0x1a8   : > { %v676_v61 = vpop.f32.mrf.mxu1  ;;  %776 = vmax.xlane.f32.xlu0 %v775_v60  ;;  %v1857_v62 = vpop.f32.mrf.mxu0 }
 0x1a9   : > { %v778_v1 = vsel %vm774_vm3, %v676_v61, -inf }
 0x1aa   : > { %v633_v63 = vpop.f32.mrf.mxu0  ;;  %v1863_v0 = vpop.f32.mrf.mxu1 }
 0x1ac   : > { %v679_v3 = vpop.f32.mrf.mxu1  ;;  %779 = vmax.xlane.f32.xlu0 %v778_v1  ;;  %v1858_v4 = vpop.f32.mrf.mxu0 }
 0x1ae   : > { %v1864_v5 = vpop.f32.mrf.mxu1  ;;  %v722_v6 = vpop.f32.mrf.mxu0 }
 0x1af   : > { %v781_v7 = vsel %vm774_vm3, %v722_v6, -inf }
 0x1b0   : > { %v768_v8 = vpop.f32.mrf.mxu1  ;;  %782 = vmax.xlane.f32.xlu1 %v781_v7  ;;  %v1869_v9 = vpop.f32.mrf.mxu0 }
 0x1b1   : > { %v784_v12 = vsel %vm774_vm3, %v768_v8, -inf }
 0x1b2   : > { %v725_v10 = vpop.f32.mrf.mxu0  ;;  %v1875_v11 = vpop.f32.mrf.mxu1 }
 0x1b4   : > { %v771_v13 = vpop.f32.mrf.mxu1  ;;  %785 = vmax.xlane.f32.xlu1 %v784_v12  ;;  %v1870_v14 = vpop.f32.mrf.mxu0 }
 0x1b6   : > { %v1876_v15 = vpop.f32.mrf.mxu1 }
 0x1c5   : > { %875 = vrot.lane.b32.xlu1 %v2142_v35, %s2034_s27 }
 0x1c9   : > { %924 = vrot.lane.b32.xlu1 %v2150_v42, %s2034_s27 }
 0x1cd   : > { %973 = vrot.lane.b32.xlu1 %v2152_v46, %s2034_s27 }
 0x231   : > { %v777_v16 = vpop.xlane.xlu0 %776 }
 0x232   : > { %v787_v17 = vsub.f32 %v630_v59, %v777_v16 }
 0x234   : > { %v791_v18 = vmul.f32 1.442695, %v787_v17 }
 0x235   : > { %v780_v19 = vpop.xlane.xlu0 %779 }
 0x236   : > { %1983 = vpow2.f32 %v791_v18  ;;  %v788_v20 = vsub.f32 %v676_v61, %v780_v19 }
 0x238   : > { %v793_v25 = vmul.f32 1.442695, %v788_v20 }
 0x239   : > { %v783_v26 = vpop.xlane.xlu1 %782 }
 0x23a   : > { %1985 = vpow2.f32 %v793_v25  ;;  %v789_v36 = vsub.f32 %v722_v6, %v783_v26 }
 0x23c   : > { %v795_v37 = vmul.f32 1.442695, %v789_v36 }
 0x23d   : > { %v786_v27 = vpop.xlane.xlu1 %785 }
 0x23e   : > { %v790_v38 = vsub.f32 %v768_v8, %v786_v27  ;;  %1987 = vpow2.f32 %v795_v37 }
 0x240   : > { %v797_v39 = vmul.f32 1.442695, %v790_v38 }
 0x241   : > { %v876_v28 = vpop.permute.xlu1 %875 }
 0x242   : > { %v881_v29 = vsel %vm830_vm4, %v876_v28, 0  ;;  %1989 = vpow2.f32 %v797_v39 }
 0x243   : > { %v1984_v30 = vpop.eup %1983  ;;  %1884 = vmatpush3.bf16.msra.mxu1 %v881_v29 }
 0x244   : > { %v799_v31 = vsel %vm774_vm3, %v1984_v30, 0.0  ;;  %1895 = vmatprep.subr.bf16.mxu1 %v2031_v2 }
 0x245   : > { %800 = vadd.xlane.f32.xlu0 %v799_v31  ;;  %v925_v45 = vpop.permute.xlu1 %924 }
 0x246   : > { %v930_v56 = vsel %vm830_vm4, %v925_v45, 0 }
 0x247   : > { %v1986_v32 = vpop.eup %1985 }
 0x248   : > { %v802_v34 = vsel %vm774_vm3, %v1986_v32, 0.0 }
 0x249   : > { %803 = vadd.xlane.f32.xlu1 %v802_v34  ;;  %v974_v47 = vpop.permute.xlu1 %973 }
 0x24a   : > { %v979_v59 = vsel %vm830_vm4, %v974_v47, 0 }
 0x24b   : > { %v1988_v40 = vpop.eup %1987 }
 0x24c   : > { %v805_v41 = vsel %vm774_vm3, %v1988_v40, 0.0 }
 0x24f   : > { %v1990_v43 = vpop.eup %1989 }
 0x250   : > { %v808_v44 = vsel %vm774_vm3, %v1990_v43, 0.0 }
 0x25a   : > { %1086 = vrot.lane.b32.xlu1 %v2142_v35, %s2035_s28 }
 0x25b   : > { %824 = vrot.lane.b32.xlu0 %v2140_v33, %s2034_s27 }
 0x27a   : > { %806 = vadd.xlane.f32.xlu0 %v805_v41 }
 0x27e   : > { %809 = vadd.xlane.f32.xlu1 %v808_v44 }
 0x28f   : > { %1084 = vrot.lane.b32.xlu1 %v2156_v50, %s2035_s28 }
 0x290   : > { %1035 = vrot.lane.b32.xlu0 %v2140_v33, %s2035_s28 }
 0x293   : > { %1188 = vrot.lane.b32.xlu1 %v2152_v46, %s2035_s28 }
 0x294   : > { %1033 = vrot.lane.b32.xlu0 %v2154_v48, %s2035_s28 }
 0x297   : > { %1186 = vrot.lane.b32.xlu1 %v2174_v58, %s2035_s28 }
 0x298   : > { %1137 = vrot.lane.b32.xlu0 %v2150_v42, %s2035_s28 }
 0x29c   : > { %1135 = vrot.lane.b32.xlu0 %v2172_v57, %s2035_s28 }
 0x2ce   : > { %v801_v49 = vpop.xlane.xlu0 %800 }
 0x2cf   : > { %1991 = vrcp.f32 %v801_v49 }
 0x2d2   : > { %v825_v51 = vpop.permute.xlu0 %824  ;;  %v804_v52 = vpop.xlane.xlu1 %803 }
 0x2d3   : > { %v832_v50 = vsel %vm830_vm4, %v825_v51, 0  ;;  %1993 = vrcp.f32 %v804_v52 }
 0x2d4   : > { %1878 = vmatpush3.bf16.msra.mxu0 %v832_v50 }
 0x2d5   : > { %1889 = vmatprep.subr.bf16.mxu0 %v2031_v2 }
 0x2d6   : > { %v1087_v60 = vpop.permute.xlu1 %1086 }
 0x2d7   : > { %v1092_v10 = vsel %vm589_vm2, %v1087_v60, 0 }
 0x2dc   : > { %v1992_v53 = vpop.eup %1991 }
 0x2dd   : > { %v815_v48 = vmul.f32 %v1992_v53, %v1984_v30 }
 0x2df   : > { %v819_v54 = vpack.c.bf16 %v815_v48, %v815_v48 }
 0x2e0   : > { %v1994_v55 = vpop.eup %1993 }
 0x2e1   : > { %1880 = vmatmul.mubr.msk.bf16.vlgmr.msra.gmra.mxu0 %vm826_vm5, %v819_v54  ;;  %v816_v57 = vmul.f32 %v1994_v55, %v1986_v32 }
 0x2e2   : > { %1890 = vmatpush3.bf16.msra.mxu0 %v930_v56  ;;  %1891 = vmatprep.mubr.msk.bf16.mxu0 %vm2032_vm0, %v2031_v2 }
 0x2e3   : > { %v820_v58 = vpack.c.bf16 %v816_v57, %v816_v57  ;;  %1901 = vmatprep.subr.bf16.mxu0 %v2031_v2 }
 0x2e5   : > { %1886 = vmatmul.mubr.msk.bf16.vlgmr.msra.gmra.mxu1 %vm826_vm5, %v820_v58 }
 0x2e6   : > { %1896 = vmatpush3.bf16.msra.mxu1 %v979_v59  ;;  %1897 = vmatprep.mubr.msk.bf16.mxu1 %vm2032_vm0, %v2031_v2 }
 0x2e7   : > { %1907 = vmatprep.subr.bf16.mxu1 %v2031_v2 }
 0x303   : > { %v807_v61 = vpop.xlane.xlu0 %806 }
 0x304   : > { %1995 = vrcp.f32 %v807_v61 }
 0x307   : > { %v810_v62 = vpop.xlane.xlu1 %809  ;;  %v1036_v63 = vpop.permute.xlu0 %1035 }
 0x308   : > { %1997 = vrcp.f32 %v810_v62  ;;  %v1041_v6 = vsel %vm589_vm2, %v1036_v63, 0 }
 0x30b   : > { %v1034_v5 = vpop.permute.xlu0 %1033  ;;  %v1085_v9 = vpop.permute.xlu1 %1084 }
 0x30f   : > { %v1138_v11 = vpop.permute.xlu0 %1137  ;;  %v1189_v13 = vpop.permute.xlu1 %1188 }
 0x310   : > { %v1143_v12 = vsel %vm589_vm2, %v1138_v11, 0  ;;  %v1194_v14 = vsel %vm589_vm2, %v1189_v13, 0 }
 0x311   : > { %v1996_v0 = vpop.eup %1995 }
 0x312   : > { %v817_v1 = vmul.f32 %v1996_v0, %v1988_v40 }
 0x313   : > { %v1136_v15 = vpop.permute.xlu0 %1135  ;;  %v1187_v16 = vpop.permute.xlu1 %1186 }
 0x314   : > { %v821_v3 = vpack.c.bf16 %v817_v1, %v817_v1 }
 0x315   : > { %v1998_v4 = vpop.eup %1997 }
 0x316   : > { %1892 = vmatmul.mubr.msk.bf16.vlgmr.msra.gmra.mxu0 %vm826_vm5, %v821_v3  ;;  %v818_v7 = vmul.f32 %v1998_v4, %v1990_v43 }
 0x317   : > { %1902 = vmatpush3.bf16.xpose.msra.mxu0 %v1041_v6  ;;  %1903 = vmatprep.mubr.msk.bf16.mxu0 %vm2032_vm0, %v2031_v2 }
 0x318   : > { %v822_v8 = vpack.c.bf16 %v818_v7, %v818_v7  ;;  %1913 = vmatprep.subr.bf16.mxu0 %v2031_v2 }
 0x31a   : > { %1898 = vmatmul.mubr.msk.bf16.vlgmr.msra.gmra.mxu1 %vm826_vm5, %v822_v8 }
 0x31b   : > { %1908 = vmatpush3.bf16.xpose.msra.mxu1 %v1092_v10  ;;  %1909 = vmatprep.mubr.msk.bf16.mxu1 %vm2032_vm0, %v2031_v2 }
 0x31c   : > { %1919 = vmatprep.subr.bf16.mxu1 %v2031_v2 }
 0x31e   : > { %1904 = vmatmul.mubr.msk.bf16.vlgmr.msra.gmra.mxu0 %vm589_vm2, %v1034_v5 }
 0x31f   : > { %1914 = vmatpush3.bf16.xpose.msra.mxu0 %v1143_v12  ;;  %1915 = vmatprep.mubr.msk.bf16.mxu0 %vm2032_vm0, %v2031_v2 }
 0x320   : > { %1925 = vmatprep.subr.bf16.mxu0 %v2031_v2 }
 0x322   : > { %1910 = vmatmul.mubr.msk.bf16.vlgmr.msra.gmra.mxu1 %vm589_vm2, %v1085_v9 }
 0x323   : > { %1920 = vmatpush3.bf16.xpose.msra.mxu1 %v1194_v14  ;;  %1921 = vmatprep.mubr.msk.bf16.mxu1 %vm2032_vm0, %v2031_v2 }
 0x324   : > { %1931 = vmatprep.subr.bf16.mxu1 %v2031_v2 }
 0x326   : > { %1916 = vmatmul.mubr.msk.bf16.vlgmr.msra.gmra.mxu0 %vm589_vm2, %v1136_v15 }
 0x327   : > { %1927 = vmatprep.mubr.msk.bf16.mxu0 %vm2032_vm0, %v2031_v2 }
 0x32a   : > { %1922 = vmatmul.mubr.msk.bf16.vlgmr.msra.gmra.mxu1 %vm589_vm2, %v1187_v16 }
 0x32b   : > { %1933 = vmatprep.mubr.msk.bf16.mxu1 %vm2032_vm0, %v2031_v2 }
 0x3a1   : > { %v868_v17 = vpop.f32.mrf.mxu0 }
 0x3a3   : > { %v1881_v18 = vpop.f32.mrf.mxu0 }
 0x3a5   : > { %v871_v19 = vpop.f32.mrf.mxu0  ;;  %v917_v20 = vpop.f32.mrf.mxu1 }
 0x3a6   : > { %v1025_v25 = vcombine.low %v868_v17, %v917_v20 }
 0x3a7   : > { %v1882_v26 = vpop.f32.mrf.mxu0  ;;  %v1887_v27 = vpop.f32.mrf.mxu1 }
 0x3a9   : > { %v920_v28 = vpop.f32.mrf.mxu1 }
 0x3ab   : > { %v1888_v29 = vpop.f32.mrf.mxu1 }
 0x3d6   : > { %v966_v30 = vpop.f32.mrf.mxu0 }
 0x3d8   : > { %v1893_v31 = vpop.f32.mrf.mxu0 }
 0x3da   : > { %v969_v32 = vpop.f32.mrf.mxu0  ;;  %v1015_v34 = vpop.f32.mrf.mxu1 }
 0x3db   : > { %v1026_v36 = vcombine.low %v966_v30, %v1015_v34 }
 0x3dc   : > { %v1894_v37 = vpop.f32.mrf.mxu0  ;;  %v1899_v38 = vpop.f32.mrf.mxu1 }
 0x3dd   : > { %v2244_v39 = vpack.c.bf16 %v1026_v36, %v1025_v25 }
 0x3de   : > { %v1018_v40 = vpop.f32.mrf.mxu1  ;;  %v1077_v41 = vpop.f32.mrf.mxu0 }
 0x3df   : > { %v1236_v43 = vsel %vm774_vm3, %v1077_v41, -inf }
 0x3e0   : > { %v1900_v44 = vpop.f32.mrf.mxu1  ;;  %1237 = vmax.xlane.f32.xlu0 %v1236_v43  ;;  %v1905_v45 = vpop.f32.mrf.mxu0 }
 0x3e2   : > { %v1080_v47 = vpop.f32.mrf.mxu0  ;;  %v1128_v49 = vpop.f32.mrf.mxu1 }
 0x3e3   : > { %v1239_v51 = vsel %vm774_vm3, %v1128_v49, -inf }
 0x3e4   : > { %1240 = vmax.xlane.f32.xlu1 %v1239_v51  ;;  %v1906_v52 = vpop.f32.mrf.mxu0  ;;  %v1911_v50 = vpop.f32.mrf.mxu1  ;;  %v1981_v51 = vld [vmem:[%s2320_s4] sm:$0xff]  }
 0x3e5   : > { %v1982_v50 = vld [vmem:[%s2320_s4 + $0x8] sm:$0xff]  }
 0x3e6   : > { %v1131_v53 = vpop.f32.mrf.mxu1  ;;  %v1179_v48 = vpop.f32.mrf.mxu0 }
 0x3e7   : > { %v1242_v54 = vsel %vm774_vm3, %v1179_v48, -inf }
 0x3e8   : > { %v1912_v55 = vpop.f32.mrf.mxu1  ;;  %1243 = vmax.xlane.f32.xlu0 %v1242_v54  ;;  %v1917_v56 = vpop.f32.mrf.mxu0 }
 0x3ea   : > { %v1182_v57 = vpop.f32.mrf.mxu0  ;;  %v1230_v58 = vpop.f32.mrf.mxu1 }
 0x3eb   : > { %v1245_v59 = vsel %vm774_vm3, %v1230_v58, -inf }
 0x3ec   : > { %v1923_v60 = vpop.f32.mrf.mxu1  ;;  %1246 = vmax.xlane.f32.xlu0 %v1245_v59  ;;  %v1918_v61 = vpop.f32.mrf.mxu0 }
 0x3ee   : > { %v1233_v62 = vpop.f32.mrf.mxu1 }
 0x3f0   : > { %v1924_v63 = vpop.f32.mrf.mxu1 }
 0x469   : > { %v1238_v0 = vpop.xlane.xlu0 %1237 }
 0x46a   : > { %v1248_v1 = vsub.f32 %v1077_v41, %v1238_v0 }
 0x46c   : > { %v1252_v3 = vmul.f32 1.442695, %v1248_v1 }
 0x46d   : > { %v1241_v4 = vpop.xlane.xlu1 %1240 }
 0x46e   : > { %1999 = vpow2.f32 %v1252_v3  ;;  %v1249_v5 = vsub.f32 %v1128_v49, %v1241_v4 }
 0x470   : > { %v1254_v6 = vmul.f32 1.442695, %v1249_v5 }
 0x471   : > { %v1244_v7 = vpop.xlane.xlu0 %1243 }
 0x472   : > { %2001 = vpow2.f32 %v1254_v6  ;;  %v1250_v8 = vsub.f32 %v1179_v48, %v1244_v7 }
 0x474   : > { %v1256_v9 = vmul.f32 1.442695, %v1250_v8 }
 0x475   : > { %v1247_v16 = vpop.xlane.xlu0 %1246 }
 0x476   : > { %2003 = vpow2.f32 %v1256_v9  ;;  %v1251_v17 = vsub.f32 %v1230_v58, %v1247_v16 }
 0x478   : > { %v1258_v18 = vmul.f32 1.442695, %v1251_v17 }
 0x47a   : > { %2005 = vpow2.f32 %v1258_v18 }
 0x47b   : > { %v2000_v10 = vpop.eup %1999 }
 0x47c   : > { %v1260_v11 = vsel %vm774_vm3, %v2000_v10, 0.0 }
 0x47d   : > { %1261 = vadd.xlane.f32.xlu0 %v1260_v11 }
 0x47f   : > { %v2002_v12 = vpop.eup %2001 }
 0x480   : > { %v1263_v13 = vsel %vm774_vm3, %v2002_v12, 0.0 }
 0x481   : > { %1264 = vadd.xlane.f32.xlu1 %v1263_v13 }
 0x483   : > { %v2004_v14 = vpop.eup %2003 }
 0x484   : > { %v1266_v15 = vsel %vm774_vm3, %v2004_v14, 0.0 }
 0x485   : > { %1267 = vadd.xlane.f32.xlu0 %v1266_v15 }
 0x487   : > { %v2006_v19 = vpop.eup %2005 }
 0x488   : > { %v1269_v20 = vsel %vm774_vm3, %v2006_v19, 0.0 }
 0x492   : > { %1332 = vrot.lane.b32.xlu1 %v2142_v35, %s2036_s29 }
 0x496   : > { %1380 = vrot.lane.b32.xlu1 %v2150_v42, %s2036_s29 }
 0x49b   : > { %1284 = vrot.lane.b32.xlu0 %v2140_v33, %s2036_s29 }
 0x4ba   : > { %1270 = vadd.xlane.f32.xlu1 %v1269_v20 }
 0x4cb   : > { %1428 = vrot.lane.b32.xlu1 %v2152_v46, %s2036_s29 }
 0x506   : > { %v1262_v25 = vpop.xlane.xlu0 %1261 }
 0x507   : > { %2007 = vrcp.f32 %v1262_v25 }
 0x50a   : > { %v1265_v26 = vpop.xlane.xlu1 %1264 }
 0x50b   : > { %2009 = vrcp.f32 %v1265_v26 }
 0x50e   : > { %v1333_v27 = vpop.permute.xlu1 %1332  ;;  %v1268_v35 = vpop.xlane.xlu0 %1267 }
 0x50f   : > { %v1338_v42 = vsel %vm830_vm4, %v1333_v27, 0  ;;  %2011 = vrcp.f32 %v1268_v35 }
 0x510   : > { %1932 = vmatpush3.bf16.msra.mxu1 %v1338_v42 }
 0x511   : > { %1943 = vmatprep.subr.bf16.mxu1 %v2031_v2 }
 0x512   : > { %v1285_v33 = vpop.permute.xlu0 %1284  ;;  %v1381_v30 = vpop.permute.xlu1 %1380 }
 0x513   : > { %v1290_v28 = vsel %vm830_vm4, %v1285_v33, 0  ;;  %v1386_v34 = vsel %vm830_vm4, %v1381_v30, 0 }
 0x514   : > { %v2008_v29 = vpop.eup %2007  ;;  %1926 = vmatpush3.bf16.msra.mxu0 %v1290_v28 }
 0x515   : > { %1937 = vmatprep.subr.bf16.mxu0 %v2031_v2  ;;  %v1276_v46 = vmul.f32 %v2008_v29, %v2000_v10 }
 0x517   : > { %v1280_v31 = vpack.c.bf16 %v1276_v46, %v1276_v46 }
 0x518   : > { %v2010_v32 = vpop.eup %2009 }
 0x519   : > { %1928 = vmatmul.mubr.msk.bf16.vlgmr.msra.gmra.mxu0 %vm826_vm5, %v1280_v31  ;;  %v1277_v36 = vmul.f32 %v2010_v32, %v2002_v12 }
 0x51a   : > { %1938 = vmatpush3.bf16.msra.mxu0 %v1386_v34  ;;  %1939 = vmatprep.mubr.msk.bf16.mxu0 %vm2032_vm0, %v2031_v2 }
 0x51b   : > { %v1281_v37 = vpack.c.bf16 %v1277_v36, %v1277_v36  ;;  %1949 = vmatprep.subr.bf16.mxu0 %v2031_v2 }
 0x51c   : > { %v2012_v38 = vpop.eup %2011 }
 0x51d   : > { %1934 = vmatmul.mubr.msk.bf16.vlgmr.msra.gmra.mxu1 %vm826_vm5, %v1281_v37  ;;  %v1278_v40 = vmul.f32 %v2012_v38, %v2004_v14 }
 0x51e   : > { %1945 = vmatprep.mubr.msk.bf16.mxu1 %vm2032_vm0, %v2031_v2 }
 0x51f   : > { %v1282_v41 = vpack.c.bf16 %v1278_v40, %v1278_v40 }
 0x521   : > { %1940 = vmatmul.mubr.msk.bf16.vlgmr.msra.gmra.mxu0 %vm826_vm5, %v1282_v41 }
 0x522   : > { %1951 = vmatprep.mubr.msk.bf16.mxu0 %vm2032_vm0, %v2031_v2  ;;  %1950 = vmatpush3.bf16.msra.mxu0 %v1982_v50 }
 0x543   : > { %v1271_v43 = vpop.xlane.xlu1 %1270 }
 0x544   : > { %2013 = vrcp.f32 %v1271_v43 }
 0x547   : > { %v1429_v44 = vpop.permute.xlu1 %1428 }
 0x548   : > { %v1434_v45 = vsel %vm830_vm4, %v1429_v44, 0 }
 0x549   : > { %1944 = vmatpush3.bf16.msra.mxu1 %v1434_v45 }
 0x54a   : > { %1955 = vmatprep.subr.bf16.mxu1 %v2031_v2 }
 0x551   : > { %v2014_v47 = vpop.eup %2013 }
 0x552   : > { %v1279_v49 = vmul.f32 %v2014_v47, %v2006_v19 }
 0x554   : > { %v1283_v52 = vpack.c.bf16 %v1279_v49, %v1279_v49 }
 0x556   : > { %1946 = vmatmul.mubr.msk.bf16.vlgmr.msra.gmra.mxu1 %vm826_vm5, %v1283_v52 }
 0x557   : > { %1956 = vmatpush3.bf16.msra.mxu1 %v1981_v51  ;;  %1957 = vmatprep.mubr.msk.bf16.mxu1 %vm2032_vm0, %v2031_v2 }
 0x55e   : > { %1958 = vmatmul.mubr.msk.bf16.vlgmr.msra.gmra.mxu1 %vm589_vm2, %v2244_v39 }
 0x5d9   : > { %v1326_v53 = vpop.f32.mrf.mxu0 }
 0x5db   : > { %v1929_v48 = vpop.f32.mrf.mxu0 }
 0x5dd   : > { %v1329_v54 = vpop.f32.mrf.mxu0  ;;  %v1374_v55 = vpop.f32.mrf.mxu1 }
 0x5de   : > { %v1480_v0 = vcombine.low %v1326_v53, %v1374_v55 }
 0x5df   : > { %v1930_v56 = vpop.f32.mrf.mxu0  ;;  %v1935_v57 = vpop.f32.mrf.mxu1 }
 0x5e1   : > { %v1377_v58 = vpop.f32.mrf.mxu1  ;;  %v1422_v59 = vpop.f32.mrf.mxu0 }
 0x5e3   : > { %v1936_v60 = vpop.f32.mrf.mxu1  ;;  %v1941_v61 = vpop.f32.mrf.mxu0 }
 0x5e4   : > { %v1791_v60 = vld [vmem:[%s2321_s5] ss:$0 sm:$0xff] }
 0x5e5   : > { %v1425_v62 = vpop.f32.mrf.mxu0 }
 0x5e7   : > { %v1942_v2 = vpop.f32.mrf.mxu0 }
 0x5e8   : > { %v1792_v2 = vld [vmem:[%s2322_s6] ss:$0 sm:$0xff] }
 0x616   : > { %v1470_v63 = vpop.f32.mrf.mxu1 }
 0x617   : > { %v1481_v39 = vcombine.low %v1422_v59, %v1470_v63 }
 0x618   : > { %v1947_v1 = vpop.f32.mrf.mxu1 }
 0x619   : > { %v1484_v3 = vpack.c.bf16 %v1481_v39, %v1480_v0 }
 0x61a   : > { %v1473_v4 = vpop.f32.mrf.mxu1 }
 0x61b   : > { %1952 = vmatmul.mubr.msk.bf16.vlgmr.msra.gmra.mxu0 %vm589_vm2, %v1484_v3 }
 0x61c   : > { %v1948_v5 = vpop.f32.mrf.mxu1 }
 0x61e   : > { %v1580_v6 = vpop.f32.mrf.mxu1 }
 0x620   : > { %v1959_v7 = vpop.f32.mrf.mxu1 }
 0x622   : > { %v1583_v8 = vpop.f32.mrf.mxu1 }
 0x624   : > { %v1960_v9 = vpop.f32.mrf.mxu1 }
 0x6db   : > { %v1530_v10 = vpop.f32.mrf.mxu0 }
 0x6dc   : > { %v1581_v11 = vadd.f32 %v1580_v6, %v1530_v10 }
 0x6dd   : > { %v1953_v12 = vpop.f32.mrf.mxu0 }
 0x6de   : > { %v1589_v13 = vcombine.high %v1581_v11, %v1581_v11  ;;  %v1593_v14 = vadd.f32 %v1581_v11, %v2125_v21 }
 0x6df   : > { %v1533_v15 = vpop.f32.mrf.mxu0 }
 0x6e0   : > { %v1584_v16 = vadd.f32 %v1583_v8, %v1533_v15  ;;  %v1600_v17 = vsel %vm1599_vm6, %v1593_v14, 0.0  ;;  %v1594_v18 = vadd.f32 %v1589_v13, %v2127_v22 }
 0x6e1   : > { %1601 = vadd.xlane.f32.xlu0 %v1600_v17  ;;  %v1954_v19 = vpop.f32.mrf.mxu0 }
 0x6e2   : > { %v1590_v20 = vcombine.high %v1584_v16, %v1584_v16  ;;  %v1603_v25 = vsel %vm1599_vm6, %v1594_v18, 0.0  ;;  %v1595_v26 = vadd.f32 %v1584_v16, %v2129_v23 }
 0x6e3   : > { %1604 = vadd.xlane.f32.xlu1 %v1603_v25 }
 0x6e4   : > { %v1606_v27 = vsel %vm1599_vm6, %v1595_v26, 0.0  ;;  %v1596_v35 = vadd.f32 %v1590_v20, %v2131_v24 }
 0x6e5   : > { %1607 = vadd.xlane.f32.xlu0 %v1606_v27 }
 0x6e6   : > { %v1609_v21 = vsel %vm1599_vm6, %v1596_v35, 0.0 }
 0x6e9   : > { %1610 = vadd.xlane.f32.xlu0 %v1609_v21 }
 0x76a   : > { %v1602_v42 = vpop.xlane.xlu0 %1601 }
 0x76b   : > { %v1613_v33 = vmul.f32 0.03125, %v1602_v42 }
 0x76c   : > { %v1605_v28 = vpop.xlane.xlu1 %1604 }
 0x76d   : > { %v1617_v22 = vsub.f32 %v1593_v14, %v1613_v33  ;;  %v1614_v29 = vmul.f32 0.03125, %v1605_v28 }
 0x76e   : > { %v1608_v46 = vpop.xlane.xlu0 %1607 }
 0x76f   : > { %v1618_v30 = vsub.f32 %v1594_v18, %v1614_v29  ;;  %v1615_v31 = vmul.f32 0.03125, %v1608_v46  ;;  %v1621_v32 = vmul.f32 %v1617_v22, %v1617_v22 }
 0x771   : > { %v1619_v34 = vsub.f32 %v1595_v26, %v1615_v31  ;;  %v1625_v23 = vsel %vm1599_vm6, %v1621_v32, 0.0  ;;  %v1622_v36 = vmul.f32 %v1618_v30, %v1618_v30 }
 0x772   : > { %1626 = vadd.xlane.f32.xlu0 %v1625_v23  ;;  %v1611_v37 = vpop.xlane.xlu0 %1610 }
 0x773   : > { %v1616_v24 = vmul.f32 0.03125, %v1611_v37  ;;  %v1628_v38 = vsel %vm1599_vm6, %v1622_v36, 0.0  ;;  %v1623_v40 = vmul.f32 %v1619_v34, %v1619_v34 }
 0x774   : > { %1629 = vadd.xlane.f32.xlu1 %v1628_v38 }
 0x775   : > { %v1620_v41 = vsub.f32 %v1596_v35, %v1616_v24  ;;  %v1631_v43 = vsel %vm1599_vm6, %v1623_v40, 0.0 }
 0x776   : > { %1632 = vadd.xlane.f32.xlu0 %v1631_v43 }
 0x777   : > { %v1624_v44 = vmul.f32 %v1620_v41, %v1620_v41 }
 0x779   : > { %v1634_v45 = vsel %vm1599_vm6, %v1624_v44, 0.0 }
 0x77a   : > { %1635 = vadd.xlane.f32.xlu1 %v1634_v45 }
 0x7fb   : > { %v1627_v47 = vpop.xlane.xlu0 %1626 }
 0x7fc   : > { %v1637_v49 = vmul.f32 0.03125, %v1627_v47 }
 0x7fd   : > { %v1630_v51 = vpop.xlane.xlu1 %1629 }
 0x7fe   : > { %v1641_v52 = vadd.f32 1e-05, %v1637_v49  ;;  %v1638_v50 = vmul.f32 0.03125, %v1630_v51 }
 0x7ff   : > { %v1633_v53 = vpop.xlane.xlu0 %1632 }
 0x800   : > { %2015 = vrsqrt.f32 %v1641_v52  ;;  %v1642_v48 = vadd.f32 1e-05, %v1638_v50  ;;  %v1639_v54 = vmul.f32 0.03125, %v1633_v53 }
 0x802   : > { %2017 = vrsqrt.f32 %v1642_v48  ;;  %v1643_v55 = vadd.f32 1e-05, %v1639_v54 }
 0x803   : > { %v1636_v56 = vpop.xlane.xlu1 %1635 }
 0x804   : > { %2019 = vrsqrt.f32 %v1643_v55  ;;  %v1640_v57 = vmul.f32 0.03125, %v1636_v56 }
 0x806   : > { %v1644_v58 = vadd.f32 1e-05, %v1640_v57 }
 0x808   : > { %2021 = vrsqrt.f32 %v1644_v58 }
 0x80d   : > { %v2016_v59 = vpop.eup %2015 }
 0x80e   : > { %v1649_v61 = vmul.f32 %v2016_v59, %v1617_v22 }
 0x80f   : > { %v2018_v62 = vpop.eup %2017 }
 0x810   : > { %v1659_v63 = vmul.f32 %v1791_v60, %v1649_v61  ;;  %v1650_v0 = vmul.f32 %v2018_v62, %v1618_v30 }
 0x811   : > { %v2020_v39 = vpop.eup %2019 }
 0x812   : > { %v1669_v1 = vadd.f32 %v1792_v2, %v1659_v63  ;;  %v1660_v3 = vmul.f32 %v1791_v60, %v1650_v0  ;;  %v1651_v4 = vmul.f32 %v2020_v39, %v1619_v34 }
 0x814   : > { %1673 = vst.msk [vmem:[%s386_s19] sm:$0xf] %vm1599_vm6, %v1669_v1  ;;  %v1670_v5 = vadd.f32 %v1792_v2, %v1660_v3  ;;  %v1661_v6 = vmul.f32 %v1791_v60, %v1651_v4 }
 0x815   : > { %v2022_v7 = vpop.eup %2021 }
 0x816   : > { %1674 = vst.msk [vmem:[%s386_s19 + $0x4] sm:$0xf] %vm1599_vm6, %v1670_v5  ;;  %v1671_v8 = vadd.f32 %v1792_v2, %v1661_v6  ;;  %v1652_v9 = vmul.f32 %v2022_v7, %v1620_v41 }
 0x818   : > { %1675 = vst.msk [vmem:[%s386_s19 + $0x8] sm:$0xf] %vm1599_vm6, %v1671_v8  ;;  %v1662_v10 = vmul.f32 %v1791_v60, %v1652_v9 }
 0x81a   : > { %v1672_v11 = vadd.f32 %v1792_v2, %v1662_v10 }
 0x81c   : > { %1676 = vst.msk [vmem:[%s386_s19 + $0xc] sm:$0xf] %vm1599_vm6, %v1672_v11 }
 0x81d PF: > { %s17_s24 = sadd.s32 1, %s2029_s24  }
 0x81e   : > { %p14_p7 = scmp.ge.s32.totalorder %s17_s24, 4  }
 0x820   :  { %16 = sbr.rel (!%p14_p7) target bundleno = 1 (0x1), region = 81 }

// kernel: _lambda_.22
= control target key start
LH: loop header
LB: loop body
LE: loop exit
PB: predicated region body
PF: predicated region fallthrough
CT: control target
= control target key end

     0   :  { %s1014_s18 = smov 0   ;;  %s1107_s0 = inlined_call_operand.vmem [shape: f32[2,2,32], index: 0, kind: input, shape index: {}]   ;;  %s1108_s1 = inlined_call_operand.vmem [shape: f32[4,4,32], index: 1, kind: input, shape index: {}]   ;;  %s1109_s2 = inlined_call_operand.vmem [shape: bf16[32,32], index: 2, kind: input, shape index: {}]   ;;  %s1110_s3 = inlined_call_operand.vmem [shape: bf16[32,64], index: 3, kind: input, shape index: {}]   ;;  %s1111_s4 = inlined_call_operand.vmem [shape: bf16[32,32], index: 4, kind: input, shape index: {}]   ;;  %s1112_s5 = inlined_call_operand.vmem [shape: f32[4,2,32], index: 5, kind: output, shape index: {}]  }
   0x1 LB: > { %s1020_s19 = sadd.s32 4294967295, %s977_s18   ;;  %p851_p0 = scmp.ge.s32.totalorder %s977_s18, 1  ;;  %s977_s18 = sphi %s1014_s18, %s15_s18  }
   0x2   : > { %p243_p1 = scmp.lt.s32.totalorder %s977_s18, 5 }
   0x4   : > { %p244_p2 = pnand %p851_p0, %p243_p1 }
   0x5   : > { %p313_p3 = scmp.lt.s32.totalorder (!%p244_p2), %s1020_s19, 3  ;;  %p285_p4 = scmp.lt.s32.totalorder (!%p244_p2), %s1020_s19, 0 }
   0x6   : > { %247 = sbr.rel (%p244_p2) target bundleno = 1239 (0x4d7), region = 40  ;;  %s286_s29 = ssub.s32 (!%p244_p2), 0, %s1020_s19 }
   0x7   : > { %s852_s6 = smin.u32 (!%p244_p2), %s1020_s19, %s286_s29  ;;  %s981_s17 = smov (!%p244_p2), 112  }
   0x8   : > { %s288_s10 = sand.u32 (!%p244_p2), 1, %s852_s6   ;;  %s983_s20 = smov (!%p244_p2), 80  }
   0x9   : > { %s289_s11 = ssub.s32 (!%p244_p2), 0, %s288_s10 }
   0xb   : > { %v957_v0 = vld [vmem:[%s1110_s3 + $0x8] sm:$0xff]   ;;  %v979_v1 = vmov 0.0   ;;  %v958_v2 = vld [vmem:[%s1110_s3] sm:$0xff]   ;;  %vm980_vm0 = vmmov 0   ;;  %s1043_s26 = scalar_select %p313_p3, %s1020_s19, 3  ;;  %vm341_vm1 = vcmask 261120  }
   0xc   : > { %900 = vmatprep.subr.bf16.mxu1 %v979_v1  ;;  %892 = vmatprep.subr.bf16.mxu0 %v979_v1  ;;  %v959_v3 = vld [vmem:[%s1109_s2 + $0x8] sm:$0xff]   ;;  %v960_v4 = vld [vmem:[%s1109_s2] sm:$0xff]   ;;  %s1114_s11 = smov (!%p285_p4, %s289_s11), %s288_s10  ;;  %vm448_vm2 = vcmask 130048   ;;  %vm495_vm3 = vcmask 25600   ;;  %s982_s19 = smov 96   ;;  %vm515_vm4 = vcmask 1041408  }
   0xd   : > { %901 = vmatpush3.bf16.msra.mxu1 %v957_v0  ;;  %904 = vmatprep.mubr.msk.bf16.mxu1 %vm980_vm0, %v979_v1  ;;  %s856_s30 = sshll.u32 %s1043_s26, 2  ;;  %p854_p5 = scmp.lt.s32.totalorder %s1114_s11, 0  ;;  %vm511_vm5 = vcmask 31744   ;;  %v962_v50 = vld [vmem:[%s1111_s4 + $0x8] sm:$0xff]   ;;  %v961_v56 = vld [vmem:[%s1111_s4] sm:$0xff]   ;;  %vm774_vm6 = vcmask 254976  }
   0xe   : > { %902 = vmatprep.subr.bf16.mxu1 %v979_v1  ;;  %896 = vmatprep.mubr.msk.bf16.mxu0 %vm980_vm0, %v979_v1  ;;  %s316_s9 = scalar_lea.vmem %s1108_s1, %s856_s30  ;;  %s295_s12 = sadd.s32 2, %s1114_s11 }
   0xf   : > { %893 = vmatpush3.bf16.msra.mxu0 %v959_v3  ;;  %v323_v5 = vld [vmem:[%s316_s9] sm:$0xf]  ;;  %s1116_s12 = smov (!%p854_p5, %s295_s12), %s1114_s11  ;;  %s857_s25 = sshll.u32 %s1043_s26, 1 }
  0x10   : > { %894 = vmatprep.subr.bf16.mxu0 %v979_v1  ;;  %v385_v6 = vpack.c.bf16 %v323_v5, %v323_v5  ;;  %p297_p6 = scmp.lt.s32.totalorder %s1116_s12, 1  ;;  %s320_s29 = scalar_lea.vmem %s1112_s5, %s857_s25 }
  0x11   : > { %903 = vmatpush3.bf16.msra.mxu1 %v958_v2 }
  0x12   : > { %914 = vmatprep.subr.bf16.mxu1 %v979_v1  ;;  %s1118_s12 = smov (!%p297_p6, %s1116_s12), 1 }
  0x13   : > { %895 = vmatpush3.bf16.msra.mxu0 %v960_v4  ;;  %s855_s13 = sshll.u32 %s1118_s12, 1 }
  0x14   : > { %908 = vmatprep.subr.bf16.mxu0 %v979_v1  ;;  %905 = vmatmul.mubr.msk.bf16.vlgmr.msra.gmra.mxu1 %vm341_vm1, %v385_v6  ;;  %s300_s16 = scalar_lea.vmem %s1107_s0, %s855_s13 }
  0x15   : > { %916 = vmatprep.mubr.msk.bf16.mxu1 %vm980_vm0, %v979_v1  ;;  %v322_v7 = vld [vmem:[%s300_s16] sm:$0x3] }
  0x16   : > { %v324_v8 = vpack.c.bf16 %v322_v7, %v322_v7 }
  0x18   : > { %897 = vmatmul.mubr.msk.bf16.vlgmr.msra.gmra.mxu0 %vm341_vm1, %v324_v8 }
  0x19   : > { %910 = vmatprep.mubr.msk.bf16.mxu0 %vm980_vm0, %v979_v1 }
  0xd4   : > { %v439_v9 = vpop.f32.mrf.mxu1 }
  0xd5   : > { %v447_v10 = vpack.c.bf16 %v439_v9, %v439_v9 }
  0xd6   : > { %v906_v11 = vpop.f32.mrf.mxu1 }
  0xd7   : > { %565 = vrot.lane.b32.xlu0 %v447_v10, %s981_s17  ;;  %v453_v12 = vsel %vm448_vm2, %v447_v10, 0 }
  0xd8   : > { %v442_v13 = vpop.f32.mrf.mxu1  ;;  %909 = vmatpush3.bf16.xpose.msra.mxu0 %v453_v12  ;;  %v379_v15 = vpop.f32.mrf.mxu0 }
  0xd9   : > { %920 = vmatprep.subr.bf16.mxu0 %v979_v1  ;;  %v445_v16 = vmul.f32 0.25, %v379_v15 }
  0xda   : > { %v907_v14 = vpop.f32.mrf.mxu1  ;;  %v898_v17 = vpop.f32.mrf.mxu0 }
  0xdb   : > { %v446_v18 = vpack.c.bf16 %v445_v16, %v445_v16 }
  0xdc   : > { %v382_v19 = vpop.f32.mrf.mxu0 }
  0xdd   : > { %563 = vrot.lane.b32.xlu0 %v446_v18, %s981_s17 }
  0xde   : > { %v899_v20 = vpop.f32.mrf.mxu0 }
  0xdf   : > { %911 = vmatmul.mubr.msk.bf16.vlgmr.msra.gmra.mxu0 %vm448_vm2, %v446_v18 }
  0xe0   : > { %922 = vmatprep.mubr.msk.bf16.mxu0 %vm980_vm0, %v979_v1 }
 0x149   : > { %v566_v21 = vpop.permute.xlu0 %565 }
 0x14a   : > { %v571_v22 = vsel %vm448_vm2, %v566_v21, 0 }
 0x14b   : > { %921 = vmatpush3.bf16.xpose.msra.mxu0 %v571_v22 }
 0x14c   : > { %932 = vmatprep.subr.bf16.mxu0 %v979_v1 }
 0x14f   : > { %v564_v23 = vpop.permute.xlu0 %563 }
 0x152   : > { %923 = vmatmul.mubr.msk.bf16.vlgmr.msra.gmra.mxu0 %vm448_vm2, %v564_v23 }
 0x153   : > { %934 = vmatprep.mubr.msk.bf16.mxu0 %vm980_vm0, %v979_v1  ;;  %933 = vmatpush3.bf16.msra.mxu0 %v962_v50 }
 0x19f   : > { %v489_v24 = vpop.f32.mrf.mxu0 }
 0x1a0   : > { %v496_v25 = vsel %vm495_vm3, %v489_v24, -inf }
 0x1a1   : > { %497 = vmax.xlane.f32.xlu1 %v496_v25  ;;  %v912_v26 = vpop.f32.mrf.mxu0 }
 0x1a3   : > { %v492_v27 = vpop.f32.mrf.mxu0 }
 0x1a5   : > { %v913_v28 = vpop.f32.mrf.mxu0 }
 0x212   : > { %v607_v29 = vpop.f32.mrf.mxu0 }
 0x213   : > { %v613_v30 = vsel %vm495_vm3, %v607_v29, -inf }
 0x214   : > { %614 = vmax.xlane.f32.xlu1 %v613_v30  ;;  %v924_v31 = vpop.f32.mrf.mxu0 }
 0x216   : > { %v610_v32 = vpop.f32.mrf.mxu0 }
 0x218   : > { %v925_v33 = vpop.f32.mrf.mxu0 }
 0x225   : > { %509 = vrot.lane.b32.xlu1 %v447_v10, %s982_s19 }
 0x22a   : > { %v498_v34 = vpop.xlane.xlu1 %497 }
 0x22b   : > { %v499_v35 = vsub.f32 %v489_v24, %v498_v34 }
 0x22d   : > { %v500_v36 = vmul.f32 1.442695, %v499_v35 }
 0x22f   : > { %963 = vpow2.f32 %v500_v36 }
 0x23c   : > { %v964_v37 = vpop.eup %963 }
 0x23d   : > { %v502_v38 = vsel %vm495_vm3, %v964_v37, 0.0 }
 0x23e   : > { %503 = vadd.xlane.f32.xlu0 %v502_v38 }
 0x29d   : > { %v615_v39 = vpop.xlane.xlu1 %614 }
 0x29e   : > { %v616_v40 = vsub.f32 %v607_v29, %v615_v39 }
 0x2a0   : > { %v617_v41 = vmul.f32 1.442695, %v616_v40 }
 0x2a1   : > { %v510_v42 = vpop.permute.xlu1 %509 }
 0x2a2   : > { %965 = vpow2.f32 %v617_v41  ;;  %v517_v43 = vsel %vm515_vm4, %v510_v42, 0 }
 0x2a3   : > { %915 = vmatpush3.bf16.msra.mxu1 %v517_v43 }
 0x2a4   : > { %926 = vmatprep.subr.bf16.mxu1 %v979_v1 }
 0x2af   : > { %v966_v44 = vpop.eup %965 }
 0x2b0   : > { %v619_v45 = vsel %vm495_vm3, %v966_v44, 0.0 }
 0x2b1   : > { %620 = vadd.xlane.f32.xlu1 %v619_v45 }
 0x2c2   : > { %625 = vrot.lane.b32.xlu1 %v447_v10, %s983_s20 }
 0x2c7   : > { %v504_v46 = vpop.xlane.xlu0 %503 }
 0x2c8   : > { %967 = vrcp.f32 %v504_v46 }
 0x2d5   : > { %v968_v47 = vpop.eup %967 }
 0x2d6   : > { %v506_v48 = vmul.f32 %v968_v47, %v964_v37 }
 0x2d8   : > { %v507_v49 = vpack.c.bf16 %v506_v48, %v506_v48 }
 0x2da   : > { %917 = vmatmul.mubr.msk.bf16.vlgmr.msra.gmra.mxu1 %vm511_vm5, %v507_v49 }
 0x2db   : > { %928 = vmatprep.mubr.msk.bf16.mxu1 %vm980_vm0, %v979_v1 }
 0x33a   : > { %v621_v51 = vpop.xlane.xlu1 %620 }
 0x33b   : > { %969 = vrcp.f32 %v621_v51 }
 0x33e   : > { %v626_v52 = vpop.permute.xlu1 %625 }
 0x33f   : > { %v631_v53 = vsel %vm515_vm4, %v626_v52, 0 }
 0x340   : > { %927 = vmatpush3.bf16.msra.mxu1 %v631_v53 }
 0x341   : > { %938 = vmatprep.subr.bf16.mxu1 %v979_v1 }
 0x348   : > { %v970_v54 = vpop.eup %969 }
 0x349   : > { %v623_v55 = vmul.f32 %v970_v54, %v966_v44 }
 0x34b   : > { %v624_v57 = vpack.c.bf16 %v623_v55, %v623_v55 }
 0x34d   : > { %929 = vmatmul.mubr.msk.bf16.vlgmr.msra.gmra.mxu1 %vm511_vm5, %v624_v57 }
 0x34e   : > { %939 = vmatpush3.bf16.msra.mxu1 %v961_v56  ;;  %940 = vmatprep.mubr.msk.bf16.mxu1 %vm980_vm0, %v979_v1 }
 0x39a   : > { %v553_v58 = vpop.f32.mrf.mxu1 }
 0x39b   : > { %v559_v59 = vpack.c.bf16 %v553_v58, %v553_v58 }
 0x39c   : > { %v918_v60 = vpop.f32.mrf.mxu1 }
 0x39d   : > { %941 = vmatmul.mubr.msk.bf16.vlgmr.msra.gmra.mxu1 %vm448_vm2, %v559_v59 }
 0x39e   : > { %v556_v61 = vpop.f32.mrf.mxu1 }
 0x3a0   : > { %v919_v62 = vpop.f32.mrf.mxu1 }
 0x40d   : > { %v667_v63 = vpop.f32.mrf.mxu1 }
 0x40e   : > { %v673_v0 = vpack.c.bf16 %v667_v63, %v667_v63 }
 0x40f   : > { %v930_v2 = vpop.f32.mrf.mxu1 }
 0x410   : > { %935 = vmatmul.mubr.msk.bf16.vlgmr.msra.gmra.mxu0 %vm448_vm2, %v673_v0 }
 0x411   : > { %v670_v3 = vpop.f32.mrf.mxu1 }
 0x413   : > { %v931_v4 = vpop.f32.mrf.mxu1 }
 0x45d   : > { %v768_v5 = vpop.f32.mrf.mxu1 }
 0x45f   : > { %v942_v6 = vpop.f32.mrf.mxu1 }
 0x461   : > { %v771_v7 = vpop.f32.mrf.mxu1 }
 0x463   : > { %v943_v8 = vpop.f32.mrf.mxu1 }
 0x4d0   : > { %v719_v1 = vpop.f32.mrf.mxu0 }
 0x4d1   : > { %v769_v9 = vadd.f32 %v768_v5, %v719_v1 }
 0x4d2   : > { %v936_v10 = vpop.f32.mrf.mxu0 }
 0x4d3   : > { %775 = vst.msk [vmem:[%s320_s29] sm:$0x3] %vm774_vm6, %v769_v9 }
 0x4d4   : > { %v722_v11 = vpop.f32.mrf.mxu0 }
 0x4d6   : > { %v937_v12 = vpop.f32.mrf.mxu0 }
 0x4d7 PF: > { %s15_s18 = sadd.s32 1, %s977_s18  }
 0x4d8   : > { %p12_p7 = scmp.ge.s32.totalorder %s15_s18, 6  }
 0x4da   :  { %14 = sbr.rel (!%p12_p7) target bundleno = 1 (0x1), region = 73 }

// kernel: _lambda_.23
= control target key start
LH: loop header
LB: loop body
LE: loop exit
PB: predicated region body
PF: predicated region fallthrough
CT: control target
= control target key end

     0   :  { %s1461_s24 = smov 0   ;;  %s1613_s0 = inlined_call_operand.vmem [shape: f32[4,4,32], index: 0, kind: input, shape index: {}]   ;;  %s1614_s1 = inlined_call_operand.vmem [shape: f32[4,2,32], index: 1, kind: input, shape index: {}]   ;;  %s1615_s2 = inlined_call_operand.vmem [shape: bf16[32,32], index: 2, kind: input, shape index: {}]   ;;  %s1616_s3 = inlined_call_operand.vmem [shape: bf16[32,64], index: 3, kind: input, shape index: {}]   ;;  %s1617_s4 = inlined_call_operand.vmem [shape: bf16[32,32], index: 4, kind: input, shape index: {}]   ;;  %s1618_s5 = inlined_call_operand.vmem [shape: f32[1,32], index: 5, kind: input, shape index: {}]   ;;  %s1619_s6 = inlined_call_operand.vmem [shape: f32[1,32], index: 6, kind: input, shape index: {}]   ;;  %s1620_s7 = inlined_call_operand.vmem [shape: f32[4,4,32], index: 7, kind: output, shape index: {}]  }
   0x1 LB: > { %s1467_s25 = sadd.s32 4294967295, %s1413_s24   ;;  %p1232_p0 = scmp.ge.s32.totalorder %s1413_s24, 1  ;;  %s1413_s24 = sphi %s1461_s24, %s17_s24  }
   0x2   : > { %p297_p1 = scmp.lt.s32.totalorder %s1413_s24, 3 }
   0x4   : > { %p298_p2 = pnand %p1232_p0, %p297_p1 }
   0x5   : > { %s1238_s30 = sshll.u32 (!%p298_p2), %s1467_s25, 1  ;;  %s347_s12 = ssub.s32 (!%p298_p2), 0, %s1467_s25 }
   0x6   : > { %301 = sbr.rel (%p298_p2) target bundleno = 1958 (0x7a6), region = 48  ;;  %p377_p3 = scmp.lt.s32.totalorder (!%p298_p2), %s1238_s30, 3 }
   0x7   : > { %s1233_s13 = smin.u32 (!%p298_p2), %s1467_s25, %s347_s12  ;;  %p346_p4 = scmp.lt.s32.totalorder (!%p298_p2), %s1467_s25, 0 }
   0x8   : > { %s349_s18 = sand.u32 (!%p298_p2), 1, %s1233_s13   ;;  %s1418_s27 = smov (!%p298_p2), 96  }
   0x9   : > { %s350_s19 = ssub.s32 (!%p298_p2), 0, %s349_s18  ;;  %s1419_s28 = smov (!%p298_p2), 112  }
   0xa   : > { %s1420_s29 = smov (!%p298_p2), 80  }
   0xb   : > { %v1380_v0 = vld [vmem:[%s1616_s3 + $0x8] sm:$0xff]   ;;  %v467_v1 = vlaneseq  ;;  %v1415_v2 = vmov 0.0   ;;  %v1381_v3 = vld [vmem:[%s1616_s3] sm:$0xff]   ;;  %vm1416_vm0 = vmmov 0   ;;  %v1417_v5 = vmov 1983009808   ;;  %s1624_s19 = smov (!%p346_p4, %s350_s19), %s349_s18 }
   0xc   : > { %1298 = vmatprep.subr.bf16.mxu1 %v1415_v2  ;;  %1290 = vmatprep.subr.bf16.mxu0 %v1415_v2  ;;  %v1382_v4 = vld [vmem:[%s1615_s2 + $0x8] sm:$0xff]   ;;  %v465_v6 = vunpack.c.l.s4 %v1417_v5  ;;  %v1383_v8 = vld [vmem:[%s1615_s2] sm:$0xff]   ;;  %s1622_s30 = smov (!%p377_p3, %s1238_s30), 3  ;;  %vm414_vm1 = vcmask 261120   ;;  %p1235_p5 = scmp.lt.s32.totalorder %s1624_s19, 0  ;;  %vm549_vm2 = vcmask 130048  }
   0xd   : > { %1299 = vmatpush3.bf16.msra.mxu1 %v1380_v0  ;;  %1302 = vmatprep.mubr.msk.bf16.mxu1 %vm1416_vm0, %v1415_v2  ;;  %v468_v7 = vshrl.u32 %v467_v1, 7  ;;  %s1239_s14 = sshll.u32 %s1622_s30, 1  ;;  %s356_s20 = sadd.s32 2, %s1624_s19  ;;  %vm674_vm3 = vcmask 1040384   ;;  %vm642_vm4 = vcmask 11264   ;;  %vm670_vm5 = vcmask 15360  }
   0xe   : > { %1300 = vmatprep.subr.bf16.mxu1 %v1415_v2  ;;  %1294 = vmatprep.mubr.msk.bf16.mxu0 %vm1416_vm0, %v1415_v2  ;;  %v466_v9 = vunpack.c.0.s8 %v465_v6  ;;  %s380_s17 = scalar_lea.vmem %s1614_s1, %s1239_s14  ;;  %s1626_s20 = smov (!%p1235_p5, %s356_s20), %s1624_s19  ;;  %vm1108_vm6 = vcmask 257024  }
   0xf   : > { %1291 = vmatpush3.bf16.msra.mxu0 %v1382_v4  ;;  %v391_v11 = vld [vmem:[%s380_s17] sm:$0x3]  ;;  %v392_v12 = vld [vmem:[%s380_s17 + $0x2] sm:$0x3]  ;;  %s1236_s21 = sshll.u32 %s1626_s20, 1  ;;  %s1241_s14 = sshll.u32 %s1622_s30, 2 }
  0x10   : > { %1292 = vmatprep.subr.bf16.mxu0 %v1415_v2  ;;  %v469_v10 = vsub.s32 %v466_v9, %v468_v7  ;;  %v463_v13 = vcombine.low %v391_v11, %v392_v12  ;;  %p359_p6 = scmp.lt.s32.totalorder %s1236_s21, 3  ;;  %s386_s19 = scalar_lea.vmem %s1620_s7, %s1241_s14 }
  0x11   : > { %1301 = vmatpush3.bf16.msra.mxu1 %v1381_v3 }
  0x12   : > { %1312 = vmatprep.subr.bf16.mxu1 %v1415_v2  ;;  %v470_v14 = vrot.slane %v463_v13, %v469_v10  ;;  %s1628_s21 = smov (!%p359_p6, %s1236_s21), 3 }
  0x13   : > { %1293 = vmatpush3.bf16.msra.mxu0 %v1383_v8  ;;  %s1237_s22 = sshll.u32 %s1628_s21, 2 }
  0x14   : > { %1306 = vmatprep.subr.bf16.mxu0 %v1415_v2  ;;  %v472_v15 = vpack.c.bf16 %v470_v14, %v470_v14  ;;  %s362_s26 = scalar_lea.vmem %s1613_s0, %s1237_s22 }
  0x15   : > { %v1509_v16 = vld [vmem:[%s362_s26] sm:$0xf]  ;;  %v1511_v17 = vld [vmem:[%s362_s26 + $0x4] sm:$0xf] }
  0x16   : > { %1303 = vmatmul.mubr.msk.bf16.vlgmr.msra.gmra.mxu1 %vm414_vm1, %v472_v15  ;;  %v395_v18 = vcombine.low %v1509_v16, %v1511_v17 }
  0x17   : > { %1314 = vmatprep.mubr.msk.bf16.mxu1 %vm1416_vm0, %v1415_v2 }
  0x18   : > { %v397_v19 = vpack.c.bf16 %v395_v18, %v395_v18 }
  0x1a   : > { %1295 = vmatmul.mubr.msk.bf16.vlgmr.msra.gmra.mxu0 %vm414_vm1, %v397_v19 }
  0x1b   : > { %1308 = vmatprep.mubr.msk.bf16.mxu0 %vm1416_vm0, %v1415_v2 }
  0xd6   : > { %v526_v20 = vpop.f32.mrf.mxu1 }
  0xd7   : > { %v539_v21 = vrot.slane %v526_v20, %v469_v10 }
  0xd8   : > { %v1304_v22 = vpop.f32.mrf.mxu1 }
  0xd9   : > { %v540_v23 = vcombine.high %v539_v21, %v539_v21  ;;  %v1518_v24 = vpack.c.bf16 %v539_v21, %v539_v21 }
  0xda   : > { %v529_v25 = vpop.f32.mrf.mxu1  ;;  %v452_v30 = vpop.f32.mrf.mxu0 }
  0xdb   : > { %v1520_v26 = vpack.c.bf16 %v540_v23, %v540_v23  ;;  %v554_v27 = vsel %vm549_vm2, %v1518_v24, 0  ;;  %v459_v31 = vcombine.high %v452_v30, %v452_v30  ;;  %v543_v32 = vmul.f32 0.25, %v452_v30 }
  0xdc   : > { %v1305_v28 = vpop.f32.mrf.mxu1  ;;  %1307 = vmatpush3.bf16.xpose.msra.mxu0 %v554_v27  ;;  %v1296_v33 = vpop.f32.mrf.mxu0 }
  0xdd   : > { %719 = vrot.lane.b32.xlu1 %v1520_v26, %s1418_s27  ;;  %v600_v29 = vsel %vm549_vm2, %v1520_v26, 0  ;;  %1318 = vmatprep.subr.bf16.mxu0 %v1415_v2  ;;  %v544_v34 = vmul.f32 0.25, %v459_v31  ;;  %v545_v35 = vpack.c.bf16 %v543_v32, %v543_v32 }
  0xde   : > { %1313 = vmatpush3.bf16.xpose.msra.mxu1 %v600_v29  ;;  %v455_v36 = vpop.f32.mrf.mxu0 }
  0xdf   : > { %1324 = vmatprep.subr.bf16.mxu1 %v1415_v2  ;;  %v546_v37 = vpack.c.bf16 %v544_v34, %v544_v34 }
  0xe0   : > { %v1297_v38 = vpop.f32.mrf.mxu0 }
  0xe1   : > { %777 = vrot.lane.b32.xlu1 %v1518_v24, %s1419_s28 }
  0xe3   : > { %1309 = vmatmul.mubr.msk.bf16.vlgmr.msra.gmra.mxu0 %vm549_vm2, %v545_v35 }
  0xe4   : > { %1320 = vmatprep.mubr.msk.bf16.mxu0 %vm1416_vm0, %v1415_v2 }
  0xe5   : > { %1315 = vmatmul.mubr.msk.bf16.vlgmr.msra.gmra.mxu1 %vm549_vm2, %v546_v37 }
  0xe6   : > { %1326 = vmatprep.mubr.msk.bf16.mxu1 %vm1416_vm0, %v1415_v2 }
 0x14f   : > { %v720_v39 = vpop.permute.xlu1 %719 }
 0x150   : > { %v725_v40 = vsel %vm674_vm3, %v720_v39, 0 }
 0x151   : > { %1325 = vmatpush3.bf16.msra.mxu1 %v725_v40 }
 0x152   : > { %1336 = vmatprep.subr.bf16.mxu1 %v1415_v2 }
 0x153   : > { %v778_v63 = vpop.permute.xlu1 %777 }
 0x154   : > { %v783_v7 = vsel %vm549_vm2, %v778_v63, 0 }
 0x1a3   : > { %v590_v41 = vpop.f32.mrf.mxu0 }
 0x1a4   : > { %v643_v42 = vsel %vm642_vm4, %v590_v41, -inf }
 0x1a5   : > { %v636_v43 = vpop.f32.mrf.mxu1  ;;  %644 = vmax.xlane.f32.xlu0 %v643_v42  ;;  %v1310_v44 = vpop.f32.mrf.mxu0 }
 0x1a6   : > { %v646_v47 = vsel %vm642_vm4, %v636_v43, -inf }
 0x1a7   : > { %v593_v45 = vpop.f32.mrf.mxu0  ;;  %v1316_v46 = vpop.f32.mrf.mxu1 }
 0x1a9   : > { %v639_v48 = vpop.f32.mrf.mxu1  ;;  %647 = vmax.xlane.f32.xlu0 %v646_v47  ;;  %v1311_v49 = vpop.f32.mrf.mxu0 }
 0x1ab   : > { %v1317_v50 = vpop.f32.mrf.mxu1 }
 0x1bf   : > { %668 = vrot.lane.b32.xlu0 %v1518_v24, %s1418_s27 }
 0x1c3   : > { %775 = vrot.lane.b32.xlu0 %v545_v35, %s1419_s28 }
 0x22e   : > { %v645_v51 = vpop.xlane.xlu0 %644 }
 0x22f   : > { %v649_v52 = vsub.f32 %v590_v41, %v645_v51 }
 0x231   : > { %v651_v53 = vmul.f32 1.442695, %v649_v52 }
 0x232   : > { %v648_v54 = vpop.xlane.xlu0 %647 }
 0x233   : > { %1387 = vpow2.f32 %v651_v53  ;;  %v650_v55 = vsub.f32 %v636_v43, %v648_v54 }
 0x235   : > { %v653_v56 = vmul.f32 1.442695, %v650_v55 }
 0x236   : > { %v669_v57 = vpop.permute.xlu0 %668 }
 0x237   : > { %1389 = vpow2.f32 %v653_v56  ;;  %v676_v58 = vsel %vm674_vm3, %v669_v57, 0 }
 0x238   : > { %1319 = vmatpush3.bf16.msra.mxu0 %v676_v58 }
 0x239   : > { %1330 = vmatprep.subr.bf16.mxu0 %v1415_v2 }
 0x23a   : > { %v776_v12 = vpop.permute.xlu0 %775 }
 0x240   : > { %v1388_v59 = vpop.eup %1387 }
 0x241   : > { %v655_v60 = vsel %vm642_vm4, %v1388_v59, 0.0 }
 0x242   : > { %656 = vadd.xlane.f32.xlu1 %v655_v60 }
 0x244   : > { %v1390_v61 = vpop.eup %1389 }
 0x245   : > { %v658_v62 = vsel %vm642_vm4, %v1390_v61, 0.0 }
 0x246   : > { %659 = vadd.xlane.f32.xlu1 %v658_v62 }
 0x257   : > { %828 = vrot.lane.b32.xlu1 %v1520_v26, %s1419_s28 }
 0x25b   : > { %826 = vrot.lane.b32.xlu1 %v546_v37, %s1419_s28 }
 0x2cb   : > { %v657_v0 = vpop.xlane.xlu1 %656 }
 0x2cc   : > { %1391 = vrcp.f32 %v657_v0 }
 0x2cf   : > { %v660_v1 = vpop.xlane.xlu1 %659 }
 0x2d0   : > { %1393 = vrcp.f32 %v660_v1 }
 0x2d3   : > { %v829_v9 = vpop.permute.xlu1 %828 }
 0x2d4   : > { %v834_v11 = vsel %vm549_vm2, %v829_v9, 0 }
 0x2d7   : > { %v827_v13 = vpop.permute.xlu1 %826 }
 0x2d9   : > { %v1392_v3 = vpop.eup %1391 }
 0x2da   : > { %v663_v4 = vmul.f32 %v1392_v3, %v1388_v59  ;;  %v1386_v59 = vld [vmem:[%s1617_s4 + $0x8] sm:$0xff]  }
 0x2dc   : > { %v665_v5 = vpack.c.bf16 %v663_v4, %v663_v4 }
 0x2dd   : > { %v1394_v6 = vpop.eup %1393 }
 0x2de   : > { %1321 = vmatmul.mubr.msk.bf16.vlgmr.msra.gmra.mxu0 %vm670_vm5, %v665_v5  ;;  %v664_v8 = vmul.f32 %v1394_v6, %v1390_v61 }
 0x2df   : > { %1331 = vmatpush3.bf16.xpose.msra.mxu0 %v783_v7  ;;  %1332 = vmatprep.mubr.msk.bf16.mxu0 %vm1416_vm0, %v1415_v2 }
 0x2e0   : > { %v666_v10 = vpack.c.bf16 %v664_v8, %v664_v8  ;;  %1342 = vmatprep.subr.bf16.mxu0 %v1415_v2 }
 0x2e2   : > { %1327 = vmatmul.mubr.msk.bf16.vlgmr.msra.gmra.mxu1 %vm670_vm5, %v666_v10 }
 0x2e3   : > { %1337 = vmatpush3.bf16.xpose.msra.mxu1 %v834_v11  ;;  %1338 = vmatprep.mubr.msk.bf16.mxu1 %vm1416_vm0, %v1415_v2 }
 0x2e4   : > { %1348 = vmatprep.subr.bf16.mxu1 %v1415_v2 }
 0x2e6   : > { %1333 = vmatmul.mubr.msk.bf16.vlgmr.msra.gmra.mxu0 %vm549_vm2, %v776_v12 }
 0x2e7   : > { %1344 = vmatprep.mubr.msk.bf16.mxu0 %vm1416_vm0, %v1415_v2 }
 0x2ea   : > { %1339 = vmatmul.mubr.msk.bf16.vlgmr.msra.gmra.mxu1 %vm549_vm2, %v827_v13 }
 0x2eb   : > { %1350 = vmatprep.mubr.msk.bf16.mxu1 %vm1416_vm0, %v1415_v2 }
 0x39e   : > { %v712_v14 = vpop.f32.mrf.mxu0 }
 0x3a0   : > { %v1322_v15 = vpop.f32.mrf.mxu0 }
 0x3a2   : > { %v715_v18 = vpop.f32.mrf.mxu0  ;;  %v761_v19 = vpop.f32.mrf.mxu1 }
 0x3a3   : > { %v769_v20 = vcombine.low %v712_v14, %v761_v19 }
 0x3a4   : > { %v1323_v21 = vpop.f32.mrf.mxu0  ;;  %v1328_v22 = vpop.f32.mrf.mxu1 }
 0x3a5   : > { %v771_v58 = vpack.c.bf16 %v769_v20, %v769_v20 }
 0x3a6   : > { %v764_v23 = vpop.f32.mrf.mxu1  ;;  %v819_v25 = vpop.f32.mrf.mxu0 }
 0x3a7   : > { %v876_v27 = vsel %vm642_vm4, %v819_v25, -inf }
 0x3a8   : > { %v1329_v28 = vpop.f32.mrf.mxu1  ;;  %877 = vmax.xlane.f32.xlu0 %v876_v27  ;;  %v1334_v29 = vpop.f32.mrf.mxu0 }
 0x3aa   : > { %v822_v30 = vpop.f32.mrf.mxu0  ;;  %v870_v31 = vpop.f32.mrf.mxu1 }
 0x3ab   : > { %v879_v32 = vsel %vm642_vm4, %v870_v31, -inf }
 0x3ac   : > { %880 = vmax.xlane.f32.xlu1 %v879_v32  ;;  %v1335_v33 = vpop.f32.mrf.mxu0  ;;  %v1340_v34 = vpop.f32.mrf.mxu1 }
 0x3ae   : > { %v873_v35 = vpop.f32.mrf.mxu1 }
 0x3b0   : > { %v1341_v36 = vpop.f32.mrf.mxu1 }
 0x3bd   : > { %948 = vrot.lane.b32.xlu1 %v1520_v26, %s1420_s29 }
 0x431   : > { %v878_v37 = vpop.xlane.xlu0 %877 }
 0x432   : > { %v882_v38 = vsub.f32 %v819_v25, %v878_v37 }
 0x434   : > { %v884_v39 = vmul.f32 1.442695, %v882_v38 }
 0x435   : > { %v881_v40 = vpop.xlane.xlu1 %880 }
 0x436   : > { %1395 = vpow2.f32 %v884_v39  ;;  %v883_v41 = vsub.f32 %v870_v31, %v881_v40  ;;  %v1260_v39 = vld [vmem:[%s1618_s5] ss:$0 sm:$0xff] }
 0x438   : > { %v886_v42 = vmul.f32 1.442695, %v883_v41 }
 0x439   : > { %v949_v43 = vpop.permute.xlu1 %948 }
 0x43a   : > { %1397 = vpow2.f32 %v886_v42  ;;  %v954_v44 = vsel %vm674_vm3, %v949_v43, 0  ;;  %v1261_v42 = vld [vmem:[%s1619_s6] ss:$0 sm:$0xff] }
 0x43b   : > { %1349 = vmatpush3.bf16.msra.mxu1 %v954_v44 }
 0x43c   : > { %1360 = vmatprep.subr.bf16.mxu1 %v1415_v2 }
 0x443   : > { %v1396_v45 = vpop.eup %1395 }
 0x444   : > { %v888_v46 = vsel %vm642_vm4, %v1396_v45, 0.0 }
 0x445   : > { %889 = vadd.xlane.f32.xlu0 %v888_v46 }
 0x447   : > { %v1398_v47 = vpop.eup %1397 }
 0x448   : > { %v891_v26 = vsel %vm642_vm4, %v1398_v47, 0.0 }
 0x449   : > { %892 = vadd.xlane.f32.xlu0 %v891_v26 }
 0x45f   : > { %900 = vrot.lane.b32.xlu0 %v1518_v24, %s1420_s29  ;;  %v1385_v24 = vld [vmem:[%s1617_s4] sm:$0xff]  }
 0x4ce   : > { %v890_v48 = vpop.xlane.xlu0 %889 }
 0x4cf   : > { %1399 = vrcp.f32 %v890_v48 }
 0x4d2   : > { %v893_v49 = vpop.xlane.xlu0 %892 }
 0x4d3   : > { %1401 = vrcp.f32 %v893_v49 }
 0x4d6   : > { %v901_v50 = vpop.permute.xlu0 %900 }
 0x4d7   : > { %v906_v51 = vsel %vm674_vm3, %v901_v50, 0 }
 0x4d8   : > { %1343 = vmatpush3.bf16.msra.mxu0 %v906_v51 }
 0x4d9   : > { %1354 = vmatprep.subr.bf16.mxu0 %v1415_v2 }
 0x4dc   : > { %v1400_v52 = vpop.eup %1399 }
 0x4dd   : > { %v896_v53 = vmul.f32 %v1400_v52, %v1396_v45 }
 0x4df   : > { %v898_v54 = vpack.c.bf16 %v896_v53, %v896_v53 }
 0x4e0   : > { %v1402_v55 = vpop.eup %1401 }
 0x4e1   : > { %1345 = vmatmul.mubr.msk.bf16.vlgmr.msra.gmra.mxu0 %vm670_vm5, %v898_v54  ;;  %v897_v56 = vmul.f32 %v1402_v55, %v1398_v47 }
 0x4e2   : > { %1356 = vmatprep.mubr.msk.bf16.mxu0 %vm1416_vm0, %v1415_v2  ;;  %1355 = vmatpush3.bf16.msra.mxu0 %v1386_v59 }
 0x4e3   : > { %v899_v57 = vpack.c.bf16 %v897_v56, %v897_v56 }
 0x4e5   : > { %1351 = vmatmul.mubr.msk.bf16.vlgmr.msra.gmra.mxu1 %vm670_vm5, %v899_v57 }
 0x4e6   : > { %1361 = vmatpush3.bf16.msra.mxu1 %v1385_v24  ;;  %1362 = vmatprep.mubr.msk.bf16.mxu1 %vm1416_vm0, %v1415_v2 }
 0x4ed   : > { %1363 = vmatmul.mubr.msk.bf16.vlgmr.msra.gmra.mxu1 %vm549_vm2, %v771_v58 }
 0x5a1   : > { %v942_v60 = vpop.f32.mrf.mxu0 }
 0x5a3   : > { %v1346_v61 = vpop.f32.mrf.mxu0 }
 0x5a5   : > { %v945_v62 = vpop.f32.mrf.mxu0  ;;  %v990_v63 = vpop.f32.mrf.mxu1 }
 0x5a6   : > { %v998_v0 = vcombine.low %v942_v60, %v990_v63 }
 0x5a7   : > { %v1347_v1 = vpop.f32.mrf.mxu0  ;;  %v1352_v3 = vpop.f32.mrf.mxu1 }
 0x5a8   : > { %v1000_v4 = vpack.c.bf16 %v998_v0, %v998_v0 }
 0x5a9   : > { %v993_v5 = vpop.f32.mrf.mxu1 }
 0x5aa   : > { %1357 = vmatmul.mubr.msk.bf16.vlgmr.msra.gmra.mxu0 %vm549_vm2, %v1000_v4 }
 0x5ab   : > { %v1353_v2 = vpop.f32.mrf.mxu1 }
 0x5ad   : > { %v1095_v6 = vpop.f32.mrf.mxu1 }
 0x5af   : > { %v1364_v7 = vpop.f32.mrf.mxu1 }
 0x5b1   : > { %v1098_v8 = vpop.f32.mrf.mxu1 }
 0x5b3   : > { %v1365_v9 = vpop.f32.mrf.mxu1 }
 0x66a   : > { %v1046_v10 = vpop.f32.mrf.mxu0 }
 0x66b   : > { %v1096_v11 = vadd.f32 %v1095_v6, %v1046_v10 }
 0x66c   : > { %v1358_v12 = vpop.f32.mrf.mxu0 }
 0x66d   : > { %v1102_v13 = vcombine.high %v1096_v11, %v1096_v11  ;;  %v1104_v14 = vadd.f32 %v1096_v11, %v1509_v16 }
 0x66e   : > { %v1049_v15 = vpop.f32.mrf.mxu0 }
 0x66f   : > { %v1109_v18 = vsel %vm1108_vm6, %v1104_v14, 0.0  ;;  %v1105_v19 = vadd.f32 %v1102_v13, %v1511_v17 }
 0x670   : > { %1110 = vadd.xlane.f32.xlu1 %v1109_v18  ;;  %v1359_v20 = vpop.f32.mrf.mxu0 }
 0x671   : > { %v1112_v21 = vsel %vm1108_vm6, %v1105_v19, 0.0 }
 0x672   : > { %1113 = vadd.xlane.f32.xlu0 %v1112_v21 }
 0x6f9   : > { %v1111_v22 = vpop.xlane.xlu1 %1110 }
 0x6fa   : > { %v1116_v23 = vmul.f32 0.03125, %v1111_v22 }
 0x6fb   : > { %v1114_v25 = vpop.xlane.xlu0 %1113 }
 0x6fc   : > { %v1118_v27 = vsub.f32 %v1104_v14, %v1116_v23  ;;  %v1117_v28 = vmul.f32 0.03125, %v1114_v25 }
 0x6fe   : > { %v1119_v29 = vsub.f32 %v1105_v19, %v1117_v28  ;;  %v1120_v30 = vmul.f32 %v1118_v27, %v1118_v27 }
 0x700   : > { %v1122_v16 = vsel %vm1108_vm6, %v1120_v30, 0.0  ;;  %v1121_v31 = vmul.f32 %v1119_v29, %v1119_v29 }
 0x701   : > { %1123 = vadd.xlane.f32.xlu0 %v1122_v16 }
 0x702   : > { %v1125_v32 = vsel %vm1108_vm6, %v1121_v31, 0.0 }
 0x703   : > { %1126 = vadd.xlane.f32.xlu1 %v1125_v32 }
 0x78a   : > { %v1124_v17 = vpop.xlane.xlu0 %1123 }
 0x78b   : > { %v1128_v33 = vmul.f32 0.03125, %v1124_v17 }
 0x78c   : > { %v1127_v34 = vpop.xlane.xlu1 %1126 }
 0x78d   : > { %v1130_v35 = vadd.f32 1e-05, %v1128_v33  ;;  %v1129_v36 = vmul.f32 0.03125, %v1127_v34 }
 0x78f   : > { %1403 = vrsqrt.f32 %v1130_v35  ;;  %v1131_v37 = vadd.f32 1e-05, %v1129_v36 }
 0x791   : > { %1405 = vrsqrt.f32 %v1131_v37 }
 0x79c   : > { %v1404_v38 = vpop.eup %1403 }
 0x79d   : > { %v1134_v40 = vmul.f32 %v1404_v38, %v1118_v27 }
 0x79e   : > { %v1406_v41 = vpop.eup %1405 }
 0x79f   : > { %v1142_v43 = vmul.f32 %v1260_v39, %v1134_v40  ;;  %v1135_v44 = vmul.f32 %v1406_v41, %v1119_v29 }
 0x7a1   : > { %v1150_v45 = vadd.f32 %v1261_v42, %v1142_v43  ;;  %v1143_v46 = vmul.f32 %v1260_v39, %v1135_v44 }
 0x7a3   : > { %1152 = vst.msk [vmem:[%s386_s19] sm:$0xf] %vm1108_vm6, %v1150_v45  ;;  %v1151_v47 = vadd.f32 %v1261_v42, %v1143_v46 }
 0x7a5   : > { %1153 = vst.msk [vmem:[%s386_s19 + $0x4] sm:$0xf] %vm1108_vm6, %v1151_v47 }
 0x7a6 PF: > { %s17_s24 = sadd.s32 1, %s1413_s24  }
 0x7a7   : > { %p14_p7 = scmp.ge.s32.totalorder %s17_s24, 4  }
 0x7a9   :  { %16 = sbr.rel (!%p14_p7) target bundleno = 1 (0x1), region = 81 }

// kernel: _lambda_.25
= control target key start
LH: loop header
LB: loop body
LE: loop exit
PB: predicated region body
PF: predicated region fallthrough
CT: control target
= control target key end

     0   :  { %v135_v0 = vmov 0.0   ;;  %vm136_vm0 = vmmov 0   ;;  %vm56_vm1 = vcmask 523264   ;;  %vm100_vm2 = vcmask 130048   ;;  %s178_s1 = inlined_call_operand.vmem [shape: bf16[64,16], index: 1, kind: input, shape index: {}]   ;;  %s179_s0 = inlined_call_operand.vmem [shape: f32[8,64], index: 0, kind: input, shape index: {}]   ;;  %s180_s2 = inlined_call_operand.vmem [shape: f32[1,16], index: 2, kind: input, shape index: {}]   ;;  %s181_s3 = inlined_call_operand.vmem [shape: f32[8,16], index: 3, kind: output, shape index: {}]  }
   0x1   :  { %117 = vmatprep.subr.bf16.mxu0 %v135_v0  ;;  %v131_v1 = vld [vmem:[%s178_s1 + $0x18] sm:$0xff]   ;;  %125 = vmatprep.mubr.msk.bf16.mxu0 %vm136_vm0, %v135_v0  ;;  %v132_v2 = vld [vmem:[%s178_s1 + $0x10] sm:$0xff]   ;;  %v133_v3 = vld [vmem:[%s178_s1 + $0x8] sm:$0xff]  }
   0x2   :  { %118 = vmatpush3.bf16.msra.mxu0 %v131_v1  ;;  %v134_v4 = vld [vmem:[%s178_s1] sm:$0xff]  }
   0x3   :  { %119 = vmatprep.subr.bf16.mxu0 %v135_v0  ;;  %v15_v5 = vld [vmem:[%s179_s0] sm:$0xff] }
   0x4   :  { %v16_v6 = vpack.c.bf16 %v15_v5, %v15_v5  ;;  %v106_v7 = vld [vmem:[%s180_s2] ss:$0 sm:$0xff] }
   0x6   :  { %120 = vmatpush3.bf16.msra.mxu0 %v132_v2 }
   0x7   :  { %121 = vmatprep.subr.bf16.mxu0 %v135_v0 }
   0xa   :  { %122 = vmatpush3.bf16.msra.mxu0 %v133_v3 }
   0xb   :  { %123 = vmatprep.subr.bf16.mxu0 %v135_v0 }
   0xe   :  { %124 = vmatpush3.bf16.msra.mxu0 %v134_v4 }
  0x11   :  { %126 = vmatmul.mubr.msk.bf16.vlgmr.msra.gmra.mxu0 %vm56_vm1, %v16_v6 }
  0xd1   :  { %v94_v8 = vpop.f32.mrf.mxu0 }
  0xd2   :  { %v95_v9 = vadd.f32 %v106_v7, %v94_v8 }
  0xd3   :  { %v127_v10 = vpop.f32.mrf.mxu0 }
  0xd4   :  { %101 = vst.msk [vmem:[%s181_s3] sm:$0xff] %vm100_vm2, %v95_v9 }
  0xd5   :  { %v97_v11 = vpop.f32.mrf.mxu0 }
  0xd7   :  { %v128_v12 = vpop.f32.mrf.mxu0 }

</bundles_post_ra>
